<compile_context>
chip_gen: v7x
topology: tpu7x:2x2x1
jax: 0.10.0
libtpu: 0.0.40
codegen_flags: <defaults>
</compile_context>

<pallas_src>
import numpy as np
import jax
import jax.numpy as jnp
from jax.experimental import pallas as pl
from jax.experimental.pallas import tpu as pltpu

EMBED_SIZE = 128           # self.embed_size
HIDDEN_SIZE = 256          # self.hidden_size
SPARSITY_THRESHOLD = 0.01  # self.sparsity_threshold
LEAKY_SLOPE = 0.01         # nn.LeakyReLU default


def _rfft_mats(L):
    # X[k] = sum_n F[k, n] * x[n]   (torch.fft.rfft, norm='ortho')
    F = np.fft.rfft(np.eye(L), axis=0, norm="ortho")               # (L//2+1, L)
    return F.real.astype(np.float32), F.imag.astype(np.float32)


def _irfft_mats(L):
    # x[t] = sum_k IR[t,k]*Re(X[k]) + II[t,k]*Im(X[k])  (irfft, n=L, 'ortho')
    FL = L // 2 + 1
    IR = np.fft.irfft(np.eye(FL), n=L, axis=0, norm="ortho")         # (L, FL)
    II = np.fft.irfft(1j * np.eye(FL), n=L, axis=0, norm="ortho")    # (L, FL)
    return IR.astype(np.float32), II.astype(np.float32)


def _softshrink(v, lam=SPARSITY_THRESHOLD):
    return jnp.where(v > lam, v - lam, jnp.where(v < -lam, v + lam, 0.0))


def _single_tensorcore_chip():
    """True on 1-TensorCore chips (v5e / v6e): fold B into one grid step there."""
    try:
        kind = jax.devices()[0].device_kind.lower()
    except Exception:
        return False
    return any(tag in kind for tag in ("lite", "v5e", "v6e"))


def make_frets_forward(B, T, N, D, H, channel_independence,
                       fast_relayout=True, fold_batch=None):
    assert D % 128 == 0, "embed_size must stay a multiple of the 128-lane width"
    FN = N // 2 + 1
    FT = T // 2 + 1
    FTP = ((FT + 7) // 8) * 8            # frequency rows padded to 8 sublanes
    ND = N * D
    KF = 2 * FTP * D                     # fc contraction length after the fold

    if fold_batch is None:
        fold_batch = _single_tensorcore_chip()
    Bb = B if fold_batch else 1          # batch elements per grid step

    # ---- host DFT constants -------------------------------------------------
    crn, cin = _rfft_mats(N)             # (FN, N)  channel rfft
    irn, iin = _irfft_mats(N)            # (N, FN)  channel irfft
    crt, cit = _rfft_mats(T)             # (FT, T)  temporal rfft
    irt, iit = _irfft_mats(T)            # (T, FT)  temporal irfft

    cf_np = np.zeros((2 * FTP, T), np.float32)   # fused + padded temporal rfft
    cf_np[:FT] = crt
    cf_np[FTP:FTP + FT] = cit

    crn_j, cin_j = jnp.asarray(crn), jnp.asarray(cin)
    irn_j, iin_j = jnp.asarray(irn), jnp.asarray(iin)
    irt_j, iit_j = jnp.asarray(irt), jnp.asarray(iit)
    cf_j = jnp.asarray(cf_np)
    eye_d = jnp.eye(D, dtype=jnp.float32)

    # ---- kernel -------------------------------------------------------------
    def kernel(*refs):
        if channel_independence == 0:
            (x_ref, xt_ref, a_ref, ab_ref, minv_ref, cf_ref, fp2_ref,
             wri_ref, wb_ref, bfc_ref, o_ref) = refs
        else:
            (x_ref, xt_ref, e_ref, cf_ref, fp2_ref,
             wri_ref, wb_ref, bfc_ref, o_ref) = refs

        def stack_over_batch(ref):
            if Bb == 1:
                return ref[0]
            return jnp.concatenate([ref[b] for b in range(Bb)], axis=0)

        x2d = stack_over_batch(x_ref)          # (Bb*T, N)  rows = (b, t)
        xnt = stack_over_batch(xt_ref)         # (Bb*N, T)  rows = (b, n)

        # ---- frequency channel learner (folded into 2 matmuls) --------------
        if channel_independence == 0:
            pre = jnp.dot(x2d, a_ref[...],
                          preferred_element_type=jnp.float32) + ab_ref[...]
            o1 = _softshrink(jnp.maximum(pre, 0.0))          # (Bb*T, 2*FN*D)
            x1 = jnp.dot(o1, minv_ref[...],
                         preferred_element_type=jnp.float32)  # (Bb*T, N*D)
        else:
            # tokenEmb only: x1[(b,t), n*D+d] = x[b,t,n] * emb[d]
            x1 = jnp.dot(x2d, e_ref[...],
                         preferred_element_type=jnp.float32)

        dr2 = fp2_ref[0:1, :]
        di2 = fp2_ref[1:2, :]
        rb2 = fp2_ref[2:3, :]
        ib2 = fp2_ref[3:4, :]
        cf = cf_ref[...]

        def to_fc_rows(o2):
            # (2*FTP, N*D) -> (N, 2*FTP*D), column index m*D + d
            if fast_relayout:
                return (o2.reshape(2 * FTP, N, D)
                          .transpose(1, 0, 2)
                          .reshape(N, KF))
            rows = []
            for n in range(N):
                rows.append(jnp.concatenate(
                    [o2[m:m + 1, n * D:(n + 1) * D] for m in range(2 * FTP)],
                    axis=1))
            return jnp.concatenate(rows, axis=0)

        # ---- frequency temporal learner + fc --------------------------------
        blocks = []
        for b in range(Bb):                        # static, tiny loop
            x1b = x1[b * T:(b + 1) * T, :]                      # (T, N*D)
            # fused (real;imag) temporal rfft: one matmul, aligned sublane split
            tri = jnp.dot(cf, x1b, preferred_element_type=jnp.float32)
            tr = tri[:FTP, :]
            ti = tri[FTP:, :]
            o2r = _softshrink(jnp.maximum(tr * dr2 - ti * di2 + rb2, 0.0))
            o2i = _softshrink(jnp.maximum(ti * dr2 + tr * di2 + ib2, 0.0))
            o2 = jnp.concatenate([o2r, o2i], axis=0)            # (2*FTP, N*D)
            blocks.append(to_fc_rows(o2))                       # (N, 2*FTP*D)
        xfc = blocks[0] if Bb == 1 else jnp.concatenate(blocks, axis=0)

        # fc: temporal irfft folded into Wri, residual bias folded into Wb
        y = (jnp.dot(xfc, wri_ref[...], preferred_element_type=jnp.float32)
             + jnp.dot(xnt, wb_ref[...], preferred_element_type=jnp.float32)
             + bfc_ref[...])
        y = jnp.where(y > 0, y, LEAKY_SLOPE * y)                # LeakyReLU
        for b in range(Bb):
            o_ref[b] = y[b * N:(b + 1) * N, :].astype(o_ref.dtype)

    # ---- specs --------------------------------------------------------------
    def const2d(shape):
        return pl.BlockSpec(shape, lambda g: (0, 0))

    in_specs = [
        pl.BlockSpec((Bb, T, N), lambda g: (g, 0, 0)),   # x_enc (time-major)
        pl.BlockSpec((Bb, N, T), lambda g: (g, 0, 0)),   # x_enc pre-transposed
    ]
    if channel_independence == 0:
        in_specs += [
            const2d((N, 2 * FN * D)),     # A    (channel rfft*emb*diag fold)
            const2d((1, 2 * FN * D)),     # Ab   (channel FreMLP bias row)
            const2d((2 * FN * D, ND)),    # Minv (channel irfft fold)
        ]
    else:
        in_specs += [const2d((N, ND))]    # E    (block-diag emb)
    in_specs += [
        const2d((2 * FTP, T)),            # CF   (fused, padded temporal rfft)
        const2d((8, ND)),                 # fp2  (padded diag/bias rows)
        # TODO(synk): at production seq_len (>=336) K-tile Wri over its 2*FTP
        # axis ("arbitrary" grid dim + f32 accumulator) and/or store it in bf16
        # so it fits v7x's 64 MiB VMEM and the default scoped-VMEM limits.
        const2d((KF, H)),                 # Wri  (temporal irfft folded into fc)
        const2d((T, H)),                  # Wb   (tokenEmb bias folded into fc)
        const2d((1, H)),                  # bfc
    ]

    grid_spec = pltpu.PrefetchScalarGridSpec(
        num_scalar_prefetch=0,
        grid=(B // Bb,),
        in_specs=in_specs,
        out_specs=pl.BlockSpec((Bb, N, H), lambda g: (g, 0, 0)),
    )

    pc = pl.pallas_call(
        kernel,
        out_shape=jax.ShapeDtypeStruct((B, N, H), jnp.float32),
        grid_spec=grid_spec,
        compiler_params=pltpu.CompilerParams(
            dimension_semantics=("parallel",)),
    )

    def forward(x_enc, emb, dr1, di1, rb1, ib1, dr2, di2, rb2, ib2, wfc, bfc):
        # Lightweight parameter prep (host/XLA side).
        e = emb[0]                                            # (D,)
        x_t = jnp.transpose(x_enc, (0, 2, 1))                 # (B, N, T)

        wfc3 = wfc.reshape(T, D, H)
        wr = jnp.einsum('tk,tdh->kdh', irt_j, wfc3)           # (FT, D, H)
        wi = jnp.einsum('tk,tdh->kdh', iit_j, wfc3)
        wri = jnp.zeros((2 * FTP, D, H), jnp.float32)
        wri = wri.at[:FT].set(wr).at[FTP:FTP + FT].set(wi)
        wri = wri.reshape(KF, H)                              # (2*FTP*D, H)
        wb = jnp.einsum('d,tdh->th', e, wfc3)                 # (T, H)

        fp2 = jnp.concatenate(
            [jnp.stack([jnp.tile(dr2, N), jnp.tile(di2, N),
                        jnp.tile(rb2, N), jnp.tile(ib2, N)], axis=0),
             jnp.zeros((4, ND), jnp.float32)], axis=0)        # (8, N*D)

        if channel_independence == 0:
            edr1, edi1 = e * dr1, e * di1
            ar = (jnp.einsum('kn,d->nkd', crn_j, edr1)
                  - jnp.einsum('kn,d->nkd', cin_j, edi1))
            ai = (jnp.einsum('kn,d->nkd', cin_j, edr1)
                  + jnp.einsum('kn,d->nkd', crn_j, edi1))
            a = jnp.concatenate([ar, ai], axis=1).reshape(N, 2 * FN * D)
            ab = jnp.concatenate([jnp.tile(rb1, FN),
                                  jnp.tile(ib1, FN)]).reshape(1, 2 * FN * D)
            minv = jnp.concatenate([jnp.kron(irn_j.T, eye_d),
                                    jnp.kron(iin_j.T, eye_d)], axis=0)
            ins = (x_enc, x_t, a, ab, minv)
        else:
            e_mat = jnp.kron(jnp.eye(N, dtype=jnp.float32), emb)   # (N, N*D)
            ins = (x_enc, x_t, e_mat)

        fc_out = pc(*ins, cf_j, fp2, wri, wb, bfc.reshape(1, H))   # (B, N, H)
        # x = self.fc(...).permute(0, 2, 1) -> (B, H, N)
        return jnp.transpose(fc_out, (0, 2, 1))

    return jax.jit(forward)


def frets_reference(x_enc, emb, dr1, di1, rb1, ib1, dr2, di2, rb2, ib2,
                    wfc, bfc, channel_independence, seq_len, feature_size):
    """Pure-JAX reference mirroring the PyTorch forward (jnp.fft based)."""
    def fre_mlp(xc, dr, di, rb, ib):
        o_r = jax.nn.relu(xc.real * dr - xc.imag * di + rb)
        o_i = jax.nn.relu(xc.imag * dr + xc.real * di + ib)
        return _softshrink(o_r) + 1j * _softshrink(o_i)

    B, T, N = x_enc.shape
    x = jnp.transpose(x_enc, (0, 2, 1))[..., None] * emb          # (B, N, T, D)
    bias = x
    if channel_independence == 0:
        xc = jnp.transpose(x, (0, 2, 1, 3))                       # (B, T, N, D)
        f = jnp.fft.rfft(xc, axis=2, norm="ortho")
        y = fre_mlp(f, dr1, di1, rb1, ib1)
        xc = jnp.fft.irfft(y, n=feature_size, axis=2, norm="ortho")
        x = jnp.transpose(xc, (0, 2, 1, 3))
    f = jnp.fft.rfft(x, axis=2, norm="ortho")
    y = fre_mlp(f, dr2, di2, rb2, ib2)
    x = jnp.fft.irfft(y, n=seq_len, axis=2, norm="ortho")
    x = x + bias
    x = x.reshape(B, N, -1) @ wfc + bfc
    x = jnp.where(x > 0, x, LEAKY_SLOPE * x)
    return jnp.transpose(x, (0, 2, 1))


if __name__ == "__main__":
    B, T, N = 2, 8, 4          # batch, configs.seq_len, configs.enc_in
    D, H = EMBED_SIZE, HIDDEN_SIZE
    channel_independence = 0   # exercise both the channel and temporal learners

    key = jax.random.PRNGKey(0)
    ks = jax.random.split(key, 12)
    scale = 0.02
    x_enc = jax.random.normal(ks[0], (B, T, N), jnp.float32)
    emb = jax.random.normal(ks[1], (1, D), jnp.float32)
    r1 = scale * jax.random.normal(ks[2], (D, D), jnp.float32)
    i1 = scale * jax.random.normal(ks[3], (D, D), jnp.float32)
    rb1 = scale * jax.random.normal(ks[4], (D,), jnp.float32)
    ib1 = scale * jax.random.normal(ks[5], (D,), jnp.float32)
    r2 = scale * jax.random.normal(ks[6], (D, D), jnp.float32)
    i2 = scale * jax.random.normal(ks[7], (D, D), jnp.float32)
    rb2 = scale * jax.random.normal(ks[8], (D,), jnp.float32)
    ib2 = scale * jax.random.normal(ks[9], (D,), jnp.float32)
    bound = 1.0 / float(np.sqrt(T * D))
    wfc = jax.random.uniform(ks[10], (T * D, H), jnp.float32, -bound, bound)
    bfc = jax.random.uniform(ks[11], (1, H), jnp.float32, -bound, bound)

    # The torch einsum 'bijd,dd->bijd' only ever reads the diagonal of r/i.
    dr1, di1 = jnp.diagonal(r1), jnp.diagonal(i1)
    dr2, di2 = jnp.diagonal(r2), jnp.diagonal(i2)

    ref = frets_reference(x_enc, emb, dr1, di1, rb1, ib1, dr2, di2, rb2, ib2,
                          wfc, bfc, channel_independence, T, N)

    out, last_err = None, None
    # Try the compact reshape/transpose relayout first; fall back to the
    # slice/concat formulation if it fails to compile or verify on this chip.
    for fast in (True, False):
        try:
            forward = make_frets_forward(B, T, N, D, H, channel_independence,
                                         fast_relayout=fast)
            cand = jax.block_until_ready(
                forward(x_enc, emb, dr1, di1, rb1, ib1,
                        dr2, di2, rb2, ib2, wfc, bfc))        # (B, H, N)
            np.testing.assert_allclose(np.asarray(cand), np.asarray(ref),
                                       rtol=3e-3, atol=3e-3)
            out = cand
            break
        except Exception as err:            # noqa: BLE001 - fall back once
            last_err = err
    if out is None:
        raise last_err

    # TODO(synk): self.projection (OutputBlock) and its dropout are not defined
    # in the provided module source; the kernel output is the (B, hidden, N)
    # tensor that feeds that head.
    print("KERNEL_OK")
</pallas_src>

<mosaic_0001>
module attributes {stable_mosaic.version = 11 : i64} {
  func.func @kernel(%arg0: i32, %arg1: memref<1x8x4xf32, #tpu.memory_space<vmem>>, %arg2: memref<1x4x8xf32, #tpu.memory_space<vmem>>, %arg3: memref<4x768xf32, #tpu.memory_space<vmem>>, %arg4: memref<1x768xf32, #tpu.memory_space<vmem>>, %arg5: memref<768x512xf32, #tpu.memory_space<vmem>>, %arg6: memref<16x8xf32, #tpu.memory_space<vmem>>, %arg7: memref<8x512xf32, #tpu.memory_space<vmem>>, %arg8: memref<2048x256xf32, #tpu.memory_space<vmem>>, %arg9: memref<8x256xf32, #tpu.memory_space<vmem>>, %arg10: memref<1x256xf32, #tpu.memory_space<vmem>>, %arg11: memref<1x4x256xf32, #tpu.memory_space<vmem>>) attributes {dimension_semantics = [#tpu.dimension_semantics<parallel>], iteration_bounds = array<i64: 2>, scalar_prefetch = 0 : i64, scratch_operands = 0 : i64, tpu.core_type = #tpu.core_type<tc>, window_params = [{transform_indices = @transform_0, window_bounds = array<i64: 1, 8, 4>}, {transform_indices = @transform_1, window_bounds = array<i64: 1, 4, 8>}, {pipeline_mode = #tpu.pipeline_mode<synchronous>, transform_indices = @transform_2, window_bounds = array<i64: 4, 768>}, {pipeline_mode = #tpu.pipeline_mode<synchronous>, transform_indices = @transform_3, window_bounds = array<i64: 1, 768>}, {pipeline_mode = #tpu.pipeline_mode<synchronous>, transform_indices = @transform_4, window_bounds = array<i64: 768, 512>}, {pipeline_mode = #tpu.pipeline_mode<synchronous>, transform_indices = @transform_5, window_bounds = array<i64: 16, 8>}, {pipeline_mode = #tpu.pipeline_mode<synchronous>, transform_indices = @transform_6, window_bounds = array<i64: 8, 512>}, {pipeline_mode = #tpu.pipeline_mode<synchronous>, transform_indices = @transform_7, window_bounds = array<i64: 2048, 256>}, {pipeline_mode = #tpu.pipeline_mode<synchronous>, transform_indices = @transform_8, window_bounds = array<i64: 8, 256>}, {pipeline_mode = #tpu.pipeline_mode<synchronous>, transform_indices = @transform_9, window_bounds = array<i64: 1, 256>}, {transform_indices = @transform_10, window_bounds = array<i64: 1, 4, 256>}]} {
    %c0 = arith.constant 0 : index
    %c0_0 = arith.constant 0 : index
    %c0_1 = arith.constant 0 : index
    %0 = vector.load %arg1[%c0, %c0_0, %c0_1] : memref<1x8x4xf32, #tpu.memory_space<vmem>>, vector<1x8x4xf32>
    %1 = vector.shape_cast %0 : vector<1x8x4xf32> to vector<8x4xf32>
    %c0_2 = arith.constant 0 : index
    %c0_3 = arith.constant 0 : index
    %c0_4 = arith.constant 0 : index
    %2 = vector.load %arg2[%c0_2, %c0_3, %c0_4] : memref<1x4x8xf32, #tpu.memory_space<vmem>>, vector<1x4x8xf32>
    %3 = vector.shape_cast %2 : vector<1x4x8xf32> to vector<4x8xf32>
    %c0_5 = arith.constant 0 : index
    %c0_6 = arith.constant 0 : index
    %4 = vector.load %arg3[%c0_5, %c0_6] : memref<4x768xf32, #tpu.memory_space<vmem>>, vector<4x768xf32>
    %cst = arith.constant dense<0.000000e+00> : vector<8x768xf32>
    %5 = tpu.matmul %1, %4, %cst {dimension_numbers = #tpu.dot_dimension_numbers<[1], [0], [0], [1], [0, 0, 1, 1], [], []>} : vector<8x4xf32>, vector<4x768xf32>, vector<8x768xf32> -> vector<8x768xf32>
    %c0_7 = arith.constant 0 : index
    %c0_8 = arith.constant 0 : index
    %6 = vector.load %arg4[%c0_7, %c0_8] : memref<1x768xf32, #tpu.memory_space<vmem>>, vector<1x768xf32>
    %7 = vector.broadcast %6 : vector<1x768xf32> to vector<8x768xf32>
    %8 = arith.addf %5, %7 : vector<8x768xf32>
    %cst_9 = arith.constant 0.000000e+00 : f32
    %9 = vector.broadcast %cst_9 : f32 to vector<8x768xf32>
    %10 = arith.maximumf %8, %9 : vector<8x768xf32>
    %cst_10 = arith.constant 0.00999999977 : f32
    %11 = vector.broadcast %cst_10 : f32 to vector<8x768xf32>
    %12 = arith.cmpf ogt, %10, %11 : vector<8x768xf32>
    %cst_11 = arith.constant 0.00999999977 : f32
    %13 = vector.broadcast %cst_11 : f32 to vector<8x768xf32>
    %14 = arith.subf %10, %13 : vector<8x768xf32>
    %cst_12 = arith.constant -0.00999999977 : f32
    %15 = vector.broadcast %cst_12 : f32 to vector<8x768xf32>
    %16 = arith.cmpf olt, %10, %15 : vector<8x768xf32>
    %cst_13 = arith.constant 0.00999999977 : f32
    %17 = vector.broadcast %cst_13 : f32 to vector<8x768xf32>
    %18 = arith.addf %10, %17 : vector<8x768xf32>
    %cst_14 = arith.constant 0.000000e+00 : f32
    %19 = vector.broadcast %cst_14 : f32 to vector<8x768xf32>
    %20 = arith.select %16, %18, %19 : vector<8x768xi1>, vector<8x768xf32>
    %21 = arith.select %12, %14, %20 : vector<8x768xi1>, vector<8x768xf32>
    %c0_15 = arith.constant 0 : index
    %c0_16 = arith.constant 0 : index
    %22 = vector.load %arg5[%c0_15, %c0_16] : memref<768x512xf32, #tpu.memory_space<vmem>>, vector<768x512xf32>
    %cst_17 = arith.constant dense<0.000000e+00> : vector<8x512xf32>
    %23 = tpu.matmul %21, %22, %cst_17 {dimension_numbers = #tpu.dot_dimension_numbers<[1], [0], [0], [1], [0, 0, 1, 1], [], []>} : vector<8x768xf32>, vector<768x512xf32>, vector<8x512xf32> -> vector<8x512xf32>
    %c0_18 = arith.constant 0 : index
    %c0_19 = arith.constant 0 : index
    %24 = vector.load %arg7[%c0_18, %c0_19] : memref<8x512xf32, #tpu.memory_space<vmem>>, vector<1x512xf32>
    %c1 = arith.constant 1 : index
    %c0_20 = arith.constant 0 : index
    %25 = vector.load %arg7[%c1, %c0_20] : memref<8x512xf32, #tpu.memory_space<vmem>>, vector<1x512xf32>
    %c2 = arith.constant 2 : index
    %c0_21 = arith.constant 0 : index
    %26 = vector.load %arg7[%c2, %c0_21] : memref<8x512xf32, #tpu.memory_space<vmem>>, vector<1x512xf32>
    %c3 = arith.constant 3 : index
    %c0_22 = arith.constant 0 : index
    %27 = vector.load %arg7[%c3, %c0_22] : memref<8x512xf32, #tpu.memory_space<vmem>>, vector<1x512xf32>
    %c0_23 = arith.constant 0 : index
    %c0_24 = arith.constant 0 : index
    %28 = vector.load %arg6[%c0_23, %c0_24] : memref<16x8xf32, #tpu.memory_space<vmem>>, vector<16x8xf32>
    %cst_25 = arith.constant dense<0.000000e+00> : vector<16x512xf32>
    %29 = tpu.matmul %28, %23, %cst_25 {dimension_numbers = #tpu.dot_dimension_numbers<[1], [0], [0], [1], [0, 0, 1, 1], [], []>} : vector<16x8xf32>, vector<8x512xf32>, vector<16x512xf32> -> vector<16x512xf32>
    %30 = vector.extract_strided_slice %29 {offsets = [0, 0], sizes = [8, 512], strides = [1, 1]} : vector<16x512xf32> to vector<8x512xf32>
    %31 = vector.extract_strided_slice %29 {offsets = [8, 0], sizes = [8, 512], strides = [1, 1]} : vector<16x512xf32> to vector<8x512xf32>
    %32 = vector.broadcast %24 : vector<1x512xf32> to vector<8x512xf32>
    %33 = arith.mulf %30, %32 : vector<8x512xf32>
    %34 = vector.broadcast %25 : vector<1x512xf32> to vector<8x512xf32>
    %35 = arith.mulf %31, %34 : vector<8x512xf32>
    %36 = arith.subf %33, %35 : vector<8x512xf32>
    %37 = vector.broadcast %26 : vector<1x512xf32> to vector<8x512xf32>
    %38 = arith.addf %36, %37 : vector<8x512xf32>
    %cst_26 = arith.constant 0.000000e+00 : f32
    %39 = vector.broadcast %cst_26 : f32 to vector<8x512xf32>
    %40 = arith.maximumf %38, %39 : vector<8x512xf32>
    %cst_27 = arith.constant 0.00999999977 : f32
    %41 = vector.broadcast %cst_27 : f32 to vector<8x512xf32>
    %42 = arith.cmpf ogt, %40, %41 : vector<8x512xf32>
    %cst_28 = arith.constant 0.00999999977 : f32
    %43 = vector.broadcast %cst_28 : f32 to vector<8x512xf32>
    %44 = arith.subf %40, %43 : vector<8x512xf32>
    %cst_29 = arith.constant -0.00999999977 : f32
    %45 = vector.broadcast %cst_29 : f32 to vector<8x512xf32>
    %46 = arith.cmpf olt, %40, %45 : vector<8x512xf32>
    %cst_30 = arith.constant 0.00999999977 : f32
    %47 = vector.broadcast %cst_30 : f32 to vector<8x512xf32>
    %48 = arith.addf %40, %47 : vector<8x512xf32>
    %cst_31 = arith.constant 0.000000e+00 : f32
    %49 = vector.broadcast %cst_31 : f32 to vector<8x512xf32>
    %50 = arith.select %46, %48, %49 : vector<8x512xi1>, vector<8x512xf32>
    %51 = arith.select %42, %44, %50 : vector<8x512xi1>, vector<8x512xf32>
    %52 = vector.broadcast %24 : vector<1x512xf32> to vector<8x512xf32>
    %53 = arith.mulf %31, %52 : vector<8x512xf32>
    %54 = vector.broadcast %25 : vector<1x512xf32> to vector<8x512xf32>
    %55 = arith.mulf %30, %54 : vector<8x512xf32>
    %56 = arith.addf %53, %55 : vector<8x512xf32>
    %57 = vector.broadcast %27 : vector<1x512xf32> to vector<8x512xf32>
    %58 = arith.addf %56, %57 : vector<8x512xf32>
    %cst_32 = arith.constant 0.000000e+00 : f32
    %59 = vector.broadcast %cst_32 : f32 to vector<8x512xf32>
    %60 = arith.maximumf %58, %59 : vector<8x512xf32>
    %cst_33 = arith.constant 0.00999999977 : f32
    %61 = vector.broadcast %cst_33 : f32 to vector<8x512xf32>
    %62 = arith.cmpf ogt, %60, %61 : vector<8x512xf32>
    %cst_34 = arith.constant 0.00999999977 : f32
    %63 = vector.broadcast %cst_34 : f32 to vector<8x512xf32>
    %64 = arith.subf %60, %63 : vector<8x512xf32>
    %cst_35 = arith.constant -0.00999999977 : f32
    %65 = vector.broadcast %cst_35 : f32 to vector<8x512xf32>
    %66 = arith.cmpf olt, %60, %65 : vector<8x512xf32>
    %cst_36 = arith.constant 0.00999999977 : f32
    %67 = vector.broadcast %cst_36 : f32 to vector<8x512xf32>
    %68 = arith.addf %60, %67 : vector<8x512xf32>
    %cst_37 = arith.constant 0.000000e+00 : f32
    %69 = vector.broadcast %cst_37 : f32 to vector<8x512xf32>
    %70 = arith.select %66, %68, %69 : vector<8x512xi1>, vector<8x512xf32>
    %71 = arith.select %62, %64, %70 : vector<8x512xi1>, vector<8x512xf32>
    %72 = tpu.concatenate %51, %71 in 0 : vector<8x512xf32>, vector<8x512xf32> -> vector<16x512xf32>
    %73 = vector.shape_cast %72 : vector<16x512xf32> to vector<16x4x128xf32>
    %74 = tpu.transpose %73, [1, 0, 2] : vector<16x4x128xf32> -> vector<4x16x128xf32>
    %75 = vector.shape_cast %74 : vector<4x16x128xf32> to vector<4x2048xf32>
    %c0_38 = arith.constant 0 : index
    %c0_39 = arith.constant 0 : index
    %76 = vector.load %arg8[%c0_38, %c0_39] : memref<2048x256xf32, #tpu.memory_space<vmem>>, vector<2048x256xf32>
    %cst_40 = arith.constant dense<0.000000e+00> : vector<4x256xf32>
    %77 = tpu.matmul %75, %76, %cst_40 {dimension_numbers = #tpu.dot_dimension_numbers<[1], [0], [0], [1], [0, 0, 1, 1], [], []>} : vector<4x2048xf32>, vector<2048x256xf32>, vector<4x256xf32> -> vector<4x256xf32>
    %c0_41 = arith.constant 0 : index
    %c0_42 = arith.constant 0 : index
    %78 = vector.load %arg9[%c0_41, %c0_42] : memref<8x256xf32, #tpu.memory_space<vmem>>, vector<8x256xf32>
    %cst_43 = arith.constant dense<0.000000e+00> : vector<4x256xf32>
    %79 = tpu.matmul %3, %78, %cst_43 {dimension_numbers = #tpu.dot_dimension_numbers<[1], [0], [0], [1], [0, 0, 1, 1], [], []>} : vector<4x8xf32>, vector<8x256xf32>, vector<4x256xf32> -> vector<4x256xf32>
    %80 = arith.addf %77, %79 : vector<4x256xf32>
    %c0_44 = arith.constant 0 : index
    %c0_45 = arith.constant 0 : index
    %81 = vector.load %arg10[%c0_44, %c0_45] : memref<1x256xf32, #tpu.memory_space<vmem>>, vector<1x256xf32>
    %82 = vector.broadcast %81 : vector<1x256xf32> to vector<4x256xf32>
    %83 = arith.addf %80, %82 : vector<4x256xf32>
    %cst_46 = arith.constant 0.000000e+00 : f32
    %84 = vector.broadcast %cst_46 : f32 to vector<4x256xf32>
    %85 = arith.cmpf ogt, %83, %84 : vector<4x256xf32>
    %cst_47 = arith.constant 0.00999999977 : f32
    %86 = vector.broadcast %cst_47 : f32 to vector<4x256xf32>
    %87 = arith.mulf %86, %83 : vector<4x256xf32>
    %88 = arith.select %85, %83, %87 : vector<4x256xi1>, vector<4x256xf32>
    %c0_48 = arith.constant 0 : index
    %c0_49 = arith.constant 0 : index
    %c0_50 = arith.constant 0 : index
    %89 = vector.load %arg11[%c0_48, %c0_49, %c0_50] : memref<1x4x256xf32, #tpu.memory_space<vmem>>, vector<1x4x256xf32>
    %90 = vector.shape_cast %89 : vector<1x4x256xf32> to vector<4x256xf32>
    %91 = vector.shape_cast %88 : vector<4x256xf32> to vector<1x4x256xf32>
    tpu.vector_store %arg11[%c0_48, %c0_49, %c0_50], %91 {strides = array<i32>} : memref<1x4x256xf32, #tpu.memory_space<vmem>>, vector<1x4x256xf32>,
    return
  }
  func.func @transform_0(%arg0: i32) -> (i32, i32, i32) {
    %c0_i32 = arith.constant 0 : i32
    %c0_i32_0 = arith.constant 0 : i32
    %c0_i32_1 = arith.constant 0 : i32
    return %arg0, %c0_i32, %c0_i32_0 : i32, i32, i32
  }
  func.func @transform_1(%arg0: i32) -> (i32, i32, i32) {
    %c0_i32 = arith.constant 0 : i32
    %c0_i32_0 = arith.constant 0 : i32
    %c0_i32_1 = arith.constant 0 : i32
    return %arg0, %c0_i32, %c0_i32_0 : i32, i32, i32
  }
  func.func @transform_2(%arg0: i32) -> (i32, i32) {
    %c0_i32 = arith.constant 0 : i32
    %c0_i32_0 = arith.constant 0 : i32
    %c0_i32_1 = arith.constant 0 : i32
    return %c0_i32, %c0_i32_0 : i32, i32
  }
  func.func @transform_3(%arg0: i32) -> (i32, i32) {
    %c0_i32 = arith.constant 0 : i32
    %c0_i32_0 = arith.constant 0 : i32
    %c0_i32_1 = arith.constant 0 : i32
    return %c0_i32, %c0_i32_0 : i32, i32
  }
  func.func @transform_4(%arg0: i32) -> (i32, i32) {
    %c0_i32 = arith.constant 0 : i32
    %c0_i32_0 = arith.constant 0 : i32
    %c0_i32_1 = arith.constant 0 : i32
    return %c0_i32, %c0_i32_0 : i32, i32
  }
  func.func @transform_5(%arg0: i32) -> (i32, i32) {
    %c0_i32 = arith.constant 0 : i32
    %c0_i32_0 = arith.constant 0 : i32
    %c0_i32_1 = arith.constant 0 : i32
    return %c0_i32, %c0_i32_0 : i32, i32
  }
  func.func @transform_6(%arg0: i32) -> (i32, i32) {
    %c0_i32 = arith.constant 0 : i32
    %c0_i32_0 = arith.constant 0 : i32
    %c0_i32_1 = arith.constant 0 : i32
    return %c0_i32, %c0_i32_0 : i32, i32
  }
  func.func @transform_7(%arg0: i32) -> (i32, i32) {
    %c0_i32 = arith.constant 0 : i32
    %c0_i32_0 = arith.constant 0 : i32
    %c0_i32_1 = arith.constant 0 : i32
    return %c0_i32, %c0_i32_0 : i32, i32
  }
  func.func @transform_8(%arg0: i32) -> (i32, i32) {
    %c0_i32 = arith.constant 0 : i32
    %c0_i32_0 = arith.constant 0 : i32
    %c0_i32_1 = arith.constant 0 : i32
    return %c0_i32, %c0_i32_0 : i32, i32
  }
  func.func @transform_9(%arg0: i32) -> (i32, i32) {
    %c0_i32 = arith.constant 0 : i32
    %c0_i32_0 = arith.constant 0 : i32
    %c0_i32_1 = arith.constant 0 : i32
    return %c0_i32, %c0_i32_0 : i32, i32
  }
  func.func @transform_10(%arg0: i32) -> (i32, i32, i32) {
    %c0_i32 = arith.constant 0 : i32
    %c0_i32_0 = arith.constant 0 : i32
    %c0_i32_1 = arith.constant 0 : i32
    return %arg0, %c0_i32, %c0_i32_0 : i32, i32, i32
  }
}

module attributes {stable_mosaic.version = 11 : i64} {
  func.func @kernel(%arg0: i32, %arg1: memref<1x8x4xf32, #tpu.memory_space<vmem>>, %arg2: memref<1x4x8xf32, #tpu.memory_space<vmem>>, %arg3: memref<4x768xf32, #tpu.memory_space<vmem>>, %arg4: memref<1x768xf32, #tpu.memory_space<vmem>>, %arg5: memref<768x512xf32, #tpu.memory_space<vmem>>, %arg6: memref<16x8xf32, #tpu.memory_space<vmem>>, %arg7: memref<8x512xf32, #tpu.memory_space<vmem>>, %arg8: memref<2048x256xf32, #tpu.memory_space<vmem>>, %arg9: memref<8x256xf32, #tpu.memory_space<vmem>>, %arg10: memref<1x256xf32, #tpu.memory_space<vmem>>, %arg11: memref<1x4x256xf32, #tpu.memory_space<vmem>>) attributes {dimension_semantics = [#tpu.dimension_semantics<parallel>], iteration_bounds = array<i64: 2>, scalar_prefetch = 0 : i64, scratch_operands = 0 : i64, tpu.core_type = #tpu.core_type<tc>, window_params = [{transform_indices = @transform_0, window_bounds = array<i64: 1, 8, 4>}, {transform_indices = @transform_1, window_bounds = array<i64: 1, 4, 8>}, {pipeline_mode = #tpu.pipeline_mode<synchronous>, transform_indices = @transform_2, window_bounds = array<i64: 4, 768>}, {pipeline_mode = #tpu.pipeline_mode<synchronous>, transform_indices = @transform_3, window_bounds = array<i64: 1, 768>}, {pipeline_mode = #tpu.pipeline_mode<synchronous>, transform_indices = @transform_4, window_bounds = array<i64: 768, 512>}, {pipeline_mode = #tpu.pipeline_mode<synchronous>, transform_indices = @transform_5, window_bounds = array<i64: 16, 8>}, {pipeline_mode = #tpu.pipeline_mode<synchronous>, transform_indices = @transform_6, window_bounds = array<i64: 8, 512>}, {pipeline_mode = #tpu.pipeline_mode<synchronous>, transform_indices = @transform_7, window_bounds = array<i64: 2048, 256>}, {pipeline_mode = #tpu.pipeline_mode<synchronous>, transform_indices = @transform_8, window_bounds = array<i64: 8, 256>}, {pipeline_mode = #tpu.pipeline_mode<synchronous>, transform_indices = @transform_9, window_bounds = array<i64: 1, 256>}, {transform_indices = @transform_10, window_bounds = array<i64: 1, 4, 256>}]} {
    %c0 = arith.constant 0 : index
    %c0_0 = arith.constant 0 : index
    %c0_1 = arith.constant 0 : index
    %0 = vector.load %arg1[%c0, %c0_0, %c0_1] : memref<1x8x4xf32, #tpu.memory_space<vmem>>, vector<1x8x4xf32>
    %1 = vector.shape_cast %0 : vector<1x8x4xf32> to vector<8x4xf32>
    %c0_2 = arith.constant 0 : index
    %c0_3 = arith.constant 0 : index
    %c0_4 = arith.constant 0 : index
    %2 = vector.load %arg2[%c0_2, %c0_3, %c0_4] : memref<1x4x8xf32, #tpu.memory_space<vmem>>, vector<1x4x8xf32>
    %3 = vector.shape_cast %2 : vector<1x4x8xf32> to vector<4x8xf32>
    %c0_5 = arith.constant 0 : index
    %c0_6 = arith.constant 0 : index
    %4 = vector.load %arg3[%c0_5, %c0_6] : memref<4x768xf32, #tpu.memory_space<vmem>>, vector<4x768xf32>
    %cst = arith.constant dense<0.000000e+00> : vector<8x768xf32>
    %5 = tpu.matmul %1, %4, %cst {dimension_numbers = #tpu.dot_dimension_numbers<[1], [0], [0], [1], [0, 0, 1, 1], [], []>} : vector<8x4xf32>, vector<4x768xf32>, vector<8x768xf32> -> vector<8x768xf32>
    %c0_7 = arith.constant 0 : index
    %c0_8 = arith.constant 0 : index
    %6 = vector.load %arg4[%c0_7, %c0_8] : memref<1x768xf32, #tpu.memory_space<vmem>>, vector<1x768xf32>
    %7 = vector.broadcast %6 : vector<1x768xf32> to vector<8x768xf32>
    %8 = arith.addf %5, %7 : vector<8x768xf32>
    %cst_9 = arith.constant 0.000000e+00 : f32
    %9 = vector.broadcast %cst_9 : f32 to vector<8x768xf32>
    %10 = arith.maximumf %8, %9 : vector<8x768xf32>
    %cst_10 = arith.constant 0.00999999977 : f32
    %11 = vector.broadcast %cst_10 : f32 to vector<8x768xf32>
    %12 = arith.cmpf ogt, %10, %11 : vector<8x768xf32>
    %cst_11 = arith.constant 0.00999999977 : f32
    %13 = vector.broadcast %cst_11 : f32 to vector<8x768xf32>
    %14 = arith.subf %10, %13 : vector<8x768xf32>
    %cst_12 = arith.constant -0.00999999977 : f32
    %15 = vector.broadcast %cst_12 : f32 to vector<8x768xf32>
    %16 = arith.cmpf olt, %10, %15 : vector<8x768xf32>
    %cst_13 = arith.constant 0.00999999977 : f32
    %17 = vector.broadcast %cst_13 : f32 to vector<8x768xf32>
    %18 = arith.addf %10, %17 : vector<8x768xf32>
    %cst_14 = arith.constant 0.000000e+00 : f32
    %19 = vector.broadcast %cst_14 : f32 to vector<8x768xf32>
    %20 = arith.select %16, %18, %19 : vector<8x768xi1>, vector<8x768xf32>
    %21 = arith.select %12, %14, %20 : vector<8x768xi1>, vector<8x768xf32>
    %c0_15 = arith.constant 0 : index
    %c0_16 = arith.constant 0 : index
    %22 = vector.load %arg5[%c0_15, %c0_16] : memref<768x512xf32, #tpu.memory_space<vmem>>, vector<768x512xf32>
    %cst_17 = arith.constant dense<0.000000e+00> : vector<8x512xf32>
    %23 = tpu.matmul %21, %22, %cst_17 {dimension_numbers = #tpu.dot_dimension_numbers<[1], [0], [0], [1], [0, 0, 1, 1], [], []>} : vector<8x768xf32>, vector<768x512xf32>, vector<8x512xf32> -> vector<8x512xf32>
    %c0_18 = arith.constant 0 : index
    %c0_19 = arith.constant 0 : index
    %24 = vector.load %arg7[%c0_18, %c0_19] : memref<8x512xf32, #tpu.memory_space<vmem>>, vector<1x512xf32>
    %c1 = arith.constant 1 : index
    %c0_20 = arith.constant 0 : index
    %25 = vector.load %arg7[%c1, %c0_20] : memref<8x512xf32, #tpu.memory_space<vmem>>, vector<1x512xf32>
    %c2 = arith.constant 2 : index
    %c0_21 = arith.constant 0 : index
    %26 = vector.load %arg7[%c2, %c0_21] : memref<8x512xf32, #tpu.memory_space<vmem>>, vector<1x512xf32>
    %c3 = arith.constant 3 : index
    %c0_22 = arith.constant 0 : index
    %27 = vector.load %arg7[%c3, %c0_22] : memref<8x512xf32, #tpu.memory_space<vmem>>, vector<1x512xf32>
    %c0_23 = arith.constant 0 : index
    %c0_24 = arith.constant 0 : index
    %28 = vector.load %arg6[%c0_23, %c0_24] : memref<16x8xf32, #tpu.memory_space<vmem>>, vector<16x8xf32>
    %cst_25 = arith.constant dense<0.000000e+00> : vector<16x512xf32>
    %29 = tpu.matmul %28, %23, %cst_25 {dimension_numbers = #tpu.dot_dimension_numbers<[1], [0], [0], [1], [0, 0, 1, 1], [], []>} : vector<16x8xf32>, vector<8x512xf32>, vector<16x512xf32> -> vector<16x512xf32>
    %30 = vector.extract_strided_slice %29 {offsets = [0, 0], sizes = [8, 512], strides = [1, 1]} : vector<16x512xf32> to vector<8x512xf32>
    %31 = vector.extract_strided_slice %29 {offsets = [8, 0], sizes = [8, 512], strides = [1, 1]} : vector<16x512xf32> to vector<8x512xf32>
    %32 = vector.broadcast %24 : vector<1x512xf32> to vector<8x512xf32>
    %33 = arith.mulf %30, %32 : vector<8x512xf32>
    %34 = vector.broadcast %25 : vector<1x512xf32> to vector<8x512xf32>
    %35 = arith.mulf %31, %34 : vector<8x512xf32>
    %36 = arith.subf %33, %35 : vector<8x512xf32>
    %37 = vector.broadcast %26 : vector<1x512xf32> to vector<8x512xf32>
    %38 = arith.addf %36, %37 : vector<8x512xf32>
    %cst_26 = arith.constant 0.000000e+00 : f32
    %39 = vector.broadcast %cst_26 : f32 to vector<8x512xf32>
    %40 = arith.maximumf %38, %39 : vector<8x512xf32>
    %cst_27 = arith.constant 0.00999999977 : f32
    %41 = vector.broadcast %cst_27 : f32 to vector<8x512xf32>
    %42 = arith.cmpf ogt, %40, %41 : vector<8x512xf32>
    %cst_28 = arith.constant 0.00999999977 : f32
    %43 = vector.broadcast %cst_28 : f32 to vector<8x512xf32>
    %44 = arith.subf %40, %43 : vector<8x512xf32>
    %cst_29 = arith.constant -0.00999999977 : f32
    %45 = vector.broadcast %cst_29 : f32 to vector<8x512xf32>
    %46 = arith.cmpf olt, %40, %45 : vector<8x512xf32>
    %cst_30 = arith.constant 0.00999999977 : f32
    %47 = vector.broadcast %cst_30 : f32 to vector<8x512xf32>
    %48 = arith.addf %40, %47 : vector<8x512xf32>
    %cst_31 = arith.constant 0.000000e+00 : f32
    %49 = vector.broadcast %cst_31 : f32 to vector<8x512xf32>
    %50 = arith.select %46, %48, %49 : vector<8x512xi1>, vector<8x512xf32>
    %51 = arith.select %42, %44, %50 : vector<8x512xi1>, vector<8x512xf32>
    %52 = vector.broadcast %24 : vector<1x512xf32> to vector<8x512xf32>
    %53 = arith.mulf %31, %52 : vector<8x512xf32>
    %54 = vector.broadcast %25 : vector<1x512xf32> to vector<8x512xf32>
    %55 = arith.mulf %30, %54 : vector<8x512xf32>
    %56 = arith.addf %53, %55 : vector<8x512xf32>
    %57 = vector.broadcast %27 : vector<1x512xf32> to vector<8x512xf32>
    %58 = arith.addf %56, %57 : vector<8x512xf32>
    %cst_32 = arith.constant 0.000000e+00 : f32
    %59 = vector.broadcast %cst_32 : f32 to vector<8x512xf32>
    %60 = arith.maximumf %58, %59 : vector<8x512xf32>
    %cst_33 = arith.constant 0.00999999977 : f32
    %61 = vector.broadcast %cst_33 : f32 to vector<8x512xf32>
    %62 = arith.cmpf ogt, %60, %61 : vector<8x512xf32>
    %cst_34 = arith.constant 0.00999999977 : f32
    %63 = vector.broadcast %cst_34 : f32 to vector<8x512xf32>
    %64 = arith.subf %60, %63 : vector<8x512xf32>
    %cst_35 = arith.constant -0.00999999977 : f32
    %65 = vector.broadcast %cst_35 : f32 to vector<8x512xf32>
    %66 = arith.cmpf olt, %60, %65 : vector<8x512xf32>
    %cst_36 = arith.constant 0.00999999977 : f32
    %67 = vector.broadcast %cst_36 : f32 to vector<8x512xf32>
    %68 = arith.addf %60, %67 : vector<8x512xf32>
    %cst_37 = arith.constant 0.000000e+00 : f32
    %69 = vector.broadcast %cst_37 : f32 to vector<8x512xf32>
    %70 = arith.select %66, %68, %69 : vector<8x512xi1>, vector<8x512xf32>
    %71 = arith.select %62, %64, %70 : vector<8x512xi1>, vector<8x512xf32>
    %72 = tpu.concatenate %51, %71 in 0 : vector<8x512xf32>, vector<8x512xf32> -> vector<16x512xf32>
    %73 = vector.extract_strided_slice %72 {offsets = [0, 0], sizes = [1, 128], strides = [1, 1]} : vector<16x512xf32> to vector<1x128xf32>
    %74 = vector.extract_strided_slice %72 {offsets = [1, 0], sizes = [1, 128], strides = [1, 1]} : vector<16x512xf32> to vector<1x128xf32>
    %75 = vector.extract_strided_slice %72 {offsets = [2, 0], sizes = [1, 128], strides = [1, 1]} : vector<16x512xf32> to vector<1x128xf32>
    %76 = vector.extract_strided_slice %72 {offsets = [3, 0], sizes = [1, 128], strides = [1, 1]} : vector<16x512xf32> to vector<1x128xf32>
    %77 = vector.extract_strided_slice %72 {offsets = [4, 0], sizes = [1, 128], strides = [1, 1]} : vector<16x512xf32> to vector<1x128xf32>
    %78 = vector.extract_strided_slice %72 {offsets = [5, 0], sizes = [1, 128], strides = [1, 1]} : vector<16x512xf32> to vector<1x128xf32>
    %79 = vector.extract_strided_slice %72 {offsets = [6, 0], sizes = [1, 128], strides = [1, 1]} : vector<16x512xf32> to vector<1x128xf32>
    %80 = vector.extract_strided_slice %72 {offsets = [7, 0], sizes = [1, 128], strides = [1, 1]} : vector<16x512xf32> to vector<1x128xf32>
    %81 = vector.extract_strided_slice %72 {offsets = [8, 0], sizes = [1, 128], strides = [1, 1]} : vector<16x512xf32> to vector<1x128xf32>
    %82 = vector.extract_strided_slice %72 {offsets = [9, 0], sizes = [1, 128], strides = [1, 1]} : vector<16x512xf32> to vector<1x128xf32>
    %83 = vector.extract_strided_slice %72 {offsets = [10, 0], sizes = [1, 128], strides = [1, 1]} : vector<16x512xf32> to vector<1x128xf32>
    %84 = vector.extract_strided_slice %72 {offsets = [11, 0], sizes = [1, 128], strides = [1, 1]} : vector<16x512xf32> to vector<1x128xf32>
    %85 = vector.extract_strided_slice %72 {offsets = [12, 0], sizes = [1, 128], strides = [1, 1]} : vector<16x512xf32> to vector<1x128xf32>
    %86 = vector.extract_strided_slice %72 {offsets = [13, 0], sizes = [1, 128], strides = [1, 1]} : vector<16x512xf32> to vector<1x128xf32>
    %87 = vector.extract_strided_slice %72 {offsets = [14, 0], sizes = [1, 128], strides = [1, 1]} : vector<16x512xf32> to vector<1x128xf32>
    %88 = vector.extract_strided_slice %72 {offsets = [15, 0], sizes = [1, 128], strides = [1, 1]} : vector<16x512xf32> to vector<1x128xf32>
    %89 = tpu.concatenate %73, %74, %75, %76, %77, %78, %79, %80, %81, %82, %83, %84, %85, %86, %87, %88 in 1 : vector<1x128xf32>, vector<1x128xf32>, vector<1x128xf32>, vector<1x128xf32>, vector<1x128xf32>, vector<1x128xf32>, vector<1x128xf32>, vector<1x128xf32>, vector<1x128xf32>, vector<1x128xf32>, vector<1x128xf32>, vector<1x128xf32>, vector<1x128xf32>, vector<1x128xf32>, vector<1x128xf32>, vector<1x128xf32> -> vector<1x2048xf32>
    %90 = vector.extract_strided_slice %72 {offsets = [0, 128], sizes = [1, 128], strides = [1, 1]} : vector<16x512xf32> to vector<1x128xf32>
    %91 = vector.extract_strided_slice %72 {offsets = [1, 128], sizes = [1, 128], strides = [1, 1]} : vector<16x512xf32> to vector<1x128xf32>
    %92 = vector.extract_strided_slice %72 {offsets = [2, 128], sizes = [1, 128], strides = [1, 1]} : vector<16x512xf32> to vector<1x128xf32>
    %93 = vector.extract_strided_slice %72 {offsets = [3, 128], sizes = [1, 128], strides = [1, 1]} : vector<16x512xf32> to vector<1x128xf32>
    %94 = vector.extract_strided_slice %72 {offsets = [4, 128], sizes = [1, 128], strides = [1, 1]} : vector<16x512xf32> to vector<1x128xf32>
    %95 = vector.extract_strided_slice %72 {offsets = [5, 128], sizes = [1, 128], strides = [1, 1]} : vector<16x512xf32> to vector<1x128xf32>
    %96 = vector.extract_strided_slice %72 {offsets = [6, 128], sizes = [1, 128], strides = [1, 1]} : vector<16x512xf32> to vector<1x128xf32>
    %97 = vector.extract_strided_slice %72 {offsets = [7, 128], sizes = [1, 128], strides = [1, 1]} : vector<16x512xf32> to vector<1x128xf32>
    %98 = vector.extract_strided_slice %72 {offsets = [8, 128], sizes = [1, 128], strides = [1, 1]} : vector<16x512xf32> to vector<1x128xf32>
    %99 = vector.extract_strided_slice %72 {offsets = [9, 128], sizes = [1, 128], strides = [1, 1]} : vector<16x512xf32> to vector<1x128xf32>
    %100 = vector.extract_strided_slice %72 {offsets = [10, 128], sizes = [1, 128], strides = [1, 1]} : vector<16x512xf32> to vector<1x128xf32>
    %101 = vector.extract_strided_slice %72 {offsets = [11, 128], sizes = [1, 128], strides = [1, 1]} : vector<16x512xf32> to vector<1x128xf32>
    %102 = vector.extract_strided_slice %72 {offsets = [12, 128], sizes = [1, 128], strides = [1, 1]} : vector<16x512xf32> to vector<1x128xf32>
    %103 = vector.extract_strided_slice %72 {offsets = [13, 128], sizes = [1, 128], strides = [1, 1]} : vector<16x512xf32> to vector<1x128xf32>
    %104 = vector.extract_strided_slice %72 {offsets = [14, 128], sizes = [1, 128], strides = [1, 1]} : vector<16x512xf32> to vector<1x128xf32>
    %105 = vector.extract_strided_slice %72 {offsets = [15, 128], sizes = [1, 128], strides = [1, 1]} : vector<16x512xf32> to vector<1x128xf32>
    %106 = tpu.concatenate %90, %91, %92, %93, %94, %95, %96, %97, %98, %99, %100, %101, %102, %103, %104, %105 in 1 : vector<1x128xf32>, vector<1x128xf32>, vector<1x128xf32>, vector<1x128xf32>, vector<1x128xf32>, vector<1x128xf32>, vector<1x128xf32>, vector<1x128xf32>, vector<1x128xf32>, vector<1x128xf32>, vector<1x128xf32>, vector<1x128xf32>, vector<1x128xf32>, vector<1x128xf32>, vector<1x128xf32>, vector<1x128xf32> -> vector<1x2048xf32>
    %107 = vector.extract_strided_slice %72 {offsets = [0, 256], sizes = [1, 128], strides = [1, 1]} : vector<16x512xf32> to vector<1x128xf32>
    %108 = vector.extract_strided_slice %72 {offsets = [1, 256], sizes = [1, 128], strides = [1, 1]} : vector<16x512xf32> to vector<1x128xf32>
    %109 = vector.extract_strided_slice %72 {offsets = [2, 256], sizes = [1, 128], strides = [1, 1]} : vector<16x512xf32> to vector<1x128xf32>
    %110 = vector.extract_strided_slice %72 {offsets = [3, 256], sizes = [1, 128], strides = [1, 1]} : vector<16x512xf32> to vector<1x128xf32>
    %111 = vector.extract_strided_slice %72 {offsets = [4, 256], sizes = [1, 128], strides = [1, 1]} : vector<16x512xf32> to vector<1x128xf32>
    %112 = vector.extract_strided_slice %72 {offsets = [5, 256], sizes = [1, 128], strides = [1, 1]} : vector<16x512xf32> to vector<1x128xf32>
    %113 = vector.extract_strided_slice %72 {offsets = [6, 256], sizes = [1, 128], strides = [1, 1]} : vector<16x512xf32> to vector<1x128xf32>
    %114 = vector.extract_strided_slice %72 {offsets = [7, 256], sizes = [1, 128], strides = [1, 1]} : vector<16x512xf32> to vector<1x128xf32>
    %115 = vector.extract_strided_slice %72 {offsets = [8, 256], sizes = [1, 128], strides = [1, 1]} : vector<16x512xf32> to vector<1x128xf32>
    %116 = vector.extract_strided_slice %72 {offsets = [9, 256], sizes = [1, 128], strides = [1, 1]} : vector<16x512xf32> to vector<1x128xf32>
    %117 = vector.extract_strided_slice %72 {offsets = [10, 256], sizes = [1, 128], strides = [1, 1]} : vector<16x512xf32> to vector<1x128xf32>
    %118 = vector.extract_strided_slice %72 {offsets = [11, 256], sizes = [1, 128], strides = [1, 1]} : vector<16x512xf32> to vector<1x128xf32>
    %119 = vector.extract_strided_slice %72 {offsets = [12, 256], sizes = [1, 128], strides = [1, 1]} : vector<16x512xf32> to vector<1x128xf32>
    %120 = vector.extract_strided_slice %72 {offsets = [13, 256], sizes = [1, 128], strides = [1, 1]} : vector<16x512xf32> to vector<1x128xf32>
    %121 = vector.extract_strided_slice %72 {offsets = [14, 256], sizes = [1, 128], strides = [1, 1]} : vector<16x512xf32> to vector<1x128xf32>
    %122 = vector.extract_strided_slice %72 {offsets = [15, 256], sizes = [1, 128], strides = [1, 1]} : vector<16x512xf32> to vector<1x128xf32>
    %123 = tpu.concatenate %107, %108, %109, %110, %111, %112, %113, %114, %115, %116, %117, %118, %119, %120, %121, %122 in 1 : vector<1x128xf32>, vector<1x128xf32>, vector<1x128xf32>, vector<1x128xf32>, vector<1x128xf32>, vector<1x128xf32>, vector<1x128xf32>, vector<1x128xf32>, vector<1x128xf32>, vector<1x128xf32>, vector<1x128xf32>, vector<1x128xf32>, vector<1x128xf32>, vector<1x128xf32>, vector<1x128xf32>, vector<1x128xf32> -> vector<1x2048xf32>
    %124 = vector.extract_strided_slice %72 {offsets = [0, 384], sizes = [1, 128], strides = [1, 1]} : vector<16x512xf32> to vector<1x128xf32>
    %125 = vector.extract_strided_slice %72 {offsets = [1, 384], sizes = [1, 128], strides = [1, 1]} : vector<16x512xf32> to vector<1x128xf32>
    %126 = vector.extract_strided_slice %72 {offsets = [2, 384], sizes = [1, 128], strides = [1, 1]} : vector<16x512xf32> to vector<1x128xf32>
    %127 = vector.extract_strided_slice %72 {offsets = [3, 384], sizes = [1, 128], strides = [1, 1]} : vector<16x512xf32> to vector<1x128xf32>
    %128 = vector.extract_strided_slice %72 {offsets = [4, 384], sizes = [1, 128], strides = [1, 1]} : vector<16x512xf32> to vector<1x128xf32>
    %129 = vector.extract_strided_slice %72 {offsets = [5, 384], sizes = [1, 128], strides = [1, 1]} : vector<16x512xf32> to vector<1x128xf32>
    %130 = vector.extract_strided_slice %72 {offsets = [6, 384], sizes = [1, 128], strides = [1, 1]} : vector<16x512xf32> to vector<1x128xf32>
    %131 = vector.extract_strided_slice %72 {offsets = [7, 384], sizes = [1, 128], strides = [1, 1]} : vector<16x512xf32> to vector<1x128xf32>
    %132 = vector.extract_strided_slice %72 {offsets = [8, 384], sizes = [1, 128], strides = [1, 1]} : vector<16x512xf32> to vector<1x128xf32>
    %133 = vector.extract_strided_slice %72 {offsets = [9, 384], sizes = [1, 128], strides = [1, 1]} : vector<16x512xf32> to vector<1x128xf32>
    %134 = vector.extract_strided_slice %72 {offsets = [10, 384], sizes = [1, 128], strides = [1, 1]} : vector<16x512xf32> to vector<1x128xf32>
    %135 = vector.extract_strided_slice %72 {offsets = [11, 384], sizes = [1, 128], strides = [1, 1]} : vector<16x512xf32> to vector<1x128xf32>
    %136 = vector.extract_strided_slice %72 {offsets = [12, 384], sizes = [1, 128], strides = [1, 1]} : vector<16x512xf32> to vector<1x128xf32>
    %137 = vector.extract_strided_slice %72 {offsets = [13, 384], sizes = [1, 128], strides = [1, 1]} : vector<16x512xf32> to vector<1x128xf32>
    %138 = vector.extract_strided_slice %72 {offsets = [14, 384], sizes = [1, 128], strides = [1, 1]} : vector<16x512xf32> to vector<1x128xf32>
    %139 = vector.extract_strided_slice %72 {offsets = [15, 384], sizes = [1, 128], strides = [1, 1]} : vector<16x512xf32> to vector<1x128xf32>
    %140 = tpu.concatenate %124, %125, %126, %127, %128, %129, %130, %131, %132, %133, %134, %135, %136, %137, %138, %139 in 1 : vector<1x128xf32>, vector<1x128xf32>, vector<1x128xf32>, vector<1x128xf32>, vector<1x128xf32>, vector<1x128xf32>, vector<1x128xf32>, vector<1x128xf32>, vector<1x128xf32>, vector<1x128xf32>, vector<1x128xf32>, vector<1x128xf32>, vector<1x128xf32>, vector<1x128xf32>, vector<1x128xf32>, vector<1x128xf32> -> vector<1x2048xf32>
    %141 = tpu.concatenate %89, %106, %123, %140 in 0 : vector<1x2048xf32>, vector<1x2048xf32>, vector<1x2048xf32>, vector<1x2048xf32> -> vector<4x2048xf32>
    %c0_38 = arith.constant 0 : index
    %c0_39 = arith.constant 0 : index
    %142 = vector.load %arg8[%c0_38, %c0_39] : memref<2048x256xf32, #tpu.memory_space<vmem>>, vector<2048x256xf32>
    %cst_40 = arith.constant dense<0.000000e+00> : vector<4x256xf32>
    %143 = tpu.matmul %141, %142, %cst_40 {dimension_numbers = #tpu.dot_dimension_numbers<[1], [0], [0], [1], [0, 0, 1, 1], [], []>} : vector<4x2048xf32>, vector<2048x256xf32>, vector<4x256xf32> -> vector<4x256xf32>
    %c0_41 = arith.constant 0 : index
    %c0_42 = arith.constant 0 : index
    %144 = vector.load %arg9[%c0_41, %c0_42] : memref<8x256xf32, #tpu.memory_space<vmem>>, vector<8x256xf32>
    %cst_43 = arith.constant dense<0.000000e+00> : vector<4x256xf32>
    %145 = tpu.matmul %3, %144, %cst_43 {dimension_numbers = #tpu.dot_dimension_numbers<[1], [0], [0], [1], [0, 0, 1, 1], [], []>} : vector<4x8xf32>, vector<8x256xf32>, vector<4x256xf32> -> vector<4x256xf32>
    %146 = arith.addf %143, %145 : vector<4x256xf32>
    %c0_44 = arith.constant 0 : index
    %c0_45 = arith.constant 0 : index
    %147 = vector.load %arg10[%c0_44, %c0_45] : memref<1x256xf32, #tpu.memory_space<vmem>>, vector<1x256xf32>
    %148 = vector.broadcast %147 : vector<1x256xf32> to vector<4x256xf32>
    %149 = arith.addf %146, %148 : vector<4x256xf32>
    %cst_46 = arith.constant 0.000000e+00 : f32
    %150 = vector.broadcast %cst_46 : f32 to vector<4x256xf32>
    %151 = arith.cmpf ogt, %149, %150 : vector<4x256xf32>
    %cst_47 = arith.constant 0.00999999977 : f32
    %152 = vector.broadcast %cst_47 : f32 to vector<4x256xf32>
    %153 = arith.mulf %152, %149 : vector<4x256xf32>
    %154 = arith.select %151, %149, %153 : vector<4x256xi1>, vector<4x256xf32>
    %c0_48 = arith.constant 0 : index
    %c0_49 = arith.constant 0 : index
    %c0_50 = arith.constant 0 : index
    %155 = vector.load %arg11[%c0_48, %c0_49, %c0_50] : memref<1x4x256xf32, #tpu.memory_space<vmem>>, vector<1x4x256xf32>
    %156 = vector.shape_cast %155 : vector<1x4x256xf32> to vector<4x256xf32>
    %157 = vector.shape_cast %154 : vector<4x256xf32> to vector<1x4x256xf32>
    tpu.vector_store %arg11[%c0_48, %c0_49, %c0_50], %157 {strides = array<i32>} : memref<1x4x256xf32, #tpu.memory_space<vmem>>, vector<1x4x256xf32>,
    return
  }
  func.func @transform_0(%arg0: i32) -> (i32, i32, i32) {
    %c0_i32 = arith.constant 0 : i32
    %c0_i32_0 = arith.constant 0 : i32
    %c0_i32_1 = arith.constant 0 : i32
    return %arg0, %c0_i32, %c0_i32_0 : i32, i32, i32
  }
  func.func @transform_1(%arg0: i32) -> (i32, i32, i32) {
    %c0_i32 = arith.constant 0 : i32
    %c0_i32_0 = arith.constant 0 : i32
    %c0_i32_1 = arith.constant 0 : i32
    return %arg0, %c0_i32, %c0_i32_0 : i32, i32, i32
  }
  func.func @transform_2(%arg0: i32) -> (i32, i32) {
    %c0_i32 = arith.constant 0 : i32
    %c0_i32_0 = arith.constant 0 : i32
    %c0_i32_1 = arith.constant 0 : i32
    return %c0_i32, %c0_i32_0 : i32, i32
  }
  func.func @transform_3(%arg0: i32) -> (i32, i32) {
    %c0_i32 = arith.constant 0 : i32
    %c0_i32_0 = arith.constant 0 : i32
    %c0_i32_1 = arith.constant 0 : i32
    return %c0_i32, %c0_i32_0 : i32, i32
  }
  func.func @transform_4(%arg0: i32) -> (i32, i32) {
    %c0_i32 = arith.constant 0 : i32
    %c0_i32_0 = arith.constant 0 : i32
    %c0_i32_1 = arith.constant 0 : i32
    return %c0_i32, %c0_i32_0 : i32, i32
  }
  func.func @transform_5(%arg0: i32) -> (i32, i32) {
    %c0_i32 = arith.constant 0 : i32
    %c0_i32_0 = arith.constant 0 : i32
    %c0_i32_1 = arith.constant 0 : i32
    return %c0_i32, %c0_i32_0 : i32, i32
  }
  func.func @transform_6(%arg0: i32) -> (i32, i32) {
    %c0_i32 = arith.constant 0 : i32
    %c0_i32_0 = arith.constant 0 : i32
    %c0_i32_1 = arith.constant 0 : i32
    return %c0_i32, %c0_i32_0 : i32, i32
  }
  func.func @transform_7(%arg0: i32) -> (i32, i32) {
    %c0_i32 = arith.constant 0 : i32
    %c0_i32_0 = arith.constant 0 : i32
    %c0_i32_1 = arith.constant 0 : i32
    return %c0_i32, %c0_i32_0 : i32, i32
  }
  func.func @transform_8(%arg0: i32) -> (i32, i32) {
    %c0_i32 = arith.constant 0 : i32
    %c0_i32_0 = arith.constant 0 : i32
    %c0_i32_1 = arith.constant 0 : i32
    return %c0_i32, %c0_i32_0 : i32, i32
  }
  func.func @transform_9(%arg0: i32) -> (i32, i32) {
    %c0_i32 = arith.constant 0 : i32
    %c0_i32_0 = arith.constant 0 : i32
    %c0_i32_1 = arith.constant 0 : i32
    return %c0_i32, %c0_i32_0 : i32, i32
  }
  func.func @transform_10(%arg0: i32) -> (i32, i32, i32) {
    %c0_i32 = arith.constant 0 : i32
    %c0_i32_0 = arith.constant 0 : i32
    %c0_i32_1 = arith.constant 0 : i32
    return %arg0, %c0_i32, %c0_i32_0 : i32, i32, i32
  }
}

</mosaic_0001>

<bundles_post_ra>
// kernel: tile.33
= control target key start
LH: loop header
LB: loop body
LE: loop exit
PB: predicated region body
PF: predicated region fallthrough
CT: control target
= control target key end

     0   :  { %2 = vsyncpa [#allocation1], 0  ;;  %s44_s6 = smov [#allocation0]   ;;  %s70_s0 = inlined_call_operand.hbm [shape: f32[128], index: 0, kind: input, shape index: {}]   ;;  %s71_s1 = inlined_call_operand.vmem [shape: f32[4,128], index: 1, kind: output, shape index: {}]  }
   0x1   :  { %s9_s7 = sshll.u32 %s44_s6, 4  ;;  %s20_s10 = scalar_lea.hbm %s70_s0, 16  ;;  %s10_s7 = int_to_ptr.vmem [resolvable:$true] %s9_s7 }
   0x2   :  { %p21_p0 = scmp.ne.s32.totalorder %s70_s0, %s20_s10  ;;  %p24_p1 = scmp.lt.u32.totalorder %s20_s10, %s70_s0 }
   0x4   :  { %p26_p2 = pnand %p24_p1, %p21_p0 }
   0x6   :  { %29 = shalt.err (!%p26_p2)
}
   0x7   :  { %s30_s15 = scalar_lea.vmem %s10_s7, 16  ;;  %s34_s16 = scalar_lea.vmem %s10_s7, 32 }
   0x8   :  { %p31_p3 = scmp.ne.s32.totalorder %s10_s7, %s30_s15  ;;  %p35_p4 = scmp.lt.s32.totalorder %s10_s7, %s10_s7 }
   0x9   :  { %p36_p5 = scmp.lt.s32.totalorder %s34_s16, %s30_s15 }
   0xb   :  { %p37_p6 = por %p36_p5, %p35_p4 }
   0xd   :  { %p38_p7 = pnand %p37_p6, %p31_p3 }
   0xf   :  { %41 = shalt.err (!%p38_p7)
}
  0x10   :  { %12 = dma.hbm_to_vmem [thread:$0]  %s70_s0, 16, %s10_s7, [#allocation1]  }
  0x11   :  { %42 = dma.done.wait [#allocation1], 16  }
  0x12   :  { %43 = vsyncadd [#allocation1], 4294967280  ;;  %v16_v0 = vld [vmem:[#allocation0] ss:$0 sm:$0xff] }
  0x13   :  { %17 = vst [vmem:[%s71_s1] sm:$0xf] %v16_v0 }
  0x14   :  { %18 = vsyncpa [#allocation1], 1 }

// kernel: forward.1
= control target key start
LH: loop header
LB: loop body
LE: loop exit
PB: predicated region body
PF: predicated region fallthrough
CT: control target
= control target key end

     0   :  { %s7753_s0 = inlined_call_operand.vmem [shape: f32[2,8,4], index: 0, kind: input, shape index: {}]   ;;  %s7754_s1 = inlined_call_operand.vmem [shape: f32[2,4,8], index: 1, kind: input, shape index: {}]   ;;  %s7755_s2 = inlined_call_operand.vmem [shape: f32[4,768], index: 2, kind: input, shape index: {}]   ;;  %s7756_s3 = inlined_call_operand.vmem [shape: f32[1,768], index: 3, kind: input, shape index: {}]   ;;  %s7757_s4 = inlined_call_operand.vmem [shape: f32[768,512], index: 4, kind: input, shape index: {}]   ;;  %s7758_s5 = inlined_call_operand.vmem [shape: f32[16,8], index: 5, kind: input, shape index: {}]   ;;  %s7759_s6 = inlined_call_operand.vmem [shape: f32[8,512], index: 6, kind: input, shape index: {}]   ;;  %s7760_s7 = inlined_call_operand.vmem [shape: f32[2048,256], index: 7, kind: input, shape index: {}]   ;;  %s7761_s8 = inlined_call_operand.vmem [shape: f32[8,256], index: 8, kind: input, shape index: {}]   ;;  %s7762_s9 = inlined_call_operand.vmem [shape: f32[1,256], index: 9, kind: input, shape index: {}]   ;;  %s7763_s10 = inlined_call_operand.hbm [shape: f32[2,4,256], index: 10, kind: output, shape index: {}]  }
   0x1   :  { %7764 = sst [smem:[#allocation6_spill]] %s7755_s2 }
   0x2   :  { %15 = vsyncpa [#allocation3], 0 }
   0x3   :  { %17 = vsyncpa [#allocation3 + $0x1], 0  ;;  %s4658_s13 = smov 0   ;;  %s4660_s14 = smov 0  }
   0x4   :  { %s4662_s15 = smov 0   ;;  %s4664_s16 = smov 0  }
   0x5 LB: > { %s4679_s17 = sadd.s32 4294967295, %s4597_s16   ;;  %s3514_s18 = sadd.s32 4294967294, %s4597_s16   ;;  %s4597_s16 = sphi %s4664_s16, %s7773_s16   ;;  %s4593_s15 = sphi %s4662_s15, %s7772_s15   ;;  %s4589_s14 = sphi %s4660_s14, %s7771_s14   ;;  %s4585_s13 = sphi %s4658_s13, %s7770_s13  }
   0x6   : > { %s4683_s19 = sadd.s32 1, %s4597_s16   ;;  %s250_s20 = sadd.s32 1, %s4593_s15 }
   0x7   : > { %s247_s21 = ssub.s32 %s4597_s16, %s4683_s19  ;;  %p260_p0 = scmp.ne.s32.totalorder %s4593_s15, %s4589_s14 }
   0x8   : > { %p248_p1 = scmp.eq.s32.totalorder %s247_s21, 0  ;;  %p261_p2 = scmp.eq.s32.totalorder %s4679_s17, 1 }
   0x9   : > { %p266_p3 = scmp.ne.s32.totalorder %s4589_s14, %s4585_s13  ;;  %p267_p4 = scmp.eq.s32.totalorder %s3514_s18, 1 }
   0xa   : > { %s4694_s22 = scalar_select %p248_p1, %s4593_s15, %s250_s20  }
   0xb   : > { %p4696_p5 = por %p261_p2, %p260_p0  ;;  %p4700_p6 = por %p267_p4, %p266_p3 }
   0xc   : > { %7765 = sst [smem:[#allocation5_spill]] %s4694_s22  ;;  %p3517_p7 = scmp.ge.s32.totalorder %s4597_s16, 1 }
   0xd   : > { %p323_p8 = scmp.lt.s32.totalorder %s4597_s16, 3 }
   0xf   : > { %p324_p9 = pnand %p3517_p7, %p323_p8 }
  0x10   : > { %s7768_s2 = sld [smem:[#allocation6_spill]] (!%p324_p9)  ;;  %vm419_vm0 = vcmask (!%p324_p9), 1043456   ;;  %p364_p10 = scmp.lt.s32.totalorder (!%p324_p9), %s4679_s17, 1  ;;  %v4599_v3 = vmov (!%p324_p9), 0.0   ;;  %v688_v7 = vld [vmem:[%s7757_s4 + $0x8] sm:$0xff] (!%p324_p9)  ;;  %vm415_vm1 = vcmask (!%p324_p9), 31744  }
  0x11   : > { %327 = sbr.rel (%p324_p9) target bundleno = 1665 (0x681), region = 60  ;;  %496 = vmatprep.mubr.f32.mxu0 (!%p324_p9), %v4599_v3  ;;  %567 = vmatprep.mubr.f32.mxu1 (!%p324_p9), %v4599_v3  ;;  %v692_v8 = vld [vmem:[%s7757_s4 + $0x28] sm:$0xff] (!%p324_p9)  ;;  %v687_v10 = vld [vmem:[%s7757_s4] sm:$0xff] (!%p324_p9)  ;;  %vm1506_vm14 = vcmask (!%p324_p9), 64512   ;;  %s361_s12 = sand.u32 (!%p324_p9), 1, %s4589_s14  }
  0x12   : > { %v3570_v9 = vpack.c.bf16 (!%p324_p9), %v692_v8, %v688_v7  ;;  %v691_v11 = vld [vmem:[%s7757_s4 + $0x20] sm:$0xff] (!%p324_p9)  ;;  %v696_v13 = vld [vmem:[%s7757_s4 + $0x48] sm:$0xff] (!%p324_p9)  ;;  %s3518_s20 = sshll.u32 (!%p324_p9), %s361_s12, 3  ;;  %s3569_s21 = sshll.u32 (!%p324_p9), %s4679_s17, 7 }
  0x13   : > { %v700_v14 = vld [vmem:[%s7757_s4 + $0x68] sm:$0xff] (!%p324_p9)  ;;  %v3572_v15 = vpack.c.bf16 (!%p324_p9), %v691_v11, %v687_v10  ;;  %v695_v17 = vld [vmem:[%s7757_s4 + $0x40] sm:$0xff] (!%p324_p9) }
  0x14   : > { %v3574_v16 = vpack.c.bf16 (!%p324_p9), %v700_v14, %v696_v13  ;;  %v699_v18 = vld [vmem:[%s7757_s4 + $0x60] sm:$0xff] (!%p324_p9)  ;;  %v704_v19 = vld [vmem:[%s7757_s4 + $0x88] sm:$0xff] (!%p324_p9) }
  0x15   : > { %v708_v20 = vld [vmem:[%s7757_s4 + $0xa8] sm:$0xff] (!%p324_p9)  ;;  %v3576_v21 = vpack.c.bf16 (!%p324_p9), %v699_v18, %v695_v17  ;;  %v703_v23 = vld [vmem:[%s7757_s4 + $0x80] sm:$0xff] (!%p324_p9) }
  0x16   : > { %v374_v0 = vld [vmem:[%s7768_s2] sm:$0xff] (!%p324_p9)  ;;  %v375_v1 = vld [vmem:[%s7768_s2 + $0x8] sm:$0xff] (!%p324_p9)  ;;  %v376_v5 = vld [vmem:[%s7768_s2 + $0x10] sm:$0xff] (!%p324_p9)  ;;  %v3578_v22 = vpack.c.bf16 (!%p324_p9), %v708_v20, %v704_v19  ;;  %s3429_s2 = scalar_lea.sflag (!%p324_p9), [#allocation3], %s361_s12 }
  0x17   : > { %v412_v2 = vcombine.high (!%p324_p9), %v374_v0, %v374_v0  ;;  %v413_v4 = vcombine.high (!%p324_p9), %v375_v1, %v375_v1  ;;  %v414_v6 = vcombine.high (!%p324_p9), %v376_v5, %v376_v5  ;;  %v707_v24 = vld [vmem:[%s7757_s4 + $0xa0] sm:$0xff] (!%p324_p9)  ;;  %v712_v25 = vld [vmem:[%s7757_s4 + $0xc8] sm:$0xff] (!%p324_p9) }
  0x18   : > { %s4719_s11 = scalar_select %p364_p10, %s4679_s17, 1  ;;  %v716_v26 = vld [vmem:[%s7757_s4 + $0xe8] sm:$0xff]  ;;  %v3580_v27 = vpack.c.bf16 %v707_v24, %v703_v23  ;;  %v711_v29 = vld [vmem:[%s7757_s4 + $0xc0] sm:$0xff] }
  0x19   : > { %3521 = vmatprep.subr.msk.mxu0 %vm419_vm0, %v412_v2  ;;  %3524 = vmatprep.subr.msk.mxu1 %vm419_vm0, %v413_v4  ;;  %v3582_v28 = vpack.c.bf16 %v716_v26, %v712_v25  ;;  %v715_v30 = vld [vmem:[%s7757_s4 + $0xe0] sm:$0xff]  ;;  %v720_v31 = vld [vmem:[%s7757_s4 + $0x108] sm:$0xff]  ;;  %s4602_s17 = smov [#allocation2]  }
  0x1a   : > { %3522 = vmatpush1.msk.msra.mxu0 %vm419_vm0, %v374_v0  ;;  %s3519_s25 = sshll.u32 %s4719_s11, 3  ;;  %3525 = vmatpush1.msk.msra.mxu1 %vm419_vm0, %v375_v1  ;;  %v724_v32 = vld [vmem:[%s7757_s4 + $0x128] sm:$0xff]  ;;  %v3584_v33 = vpack.c.bf16 %v715_v30, %v711_v29  ;;  %v719_v35 = vld [vmem:[%s7757_s4 + $0x100] sm:$0xff]  ;;  %s3520_s29 = sshll.u32 %s4719_s11, 2 }
  0x1b   : > { %s367_s28 = scalar_lea.vmem %s7753_s0, %s3519_s25  ;;  %3527 = vmatprep.subr.msk.mxu0 %vm419_vm0, %v414_v6  ;;  %v3586_v34 = vpack.c.bf16 %v724_v32, %v720_v31  ;;  %v723_v36 = vld [vmem:[%s7757_s4 + $0x120] sm:$0xff]  ;;  %v728_v37 = vld [vmem:[%s7757_s4 + $0x148] sm:$0xff]  ;;  %s371_s18 = scalar_lea.vmem %s7754_s1, %s3520_s29 }
  0x1c   : > { %v372_v12 = vld [vmem:[%s367_s28] sm:$0xff]  ;;  %v732_v38 = vld [vmem:[%s7757_s4 + $0x168] sm:$0xff]  ;;  %v3588_v39 = vpack.c.bf16 %v723_v36, %v719_v35  ;;  %s363_s25 = scalar_lea.vmem [#allocation2], %s3518_s20  ;;  %s7711_s28 = scalar_lea.hbm %s7763_s10, %s3569_s21 }
  0x1d   : > { %3523 = vmatmul.mubr.msk.f32.vlgmr.msra.gmra.mrb[0].mxu0 %vm415_vm1, %v372_v12  ;;  %3526 = vmatmul.mubr.msk.f32.vlgmr.msra.gmra.mrb[0].mxu1 %vm415_vm1, %v372_v12  ;;  %v3590_v40 = vpack.c.bf16 %v732_v38, %v728_v37  ;;  %v727_v41 = vld [vmem:[%s7757_s4 + $0x140] sm:$0xff]  ;;  %v736_v43 = vld [vmem:[%s7757_s4 + $0x188] sm:$0xff]  ;;  %s4539_s11 = sshll.u32 %s4602_s17, 4  ;;  %s4540_s11 = int_to_ptr.vmem [resolvable:$false] %s4539_s11 }
  0x1e   : > { %3528 = vmatpush1.msk.msra.mxu0 %vm419_vm0, %v376_v5  ;;  %638 = vmatprep.mubr.f32.mxu0 %v4599_v3  ;;  %v731_v42 = vld [vmem:[%s7757_s4 + $0x160] sm:$0xff]  ;;  %v740_v44 = vld [vmem:[%s7757_s4 + $0x1a8] sm:$0xff]  ;;  %s4541_s29 = scalar_lea.vmem %s4540_s11, 256 }
  0x1f   : > { %3571 = vmatprep.subr.bf16.mxu0 %v3570_v9  ;;  %1577 = vmatprep.mubr.f32.mxu1 %v4599_v3  ;;  %v3592_v45 = vpack.c.bf16 %v731_v42, %v727_v41  ;;  %v3594_v46 = vpack.c.bf16 %v740_v44, %v736_v43  ;;  %v735_v47 = vld [vmem:[%s7757_s4 + $0x180] sm:$0xff]  ;;  %v744_v49 = vld [vmem:[%s7757_s4 + $0x1c8] sm:$0xff]  ;;  %v379_v44 = vlaneseq }
  0x20   : > { %v739_v48 = vld [vmem:[%s7757_s4 + $0x1a0] sm:$0xff]  ;;  %v748_v50 = vld [vmem:[%s7757_s4 + $0x1e8] sm:$0xff] }
  0x21   : > { %3529 = vmatmul.mubr.msk.f32.vlgmr.msra.gmra.mrb[2].mxu0 %vm415_vm1, %v372_v12  ;;  %v3596_v51 = vpack.c.bf16 %v739_v48, %v735_v47  ;;  %v3598_v52 = vpack.c.bf16 %v748_v50, %v744_v49  ;;  %v743_v53 = vld [vmem:[%s7757_s4 + $0x1c0] sm:$0xff]  ;;  %v752_v55 = vld [vmem:[%s7757_s4 + $0x208] sm:$0xff] }
  0x22   : > { %3573 = vmatpush1.bf16.msra.mxu0 %v3572_v15  ;;  %v747_v54 = vld [vmem:[%s7757_s4 + $0x1e0] sm:$0xff]  ;;  %v756_v56 = vld [vmem:[%s7757_s4 + $0x228] sm:$0xff] }
  0x23   : > { %3575 = vmatprep.subr.bf16.mxu0 %v3574_v16  ;;  %v3600_v57 = vpack.c.bf16 %v747_v54, %v743_v53  ;;  %v3602_v58 = vpack.c.bf16 %v756_v56, %v752_v55  ;;  %v751_v59 = vld [vmem:[%s7757_s4 + $0x200] sm:$0xff]  ;;  %v760_v61 = vld [vmem:[%s7757_s4 + $0x248] sm:$0xff] }
  0x24   : > { %v755_v60 = vld [vmem:[%s7757_s4 + $0x220] sm:$0xff]  ;;  %v764_v62 = vld [vmem:[%s7757_s4 + $0x268] sm:$0xff] }
  0x25   : > { %v3604_v63 = vpack.c.bf16 %v755_v60, %v751_v59  ;;  %v3606_v0 = vpack.c.bf16 %v764_v62, %v760_v61  ;;  %v759_v1 = vld [vmem:[%s7757_s4 + $0x240] sm:$0xff]  ;;  %v768_v4 = vld [vmem:[%s7757_s4 + $0x288] sm:$0xff] }
  0x26   : > { %3577 = vmatpush1.bf16.msra.mxu0 %v3576_v21  ;;  %v763_v2 = vld [vmem:[%s7757_s4 + $0x260] sm:$0xff]  ;;  %v772_v5 = vld [vmem:[%s7757_s4 + $0x2a8] sm:$0xff] }
  0x27   : > { %3579 = vmatprep.subr.bf16.mxu0 %v3578_v22  ;;  %v3608_v6 = vpack.c.bf16 %v763_v2, %v759_v1  ;;  %v3610_v7 = vpack.c.bf16 %v772_v5, %v768_v4  ;;  %v767_v8 = vld [vmem:[%s7757_s4 + $0x280] sm:$0xff]  ;;  %v776_v10 = vld [vmem:[%s7757_s4 + $0x2c8] sm:$0xff] }
  0x28   : > { %v771_v9 = vld [vmem:[%s7757_s4 + $0x2a0] sm:$0xff]  ;;  %v780_v11 = vld [vmem:[%s7757_s4 + $0x2e8] sm:$0xff] }
  0x29   : > { %v3612_v12 = vpack.c.bf16 %v771_v9, %v767_v8  ;;  %v3614_v13 = vpack.c.bf16 %v780_v11, %v776_v10  ;;  %v775_v14 = vld [vmem:[%s7757_s4 + $0x2c0] sm:$0xff]  ;;  %v784_v16 = vld [vmem:[%s7757_s4 + $0x308] sm:$0xff] }
  0x2a   : > { %3581 = vmatpush1.bf16.msra.mxu0 %v3580_v27  ;;  %v779_v15 = vld [vmem:[%s7757_s4 + $0x2e0] sm:$0xff]  ;;  %v788_v17 = vld [vmem:[%s7757_s4 + $0x328] sm:$0xff] }
  0x2b   : > { %3583 = vmatprep.subr.bf16.mxu0 %v3582_v28  ;;  %v3616_v18 = vpack.c.bf16 %v779_v15, %v775_v14  ;;  %v3618_v19 = vpack.c.bf16 %v788_v17, %v784_v16  ;;  %v783_v20 = vld [vmem:[%s7757_s4 + $0x300] sm:$0xff]  ;;  %v792_v22 = vld [vmem:[%s7757_s4 + $0x348] sm:$0xff] }
  0x2c   : > { %v787_v21 = vld [vmem:[%s7757_s4 + $0x320] sm:$0xff]  ;;  %v796_v23 = vld [vmem:[%s7757_s4 + $0x368] sm:$0xff] }
  0x2d   : > { %v3620_v24 = vpack.c.bf16 %v787_v21, %v783_v20  ;;  %v3622_v25 = vpack.c.bf16 %v796_v23, %v792_v22  ;;  %v791_v26 = vld [vmem:[%s7757_s4 + $0x340] sm:$0xff]  ;;  %v800_v29 = vld [vmem:[%s7757_s4 + $0x388] sm:$0xff] }
  0x2e   : > { %3585 = vmatpush1.bf16.msra.mxu0 %v3584_v33  ;;  %v795_v27 = vld [vmem:[%s7757_s4 + $0x360] sm:$0xff]  ;;  %v804_v30 = vld [vmem:[%s7757_s4 + $0x3a8] sm:$0xff] }
  0x2f   : > { %3587 = vmatprep.subr.bf16.mxu0 %v3586_v34  ;;  %v3624_v28 = vpack.c.bf16 %v795_v27, %v791_v26  ;;  %v3626_v31 = vpack.c.bf16 %v804_v30, %v800_v29  ;;  %v799_v32 = vld [vmem:[%s7757_s4 + $0x380] sm:$0xff]  ;;  %v808_v35 = vld [vmem:[%s7757_s4 + $0x3c8] sm:$0xff] }
  0x30   : > { %v803_v33 = vld [vmem:[%s7757_s4 + $0x3a0] sm:$0xff]  ;;  %v812_v36 = vld [vmem:[%s7757_s4 + $0x3e8] sm:$0xff] }
  0x31   : > { %v3628_v34 = vpack.c.bf16 %v803_v33, %v799_v32  ;;  %v3630_v37 = vpack.c.bf16 %v812_v36, %v808_v35  ;;  %v807_v38 = vld [vmem:[%s7757_s4 + $0x3c0] sm:$0xff]  ;;  %v816_v41 = vld [vmem:[%s7757_s4 + $0x408] sm:$0xff] }
  0x32   : > { %3589 = vmatpush1.bf16.msra.mxu0 %v3588_v39  ;;  %v811_v39 = vld [vmem:[%s7757_s4 + $0x3e0] sm:$0xff]  ;;  %v820_v42 = vld [vmem:[%s7757_s4 + $0x428] sm:$0xff] }
  0x33   : > { %3591 = vmatprep.subr.bf16.mxu0 %v3590_v40  ;;  %v3632_v40 = vpack.c.bf16 %v811_v39, %v807_v38  ;;  %v3634_v43 = vpack.c.bf16 %v820_v42, %v816_v41  ;;  %v4942_v47 = vld [vmem:[%s7756_s3] sm:$0x3f]  ;;  %v824_v4 = vld [vmem:[%s7757_s4 + $0x448] sm:$0xff] }
  0x34   : > { %v815_v62 = vld [vmem:[%s7757_s4 + $0x400] sm:$0xff]  ;;  %v828_v5 = vld [vmem:[%s7757_s4 + $0x468] sm:$0xff] }
  0x35   : > { %v819_v2 = vld [vmem:[%s7757_s4 + $0x420] sm:$0xff]  ;;  %v3638_v15 = vpack.c.bf16 %v828_v5, %v824_v4  ;;  %v832_v21 = vld [vmem:[%s7757_s4 + $0x488] sm:$0xff] }
  0x36   : > { %3593 = vmatpush1.bf16.msra.mxu0 %v3592_v45  ;;  %v4934_v45 = vshrl.u32 %v379_v44, 7  ;;  %v823_v16 = vld [vmem:[%s7757_s4 + $0x440] sm:$0xff]  ;;  %v836_v22 = vld [vmem:[%s7757_s4 + $0x4a8] sm:$0xff] }
  0x37   : > { %3595 = vmatprep.subr.bf16.mxu0 %v3594_v46  ;;  %v827_v17 = vld [vmem:[%s7757_s4 + $0x460] sm:$0xff]  ;;  %v844_v29 = vld [vmem:[%s7757_s4 + $0x4e8] sm:$0xff] }
  0x38   : > { %v4937_v46 = vsub.s32 0, %v4934_v45  ;;  %v4945_v48 = vsub.s32 1, %v4934_v45  ;;  %v4948_v49 = vsub.s32 3, %v4934_v45  ;;  %v831_v26 = vld [vmem:[%s7757_s4 + $0x480] sm:$0xff]  ;;  %v852_v35 = vld [vmem:[%s7757_s4 + $0x528] sm:$0xff] }
  0x39   : > { %v835_v27 = vld [vmem:[%s7757_s4 + $0x4a0] sm:$0xff]  ;;  %v860_v41 = vld [vmem:[%s7757_s4 + $0x568] sm:$0xff] }
  0x3a   : > { %3597 = vmatpush1.bf16.msra.mxu0 %v3596_v51  ;;  %v382_v50 = vrot.slane %v4942_v47, %v4937_v46  ;;  %v386_v51 = vrot.slane %v4942_v47, %v4945_v48  ;;  %v3644_v30 = vpack.c.bf16 %v835_v27, %v831_v26  ;;  %v839_v32 = vld [vmem:[%s7757_s4 + $0x4c0] sm:$0xff] }
  0x3b   : > { %3599 = vmatprep.subr.bf16.mxu0 %v3598_v52  ;;  %v394_v52 = vrot.slane %v4942_v47, %v4948_v49  ;;  %v843_v33 = vld [vmem:[%s7757_s4 + $0x4e0] sm:$0xff] }
  0x3c   : > { %v3648_v36 = vpack.c.bf16 %v843_v33, %v839_v32  ;;  %v847_v38 = vld [vmem:[%s7757_s4 + $0x500] sm:$0xff]  ;;  %v401_v32 = vsub.s32 5, %v4934_v45  ;;  %v5118_v33 = vsub.s32 2, %v4934_v45 }
  0x3d   : > { %v851_v39 = vld [vmem:[%s7757_s4 + $0x520] sm:$0xff] }
  0x3e   : > { %3601 = vmatpush1.bf16.msra.mxu0 %v3600_v57  ;;  %v3652_v42 = vpack.c.bf16 %v851_v39, %v847_v38  ;;  %v855_v44 = vld [vmem:[%s7757_s4 + $0x540] sm:$0xff]  ;;  %v920_v38 = vld [vmem:[%s7757_s4 + $0x748] sm:$0xff] }
  0x3f   : > { %3603 = vmatprep.subr.bf16.mxu0 %v3602_v58  ;;  %v924_v39 = vld [vmem:[%s7757_s4 + $0x768] sm:$0xff] }
  0x42   : > { %3605 = vmatpush1.bf16.msra.mxu0 %v3604_v63 }
  0x43   : > { %3607 = vmatprep.subr.bf16.mxu0 %v3606_v0 }
  0x46   : > { %3609 = vmatpush1.bf16.msra.mxu0 %v3608_v6 }
  0x47   : > { %3611 = vmatprep.subr.bf16.mxu0 %v3610_v7 }
  0x4a   : > { %3613 = vmatpush1.bf16.msra.mxu0 %v3612_v12 }
  0x4b   : > { %3615 = vmatprep.subr.bf16.mxu0 %v3614_v13  ;;  %v3636_v13 = vpack.c.bf16 %v819_v2, %v815_v62  ;;  %v871_v62 = vld [vmem:[%s7757_s4 + $0x5c0] sm:$0xff]  ;;  %v884_v2 = vld [vmem:[%s7757_s4 + $0x628] sm:$0xff] }
  0x4e   : > { %3617 = vmatpush1.bf16.msra.mxu0 %v3616_v18 }
  0x4f   : > { %3619 = vmatprep.subr.bf16.mxu0 %v3618_v19 }
  0x52   : > { %3621 = vmatpush1.bf16.msra.mxu0 %v3620_v24  ;;  %v3640_v24 = vpack.c.bf16 %v827_v17, %v823_v16  ;;  %v900_v16 = vld [vmem:[%s7757_s4 + $0x6a8] sm:$0xff] }
  0x53   : > { %3623 = vmatprep.subr.bf16.mxu0 %v3622_v25  ;;  %v3642_v25 = vpack.c.bf16 %v836_v22, %v832_v21  ;;  %v895_v21 = vld [vmem:[%s7757_s4 + $0x680] sm:$0xff] }
  0x54   : > { %v899_v22 = vld [vmem:[%s7757_s4 + $0x6a0] sm:$0xff] }
  0x55   : > { %v3676_v26 = vpack.c.bf16 %v899_v22, %v895_v21 }
  0x56   : > { %3625 = vmatpush1.bf16.msra.mxu0 %v3624_v28  ;;  %v840_v28 = vld [vmem:[%s7757_s4 + $0x4c8] sm:$0xff] }
  0x57   : > { %3627 = vmatprep.subr.bf16.mxu0 %v3626_v31  ;;  %v3646_v31 = vpack.c.bf16 %v844_v29, %v840_v28  ;;  %v903_v28 = vld [vmem:[%s7757_s4 + $0x6c0] sm:$0xff] }
  0x58   : > { %v907_v29 = vld [vmem:[%s7757_s4 + $0x6e0] sm:$0xff] }
  0x5a   : > { %3629 = vmatpush1.bf16.msra.mxu0 %v3628_v34  ;;  %v848_v34 = vld [vmem:[%s7757_s4 + $0x508] sm:$0xff] }
  0x5b   : > { %3631 = vmatprep.subr.bf16.mxu0 %v3630_v37  ;;  %v3650_v37 = vpack.c.bf16 %v852_v35, %v848_v34  ;;  %v3680_v34 = vpack.c.bf16 %v907_v29, %v903_v28  ;;  %v960_v28 = vld [vmem:[%s7757_s4 + $0x888] sm:$0xff] }
  0x5c   : > { %v964_v29 = vld [vmem:[%s7757_s4 + $0x8a8] sm:$0xff] }
  0x5e   : > { %3633 = vmatpush1.bf16.msra.mxu0 %v3632_v40  ;;  %v856_v40 = vld [vmem:[%s7757_s4 + $0x548] sm:$0xff] }
  0x5f   : > { %3635 = vmatprep.subr.bf16.mxu0 %v3634_v43  ;;  %v3654_v43 = vpack.c.bf16 %v860_v41, %v856_v40  ;;  %v402_v40 = vrot.slane %v4942_v47, %v401_v32  ;;  %v390_v41 = vrot.slane %v4942_v47, %v5118_v33  ;;  %v959_v32 = vld [vmem:[%s7757_s4 + $0x880] sm:$0xff] }
  0xf0   : > { %v498_v53 = vpop.f32.mrb[0].mxu0  ;;  %v4956_v54 = vpop.f32.mrb[0].mxu1 }
  0xf1   : > { %v499_v55 = vadd.f32 %v498_v53, %v382_v50  ;;  %v500_v56 = vpop.f32.mrb[1].mxu0  ;;  %v571_v57 = vpop.f32.mrb[1].mxu1  ;;  %v859_v50 = vld [vmem:[%s7757_s4 + $0x560] sm:$0xff] }
  0xf2   : > { %v501_v58 = vadd.f32 %v500_v56, %v386_v51  ;;  %v572_v59 = vadd.f32 %v571_v57, %v394_v52  ;;  %v864_v51 = vld [vmem:[%s7757_s4 + $0x588] sm:$0xff]  ;;  %v3656_v53 = vpack.c.bf16 %v859_v50, %v855_v44  ;;  %v863_v56 = vld [vmem:[%s7757_s4 + $0x580] sm:$0xff] }
  0xf3   : > { %v645_v60 = vmax.f32 %v499_v55, 0.0  ;;  %v868_v52 = vld [vmem:[%s7757_s4 + $0x5a8] sm:$0xff]  ;;  %v867_v57 = vld [vmem:[%s7757_s4 + $0x5a0] sm:$0xff] }
  0xf4   : > { %v646_v61 = vmax.f32 %v501_v58, 0.0  ;;  %v648_v63 = vmax.f32 %v572_v59, 0.0  ;;  %v4961_v0 = vpop.f32.mrb[2].mxu0  ;;  %v3658_v55 = vpack.c.bf16 %v868_v52, %v864_v51  ;;  %v872_v58 = vld [vmem:[%s7757_s4 + $0x5c8] sm:$0xff]  ;;  %v919_v44 = vld [vmem:[%s7757_s4 + $0x740] sm:$0xff] }
  0xf5   : > { %v3530_v1 = vadd.f32 -0.01, %v645_v60  ;;  %vm663_vm3 = vcmp.lt.f32.partialorder %v645_v60, -0.01  ;;  %v669_v8 = vadd.f32 0.01, %v645_v60 }
  0xf6   : > { %v3531_v6 = vadd.f32 -0.01, %v646_v61  ;;  %vm664_vm2 = vcmp.lt.f32.partialorder %v646_v61, -0.01  ;;  %v670_v7 = vadd.f32 0.01, %v646_v61 }
  0xf7   : > { %vm654_vm4 = vcmp.gt.f32.partialorder %v648_v63, 0.01  ;;  %v3533_v9 = vadd.f32 -0.01, %v648_v63  ;;  %vm666_vm5 = vcmp.lt.f32.partialorder %v648_v63, -0.01 }
  0xf8   : > { %v672_v10 = vadd.f32 0.01, %v648_v63  ;;  %vm652_vm6 = vcmp.gt.f32.partialorder %v646_v61, 0.01  ;;  %v676_v11 = vsel %vm664_vm2, %v670_v7, 0.0  ;;  %v675_v12 = vsel %vm663_vm3, %v669_v8, 0.0 }
  0xf9   : > { %v4972_v14 = vsel %vm652_vm6, %v3531_v6, %v676_v11  ;;  %vm651_vm7 = vcmp.gt.f32.partialorder %v645_v60, 0.01  ;;  %v4980_v19 = vpop.f32.mrb[3].mxu0  ;;  %v876_v59 = vld [vmem:[%s7757_s4 + $0x5e8] sm:$0xff]  ;;  %v3660_v60 = vpack.c.bf16 %v867_v57, %v863_v56  ;;  %v875_v63 = vld [vmem:[%s7757_s4 + $0x5e0] sm:$0xff] }
  0xfa   : > { %v678_v18 = vsel %vm666_vm5, %v672_v10, 0.0  ;;  %1135 = vmatprep.mubr.f32.mxu0 %v4972_v14  ;;  %v4983_v20 = vsel %vm651_vm7, %v3530_v1, %v675_v12  ;;  %v3662_v61 = vpack.c.bf16 %v876_v59, %v872_v58  ;;  %v880_v1 = vld [vmem:[%s7757_s4 + $0x608] sm:$0xff]  ;;  %v3664_v4 = vpack.c.bf16 %v875_v63, %v871_v62  ;;  %v879_v6 = vld [vmem:[%s7757_s4 + $0x600] sm:$0xff] }
  0xfb   : > { %v4992_v23 = vsel %vm654_vm4, %v3533_v9, %v678_v18  ;;  %1136 = vmatmul.mubr.f32.vlgmr.msra.gmra.mrb[4].mxu0 %v4983_v20  ;;  %v3666_v5 = vpack.c.bf16 %v884_v2, %v880_v1  ;;  %v883_v7 = vld [vmem:[%s7757_s4 + $0x620] sm:$0xff]  ;;  %v888_v8 = vld [vmem:[%s7757_s4 + $0x648] sm:$0xff] }
  0xfc   : > { %3637 = vmatpush1.bf16.msra.mxu0 %v3636_v13  ;;  %1206 = vmatprep.mubr.f32.mxu0 %v4992_v23  ;;  %v892_v9 = vld [vmem:[%s7757_s4 + $0x668] sm:$0xff]  ;;  %v3668_v10 = vpack.c.bf16 %v883_v7, %v879_v6  ;;  %v887_v12 = vld [vmem:[%s7757_s4 + $0x640] sm:$0xff] }
  0xfd   : > { %3639 = vmatprep.subr.bf16.mxu0 %v3638_v15  ;;  %v3670_v11 = vpack.c.bf16 %v892_v9, %v888_v8  ;;  %v891_v13 = vld [vmem:[%s7757_s4 + $0x660] sm:$0xff]  ;;  %v896_v15 = vld [vmem:[%s7757_s4 + $0x688] sm:$0xff] }
  0xfe   : > { %v3672_v17 = vpack.c.bf16 %v891_v13, %v887_v12  ;;  %v3674_v18 = vpack.c.bf16 %v900_v16, %v896_v15  ;;  %v923_v50 = vld [vmem:[%s7757_s4 + $0x760] sm:$0xff]  ;;  %v928_v51 = vld [vmem:[%s7757_s4 + $0x788] sm:$0xff] }
  0xff   : > { %v932_v52 = vld [vmem:[%s7757_s4 + $0x7a8] sm:$0xff]  ;;  %v3688_v56 = vpack.c.bf16 %v923_v50, %v919_v44  ;;  %v927_v58 = vld [vmem:[%s7757_s4 + $0x780] sm:$0xff] }
 0x100   : > { %3641 = vmatpush1.bf16.msra.mxu0 %v3640_v24  ;;  %v904_v24 = vld [vmem:[%s7757_s4 + $0x6c8] sm:$0xff]  ;;  %v3690_v57 = vpack.c.bf16 %v932_v52, %v928_v51  ;;  %v931_v59 = vld [vmem:[%s7757_s4 + $0x7a0] sm:$0xff] }
 0x101   : > { %3643 = vmatprep.subr.bf16.mxu0 %v3642_v25  ;;  %v908_v25 = vld [vmem:[%s7757_s4 + $0x6e8] sm:$0xff]  ;;  %v3692_v62 = vpack.c.bf16 %v931_v59, %v927_v58  ;;  %v935_v1 = vld [vmem:[%s7757_s4 + $0x7c0] sm:$0xff] }
 0x102   : > { %v3678_v27 = vpack.c.bf16 %v908_v25, %v904_v24  ;;  %v939_v2 = vld [vmem:[%s7757_s4 + $0x7e0] sm:$0xff]  ;;  %v952_v12 = vld [vmem:[%s7757_s4 + $0x848] sm:$0xff] }
 0x103   : > { %v3696_v8 = vpack.c.bf16 %v939_v2, %v935_v1  ;;  %v956_v16 = vld [vmem:[%s7757_s4 + $0x868] sm:$0xff]  ;;  %v951_v24 = vld [vmem:[%s7757_s4 + $0x840] sm:$0xff] }
 0x104   : > { %3645 = vmatpush1.bf16.msra.mxu0 %v3644_v30  ;;  %v912_v30 = vld [vmem:[%s7757_s4 + $0x708] sm:$0xff]  ;;  %v3702_v22 = vpack.c.bf16 %v956_v16, %v952_v12  ;;  %v955_v25 = vld [vmem:[%s7757_s4 + $0x860] sm:$0xff] }
 0x105   : > { %3647 = vmatprep.subr.bf16.mxu0 %v3646_v31  ;;  %v916_v31 = vld [vmem:[%s7757_s4 + $0x728] sm:$0xff]  ;;  %v975_v50 = vld [vmem:[%s7757_s4 + $0x900] sm:$0xff] }
 0x106   : > { %v3682_v35 = vpack.c.bf16 %v916_v31, %v912_v30  ;;  %v3704_v30 = vpack.c.bf16 %v955_v25, %v951_v24  ;;  %v3706_v31 = vpack.c.bf16 %v964_v29, %v960_v28  ;;  %v979_v51 = vld [vmem:[%s7757_s4 + $0x920] sm:$0xff]  ;;  %v984_v52 = vld [vmem:[%s7757_s4 + $0x948] sm:$0xff] }
 0x107   : > { %v987_v58 = vld [vmem:[%s7757_s4 + $0x960] sm:$0xff]  ;;  %v992_v59 = vld [vmem:[%s7757_s4 + $0x988] sm:$0xff] }
 0x108   : > { %3649 = vmatpush1.bf16.msra.mxu0 %v3648_v36  ;;  %v911_v36 = vld [vmem:[%s7757_s4 + $0x700] sm:$0xff]  ;;  %v1004_v1 = vld [vmem:[%s7757_s4 + $0x9e8] sm:$0xff] }
 0x109   : > { %3651 = vmatprep.subr.bf16.mxu0 %v3650_v37  ;;  %v915_v37 = vld [vmem:[%s7757_s4 + $0x720] sm:$0xff]  ;;  %v1028_v24 = vld [vmem:[%s7757_s4 + $0xaa8] sm:$0xff] }
 0x10a   : > { %v1011_v12 = vld [vmem:[%s7757_s4 + $0xa20] sm:$0xff] }
 0x10b   : > { %v1023_v29 = vld [vmem:[%s7757_s4 + $0xa80] sm:$0xff] }
 0x10c   : > { %3653 = vmatpush1.bf16.msra.mxu0 %v3652_v42  ;;  %v3684_v42 = vpack.c.bf16 %v915_v37, %v911_v36  ;;  %v972_v36 = vld [vmem:[%s7757_s4 + $0x8e8] sm:$0xff] }
 0x10d   : > { %3655 = vmatprep.subr.bf16.mxu0 %v3654_v43  ;;  %v3686_v43 = vpack.c.bf16 %v924_v39, %v920_v38  ;;  %v967_v39 = vld [vmem:[%s7757_s4 + $0x8c0] sm:$0xff] }
 0x110   : > { %3657 = vmatpush1.bf16.msra.mxu0 %v3656_v53  ;;  %v643_v53 = vadd.f32 %v4980_v19, %v402_v40  ;;  %v971_v40 = vld [vmem:[%s7757_s4 + $0x8e0] sm:$0xff] }
 0x111   : > { %3659 = vmatprep.subr.bf16.mxu0 %v3658_v55  ;;  %v570_v55 = vadd.f32 %v4956_v54, %v390_v41  ;;  %v940_v54 = vld [vmem:[%s7757_s4 + $0x7e8] sm:$0xff] }
 0x112   : > { %v650_v19 = vmax.f32 %v643_v53, 0.0  ;;  %v976_v41 = vld [vmem:[%s7757_s4 + $0x908] sm:$0xff] }
 0x113   : > { %v988_v53 = vld [vmem:[%s7757_s4 + $0x968] sm:$0xff] }
 0x114   : > { %3661 = vmatpush1.bf16.msra.mxu0 %v3660_v60  ;;  %v936_v60 = vld [vmem:[%s7757_s4 + $0x7c8] sm:$0xff]  ;;  %v674_v6 = vadd.f32 0.01, %v650_v19  ;;  %vm668_vm8 = vcmp.lt.f32.partialorder %v650_v19, -0.01 }
 0x115   : > { %3663 = vmatprep.subr.bf16.mxu0 %v3662_v61  ;;  %v647_v61 = vmax.f32 %v570_v55, 0.0  ;;  %v3694_v63 = vpack.c.bf16 %v940_v54, %v936_v60  ;;  %v3535_v13 = vadd.f32 -0.01, %v650_v19  ;;  %vm656_vm10 = vcmp.gt.f32.partialorder %v650_v19, 0.01  ;;  %v996_v60 = vld [vmem:[%s7757_s4 + $0x9a8] sm:$0xff] }
 0x116   : > { %v3716_v55 = vpack.c.bf16 %v979_v51, %v975_v50  ;;  %v3722_v19 = vpack.c.bf16 %v996_v60, %v992_v59  ;;  %v1048_v50 = vld [vmem:[%s7757_s4 + $0xb48] sm:$0xff] }
 0x117   : > { %v671_v7 = vadd.f32 0.01, %v647_v61  ;;  %vm665_vm9 = vcmp.lt.f32.partialorder %v647_v61, -0.01  ;;  %v3532_v15 = vadd.f32 -0.01, %v647_v61 }
 0x118   : > { %3665 = vmatpush1.bf16.msra.mxu0 %v3664_v4  ;;  %v944_v4 = vld [vmem:[%s7757_s4 + $0x808] sm:$0xff]  ;;  %vm653_vm11 = vcmp.gt.f32.partialorder %v647_v61, 0.01  ;;  %v991_v61 = vld [vmem:[%s7757_s4 + $0x980] sm:$0xff] }
 0x119   : > { %3667 = vmatprep.subr.bf16.mxu0 %v3666_v5  ;;  %v948_v5 = vld [vmem:[%s7757_s4 + $0x828] sm:$0xff] }
 0x11a   : > { %v3698_v9 = vpack.c.bf16 %v948_v5, %v944_v4  ;;  %v999_v5 = vld [vmem:[%s7757_s4 + $0x9c0] sm:$0xff]  ;;  %v1052_v51 = vld [vmem:[%s7757_s4 + $0xb68] sm:$0xff] }
 0x11c   : > { %3669 = vmatpush1.bf16.msra.mxu0 %v3668_v10  ;;  %v943_v10 = vld [vmem:[%s7757_s4 + $0x800] sm:$0xff] }
 0x11d   : > { %3671 = vmatprep.subr.bf16.mxu0 %v3670_v11  ;;  %v947_v11 = vld [vmem:[%s7757_s4 + $0x820] sm:$0xff] }
 0x11e   : > { %v3700_v21 = vpack.c.bf16 %v947_v11, %v943_v10  ;;  %v1007_v11 = vld [vmem:[%s7757_s4 + $0xa00] sm:$0xff] }
 0x11f   : > { %v3732_v16 = vpack.c.bf16 %v1011_v12, %v1007_v11  ;;  %v689_v11 = vld [vmem:[%s7757_s4 + $0x10] sm:$0xff] }
 0x120   : > { %3673 = vmatpush1.bf16.msra.mxu0 %v3672_v17  ;;  %v680_v17 = vsel %vm668_vm8, %v674_v6, 0.0  ;;  %v1003_v6 = vld [vmem:[%s7757_s4 + $0x9e0] sm:$0xff]  ;;  %v693_v12 = vld [vmem:[%s7757_s4 + $0x30] sm:$0xff] }
 0x121   : > { %3675 = vmatprep.subr.bf16.mxu0 %v3674_v18  ;;  %v677_v18 = vsel %vm665_vm9, %v671_v7, 0.0  ;;  %v1008_v7 = vld [vmem:[%s7757_s4 + $0xa08] sm:$0xff] }
 0x124   : > { %3677 = vmatpush1.bf16.msra.mxu0 %v3676_v26  ;;  %v5191_v26 = vsel %vm656_vm10, %v3535_v13, %v680_v17  ;;  %v1016_v13 = vld [vmem:[%s7757_s4 + $0xa48] sm:$0xff] }
 0x125   : > { %3679 = vmatprep.subr.bf16.mxu0 %v3678_v27  ;;  %v5193_v27 = vsel %vm653_vm11, %v3532_v15, %v677_v18  ;;  %v1020_v15 = vld [vmem:[%s7757_s4 + $0xa68] sm:$0xff]  ;;  %v1015_v18 = vld [vmem:[%s7757_s4 + $0xa40] sm:$0xff] }
 0x126   : > { %v3734_v17 = vpack.c.bf16 %v1020_v15, %v1016_v13  ;;  %v698_v15 = vld [vmem:[%s7757_s4 + $0x58] sm:$0xff] }
 0x128   : > { %3681 = vmatpush1.bf16.msra.mxu0 %v3680_v34  ;;  %v963_v34 = vld [vmem:[%s7757_s4 + $0x8a0] sm:$0xff] }
 0x129   : > { %3683 = vmatprep.subr.bf16.mxu0 %v3682_v35  ;;  %v968_v35 = vld [vmem:[%s7757_s4 + $0x8c8] sm:$0xff]  ;;  %v3708_v37 = vpack.c.bf16 %v963_v34, %v959_v32 }
 0x12a   : > { %v3710_v38 = vpack.c.bf16 %v972_v36, %v968_v35  ;;  %v1036_v32 = vld [vmem:[%s7757_s4 + $0xae8] sm:$0xff]  ;;  %v1031_v36 = vld [vmem:[%s7757_s4 + $0xac0] sm:$0xff] }
 0x12c   : > { %3685 = vmatpush1.bf16.msra.mxu0 %v3684_v42  ;;  %v980_v42 = vld [vmem:[%s7757_s4 + $0x928] sm:$0xff] }
 0x12d   : > { %3687 = vmatprep.subr.bf16.mxu0 %v3686_v43  ;;  %v3712_v43 = vpack.c.bf16 %v971_v40, %v967_v39  ;;  %v3714_v44 = vpack.c.bf16 %v980_v42, %v976_v41  ;;  %v1044_v39 = vld [vmem:[%s7757_s4 + $0xb28] sm:$0xff]  ;;  %v397_v40 = vsub.s32 4, %v4934_v45 }
 0x130   : > { %3689 = vmatpush1.bf16.msra.mxu0 %v3688_v56  ;;  %v3718_v56 = vpack.c.bf16 %v988_v53, %v984_v52  ;;  %v398_v52 = vrot.slane %v4942_v47, %v397_v40  ;;  %v1060_v47 = vld [vmem:[%s7757_s4 + $0xba8] sm:$0xff]  ;;  %v722_v40 = vld [vmem:[%s7757_s4 + $0x118] sm:$0xff] }
 0x131   : > { %3691 = vmatprep.subr.bf16.mxu0 %v3690_v57  ;;  %v983_v57 = vld [vmem:[%s7757_s4 + $0x940] sm:$0xff] }
 0x132   : > { %v3720_v54 = vpack.c.bf16 %v987_v58, %v983_v57  ;;  %v1051_v57 = vld [vmem:[%s7757_s4 + $0xb60] sm:$0xff]  ;;  %v1056_v58 = vld [vmem:[%s7757_s4 + $0xb88] sm:$0xff]  ;;  %v641_v59 = vadd.f32 %v4961_v0, %v398_v52  ;;  %v734_v52 = vld [vmem:[%s7757_s4 + $0x178] sm:$0xff] }
 0x133   : > { %v1068_v0 = vld [vmem:[%s7757_s4 + $0xbe8] sm:$0xff] }
 0x134   : > { %3693 = vmatpush1.bf16.msra.mxu0 %v3692_v62  ;;  %v995_v62 = vld [vmem:[%s7757_s4 + $0x9a0] sm:$0xff] }
 0x135   : > { %3695 = vmatprep.subr.bf16.mxu0 %v3694_v63  ;;  %v1000_v63 = vld [vmem:[%s7757_s4 + $0x9c8] sm:$0xff]  ;;  %v3724_v2 = vpack.c.bf16 %v995_v62, %v991_v61  ;;  %v1059_v61 = vld [vmem:[%s7757_s4 + $0xba0] sm:$0xff] }
 0x136   : > { %v3726_v4 = vpack.c.bf16 %v1004_v1, %v1000_v63  ;;  %v1064_v62 = vld [vmem:[%s7757_s4 + $0xbc8] sm:$0xff]  ;;  %v649_v63 = vmax.f32 %v641_v59, 0.0 }
 0x138   : > { %3697 = vmatpush1.bf16.msra.mxu0 %v3696_v8  ;;  %v1012_v8 = vld [vmem:[%s7757_s4 + $0xa28] sm:$0xff]  ;;  %vm667_vm12 = vcmp.lt.f32.partialorder %v649_v63, -0.01  ;;  %v3534_v13 = vadd.f32 -0.01, %v649_v63 }
 0x139   : > { %3699 = vmatprep.subr.bf16.mxu0 %v3698_v9  ;;  %v3728_v9 = vpack.c.bf16 %v1003_v6, %v999_v5  ;;  %v3730_v10 = vpack.c.bf16 %v1012_v8, %v1008_v7  ;;  %v1067_v5 = vld [vmem:[%s7757_s4 + $0xbe0] sm:$0xff]  ;;  %v690_v6 = vld [vmem:[%s7757_s4 + $0x18] sm:$0xff]  ;;  %v673_v8 = vadd.f32 0.01, %v649_v63  ;;  %vm655_vm13 = vcmp.gt.f32.partialorder %v649_v63, 0.01 }
 0x13a   : > { %v694_v7 = vld [vmem:[%s7757_s4 + $0x38] sm:$0xff] }
 0x13b   : > { %1207 = vmatmul.mubr.f32.vlgmr.msra.gmra.mrb[4].mxu0 %v5193_v27 }
 0x13c   : > { %3701 = vmatpush1.bf16.msra.mxu0 %v3700_v21  ;;  %1277 = vmatprep.mubr.f32.mxu0 %v5191_v26  ;;  %v1019_v21 = vld [vmem:[%s7757_s4 + $0xa60] sm:$0xff] }
 0x13d   : > { %3703 = vmatprep.subr.bf16.mxu0 %v3702_v22  ;;  %v1024_v22 = vld [vmem:[%s7757_s4 + $0xa88] sm:$0xff]  ;;  %v3736_v25 = vpack.c.bf16 %v1019_v21, %v1015_v18  ;;  %v3764_v18 = vpack.c.bf16 %v693_v12, %v689_v11  ;;  %v766_v11 = vld [vmem:[%s7757_s4 + $0x278] sm:$0xff] }
 0x13e   : > { %v3738_v28 = vpack.c.bf16 %v1028_v24, %v1024_v22  ;;  %v697_v22 = vld [vmem:[%s7757_s4 + $0x50] sm:$0xff] }
 0x13f   : > { %v701_v24 = vld [vmem:[%s7757_s4 + $0x70] sm:$0xff] }
 0x140   : > { %3705 = vmatpush1.bf16.msra.mxu0 %v3704_v30  ;;  %v1027_v30 = vld [vmem:[%s7757_s4 + $0xaa0] sm:$0xff] }
 0x141   : > { %3707 = vmatprep.subr.bf16.mxu0 %v3706_v31  ;;  %v1032_v31 = vld [vmem:[%s7757_s4 + $0xac8] sm:$0xff]  ;;  %v3740_v34 = vpack.c.bf16 %v1027_v30, %v1023_v29  ;;  %v710_v29 = vld [vmem:[%s7757_s4 + $0xb8] sm:$0xff]  ;;  %v3768_v30 = vpack.c.bf16 %v701_v24, %v697_v22  ;;  %v769_v24 = vld [vmem:[%s7757_s4 + $0x290] sm:$0xff] }
 0x142   : > { %v3742_v35 = vpack.c.bf16 %v1036_v32, %v1032_v31  ;;  %v705_v32 = vld [vmem:[%s7757_s4 + $0x90] sm:$0xff] }
 0x144   : > { %3709 = vmatpush1.bf16.msra.mxu0 %v3708_v37  ;;  %v1035_v37 = vld [vmem:[%s7757_s4 + $0xae0] sm:$0xff] }
 0x145   : > { %3711 = vmatprep.subr.bf16.mxu0 %v3710_v38  ;;  %v1040_v38 = vld [vmem:[%s7757_s4 + $0xb08] sm:$0xff]  ;;  %v3744_v41 = vpack.c.bf16 %v1035_v37, %v1031_v36  ;;  %v718_v36 = vld [vmem:[%s7757_s4 + $0xf8] sm:$0xff] }
 0x146   : > { %v3746_v42 = vpack.c.bf16 %v1044_v39, %v1040_v38  ;;  %v713_v38 = vld [vmem:[%s7757_s4 + $0xd0] sm:$0xff] }
 0x147   : > { %v717_v39 = vld [vmem:[%s7757_s4 + $0xf0] sm:$0xff] }
 0x148   : > { %3713 = vmatpush1.bf16.msra.mxu0 %v3712_v43  ;;  %v1039_v43 = vld [vmem:[%s7757_s4 + $0xb00] sm:$0xff] }
 0x149   : > { %3715 = vmatprep.subr.bf16.mxu0 %v3714_v44  ;;  %v1043_v44 = vld [vmem:[%s7757_s4 + $0xb20] sm:$0xff] }
 0x14a   : > { %v3748_v53 = vpack.c.bf16 %v1043_v44, %v1039_v43  ;;  %v721_v44 = vld [vmem:[%s7757_s4 + $0x110] sm:$0xff] }
 0x14c   : > { %3717 = vmatpush1.bf16.msra.mxu0 %v3716_v55  ;;  %v3750_v55 = vpack.c.bf16 %v1052_v51, %v1048_v50  ;;  %v725_v50 = vld [vmem:[%s7757_s4 + $0x130] sm:$0xff]  ;;  %v730_v51 = vld [vmem:[%s7757_s4 + $0x158] sm:$0xff] }
 0x14d   : > { %3719 = vmatprep.subr.bf16.mxu0 %v3718_v56  ;;  %v1047_v56 = vld [vmem:[%s7757_s4 + $0xb40] sm:$0xff] }
 0x14e   : > { %v3752_v60 = vpack.c.bf16 %v1051_v57, %v1047_v56  ;;  %v729_v56 = vld [vmem:[%s7757_s4 + $0x150] sm:$0xff] }
 0x14f   : > { %v733_v57 = vld [vmem:[%s7757_s4 + $0x170] sm:$0xff] }
 0x150   : > { %3721 = vmatpush1.bf16.msra.mxu0 %v3720_v54  ;;  %v3754_v54 = vpack.c.bf16 %v1060_v47, %v1056_v58  ;;  %v738_v58 = vld [vmem:[%s7757_s4 + $0x198] sm:$0xff]  ;;  %v3784_v59 = vpack.c.bf16 %v733_v57, %v729_v56  ;;  %v801_v57 = vld [vmem:[%s7757_s4 + $0x390] sm:$0xff] }
 0x151   : > { %3723 = vmatprep.subr.bf16.mxu0 %v3722_v19  ;;  %v1055_v19 = vld [vmem:[%s7757_s4 + $0xb80] sm:$0xff]  ;;  %v742_v47 = vld [vmem:[%s7757_s4 + $0x1b8] sm:$0xff] }
 0x152   : > { %v3756_v1 = vpack.c.bf16 %v1059_v61, %v1055_v19  ;;  %v741_v19 = vld [vmem:[%s7757_s4 + $0x1b0] sm:$0xff]  ;;  %v746_v61 = vld [vmem:[%s7757_s4 + $0x1d8] sm:$0xff] }
 0x154   : > { %3725 = vmatpush1.bf16.msra.mxu0 %v3724_v2  ;;  %v3758_v2 = vpack.c.bf16 %v1068_v0, %v1064_v62  ;;  %v750_v62 = vld [vmem:[%s7757_s4 + $0x1f8] sm:$0xff] }
 0x155   : > { %3727 = vmatprep.subr.bf16.mxu0 %v3726_v4  ;;  %v1063_v4 = vld [vmem:[%s7757_s4 + $0xbc0] sm:$0xff]  ;;  %v3790_v63 = vpack.c.bf16 %v750_v62, %v746_v61  ;;  %v813_v61 = vld [vmem:[%s7757_s4 + $0x3f0] sm:$0xff]  ;;  %v818_v62 = vld [vmem:[%s7757_s4 + $0x418] sm:$0xff] }
 0x158   : > { %3729 = vmatpush1.bf16.msra.mxu0 %v3728_v9  ;;  %v3760_v9 = vpack.c.bf16 %v1067_v5, %v1063_v4  ;;  %v754_v4 = vld [vmem:[%s7757_s4 + $0x218] sm:$0xff] }
 0x159   : > { %3731 = vmatprep.subr.bf16.mxu0 %v3730_v10  ;;  %v3762_v10 = vpack.c.bf16 %v694_v7, %v690_v6  ;;  %v758_v5 = vld [vmem:[%s7757_s4 + $0x238] sm:$0xff] }
 0x15a   : > { %v3794_v7 = vpack.c.bf16 %v758_v5, %v754_v4  ;;  %v821_v4 = vld [vmem:[%s7757_s4 + $0x430] sm:$0xff]  ;;  %v826_v5 = vld [vmem:[%s7757_s4 + $0x458] sm:$0xff] }
 0x15c   : > { %3733 = vmatpush1.bf16.msra.mxu0 %v3732_v16  ;;  %v702_v16 = vld [vmem:[%s7757_s4 + $0x78] sm:$0xff] }
 0x15d   : > { %3735 = vmatprep.subr.bf16.mxu0 %v3734_v17  ;;  %v679_v17 = vsel %vm667_vm12, %v673_v8, 0.0  ;;  %v3766_v21 = vpack.c.bf16 %v702_v16, %v698_v15  ;;  %v753_v8 = vld [vmem:[%s7757_s4 + $0x210] sm:$0xff] }
 0x15e   : > { %v761_v15 = vld [vmem:[%s7757_s4 + $0x250] sm:$0xff] }
 0x15f   : > { %v765_v16 = vld [vmem:[%s7757_s4 + $0x270] sm:$0xff] }
 0x160   : > { %3737 = vmatpush1.bf16.msra.mxu0 %v3736_v25  ;;  %v5392_v25 = vsel %vm655_vm13, %v3534_v13, %v679_v17  ;;  %v770_v17 = vld [vmem:[%s7757_s4 + $0x298] sm:$0xff] }
 0x161   : > { %3739 = vmatprep.subr.bf16.mxu0 %v3738_v28  ;;  %v706_v28 = vld [vmem:[%s7757_s4 + $0x98] sm:$0xff] }
 0x162   : > { %v3770_v31 = vpack.c.bf16 %v710_v29, %v706_v28  ;;  %v773_v28 = vld [vmem:[%s7757_s4 + $0x2b0] sm:$0xff]  ;;  %v778_v29 = vld [vmem:[%s7757_s4 + $0x2d8] sm:$0xff] }
 0x164   : > { %3741 = vmatpush1.bf16.msra.mxu0 %v3740_v34  ;;  %v709_v34 = vld [vmem:[%s7757_s4 + $0xb0] sm:$0xff] }
 0x165   : > { %3743 = vmatprep.subr.bf16.mxu0 %v3742_v35  ;;  %v714_v35 = vld [vmem:[%s7757_s4 + $0xd8] sm:$0xff] }
 0x166   : > { %v3774_v37 = vpack.c.bf16 %v718_v36, %v714_v35  ;;  %v781_v35 = vld [vmem:[%s7757_s4 + $0x2f0] sm:$0xff]  ;;  %v786_v36 = vld [vmem:[%s7757_s4 + $0x318] sm:$0xff] }
 0x168   : > { %3745 = vmatpush1.bf16.msra.mxu0 %v3744_v41  ;;  %v726_v41 = vld [vmem:[%s7757_s4 + $0x138] sm:$0xff] }
 0x169   : > { %3747 = vmatprep.subr.bf16.mxu0 %v3746_v42  ;;  %v3776_v42 = vpack.c.bf16 %v717_v39, %v713_v38  ;;  %v3778_v43 = vpack.c.bf16 %v726_v41, %v722_v40  ;;  %v785_v39 = vld [vmem:[%s7757_s4 + $0x310] sm:$0xff]  ;;  %v794_v41 = vld [vmem:[%s7757_s4 + $0x358] sm:$0xff] }
 0x16a   : > { %v789_v40 = vld [vmem:[%s7757_s4 + $0x330] sm:$0xff] }
 0x16c   : > { %3749 = vmatpush1.bf16.msra.mxu0 %v3748_v53  ;;  %v3780_v53 = vpack.c.bf16 %v725_v50, %v721_v44  ;;  %v793_v50 = vld [vmem:[%s7757_s4 + $0x350] sm:$0xff] }
 0x16d   : > { %3751 = vmatprep.subr.bf16.mxu0 %v3750_v55  ;;  %v3782_v55 = vpack.c.bf16 %v734_v52, %v730_v51  ;;  %v797_v51 = vld [vmem:[%s7757_s4 + $0x370] sm:$0xff]  ;;  %v802_v52 = vld [vmem:[%s7757_s4 + $0x398] sm:$0xff] }
 0x170   : > { %3753 = vmatpush1.bf16.msra.mxu0 %v3752_v60  ;;  %v3786_v60 = vpack.c.bf16 %v742_v47, %v738_v58  ;;  %v805_v58 = vld [vmem:[%s7757_s4 + $0x3b0] sm:$0xff]  ;;  %v810_v47 = vld [vmem:[%s7757_s4 + $0x3d8] sm:$0xff] }
 0x171   : > { %3755 = vmatprep.subr.bf16.mxu0 %v3754_v54  ;;  %v737_v54 = vld [vmem:[%s7757_s4 + $0x190] sm:$0xff] }
 0x172   : > { %v3788_v0 = vpack.c.bf16 %v741_v19, %v737_v54  ;;  %v809_v19 = vld [vmem:[%s7757_s4 + $0x3d0] sm:$0xff] }
 0x174   : > { %3757 = vmatpush1.bf16.msra.mxu0 %v3756_v1  ;;  %v745_v1 = vld [vmem:[%s7757_s4 + $0x1d0] sm:$0xff] }
 0x175   : > { %3759 = vmatprep.subr.bf16.mxu0 %v3758_v2  ;;  %v749_v2 = vld [vmem:[%s7757_s4 + $0x1f0] sm:$0xff] }
 0x176   : > { %v3792_v6 = vpack.c.bf16 %v749_v2, %v745_v1  ;;  %v817_v2 = vld [vmem:[%s7757_s4 + $0x410] sm:$0xff] }
 0x178   : > { %3761 = vmatpush1.bf16.msra.mxu0 %v3760_v9  ;;  %v757_v9 = vld [vmem:[%s7757_s4 + $0x230] sm:$0xff] }
 0x179   : > { %3763 = vmatprep.subr.bf16.mxu0 %v3762_v10  ;;  %v762_v10 = vld [vmem:[%s7757_s4 + $0x258] sm:$0xff]  ;;  %v3796_v12 = vpack.c.bf16 %v757_v9, %v753_v8  ;;  %v825_v9 = vld [vmem:[%s7757_s4 + $0x450] sm:$0xff] }
 0x17a   : > { %v3798_v13 = vpack.c.bf16 %v766_v11, %v762_v10  ;;  %v829_v10 = vld [vmem:[%s7757_s4 + $0x470] sm:$0xff]  ;;  %v834_v11 = vld [vmem:[%s7757_s4 + $0x498] sm:$0xff] }
 0x17b   : > { %1278 = vmatmul.mubr.f32.vlgmr.msra.gmra.mrb[4].mxu0 %v5392_v25 }
 0x17c   : > { %3765 = vmatpush1.bf16.msra.mxu0 %v3764_v18  ;;  %1348 = vmatprep.mubr.f32.mxu0 %v4972_v14  ;;  %v3772_v14 = vpack.c.bf16 %v709_v34, %v705_v32  ;;  %v774_v18 = vld [vmem:[%s7757_s4 + $0x2b8] sm:$0xff]  ;;  %v777_v34 = vld [vmem:[%s7757_s4 + $0x2d0] sm:$0xff] }
 0x17d   : > { %3767 = vmatprep.subr.bf16.mxu0 %v3766_v21  ;;  %v3800_v21 = vpack.c.bf16 %v765_v16, %v761_v15  ;;  %v3802_v22 = vpack.c.bf16 %v774_v18, %v770_v17  ;;  %v833_v16 = vld [vmem:[%s7757_s4 + $0x490] sm:$0xff]  ;;  %v842_v18 = vld [vmem:[%s7757_s4 + $0x4d8] sm:$0xff] }
 0x17e   : > { %v837_v17 = vld [vmem:[%s7757_s4 + $0x4b0] sm:$0xff] }
 0x180   : > { %3769 = vmatpush1.bf16.msra.mxu0 %v3768_v30  ;;  %v782_v30 = vld [vmem:[%s7757_s4 + $0x2f8] sm:$0xff] }
 0x181   : > { %3771 = vmatprep.subr.bf16.mxu0 %v3770_v31  ;;  %v3804_v31 = vpack.c.bf16 %v773_v28, %v769_v24  ;;  %v3806_v32 = vpack.c.bf16 %v782_v30, %v778_v29  ;;  %v845_v24 = vld [vmem:[%s7757_s4 + $0x4f0] sm:$0xff]  ;;  %v850_v28 = vld [vmem:[%s7757_s4 + $0x518] sm:$0xff] }
 0x182   : > { %v854_v29 = vld [vmem:[%s7757_s4 + $0x538] sm:$0xff] }
 0x184   : > { %3773 = vmatpush1.bf16.msra.mxu0 %v3772_v14  ;;  %v790_v14 = vld [vmem:[%s7757_s4 + $0x338] sm:$0xff] }
 0x185   : > { %3775 = vmatprep.subr.bf16.mxu0 %v3774_v37  ;;  %v3808_v37 = vpack.c.bf16 %v781_v35, %v777_v34  ;;  %v3810_v38 = vpack.c.bf16 %v790_v14, %v786_v36  ;;  %v853_v34 = vld [vmem:[%s7757_s4 + $0x530] sm:$0xff]  ;;  %v858_v35 = vld [vmem:[%s7757_s4 + $0x558] sm:$0xff] }
 0x186   : > { %v862_v36 = vld [vmem:[%s7757_s4 + $0x578] sm:$0xff] }
 0x188   : > { %3777 = vmatpush1.bf16.msra.mxu0 %v3776_v42  ;;  %v798_v42 = vld [vmem:[%s7757_s4 + $0x378] sm:$0xff] }
 0x189   : > { %3779 = vmatprep.subr.bf16.mxu0 %v3778_v43  ;;  %v3812_v43 = vpack.c.bf16 %v789_v40, %v785_v39  ;;  %v3814_v44 = vpack.c.bf16 %v798_v42, %v794_v41  ;;  %v861_v39 = vld [vmem:[%s7757_s4 + $0x570] sm:$0xff]  ;;  %v866_v40 = vld [vmem:[%s7757_s4 + $0x598] sm:$0xff] }
 0x18a   : > { %v870_v41 = vld [vmem:[%s7757_s4 + $0x5b8] sm:$0xff] }
 0x18c   : > { %3781 = vmatpush1.bf16.msra.mxu0 %v3780_v53  ;;  %v806_v53 = vld [vmem:[%s7757_s4 + $0x3b8] sm:$0xff] }
 0x18d   : > { %3783 = vmatprep.subr.bf16.mxu0 %v3782_v55  ;;  %v3816_v55 = vpack.c.bf16 %v797_v51, %v793_v50  ;;  %v3818_v56 = vpack.c.bf16 %v806_v53, %v802_v52  ;;  %v869_v50 = vld [vmem:[%s7757_s4 + $0x5b0] sm:$0xff]  ;;  %v874_v51 = vld [vmem:[%s7757_s4 + $0x5d8] sm:$0xff] }
 0x18e   : > { %v878_v52 = vld [vmem:[%s7757_s4 + $0x5f8] sm:$0xff] }
 0x190   : > { %3785 = vmatpush1.bf16.msra.mxu0 %v3784_v59  ;;  %v814_v59 = vld [vmem:[%s7757_s4 + $0x3f8] sm:$0xff] }
 0x191   : > { %3787 = vmatprep.subr.bf16.mxu0 %v3786_v60  ;;  %v3820_v60 = vpack.c.bf16 %v805_v58, %v801_v57  ;;  %v3822_v54 = vpack.c.bf16 %v814_v59, %v810_v47  ;;  %v877_v57 = vld [vmem:[%s7757_s4 + $0x5f0] sm:$0xff]  ;;  %v882_v58 = vld [vmem:[%s7757_s4 + $0x618] sm:$0xff] }
 0x192   : > { %v886_v47 = vld [vmem:[%s7757_s4 + $0x638] sm:$0xff] }
 0x194   : > { %3789 = vmatpush1.bf16.msra.mxu0 %v3788_v0  ;;  %v822_v0 = vld [vmem:[%s7757_s4 + $0x438] sm:$0xff] }
 0x195   : > { %3791 = vmatprep.subr.bf16.mxu0 %v3790_v63  ;;  %v3824_v63 = vpack.c.bf16 %v813_v61, %v809_v19  ;;  %v3826_v1 = vpack.c.bf16 %v822_v0, %v818_v62  ;;  %v885_v19 = vld [vmem:[%s7757_s4 + $0x630] sm:$0xff]  ;;  %v890_v61 = vld [vmem:[%s7757_s4 + $0x658] sm:$0xff] }
 0x196   : > { %v894_v62 = vld [vmem:[%s7757_s4 + $0x678] sm:$0xff] }
 0x198   : > { %3793 = vmatpush1.bf16.msra.mxu0 %v3792_v6  ;;  %v830_v6 = vld [vmem:[%s7757_s4 + $0x478] sm:$0xff] }
 0x199   : > { %3795 = vmatprep.subr.bf16.mxu0 %v3794_v7  ;;  %v3828_v7 = vpack.c.bf16 %v821_v4, %v817_v2  ;;  %v3830_v8 = vpack.c.bf16 %v830_v6, %v826_v5  ;;  %v893_v2 = vld [vmem:[%s7757_s4 + $0x670] sm:$0xff]  ;;  %v898_v4 = vld [vmem:[%s7757_s4 + $0x698] sm:$0xff] }
 0x19a   : > { %v902_v5 = vld [vmem:[%s7757_s4 + $0x6b8] sm:$0xff] }
 0x19c   : > { %3797 = vmatpush1.bf16.msra.mxu0 %v3796_v12  ;;  %v838_v12 = vld [vmem:[%s7757_s4 + $0x4b8] sm:$0xff] }
 0x19d   : > { %3799 = vmatprep.subr.bf16.mxu0 %v3798_v13  ;;  %v3832_v13 = vpack.c.bf16 %v829_v10, %v825_v9  ;;  %v3834_v15 = vpack.c.bf16 %v838_v12, %v834_v11  ;;  %v901_v9 = vld [vmem:[%s7757_s4 + $0x6b0] sm:$0xff]  ;;  %v906_v10 = vld [vmem:[%s7757_s4 + $0x6d8] sm:$0xff] }
 0x19e   : > { %v910_v11 = vld [vmem:[%s7757_s4 + $0x6f8] sm:$0xff] }
 0x1a0   : > { %3801 = vmatpush1.bf16.msra.mxu0 %v3800_v21 }
 0x1a1   : > { %3803 = vmatprep.subr.bf16.mxu0 %v3802_v22  ;;  %v841_v22 = vld [vmem:[%s7757_s4 + $0x4d0] sm:$0xff] }
 0x1a2   : > { %v3840_v30 = vpack.c.bf16 %v845_v24, %v841_v22  ;;  %v917_v22 = vld [vmem:[%s7757_s4 + $0x730] sm:$0xff]  ;;  %v922_v24 = vld [vmem:[%s7757_s4 + $0x758] sm:$0xff] }
 0x1a4   : > { %3805 = vmatpush1.bf16.msra.mxu0 %v3804_v31  ;;  %v3842_v31 = vpack.c.bf16 %v854_v29, %v850_v28  ;;  %v926_v28 = vld [vmem:[%s7757_s4 + $0x778] sm:$0xff] }
 0x1a5   : > { %3807 = vmatprep.subr.bf16.mxu0 %v3806_v32  ;;  %v849_v32 = vld [vmem:[%s7757_s4 + $0x510] sm:$0xff] }
 0x1a6   : > { %v3844_v14 = vpack.c.bf16 %v853_v34, %v849_v32  ;;  %v925_v32 = vld [vmem:[%s7757_s4 + $0x770] sm:$0xff]  ;;  %v930_v34 = vld [vmem:[%s7757_s4 + $0x798] sm:$0xff] }
 0x1a8   : > { %3809 = vmatpush1.bf16.msra.mxu0 %v3808_v37  ;;  %v3846_v37 = vpack.c.bf16 %v862_v36, %v858_v35  ;;  %v934_v35 = vld [vmem:[%s7757_s4 + $0x7b8] sm:$0xff] }
 0x1a9   : > { %3811 = vmatprep.subr.bf16.mxu0 %v3810_v38  ;;  %v857_v38 = vld [vmem:[%s7757_s4 + $0x550] sm:$0xff] }
 0x1aa   : > { %v3848_v42 = vpack.c.bf16 %v861_v39, %v857_v38  ;;  %v933_v38 = vld [vmem:[%s7757_s4 + $0x7b0] sm:$0xff]  ;;  %v938_v39 = vld [vmem:[%s7757_s4 + $0x7d8] sm:$0xff] }
 0x1ac   : > { %3813 = vmatpush1.bf16.msra.mxu0 %v3812_v43  ;;  %v3850_v43 = vpack.c.bf16 %v870_v41, %v866_v40  ;;  %v942_v40 = vld [vmem:[%s7757_s4 + $0x7f8] sm:$0xff] }
 0x1ad   : > { %3815 = vmatprep.subr.bf16.mxu0 %v3814_v44  ;;  %v865_v44 = vld [vmem:[%s7757_s4 + $0x590] sm:$0xff] }
 0x1ae   : > { %v3852_v53 = vpack.c.bf16 %v869_v50, %v865_v44  ;;  %v941_v44 = vld [vmem:[%s7757_s4 + $0x7f0] sm:$0xff]  ;;  %v946_v50 = vld [vmem:[%s7757_s4 + $0x818] sm:$0xff] }
 0x1b0   : > { %3817 = vmatpush1.bf16.msra.mxu0 %v3816_v55  ;;  %v3854_v55 = vpack.c.bf16 %v878_v52, %v874_v51  ;;  %v950_v51 = vld [vmem:[%s7757_s4 + $0x838] sm:$0xff] }
 0x1b1   : > { %3819 = vmatprep.subr.bf16.mxu0 %v3818_v56  ;;  %v873_v56 = vld [vmem:[%s7757_s4 + $0x5d0] sm:$0xff] }
 0x1b2   : > { %v3856_v59 = vpack.c.bf16 %v877_v57, %v873_v56  ;;  %v949_v56 = vld [vmem:[%s7757_s4 + $0x830] sm:$0xff]  ;;  %v954_v57 = vld [vmem:[%s7757_s4 + $0x858] sm:$0xff] }
 0x1b4   : > { %3821 = vmatpush1.bf16.msra.mxu0 %v3820_v60  ;;  %v3858_v60 = vpack.c.bf16 %v886_v47, %v882_v58  ;;  %v958_v58 = vld [vmem:[%s7757_s4 + $0x878] sm:$0xff] }
 0x1b5   : > { %3823 = vmatprep.subr.bf16.mxu0 %v3822_v54  ;;  %v881_v54 = vld [vmem:[%s7757_s4 + $0x610] sm:$0xff] }
 0x1b6   : > { %v3860_v0 = vpack.c.bf16 %v885_v19, %v881_v54  ;;  %v957_v54 = vld [vmem:[%s7757_s4 + $0x870] sm:$0xff]  ;;  %v962_v19 = vld [vmem:[%s7757_s4 + $0x898] sm:$0xff] }
 0x1b8   : > { %3825 = vmatpush1.bf16.msra.mxu0 %v3824_v63  ;;  %v3862_v63 = vpack.c.bf16 %v894_v62, %v890_v61  ;;  %v966_v61 = vld [vmem:[%s7757_s4 + $0x8b8] sm:$0xff] }
 0x1b9   : > { %3827 = vmatprep.subr.bf16.mxu0 %v3826_v1  ;;  %v889_v1 = vld [vmem:[%s7757_s4 + $0x650] sm:$0xff] }
 0x1ba   : > { %v3864_v6 = vpack.c.bf16 %v893_v2, %v889_v1  ;;  %v965_v1 = vld [vmem:[%s7757_s4 + $0x8b0] sm:$0xff]  ;;  %v970_v2 = vld [vmem:[%s7757_s4 + $0x8d8] sm:$0xff] }
 0x1bb   : > { %1349 = vmatmul.mubr.f32.vlgmr.msra.gmra.mrb[6].mxu0 %v4983_v20  ;;  %v846_v20 = vld [vmem:[%s7757_s4 + $0x4f8] sm:$0xff] }
 0x1bc   : > { %3829 = vmatpush1.bf16.msra.mxu0 %v3828_v7  ;;  %1419 = vmatprep.mubr.f32.mxu0 %v4992_v23  ;;  %v3836_v23 = vpack.c.bf16 %v837_v17, %v833_v16  ;;  %v3838_v21 = vpack.c.bf16 %v846_v20, %v842_v18  ;;  %v3866_v7 = vpack.c.bf16 %v902_v5, %v898_v4  ;;  %v909_v16 = vld [vmem:[%s7757_s4 + $0x6f0] sm:$0xff]  ;;  %v914_v17 = vld [vmem:[%s7757_s4 + $0x718] sm:$0xff] }
 0x1bd   : > { %3831 = vmatprep.subr.bf16.mxu0 %v3830_v8  ;;  %v897_v8 = vld [vmem:[%s7757_s4 + $0x690] sm:$0xff]  ;;  %v918_v18 = vld [vmem:[%s7757_s4 + $0x738] sm:$0xff] }
 0x1be   : > { %v3868_v12 = vpack.c.bf16 %v901_v9, %v897_v8  ;;  %v969_v5 = vld [vmem:[%s7757_s4 + $0x8d0] sm:$0xff]  ;;  %v982_v8 = vld [vmem:[%s7757_s4 + $0x938] sm:$0xff] }
 0x1c0   : > { %3833 = vmatpush1.bf16.msra.mxu0 %v3832_v13  ;;  %v3870_v13 = vpack.c.bf16 %v910_v11, %v906_v10  ;;  %v977_v11 = vld [vmem:[%s7757_s4 + $0x910] sm:$0xff] }
 0x1c1   : > { %3835 = vmatprep.subr.bf16.mxu0 %v3834_v15  ;;  %v905_v15 = vld [vmem:[%s7757_s4 + $0x6d0] sm:$0xff] }
 0x1c2   : > { %v3872_v20 = vpack.c.bf16 %v909_v16, %v905_v15  ;;  %v990_v15 = vld [vmem:[%s7757_s4 + $0x978] sm:$0xff] }
 0x1c4   : > { %3837 = vmatpush1.bf16.msra.mxu0 %v3836_v23  ;;  %v3874_v23 = vpack.c.bf16 %v918_v18, %v914_v17  ;;  %v985_v18 = vld [vmem:[%s7757_s4 + $0x950] sm:$0xff] }
 0x1c5   : > { %3839 = vmatprep.subr.bf16.mxu0 %v3838_v21  ;;  %v913_v21 = vld [vmem:[%s7757_s4 + $0x710] sm:$0xff] }
 0x1c6   : > { %v3876_v29 = vpack.c.bf16 %v917_v22, %v913_v21  ;;  %v998_v21 = vld [vmem:[%s7757_s4 + $0x9b8] sm:$0xff] }
 0x1c8   : > { %3841 = vmatpush1.bf16.msra.mxu0 %v3840_v30  ;;  %v3878_v30 = vpack.c.bf16 %v926_v28, %v922_v24  ;;  %v993_v28 = vld [vmem:[%s7757_s4 + $0x990] sm:$0xff] }
 0x1c9   : > { %3843 = vmatprep.subr.bf16.mxu0 %v3842_v31  ;;  %v921_v31 = vld [vmem:[%s7757_s4 + $0x750] sm:$0xff] }
 0x1ca   : > { %v3880_v36 = vpack.c.bf16 %v925_v32, %v921_v31  ;;  %v1006_v31 = vld [vmem:[%s7757_s4 + $0x9f8] sm:$0xff] }
 0x1cc   : > { %3845 = vmatpush1.bf16.msra.mxu0 %v3844_v14  ;;  %v3882_v14 = vpack.c.bf16 %v934_v35, %v930_v34  ;;  %v1001_v35 = vld [vmem:[%s7757_s4 + $0x9d0] sm:$0xff] }
 0x1cd   : > { %3847 = vmatprep.subr.bf16.mxu0 %v3846_v37  ;;  %v929_v37 = vld [vmem:[%s7757_s4 + $0x790] sm:$0xff] }
 0x1ce   : > { %v3884_v41 = vpack.c.bf16 %v933_v38, %v929_v37  ;;  %v1014_v37 = vld [vmem:[%s7757_s4 + $0xa38] sm:$0xff] }
 0x1d0   : > { %3849 = vmatpush1.bf16.msra.mxu0 %v3848_v42  ;;  %v3886_v42 = vpack.c.bf16 %v942_v40, %v938_v39  ;;  %v1009_v40 = vld [vmem:[%s7757_s4 + $0xa10] sm:$0xff] }
 0x1d1   : > { %3851 = vmatprep.subr.bf16.mxu0 %v3850_v43  ;;  %v937_v43 = vld [vmem:[%s7757_s4 + $0x7d0] sm:$0xff] }
 0x1d2   : > { %v3888_v52 = vpack.c.bf16 %v941_v44, %v937_v43  ;;  %v1022_v43 = vld [vmem:[%s7757_s4 + $0xa78] sm:$0xff] }
 0x1d4   : > { %3853 = vmatpush1.bf16.msra.mxu0 %v3852_v53  ;;  %v3890_v53 = vpack.c.bf16 %v950_v51, %v946_v50  ;;  %v1017_v51 = vld [vmem:[%s7757_s4 + $0xa50] sm:$0xff] }
 0x1d5   : > { %3855 = vmatprep.subr.bf16.mxu0 %v3854_v55  ;;  %v945_v55 = vld [vmem:[%s7757_s4 + $0x810] sm:$0xff] }
 0x1d6   : > { %v3892_v47 = vpack.c.bf16 %v949_v56, %v945_v55  ;;  %v1030_v55 = vld [vmem:[%s7757_s4 + $0xab8] sm:$0xff] }
 0x1d8   : > { %3857 = vmatpush1.bf16.msra.mxu0 %v3856_v59  ;;  %v3894_v59 = vpack.c.bf16 %v958_v58, %v954_v57  ;;  %v1025_v58 = vld [vmem:[%s7757_s4 + $0xa90] sm:$0xff] }
 0x1d9   : > { %3859 = vmatprep.subr.bf16.mxu0 %v3858_v60  ;;  %v953_v60 = vld [vmem:[%s7757_s4 + $0x850] sm:$0xff] }
 0x1da   : > { %v3896_v62 = vpack.c.bf16 %v957_v54, %v953_v60  ;;  %v1038_v60 = vld [vmem:[%s7757_s4 + $0xaf8] sm:$0xff] }
 0x1dc   : > { %3861 = vmatpush1.bf16.msra.mxu0 %v3860_v0  ;;  %v3898_v0 = vpack.c.bf16 %v966_v61, %v962_v19  ;;  %v1033_v61 = vld [vmem:[%s7757_s4 + $0xad0] sm:$0xff] }
 0x1dd   : > { %3863 = vmatprep.subr.bf16.mxu0 %v3862_v63  ;;  %v961_v63 = vld [vmem:[%s7757_s4 + $0x890] sm:$0xff] }
 0x1e0   : > { %3865 = vmatpush1.bf16.msra.mxu0 %v3864_v6  ;;  %v973_v6 = vld [vmem:[%s7757_s4 + $0x8f0] sm:$0xff] }
 0x1e1   : > { %3867 = vmatprep.subr.bf16.mxu0 %v3866_v7  ;;  %v978_v7 = vld [vmem:[%s7757_s4 + $0x918] sm:$0xff]  ;;  %v3904_v9 = vpack.c.bf16 %v973_v6, %v969_v5 }
 0x1e2   : > { %v3906_v10 = vpack.c.bf16 %v982_v8, %v978_v7  ;;  %v1054_v5 = vld [vmem:[%s7757_s4 + $0xb78] sm:$0xff]  ;;  %v1049_v8 = vld [vmem:[%s7757_s4 + $0xb50] sm:$0xff] }
 0x1e4   : > { %3869 = vmatpush1.bf16.msra.mxu0 %v3868_v12  ;;  %v981_v12 = vld [vmem:[%s7757_s4 + $0x930] sm:$0xff] }
 0x1e5   : > { %3871 = vmatprep.subr.bf16.mxu0 %v3870_v13  ;;  %v986_v13 = vld [vmem:[%s7757_s4 + $0x958] sm:$0xff]  ;;  %v3908_v16 = vpack.c.bf16 %v981_v12, %v977_v11 }
 0x1e6   : > { %v3910_v17 = vpack.c.bf16 %v990_v15, %v986_v13  ;;  %v1062_v11 = vld [vmem:[%s7757_s4 + $0xbb8] sm:$0xff]  ;;  %v1057_v15 = vld [vmem:[%s7757_s4 + $0xb90] sm:$0xff] }
 0x1e8   : > { %3873 = vmatpush1.bf16.msra.mxu0 %v3872_v20  ;;  %v989_v20 = vld [vmem:[%s7757_s4 + $0x970] sm:$0xff] }
 0x1e9   : > { %3875 = vmatprep.subr.bf16.mxu0 %v3874_v23  ;;  %v994_v23 = vld [vmem:[%s7757_s4 + $0x998] sm:$0xff]  ;;  %v3912_v22 = vpack.c.bf16 %v989_v20, %v985_v18 }
 0x1ea   : > { %v3914_v24 = vpack.c.bf16 %v998_v21, %v994_v23  ;;  %v1070_v18 = vld [vmem:[%s7757_s4 + $0xbf8] sm:$0xff]  ;;  %v1065_v21 = vld [vmem:[%s7757_s4 + $0xbd0] sm:$0xff] }
 0x1ec   : > { %3877 = vmatpush1.bf16.msra.mxu0 %v3876_v29  ;;  %v997_v29 = vld [vmem:[%s7757_s4 + $0x9b0] sm:$0xff] }
 0x1ed   : > { %3879 = vmatprep.subr.bf16.mxu0 %v3878_v30  ;;  %v1002_v30 = vld [vmem:[%s7757_s4 + $0x9d8] sm:$0xff]  ;;  %v3916_v32 = vpack.c.bf16 %v997_v29, %v993_v28 }
 0x1ee   : > { %v3918_v34 = vpack.c.bf16 %v1006_v31, %v1002_v30  ;;  %v5957_v30 = vld [vmem:[%s7758_s5] sm:$0xff]  ;;  %v2760_v31 = vld [vmem:[%s7761_s8 + $0x8] sm:$0xff] }
 0x1f0   : > { %3881 = vmatpush1.bf16.msra.mxu0 %v3880_v36  ;;  %v1005_v36 = vld [vmem:[%s7757_s4 + $0x9f0] sm:$0xff] }
 0x1f1   : > { %3883 = vmatprep.subr.bf16.mxu0 %v3882_v14  ;;  %v1010_v14 = vld [vmem:[%s7757_s4 + $0xa18] sm:$0xff]  ;;  %v3920_v38 = vpack.c.bf16 %v1005_v36, %v1001_v35  ;;  %v373_v36 = vld [vmem:[%s371_s18] sm:$0xf]  ;;  %s3443_s18 = sshll.u32 %s363_s25, 4  ;;  %s7713_s18 = int_to_ptr.vmem [resolvable:$true] %s3443_s18 }
 0x1f2   : > { %v3922_v39 = vpack.c.bf16 %v1014_v37, %v1010_v14  ;;  %v2314_v35 = vld [vmem:[%s7760_s7 + $0x218] sm:$0xff]  ;;  %v2311_v37 = vld [vmem:[%s7760_s7 + $0x200] sm:$0xff]  ;;  %s4535_s22 = scalar_lea.vmem %s7713_s18, 128  ;;  %p4542_p0 = scmp.lt.s32.totalorder %s7713_s18, %s4540_s11 }
 0x1f3   : > { %p4536_p11 = scmp.ne.s32.totalorder %s7713_s18, %s4535_s22  ;;  %p4543_p1 = scmp.lt.s32.totalorder %s4541_s29, %s4535_s22 }
 0x1f4   : > { %3885 = vmatpush1.bf16.msra.mxu0 %v3884_v41  ;;  %v1013_v41 = vld [vmem:[%s7757_s4 + $0xa30] sm:$0xff] }
 0x1f5   : > { %3887 = vmatprep.subr.bf16.mxu0 %v3886_v42  ;;  %v1018_v42 = vld [vmem:[%s7757_s4 + $0xa58] sm:$0xff]  ;;  %v3924_v44 = vpack.c.bf16 %v1013_v41, %v1009_v40  ;;  %v2316_v40 = vld [vmem:[%s7760_s7 + $0x228] sm:$0xff]  ;;  %p4537_p12 = pnand %p4536_p11, %p4696_p5  ;;  %p4544_p2 = por %p4543_p1, %p4542_p0 }
 0x1f6   : > { %v3926_v50 = vpack.c.bf16 %v1022_v43, %v1018_v42  ;;  %v2318_v41 = vld [vmem:[%s7760_s7 + $0x238] sm:$0xff]  ;;  %v2315_v43 = vld [vmem:[%s7760_s7 + $0x220] sm:$0xff] }
 0x1f7   : > { %v4022_v42 = vpack.c.bf16 %v2318_v41, %v2316_v40  ;;  %v2263_v41 = vld [vmem:[%s7760_s7 + $0x80] sm:$0xff]  ;;  %p4538_p13 = pneg %p4537_p12 }
 0x1f8   : > { %3889 = vmatpush1.bf16.msra.mxu0 %v3888_v52  ;;  %v1021_v52 = vld [vmem:[%s7757_s4 + $0xa70] sm:$0xff] }
 0x1f9   : > { %3891 = vmatprep.subr.bf16.mxu0 %v3890_v53  ;;  %v1026_v53 = vld [vmem:[%s7757_s4 + $0xa98] sm:$0xff]  ;;  %v3928_v56 = vpack.c.bf16 %v1021_v52, %v1017_v51  ;;  %v2320_v51 = vld [vmem:[%s7760_s7 + $0x248] sm:$0xff]  ;;  %p4545_p3 = pnand %p4544_p2, %p4538_p13 }
 0x1fa   : > { %v3930_v57 = vpack.c.bf16 %v1030_v55, %v1026_v53  ;;  %v2322_v52 = vld [vmem:[%s7760_s7 + $0x258] sm:$0xff]  ;;  %v2319_v55 = vld [vmem:[%s7760_s7 + $0x240] sm:$0xff] }
 0x1fb   : > { %1420 = vmatmul.mubr.f32.vlgmr.msra.gmra.mrb[6].mxu0 %v5193_v27  ;;  %v974_v27 = vld [vmem:[%s7757_s4 + $0x8f8] sm:$0xff]  ;;  %v4026_v53 = vpack.c.bf16 %v2322_v52, %v2320_v51 }
 0x1fc   : > { %3893 = vmatpush1.bf16.msra.mxu0 %v3892_v47  ;;  %1490 = vmatprep.mubr.f32.mxu0 %v5191_v26  ;;  %v3900_v26 = vpack.c.bf16 %v965_v1, %v961_v63  ;;  %v3902_v4 = vpack.c.bf16 %v974_v27, %v970_v2  ;;  %v1029_v47 = vld [vmem:[%s7757_s4 + $0xab0] sm:$0xff]  ;;  %v1046_v63 = vld [vmem:[%s7757_s4 + $0xb38] sm:$0xff] }
 0x1fd   : > { %3895 = vmatprep.subr.bf16.mxu0 %v3894_v59  ;;  %v1034_v59 = vld [vmem:[%s7757_s4 + $0xad8] sm:$0xff]  ;;  %v3932_v54 = vpack.c.bf16 %v1029_v47, %v1025_v58  ;;  %v1041_v27 = vld [vmem:[%s7757_s4 + $0xb10] sm:$0xff]  ;;  %v2324_v58 = vld [vmem:[%s7760_s7 + $0x268] sm:$0xff] }
 0x1fe   : > { %v3934_v19 = vpack.c.bf16 %v1038_v60, %v1034_v59  ;;  %v2326_v47 = vld [vmem:[%s7760_s7 + $0x278] sm:$0xff]  ;;  %v2323_v60 = vld [vmem:[%s7760_s7 + $0x260] sm:$0xff] }
 0x1ff   : > { %v4030_v59 = vpack.c.bf16 %v2326_v47, %v2324_v58  ;;  %v6127_v52 = vld [vmem:[%s7759_s6 + $0x1] ss:$8 sm:$0xf] }
 0x200   : > { %3897 = vmatpush1.bf16.msra.mxu0 %v3896_v62  ;;  %v1037_v62 = vld [vmem:[%s7757_s4 + $0xaf0] sm:$0xff] }
 0x201   : > { %3899 = vmatprep.subr.bf16.mxu0 %v3898_v0  ;;  %v1042_v0 = vld [vmem:[%s7757_s4 + $0xb18] sm:$0xff]  ;;  %v3936_v1 = vpack.c.bf16 %v1037_v62, %v1033_v61 }
 0x202   : > { %v3938_v2 = vpack.c.bf16 %v1046_v63, %v1042_v0  ;;  %v2330_v61 = vld [vmem:[%s7760_s7 + $0x298] sm:$0xff]  ;;  %v2327_v63 = vld [vmem:[%s7760_s7 + $0x280] sm:$0xff] }
 0x204   : > { %3901 = vmatpush1.bf16.msra.mxu0 %v3900_v26  ;;  %v1045_v26 = vld [vmem:[%s7757_s4 + $0xb30] sm:$0xff] }
 0x205   : > { %3903 = vmatprep.subr.bf16.mxu0 %v3902_v4  ;;  %v1050_v4 = vld [vmem:[%s7757_s4 + $0xb58] sm:$0xff]  ;;  %v3940_v6 = vpack.c.bf16 %v1045_v26, %v1041_v27  ;;  %v2332_v27 = vld [vmem:[%s7760_s7 + $0x2a8] sm:$0xff] }
 0x206   : > { %v3942_v7 = vpack.c.bf16 %v1054_v5, %v1050_v4  ;;  %v2334_v26 = vld [vmem:[%s7760_s7 + $0x2b8] sm:$0xff]  ;;  %v2331_v5 = vld [vmem:[%s7760_s7 + $0x2a0] sm:$0xff] }
 0x207   : > { %v4038_v4 = vpack.c.bf16 %v2334_v26, %v2332_v27  ;;  %v2267_v26 = vld [vmem:[%s7760_s7 + $0xa0] sm:$0xff] }
 0x208   : > { %3905 = vmatpush1.bf16.msra.mxu0 %v3904_v9  ;;  %v1053_v9 = vld [vmem:[%s7757_s4 + $0xb70] sm:$0xff] }
 0x209   : > { %3907 = vmatprep.subr.bf16.mxu0 %v3906_v10  ;;  %v1058_v10 = vld [vmem:[%s7757_s4 + $0xb98] sm:$0xff]  ;;  %v3944_v12 = vpack.c.bf16 %v1053_v9, %v1049_v8  ;;  %v2248_v8 = vld [vmem:[%s7760_s7 + $0x8] sm:$0xff] }
 0x20a   : > { %v3946_v13 = vpack.c.bf16 %v1062_v11, %v1058_v10  ;;  %v2250_v9 = vld [vmem:[%s7760_s7 + $0x18] sm:$0xff]  ;;  %v2247_v10 = vld [vmem:[%s7760_s7] sm:$0xff]  ;;  %v2249_v11 = vld [vmem:[%s7760_s7 + $0x10] sm:$0xff] }
 0x20c   : > { %3909 = vmatpush1.bf16.msra.mxu0 %v3908_v16  ;;  %v1061_v16 = vld [vmem:[%s7757_s4 + $0xbb0] sm:$0xff] }
 0x20d   : > { %3911 = vmatprep.subr.bf16.mxu0 %v3910_v17  ;;  %v1066_v17 = vld [vmem:[%s7757_s4 + $0xbd8] sm:$0xff]  ;;  %v3948_v20 = vpack.c.bf16 %v1061_v16, %v1057_v15  ;;  %v3954_v16 = vpack.c.bf16 %v2250_v9, %v2248_v8 }
 0x20e   : > { %v3950_v23 = vpack.c.bf16 %v1070_v18, %v1066_v17  ;;  %v3956_v18 = vpack.c.bf16 %v2249_v11, %v2247_v10  ;;  %v2336_v10 = vld [vmem:[%s7760_s7 + $0x2c8] sm:$0xff]  ;;  %v2338_v11 = vld [vmem:[%s7760_s7 + $0x2d8] sm:$0xff] }
 0x210   : > { %3913 = vmatpush1.bf16.msra.mxu0 %v3912_v22  ;;  %v1069_v22 = vld [vmem:[%s7757_s4 + $0xbf0] sm:$0xff] }
 0x211   : > { %3915 = vmatprep.subr.bf16.mxu0 %v3914_v24  ;;  %v3952_v24 = vpack.c.bf16 %v1069_v22, %v1065_v21  ;;  %v2253_v21 = vld [vmem:[%s7760_s7 + $0x30] sm:$0xff]  ;;  %v2256_v22 = vld [vmem:[%s7760_s7 + $0x48] sm:$0xff] }
 0x214   : > { %3917 = vmatpush1.bf16.msra.mxu0 %v3916_v32  ;;  %v2759_v32 = vld [vmem:[%s7761_s8] sm:$0xff] }
 0x215   : > { %3919 = vmatprep.subr.bf16.mxu0 %v3918_v34  ;;  %v2312_v34 = vld [vmem:[%s7760_s7 + $0x208] sm:$0xff] }
 0x216   : > { %v4018_v14 = vpack.c.bf16 %v2314_v35, %v2312_v34  ;;  %v2260_v34 = vld [vmem:[%s7760_s7 + $0x68] sm:$0xff] }
 0x218   : > { %3921 = vmatpush1.bf16.msra.mxu0 %v3920_v38  ;;  %v2313_v38 = vld [vmem:[%s7760_s7 + $0x210] sm:$0xff] }
 0x219   : > { %3923 = vmatprep.subr.bf16.mxu0 %v3922_v39  ;;  %v4020_v39 = vpack.c.bf16 %v2313_v38, %v2311_v37  ;;  %v2261_v37 = vld [vmem:[%s7760_s7 + $0x70] sm:$0xff]  ;;  %v2264_v38 = vld [vmem:[%s7760_s7 + $0x88] sm:$0xff] }
 0x21c   : > { %3925 = vmatpush1.bf16.msra.mxu0 %v3924_v44  ;;  %v2317_v44 = vld [vmem:[%s7760_s7 + $0x230] sm:$0xff] }
 0x21d   : > { %3927 = vmatprep.subr.bf16.mxu0 %v3926_v50  ;;  %v4024_v50 = vpack.c.bf16 %v2317_v44, %v2315_v43  ;;  %v2268_v43 = vld [vmem:[%s7760_s7 + $0xa8] sm:$0xff]  ;;  %v2270_v44 = vld [vmem:[%s7760_s7 + $0xb8] sm:$0xff] }
 0x21e   : > { %v3974_v51 = vpack.c.bf16 %v2270_v44, %v2268_v43  ;;  %v2343_v43 = vld [vmem:[%s7760_s7 + $0x300] sm:$0xff]  ;;  %v2345_v44 = vld [vmem:[%s7760_s7 + $0x310] sm:$0xff] }
 0x220   : > { %3929 = vmatpush1.bf16.msra.mxu0 %v3928_v56  ;;  %v2321_v56 = vld [vmem:[%s7760_s7 + $0x250] sm:$0xff] }
 0x221   : > { %3931 = vmatprep.subr.bf16.mxu0 %v3930_v57  ;;  %v4028_v57 = vpack.c.bf16 %v2321_v56, %v2319_v55  ;;  %v1696_v55 = vrot.slane %v6127_v52, %v4937_v46  ;;  %v1700_v56 = vrot.slane %v6127_v52, %v4945_v48 }
 0x224   : > { %3933 = vmatpush1.bf16.msra.mxu0 %v3932_v54  ;;  %v2325_v54 = vld [vmem:[%s7760_s7 + $0x270] sm:$0xff] }
 0x225   : > { %3935 = vmatprep.subr.bf16.mxu0 %v3934_v19  ;;  %v2328_v19 = vld [vmem:[%s7760_s7 + $0x288] sm:$0xff]  ;;  %v4032_v62 = vpack.c.bf16 %v2325_v54, %v2323_v60 }
 0x226   : > { %v4034_v0 = vpack.c.bf16 %v2330_v61, %v2328_v19 }
 0x228   : > { %3937 = vmatpush1.bf16.msra.mxu0 %v3936_v1  ;;  %v2329_v1 = vld [vmem:[%s7760_s7 + $0x290] sm:$0xff] }
 0x229   : > { %3939 = vmatprep.subr.bf16.mxu0 %v3938_v2  ;;  %v4036_v2 = vpack.c.bf16 %v2329_v1, %v2327_v63 }
 0x22c   : > { %3941 = vmatpush1.bf16.msra.mxu0 %v3940_v6  ;;  %v2333_v6 = vld [vmem:[%s7760_s7 + $0x2b0] sm:$0xff] }
 0x22d   : > { %3943 = vmatprep.subr.bf16.mxu0 %v3942_v7  ;;  %v4040_v7 = vpack.c.bf16 %v2333_v6, %v2331_v5 }
 0x230   : > { %3945 = vmatpush1.bf16.msra.mxu0 %v3944_v12  ;;  %v2252_v12 = vld [vmem:[%s7760_s7 + $0x28] sm:$0xff] }
 0x231   : > { %3947 = vmatprep.subr.bf16.mxu0 %v3946_v13  ;;  %v2254_v13 = vld [vmem:[%s7760_s7 + $0x38] sm:$0xff] }
 0x234   : > { %3949 = vmatpush1.bf16.msra.mxu0 %v3948_v20  ;;  %v3958_v20 = vpack.c.bf16 %v2254_v13, %v2252_v12  ;;  %v4042_v12 = vpack.c.bf16 %v2338_v11, %v2336_v10  ;;  %v2272_v13 = vld [vmem:[%s7760_s7 + $0xc8] sm:$0xff]  ;;  %v2354_v10 = vld [vmem:[%s7760_s7 + $0x358] sm:$0xff] }
 0x235   : > { %3951 = vmatprep.subr.bf16.mxu0 %v3950_v23  ;;  %v2251_v23 = vld [vmem:[%s7760_s7 + $0x20] sm:$0xff] }
 0x238   : > { %3953 = vmatpush1.bf16.msra.mxu0 %v3952_v24  ;;  %v2258_v24 = vld [vmem:[%s7760_s7 + $0x58] sm:$0xff] }
 0x23b   : > { %1491 = vmatmul.mubr.f32.vlgmr.msra.gmra.mrb[6].mxu0 %v5392_v25  ;;  %v5965_v25 = vld [vmem:[%s7758_s5 + $0x8] sm:$0xff] }
 0x23c   : > { %1654 = vmatprep.mubr.f32.mxu0 %v4599_v3 }
 0x24e   : > { %v1279_v28 = vpop.f32.mrb[4].mxu0 }
 0x24f   : > { %v1281_v29 = vpop.f32.mrb[5].mxu0 }
 0x250   : > { %1513 = vmatprep.subr.mxu1 %v1281_v29  ;;  %v3962_v29 = vpack.c.bf16 %v2258_v24, %v2256_v22  ;;  %v2340_v22 = vld [vmem:[%s7760_s7 + $0x2e8] sm:$0xff]  ;;  %v2342_v24 = vld [vmem:[%s7760_s7 + $0x2f8] sm:$0xff] }
 0x251   : > { %1514 = vmatpush1.msra.mxu1 %v1279_v28  ;;  %v3960_v28 = vpack.c.bf16 %v2253_v21, %v2251_v23  ;;  %v2273_v21 = vld [vmem:[%s7760_s7 + $0xd0] sm:$0xff] }
 0x252   : > { %3539 = vmatmul.mubr.msk.f32.vlgmr.msra.gmra.mrb[2].mxu1 %vm1506_vm14, %v5957_v30  ;;  %2764 = vmatprep.subr.mxu1 %v2760_v31  ;;  %v2255_v31 = vld [vmem:[%s7760_s7 + $0x40] sm:$0xff] }
 0x253   : > { %1583 = vmatprep.mubr.f32.mxu1 %v4599_v3  ;;  %2765 = vmatpush1.msra.mxu1 %v2759_v32  ;;  %v2257_v32 = vld [vmem:[%s7760_s7 + $0x50] sm:$0xff] }
 0x254   : > { %4019 = vmatprep.subr.bf16.mxu1 %v4018_v14  ;;  %v3964_v35 = vpack.c.bf16 %v2257_v32, %v2255_v31  ;;  %v2259_v14 = vld [vmem:[%s7760_s7 + $0x60] sm:$0xff]  ;;  %v2276_v31 = vld [vmem:[%s7760_s7 + $0xe8] sm:$0xff]  ;;  %v2278_v32 = vld [vmem:[%s7760_s7 + $0xf8] sm:$0xff] }
 0x256   : > { %3540 = vmatmul.mubr.msk.f32.gmra.mrb[4].mxu1 %vm1506_vm14, %v5965_v25 }
 0x257   : > { %2828 = vmatprep.mubr.f32.mxu1 %v4599_v3 }
 0x25a   : > { %3563 = vmatmul.mubr.msk.f32.vlgmr.msra.gmra.mrb[6].mxu1 %vm1506_vm14, %v373_v36 }
 0x25b   : > { %4021 = vmatpush1.bf16.msra.mxu1 %v4020_v39  ;;  %v3968_v39 = vpack.c.bf16 %v2261_v37, %v2259_v14  ;;  %v2277_v14 = vld [vmem:[%s7760_s7 + $0xf0] sm:$0xff] }
 0x25c   : > { %4023 = vmatprep.subr.bf16.mxu1 %v4022_v42  ;;  %v2265_v42 = vld [vmem:[%s7760_s7 + $0x90] sm:$0xff] }
 0x25f   : > { %4025 = vmatpush1.bf16.msra.mxu1 %v4024_v50  ;;  %v3972_v50 = vpack.c.bf16 %v2265_v42, %v2263_v41  ;;  %v2282_v42 = vld [vmem:[%s7760_s7 + $0x118] sm:$0xff] }
 0x260   : > { %4027 = vmatprep.subr.bf16.mxu1 %v4026_v53  ;;  %v6132_v53 = vld [vmem:[%s7759_s6] ss:$8 sm:$0xf] }
 0x261   : > { %v1675_v47 = vrot.slane %v6132_v53, %v4945_v48 }
 0x263   : > { %4029 = vmatpush1.bf16.msra.mxu1 %v4028_v57  ;;  %v1671_v57 = vrot.slane %v6132_v53, %v4937_v46 }
 0x264   : > { %4031 = vmatprep.subr.bf16.mxu1 %v4030_v59 }
 0x267   : > { %4033 = vmatpush1.bf16.msra.mxu1 %v4032_v62 }
 0x268   : > { %4035 = vmatprep.subr.bf16.mxu1 %v4034_v0 }
 0x26b   : > { %4037 = vmatpush1.bf16.msra.mxu1 %v4036_v2 }
 0x26c   : > { %4039 = vmatprep.subr.bf16.mxu1 %v4038_v4  ;;  %v2269_v4 = vld [vmem:[%s7760_s7 + $0xb0] sm:$0xff] }
 0x26f   : > { %4041 = vmatpush1.bf16.msra.mxu1 %v4040_v7  ;;  %v3976_v7 = vpack.c.bf16 %v2269_v4, %v2267_v26  ;;  %v2285_v26 = vld [vmem:[%s7760_s7 + $0x130] sm:$0xff] }
 0x270   : > { %4043 = vmatprep.subr.bf16.mxu1 %v4042_v12 }
 0x30e   : > { %v1492_v15 = vpop.f32.mrb[6].mxu0 }
 0x30f   : > { %v1494_v17 = vpop.f32.mrb[7].mxu0 }
 0x310   : > { %1590 = vmatprep.subr.mxu0 %v1494_v17  ;;  %v2335_v17 = vld [vmem:[%s7760_s7 + $0x2c0] sm:$0xff] }
 0x311   : > { %1591 = vmatpush1.msra.mxu0 %v1492_v15  ;;  %v2274_v15 = vld [vmem:[%s7760_s7 + $0xd8] sm:$0xff] }
 0x312   : > { %3541 = vmatmul.mubr.msk.f32.vlgmr.msra.gmra.mrb[8].mxu0 %vm1506_vm14, %v5957_v30  ;;  %3955 = vmatprep.subr.bf16.mxu0 %v3954_v16  ;;  %v2262_v30 = vld [vmem:[%s7760_s7 + $0x78] sm:$0xff]  ;;  %v3978_v16 = vpack.c.bf16 %v2274_v15, %v2272_v13  ;;  %v2288_v13 = vld [vmem:[%s7760_s7 + $0x148] sm:$0xff] }
 0x313   : > { %1660 = vmatprep.mubr.f32.mxu0 %v4599_v3  ;;  %3957 = vmatpush1.bf16.msra.mxu0 %v3956_v18  ;;  %v3966_v36 = vpack.c.bf16 %v2262_v30, %v2260_v34  ;;  %v2337_v18 = vld [vmem:[%s7760_s7 + $0x2d0] sm:$0xff]  ;;  %v2339_v34 = vld [vmem:[%s7760_s7 + $0x2e0] sm:$0xff]  ;;  %v3982_v30 = vpack.c.bf16 %v2278_v32, %v2276_v31  ;;  %v2290_v15 = vld [vmem:[%s7760_s7 + $0x158] sm:$0xff] }
 0x314   : > { %3959 = vmatprep.subr.bf16.mxu0 %v3958_v20  ;;  %v2271_v20 = vld [vmem:[%s7760_s7 + $0xc0] sm:$0xff]  ;;  %v4044_v23 = vpack.c.bf16 %v2337_v18, %v2335_v17  ;;  %v3994_v17 = vpack.c.bf16 %v2290_v15, %v2288_v13  ;;  %v2353_v18 = vld [vmem:[%s7760_s7 + $0x350] sm:$0xff]  ;;  %v2292_v31 = vld [vmem:[%s7760_s7 + $0x168] sm:$0xff] }
 0x315   : > { %v2294_v32 = vld [vmem:[%s7760_s7 + $0x178] sm:$0xff] }
 0x316   : > { %3542 = vmatmul.mubr.msk.f32.gmra.mrb[10].mxu0 %vm1506_vm14, %v5965_v25  ;;  %v2266_v25 = vld [vmem:[%s7760_s7 + $0x98] sm:$0xff]  ;;  %4045 = vmatpush1.bf16.msra.mxu1 %v4044_v23  ;;  %v2289_v23 = vld [vmem:[%s7760_s7 + $0x150] sm:$0xff] }
 0x317   : > { %3961 = vmatpush1.bf16.msra.mxu0 %v3960_v28  ;;  %v3970_v40 = vpack.c.bf16 %v2266_v25, %v2264_v38  ;;  %v3980_v28 = vpack.c.bf16 %v2273_v21, %v2271_v20  ;;  %v2344_v25 = vld [vmem:[%s7760_s7 + $0x308] sm:$0xff]  ;;  %v2287_v20 = vld [vmem:[%s7760_s7 + $0x140] sm:$0xff] }
 0x318   : > { %3963 = vmatprep.subr.bf16.mxu0 %v3962_v29  ;;  %v4046_v29 = vpack.c.bf16 %v2342_v24, %v2340_v22  ;;  %v2356_v22 = vld [vmem:[%s7760_s7 + $0x368] sm:$0xff]  ;;  %v2358_v24 = vld [vmem:[%s7760_s7 + $0x378] sm:$0xff] }
 0x31a   : > { %4047 = vmatprep.subr.bf16.mxu1 %v4046_v29  ;;  %v4062_v29 = vpack.c.bf16 %v2358_v24, %v2356_v22  ;;  %v2374_v22 = vld [vmem:[%s7760_s7 + $0x3f8] sm:$0xff]  ;;  %v2308_v24 = vld [vmem:[%s7760_s7 + $0x1e8] sm:$0xff] }
 0x31b   : > { %3965 = vmatpush1.bf16.msra.mxu0 %v3964_v35  ;;  %v2341_v35 = vld [vmem:[%s7760_s7 + $0x2f0] sm:$0xff] }
 0x31c   : > { %3967 = vmatprep.subr.bf16.mxu0 %v3966_v36  ;;  %v2275_v36 = vld [vmem:[%s7760_s7 + $0xe0] sm:$0xff]  ;;  %v4048_v37 = vpack.c.bf16 %v2341_v35, %v2339_v34  ;;  %v2357_v35 = vld [vmem:[%s7760_s7 + $0x370] sm:$0xff] }
 0x31d   : > { %v3984_v38 = vpack.c.bf16 %v2277_v14, %v2275_v36  ;;  %v2355_v34 = vld [vmem:[%s7760_s7 + $0x360] sm:$0xff]  ;;  %v2293_v14 = vld [vmem:[%s7760_s7 + $0x170] sm:$0xff] }
 0x31e   : > { %4049 = vmatpush1.bf16.msra.mxu1 %v4048_v37  ;;  %v2291_v36 = vld [vmem:[%s7760_s7 + $0x160] sm:$0xff]  ;;  %v2360_v37 = vld [vmem:[%s7760_s7 + $0x388] sm:$0xff] }
 0x31f   : > { %3969 = vmatpush1.bf16.msra.mxu0 %v3968_v39  ;;  %v2346_v39 = vld [vmem:[%s7760_s7 + $0x318] sm:$0xff] }
 0x320   : > { %3971 = vmatprep.subr.bf16.mxu0 %v3970_v40  ;;  %v2280_v40 = vld [vmem:[%s7760_s7 + $0x108] sm:$0xff]  ;;  %v4050_v41 = vpack.c.bf16 %v2346_v39, %v2344_v25  ;;  %v4064_v39 = vpack.c.bf16 %v2357_v35, %v2355_v34  ;;  %v2371_v34 = vld [vmem:[%s7760_s7 + $0x3e0] sm:$0xff] }
 0x321   : > { %v2296_v25 = vld [vmem:[%s7760_s7 + $0x188] sm:$0xff] }
 0x322   : > { %4051 = vmatprep.subr.bf16.mxu1 %v4050_v41  ;;  %v4000_v41 = vpack.c.bf16 %v2293_v14, %v2291_v36  ;;  %v2307_v36 = vld [vmem:[%s7760_s7 + $0x1e0] sm:$0xff]  ;;  %v2309_v14 = vld [vmem:[%s7760_s7 + $0x1f0] sm:$0xff] }
 0x323   : > { %3973 = vmatpush1.bf16.msra.mxu0 %v3972_v50  ;;  %v3986_v50 = vpack.c.bf16 %v2282_v42, %v2280_v40  ;;  %v2298_v40 = vld [vmem:[%s7760_s7 + $0x198] sm:$0xff] }
 0x324   : > { %3975 = vmatprep.subr.bf16.mxu0 %v3974_v51  ;;  %v2279_v51 = vld [vmem:[%s7760_s7 + $0x100] sm:$0xff] }
 0x325   : > { %v1579_v58 = vpop.f32.mrb[2].mxu1 }
 0x326   : > { %v1778_v59 = vmul.f32 %v1696_v55, %v1579_v58  ;;  %v1581_v60 = vpop.f32.mrb[3].mxu1  ;;  %v6142_v19 = vmul.f32 %v1671_v57, %v1579_v58  ;;  %v2350_v58 = vld [vmem:[%s7760_s7 + $0x338] sm:$0xff] }
 0x327   : > { %v1779_v54 = vmul.f32 %v1700_v56, %v1581_v60  ;;  %v6144_v61 = vmul.f32 %v1675_v47, %v1581_v60  ;;  %3977 = vmatpush1.bf16.msra.mxu0 %v3976_v7  ;;  %v2284_v60 = vld [vmem:[%s7760_s7 + $0x128] sm:$0xff] }
 0x328   : > { %3979 = vmatprep.subr.bf16.mxu0 %v3978_v16  ;;  %v2352_v7 = vld [vmem:[%s7760_s7 + $0x348] sm:$0xff]  ;;  %v2351_v16 = vld [vmem:[%s7760_s7 + $0x340] sm:$0xff] }
 0x329   : > { %v1585_v62 = vpop.f32.mrb[4].mxu1  ;;  %v4058_v12 = vpack.c.bf16 %v2354_v10, %v2352_v7  ;;  %v4060_v21 = vpack.c.bf16 %v2353_v18, %v2351_v16  ;;  %v2370_v7 = vld [vmem:[%s7760_s7 + $0x3d8] sm:$0xff]  ;;  %v2304_v10 = vld [vmem:[%s7760_s7 + $0x1c8] sm:$0xff]  ;;  %v2367_v16 = vld [vmem:[%s7760_s7 + $0x3c0] sm:$0xff] }
 0x32a   : > { %v6146_v0 = vmul.f32 %v1696_v55, %v1585_v62  ;;  %v1774_v63 = vmul.f32 %v1671_v57, %v1585_v62  ;;  %v1587_v1 = vpop.f32.mrb[5].mxu1  ;;  %v2281_v55 = vld [vmem:[%s7760_s7 + $0x110] sm:$0xff]  ;;  %v2348_v57 = vld [vmem:[%s7760_s7 + $0x328] sm:$0xff]  ;;  %v2347_v62 = vld [vmem:[%s7760_s7 + $0x320] sm:$0xff] }
 0x32b   : > { %v6148_v2 = vmul.f32 %v1700_v56, %v1587_v1  ;;  %v1775_v27 = vmul.f32 %v1675_v47, %v1587_v1  ;;  %3981 = vmatpush1.bf16.msra.mxu0 %v3980_v28  ;;  %v4052_v56 = vpack.c.bf16 %v2345_v44, %v2343_v43  ;;  %v3988_v47 = vpack.c.bf16 %v2281_v55, %v2279_v51  ;;  %v2349_v1 = vld [vmem:[%s7760_s7 + $0x330] sm:$0xff]  ;;  %v2359_v43 = vld [vmem:[%s7760_s7 + $0x380] sm:$0xff] }
 0x32c   : > { %v1717_v5 = vsub.f32 %v6142_v19, %v6146_v0  ;;  %v6158_v6 = vadd.f32 %v1778_v59, %v1774_v63  ;;  %3983 = vmatprep.subr.bf16.mxu0 %v3982_v30  ;;  %v4054_v59 = vpack.c.bf16 %v2350_v58, %v2348_v57  ;;  %v4056_v4 = vpack.c.bf16 %v2349_v1, %v2347_v62  ;;  %v2361_v44 = vld [vmem:[%s7760_s7 + $0x390] sm:$0xff]  ;;  %v2366_v57 = vld [vmem:[%s7760_s7 + $0x3b8] sm:$0xff]  ;;  %v2300_v58 = vld [vmem:[%s7760_s7 + $0x1a8] sm:$0xff] }
 0x32d   : > { %v1718_v8 = vsub.f32 %v6144_v61, %v6148_v2  ;;  %v6162_v9 = vadd.f32 %v1779_v54, %v1775_v27  ;;  %v2286_v54 = vld [vmem:[%s7760_s7 + $0x138] sm:$0xff]  ;;  %v2283_v27 = vld [vmem:[%s7760_s7 + $0x120] sm:$0xff]  ;;  %4053 = vmatpush1.bf16.msra.mxu1 %v4052_v56  ;;  %v3996_v28 = vpack.c.bf16 %v2289_v23, %v2287_v20  ;;  %v3998_v30 = vpack.c.bf16 %v2294_v32, %v2292_v31  ;;  %v2297_v55 = vld [vmem:[%s7760_s7 + $0x190] sm:$0xff] }
 0x32e   : > { %v3990_v63 = vpack.c.bf16 %v2286_v54, %v2284_v60  ;;  %4055 = vmatprep.subr.bf16.mxu1 %v4054_v59  ;;  %v3992_v11 = vpack.c.bf16 %v2285_v26, %v2283_v27  ;;  %v4002_v51 = vpack.c.bf16 %v2298_v40, %v2296_v25  ;;  %v2364_v56 = vld [vmem:[%s7760_s7 + $0x3a8] sm:$0xff]  ;;  %v4068_v59 = vpack.c.bf16 %v2361_v44, %v2359_v43  ;;  %v2363_v62 = vld [vmem:[%s7760_s7 + $0x3a0] sm:$0xff]  ;;  %v2301_v26 = vld [vmem:[%s7760_s7 + $0x1b0] sm:$0xff] }
 0x32f   : > { %3985 = vmatpush1.bf16.msra.mxu0 %v3984_v38  ;;  %v2362_v38 = vld [vmem:[%s7760_s7 + $0x398] sm:$0xff]  ;;  %v4070_v54 = vpack.c.bf16 %v2366_v57, %v2364_v56  ;;  %v2299_v1 = vld [vmem:[%s7760_s7 + $0x1a0] sm:$0xff]  ;;  %v2305_v23 = vld [vmem:[%s7760_s7 + $0x1d0] sm:$0xff] }
 0x330   : > { %3987 = vmatprep.subr.bf16.mxu0 %v3986_v50  ;;  %v4066_v42 = vpack.c.bf16 %v2362_v38, %v2360_v37  ;;  %v2295_v50 = vld [vmem:[%s7760_s7 + $0x180] sm:$0xff]  ;;  %v4008_v13 = vpack.c.bf16 %v2301_v26, %v2299_v1  ;;  %v2376_v38 = vld [vmem:[%s7760_s7 + $0x408] sm:$0xff]  ;;  %v2378_v25 = vld [vmem:[%s7760_s7 + $0x418] sm:$0xff] }
 0x331   : > { %4057 = vmatpush1.bf16.msra.mxu1 %v4056_v4  ;;  %v4004_v60 = vpack.c.bf16 %v2297_v55, %v2295_v50  ;;  %v2368_v4 = vld [vmem:[%s7760_s7 + $0x3c8] sm:$0xff]  ;;  %v2303_v18 = vld [vmem:[%s7760_s7 + $0x1c0] sm:$0xff]  ;;  %v4082_v40 = vpack.c.bf16 %v2378_v25, %v2376_v38  ;;  %v4600_v55 = vmov 1983009808  }
 0x332   : > { %4059 = vmatprep.subr.bf16.mxu1 %v4058_v12  ;;  %v4074_v15 = vpack.c.bf16 %v2370_v7, %v2368_v4  ;;  %v4012_v31 = vpack.c.bf16 %v2305_v23, %v2303_v18  ;;  %v1842_v56 = vunpack.c.l.s4 %v4600_v55 }
 0x333   : > { %3989 = vmatpush1.bf16.msra.mxu0 %v3988_v47  ;;  %v2302_v47 = vld [vmem:[%s7760_s7 + $0x1b8] sm:$0xff] }
 0x334   : > { %3991 = vmatprep.subr.bf16.mxu0 %v3990_v63  ;;  %v2365_v63 = vld [vmem:[%s7760_s7 + $0x3b0] sm:$0xff]  ;;  %v4006_v27 = vpack.c.bf16 %v2302_v47, %v2300_v58  ;;  %v4601_v58 = vmov 1934713408   ;;  %v1843_v1 = vunpack.c.0.s8 %v1842_v56 }
 0x335   : > { %4061 = vmatpush1.bf16.msra.mxu1 %v4060_v21  ;;  %v4072_v12 = vpack.c.bf16 %v2365_v63, %v2363_v62  ;;  %v2372_v21 = vld [vmem:[%s7760_s7 + $0x3e8] sm:$0xff]  ;;  %v6423_v47 = vunpack.c.l.s4 %v4601_v58  ;;  %v1708_v63 = vrot.slane %v6127_v52, %v4948_v49 }
 0x336   : > { %4063 = vmatprep.subr.bf16.mxu1 %v4062_v29  ;;  %v4078_v32 = vpack.c.bf16 %v2374_v22, %v2372_v21 }
 0x337   : > { %3993 = vmatpush1.bf16.msra.mxu0 %v3992_v11  ;;  %v2306_v11 = vld [vmem:[%s7760_s7 + $0x1d8] sm:$0xff] }
 0x338   : > { %3995 = vmatprep.subr.bf16.mxu0 %v3994_v17  ;;  %v2369_v17 = vld [vmem:[%s7760_s7 + $0x3d0] sm:$0xff]  ;;  %v4010_v20 = vpack.c.bf16 %v2306_v11, %v2304_v10 }
 0x339   : > { %4065 = vmatpush1.bf16.msra.mxu1 %v4064_v39  ;;  %v4076_v29 = vpack.c.bf16 %v2369_v17, %v2367_v16  ;;  %v4016_v39 = vpack.c.bf16 %v2309_v14, %v2307_v36 }
 0x33a   : > { %4067 = vmatprep.subr.bf16.mxu1 %v4066_v42  ;;  %v3538_v42 = vld [vmem:[%s7759_s6 + $0x3] ss:$8 sm:$0xf] }
 0x33b   : > { %3997 = vmatpush1.bf16.msra.mxu0 %v3996_v28  ;;  %v2310_v28 = vld [vmem:[%s7760_s7 + $0x1f8] sm:$0xff]  ;;  %v1790_v44 = vrot.slane %v3538_v42, %v4937_v46  ;;  %v1802_v22 = vrot.slane %v3538_v42, %v4948_v49 }
 0x33c   : > { %3999 = vmatprep.subr.bf16.mxu0 %v3998_v30  ;;  %v2373_v30 = vld [vmem:[%s7760_s7 + $0x3f0] sm:$0xff]  ;;  %v4014_v35 = vpack.c.bf16 %v2310_v28, %v2308_v24 }
 0x33d   : > { %4069 = vmatpush1.bf16.msra.mxu1 %v4068_v59  ;;  %v4080_v37 = vpack.c.bf16 %v2373_v30, %v2371_v34  ;;  %v1704_v59 = vrot.slane %v6127_v52, %v5118_v33  ;;  %v6442_v52 = vsub.s32 %v1843_v1, %v4934_v45 }
 0x33e   : > { %4071 = vmatprep.subr.bf16.mxu1 %v4070_v54 }
 0x33f   : > { %4001 = vmatpush1.bf16.msra.mxu0 %v4000_v41  ;;  %v3537_v41 = vld [vmem:[%s7759_s6 + $0x2] ss:$8 sm:$0xf] }
 0x340   : > { %4003 = vmatprep.subr.bf16.mxu0 %v4002_v51  ;;  %v1725_v43 = vrot.slane %v3537_v41, %v4937_v46  ;;  %v1729_v50 = vrot.slane %v3537_v41, %v4945_v48  ;;  %v1794_v51 = vrot.slane %v3538_v42, %v4945_v48  ;;  %v1737_v18 = vrot.slane %v3537_v41, %v4948_v49 }
 0x341   : > { %4073 = vmatpush1.bf16.msra.mxu1 %v4072_v12  ;;  %v1733_v12 = vrot.slane %v3537_v41, %v5118_v33 }
 0x342   : > { %4075 = vmatprep.subr.bf16.mxu1 %v4074_v15  ;;  %v1742_v57 = vadd.f32 %v1725_v43, %v1717_v5  ;;  %v1743_v54 = vadd.f32 %v1729_v50, %v1718_v8  ;;  %v1808_v62 = vadd.f32 %v1794_v51, %v6162_v9  ;;  %v1875_v5 = vunpack.c.0.s8 %v6423_v47 }
 0x343   : > { %4005 = vmatpush1.bf16.msra.mxu0 %v4004_v60  ;;  %v1807_v60 = vadd.f32 %v1790_v44, %v6158_v6  ;;  %v1683_v6 = vrot.slane %v6132_v53, %v4948_v49 }
 0x344   : > { %4007 = vmatprep.subr.bf16.mxu0 %v4006_v27  ;;  %v1746_v19 = vmax.f32 %v1742_v57, 0.0  ;;  %v1679_v27 = vrot.slane %v6132_v53, %v5118_v33  ;;  %v1747_v2 = vmax.f32 %v1743_v54, 0.0  ;;  %v6439_v8 = vmax.f32 %v1808_v62, 0.0 }
 0x345   : > { %4077 = vmatpush1.bf16.msra.mxu1 %v4076_v29  ;;  %v1811_v61 = vmax.f32 %v1807_v60, 0.0 }
 0x346   : > { %4079 = vmatprep.subr.bf16.mxu1 %v4078_v32  ;;  %vm1750_vm15 = vcmp.gt.f32.partialorder %v1746_v19, 0.01  ;;  %v3543_v7 = vadd.f32 -0.01, %v1746_v19  ;;  %vm1758_vm0 = vcmp.lt.f32.partialorder %v1746_v19, -0.01 }
 0x347   : > { %4009 = vmatpush1.bf16.msra.mxu0 %v4008_v13  ;;  %v1762_v10 = vadd.f32 0.01, %v1746_v19  ;;  %vm1815_vm1 = vcmp.gt.f32.partialorder %v1811_v61, 0.01  ;;  %v1798_v13 = vrot.slane %v3538_v42, %v5118_v33  ;;  %v3547_v24 = vadd.f32 -0.01, %v1811_v61 }
 0x348   : > { %4011 = vmatprep.subr.bf16.mxu0 %v4010_v20  ;;  %v1827_v28 = vadd.f32 0.01, %v1811_v61  ;;  %vm1823_vm2 = vcmp.lt.f32.partialorder %v1811_v61, -0.01  ;;  %v1763_v32 = vadd.f32 0.01, %v1747_v2 }
 0x349   : > { %4081 = vmatpush1.bf16.msra.mxu1 %v4080_v37  ;;  %vm1751_vm3 = vcmp.gt.f32.partialorder %v1747_v2, 0.01  ;;  %vm1759_vm4 = vcmp.lt.f32.partialorder %v1747_v2, -0.01  ;;  %v1766_v36 = vsel %vm1758_vm0, %v1762_v10, 0.0 }
 0x34a   : > { %4083 = vmatprep.subr.bf16.mxu1 %v4082_v40  ;;  %v3544_v14 = vadd.f32 -0.01, %v1747_v2  ;;  %v1831_v25 = vsel %vm1823_vm2, %v1827_v28, 0.0  ;;  %v3548_v49 = vadd.f32 -0.01, %v6439_v8  ;;  %v1767_v41 = vsel %vm1759_vm4, %v1763_v32, 0.0 }
 0x34b   : > { %4013 = vmatpush1.bf16.msra.mxu0 %v4012_v31  ;;  %vm1816_vm5 = vcmp.gt.f32.partialorder %v6439_v8, 0.01  ;;  %vm1824_vm6 = vcmp.lt.f32.partialorder %v6439_v8, -0.01  ;;  %v1828_v42 = vadd.f32 0.01, %v6439_v8  ;;  %v1770_v44 = vsel %vm1750_vm15, %v3543_v7, %v1766_v36 }
 0x34c   : > { %4015 = vmatprep.subr.bf16.mxu0 %v4014_v35  ;;  %v1835_v55 = vsel %vm1815_vm1, %v3547_v24, %v1831_v25  ;;  %v1771_v58 = vsel %vm1751_vm3, %v3544_v14, %v1767_v41 }
 0x34d   : > { %v1832_v60 = vsel %vm1824_vm6, %v1828_v42, 0.0 }
 0x34f   : > { %4017 = vmatpush1.bf16.msra.mxu0 %v4016_v39 }
 0x3e5   : > { %v1656_v0 = vpop.f32.mrb[8].mxu0 }
 0x3e6   : > { %v1780_v26 = vmul.f32 %v1704_v59, %v1656_v0  ;;  %v1658_v4 = vpop.f32.mrb[9].mxu0  ;;  %v1690_v15 = vmul.f32 %v1679_v27, %v1656_v0 }
 0x3e7   : > { %v1781_v9 = vmul.f32 %v1708_v63, %v1658_v4  ;;  %v1691_v20 = vmul.f32 %v1683_v6, %v1658_v4 }
 0x3e9   : > { %v1662_v11 = vpop.f32.mrb[10].mxu0 }
 0x3ea   : > { %v1715_v53 = vmul.f32 %v1704_v59, %v1662_v11  ;;  %v1776_v16 = vmul.f32 %v1679_v27, %v1662_v11  ;;  %v1664_v17 = vpop.f32.mrb[11].mxu0 }
 0x3eb   : > { %v1716_v23 = vmul.f32 %v1708_v63, %v1664_v17  ;;  %v1777_v21 = vmul.f32 %v1683_v6, %v1664_v17 }
 0x3ec   : > { %v1719_v29 = vsub.f32 %v1690_v15, %v1715_v53  ;;  %v1784_v31 = vadd.f32 %v1780_v26, %v1776_v16  ;;  %v6463_v16 = vsub.s32 %v1875_v5, %v4934_v45 }
 0x3ed   : > { %v1720_v34 = vsub.f32 %v1691_v20, %v1716_v23  ;;  %v1785_v30 = vadd.f32 %v1781_v9, %v1777_v21 }
 0x3ee   : > { %v1744_v33 = vadd.f32 %v1733_v12, %v1719_v29  ;;  %v1809_v35 = vadd.f32 %v1798_v13, %v1784_v31 }
 0x3ef   : > { %v1745_v37 = vadd.f32 %v1737_v18, %v1720_v34  ;;  %v1810_v38 = vadd.f32 %v1802_v22, %v1785_v30  ;;  %v1836_v18 = vsel %vm1816_vm5, %v3548_v49, %v1832_v60 }
 0x3f0   : > { %v1748_v39 = vmax.f32 %v1744_v33, 0.0  ;;  %v1813_v40 = vmax.f32 %v1809_v35, 0.0 }
 0x3f1   : > { %v1749_v43 = vmax.f32 %v1745_v37, 0.0  ;;  %v1814_v51 = vmax.f32 %v1810_v38, 0.0 }
 0x3f2   : > { %v3545_v50 = vadd.f32 -0.01, %v1748_v39  ;;  %vm1760_vm7 = vcmp.lt.f32.partialorder %v1748_v39, -0.01  ;;  %vm1752_vm8 = vcmp.gt.f32.partialorder %v1748_v39, 0.01 }
 0x3f3   : > { %v1764_v56 = vadd.f32 0.01, %v1748_v39  ;;  %v3549_v57 = vadd.f32 -0.01, %v1813_v40  ;;  %vm1817_vm9 = vcmp.gt.f32.partialorder %v1813_v40, 0.01 }
 0x3f4   : > { %vm1825_vm10 = vcmp.lt.f32.partialorder %v1813_v40, -0.01  ;;  %v1829_v59 = vadd.f32 0.01, %v1813_v40  ;;  %v3546_v62 = vadd.f32 -0.01, %v1749_v43 }
 0x3f5   : > { %v1768_v54 = vsel %vm1760_vm7, %v1764_v56, 0.0  ;;  %vm1761_vm11 = vcmp.lt.f32.partialorder %v1749_v43, -0.01  ;;  %vm1753_vm12 = vcmp.gt.f32.partialorder %v1749_v43, 0.01 }
 0x3f6   : > { %v1772_v63 = vsel %vm1752_vm8, %v3545_v50, %v1768_v54  ;;  %v1833_v1 = vsel %vm1825_vm10, %v1829_v59, 0.0  ;;  %v1765_v19 = vadd.f32 0.01, %v1749_v43  ;;  %v3550_v4 = vadd.f32 -0.01, %v1814_v51 }
 0x3f7   : > { %v1837_v0 = vsel %vm1817_vm9, %v3549_v57, %v1833_v1  ;;  %v1839_v27 = vcombine.low %v1770_v44, %v1772_v63  ;;  %v1840_v26 = vcombine.high %v1770_v44, %v1772_v63  ;;  %vm1826_vm13 = vcmp.lt.f32.partialorder %v1814_v51, -0.01 }
 0x3f8   : > { %v1907_v6 = vcombine.low %v1835_v55, %v1837_v0  ;;  %v1908_v61 = vcombine.high %v1835_v55, %v1837_v0  ;;  %v1769_v9 = vsel %vm1761_vm11, %v1765_v19, 0.0  ;;  %v1830_v11 = vadd.f32 0.01, %v1814_v51 }
 0x3f9   : > { %v1847_v2 = vrot.slane %v1839_v27, %v6442_v52  ;;  %v1854_v7 = vrot.slane %v1840_v26, %v6442_v52  ;;  %v1773_v10 = vsel %vm1753_vm12, %v3546_v62, %v1769_v9  ;;  %vm1818_vm14 = vcmp.gt.f32.partialorder %v1814_v51, 0.01 }
 0x3fa   : > { %v1915_v12 = vrot.slane %v1907_v6, %v6442_v52  ;;  %v1922_v13 = vrot.slane %v1908_v61, %v6442_v52  ;;  %v1855_v15 = vcombine.low %v1771_v58, %v1773_v10  ;;  %v1856_v53 = vcombine.high %v1771_v58, %v1773_v10 }
 0x3fb   : > { %v1834_v17 = vsel %vm1826_vm13, %v1830_v11, 0.0 }
 0x3fc   : > { %v1838_v20 = vsel %vm1818_vm14, %v3550_v4, %v1834_v17  ;;  %v1863_v23 = vrot.slane %v1855_v15, %v6442_v52  ;;  %v1870_v21 = vrot.slane %v1856_v53, %v6442_v52 }
 0x3fd   : > { %v1923_v22 = vcombine.low %v1836_v18, %v1838_v20  ;;  %v1924_v24 = vcombine.high %v1836_v18, %v1838_v20 }
 0x3fe   : > { %v1871_v28 = vcombine.low %v1847_v2, %v1863_v23  ;;  %v1872_v29 = vcombine.high %v1847_v2, %v1863_v23  ;;  %v1887_v31 = vcombine.low %v1854_v7, %v1870_v21  ;;  %v1888_v32 = vcombine.high %v1854_v7, %v1870_v21 }
 0x3ff   : > { %v1931_v47 = vrot.slane %v1923_v22, %v6442_v52  ;;  %v1938_v45 = vrot.slane %v1924_v24, %v6442_v52  ;;  %v2375_v22 = vld [vmem:[%s7760_s7 + $0x400] sm:$0xff] }
 0x400   : > { %v1879_v5 = vrot.slane %v1871_v28, %v6463_v16  ;;  %v1886_v8 = vrot.slane %v1872_v29, %v6463_v16  ;;  %v1895_v34 = vrot.slane %v1887_v31, %v6463_v16  ;;  %v1902_v30 = vrot.slane %v1888_v32, %v6463_v16  ;;  %v2377_v29 = vld [vmem:[%s7760_s7 + $0x410] sm:$0xff]  ;;  %v2380_v31 = vld [vmem:[%s7760_s7 + $0x428] sm:$0xff]  ;;  %v2382_v32 = vld [vmem:[%s7760_s7 + $0x438] sm:$0xff] }
 0x401   : > { %v1939_v33 = vcombine.low %v1915_v12, %v1931_v47  ;;  %v1940_v35 = vcombine.high %v1915_v12, %v1931_v47  ;;  %v1955_v36 = vcombine.low %v1922_v13, %v1938_v45  ;;  %v1956_v14 = vcombine.high %v1922_v13, %v1938_v45 }
 0x402   : > { %v1975_v37 = vcombine.low %v1879_v5, %v1886_v8  ;;  %v3551_v38 = vcombine.high %v1879_v5, %v1886_v8  ;;  %v1991_v25 = vcombine.low %v1895_v34, %v1902_v30  ;;  %v3552_v49 = vcombine.high %v1895_v34, %v1902_v30 }
 0x403   : > { %v1947_v39 = vrot.slane %v1939_v33, %v6463_v16  ;;  %v1954_v40 = vrot.slane %v1940_v35, %v6463_v16  ;;  %v1963_v55 = vrot.slane %v1955_v36, %v6463_v16  ;;  %v1970_v62 = vrot.slane %v1956_v14, %v6463_v16 }
 0x404   : > { %v1982_v41 = vrot.slane %v1975_v37, %v6442_v52  ;;  %v1990_v42 = vrot.slane %v3551_v38, %v6442_v52  ;;  %v1998_v43 = vrot.slane %v1991_v25, %v6442_v52  ;;  %v2006_v44 = vrot.slane %v3552_v49, %v6442_v52 }
 0x405   : > { %v2043_v50 = vcombine.low %v1947_v39, %v1954_v40  ;;  %v3553_v51 = vcombine.high %v1947_v39, %v1954_v40  ;;  %v2059_v4 = vcombine.low %v1963_v55, %v1970_v62  ;;  %v3554_v20 = vcombine.high %v1963_v55, %v1970_v62  ;;  %v2379_v39 = vld [vmem:[%s7760_s7 + $0x420] sm:$0xff]  ;;  %v2381_v40 = vld [vmem:[%s7760_s7 + $0x430] sm:$0xff]  ;;  %v2386_v55 = vld [vmem:[%s7760_s7 + $0x458] sm:$0xff] }
 0x406   : > { %v2007_v56 = vcombine.low %v1982_v41, %v1990_v42  ;;  %v2008_v57 = vcombine.high %v1982_v41, %v1990_v42  ;;  %v2023_v58 = vcombine.low %v1998_v43, %v2006_v44  ;;  %v2024_v59 = vcombine.high %v1998_v43, %v2006_v44  ;;  %v2390_v62 = vld [vmem:[%s7760_s7 + $0x478] sm:$0xff] }
 0x407   : > { %v2050_v60 = vrot.slane %v2043_v50, %v6442_v52  ;;  %v2058_v54 = vrot.slane %v3553_v51, %v6442_v52  ;;  %v2066_v11 = vrot.slane %v2059_v4, %v6442_v52  ;;  %v2074_v5 = vrot.slane %v3554_v20, %v6442_v52  ;;  %v2384_v51 = vld [vmem:[%s7760_s7 + $0x448] sm:$0xff]  ;;  %v2387_v4 = vld [vmem:[%s7760_s7 + $0x460] sm:$0xff] }
 0x408   : > { %v2015_v63 = vrot.slane %v2007_v56, %v6463_v16  ;;  %v2022_v1 = vrot.slane %v2008_v57, %v6463_v16  ;;  %v2031_v19 = vrot.slane %v2023_v58, %v6463_v16  ;;  %v2038_v0 = vrot.slane %v2024_v59, %v6463_v16  ;;  %v2383_v59 = vld [vmem:[%s7760_s7 + $0x440] sm:$0xff] }
 0x409   : > { %v2075_v27 = vcombine.low %v2050_v60, %v2058_v54  ;;  %v2076_v26 = vcombine.high %v2050_v60, %v2058_v54  ;;  %v2091_v14 = vcombine.low %v2066_v11, %v2074_v5  ;;  %v4084_v25 = vpack.c.bf16 %v2377_v29, %v2375_v22  ;;  %v2385_v60 = vld [vmem:[%s7760_s7 + $0x450] sm:$0xff]  ;;  %v2388_v54 = vld [vmem:[%s7760_s7 + $0x468] sm:$0xff]  ;;  %v2395_v20 = vld [vmem:[%s7760_s7 + $0x4a0] sm:$0xff] }
 0x40a   : > { %v3555_v6 = vcombine.low %v2015_v63, %v2022_v1  ;;  %v3557_v61 = vcombine.high %v2015_v63, %v2022_v1  ;;  %v3556_v9 = vcombine.low %v2031_v19, %v2038_v0  ;;  %v3558_v2 = vcombine.high %v2031_v19, %v2038_v0  ;;  %v2402_v22 = vld [vmem:[%s7760_s7 + $0x4d8] sm:$0xff]  ;;  %v2399_v29 = vld [vmem:[%s7760_s7 + $0x4c0] sm:$0xff] }
 0x40b   : > { %v2083_v7 = vrot.slane %v2075_v27, %v6463_v16  ;;  %v2090_v10 = vrot.slane %v2076_v26, %v6463_v16  ;;  %v4086_v49 = vpack.c.bf16 %v2382_v32, %v2380_v31  ;;  %v2092_v43 = vcombine.high %v2066_v11, %v2074_v5  ;;  %v2401_v31 = vld [vmem:[%s7760_s7 + $0x4d0] sm:$0xff]  ;;  %v2404_v32 = vld [vmem:[%s7760_s7 + $0x4e8] sm:$0xff]  ;;  %v6611_v5 = vpop.f32.mrb[6].mxu1 }
 0x40c   : > { %v2119_v12 = vrot.slane %v3555_v6, %v6442_v52  ;;  %v2135_v13 = vrot.slane %v3557_v61, %v6442_v52  ;;  %v2126_v15 = vrot.slane %v3556_v9, %v6442_v52  ;;  %v2142_v53 = vrot.slane %v3558_v2, %v6442_v52  ;;  %v2389_v6 = vld [vmem:[%s7760_s7 + $0x470] sm:$0xff]  ;;  %v2392_v61 = vld [vmem:[%s7760_s7 + $0x488] sm:$0xff]  ;;  %v2394_v9 = vld [vmem:[%s7760_s7 + $0x498] sm:$0xff] }
 0x40d   : > { %v3559_v17 = vcombine.low %v2083_v7, %v2090_v10  ;;  %v3561_v18 = vcombine.high %v2083_v7, %v2090_v10  ;;  %v2099_v44 = vrot.slane %v2091_v14, %v6463_v16  ;;  %v4088_v56 = vpack.c.bf16 %v2381_v40, %v2379_v39  ;;  %v2408_v14 = vld [vmem:[%s7760_s7 + $0x508] sm:$0xff]  ;;  %v2409_v39 = vld [vmem:[%s7760_s7 + $0x510] sm:$0xff] }
 0x40e   : > { %v2143_v23 = vcombine.low %v2119_v12, %v2135_v13  ;;  %v2144_v21 = vcombine.high %v2119_v12, %v2135_v13  ;;  %v2159_v24 = vcombine.low %v2126_v15, %v2142_v53  ;;  %v2160_v28 = vcombine.high %v2126_v15, %v2142_v53  ;;  %v2391_v13 = vld [vmem:[%s7760_s7 + $0x480] sm:$0xff]  ;;  %v2393_v15 = vld [vmem:[%s7760_s7 + $0x490] sm:$0xff]  ;;  %v2396_v53 = vld [vmem:[%s7760_s7 + $0x4a8] sm:$0xff] }
 0x40f   : > { %v2187_v47 = vrot.slane %v3559_v17, %v6442_v52  ;;  %v2203_v45 = vrot.slane %v3561_v18, %v6442_v52  ;;  %v2106_v57 = vrot.slane %v2092_v43, %v6463_v16  ;;  %v4090_v58 = vpack.c.bf16 %v2386_v55, %v2384_v51  ;;  %v2398_v17 = vld [vmem:[%s7760_s7 + $0x4b8] sm:$0xff]  ;;  %v2412_v40 = vld [vmem:[%s7760_s7 + $0x528] sm:$0xff]  ;;  %v2411_v51 = vld [vmem:[%s7760_s7 + $0x520] sm:$0xff] }
 0x410   : > { %v2151_v8 = vrot.slane %v2143_v23, %v6463_v16  ;;  %v2158_v34 = vrot.slane %v2144_v21, %v6463_v16  ;;  %v6514_v30 = vrot.slane %v2159_v24, %v6463_v16  ;;  %v6517_v33 = vrot.slane %v2160_v28, %v6463_v16  ;;  %v2397_v23 = vld [vmem:[%s7760_s7 + $0x4b0] sm:$0xff]  ;;  %v2400_v21 = vld [vmem:[%s7760_s7 + $0x4c8] sm:$0xff]  ;;  %v2414_v43 = vld [vmem:[%s7760_s7 + $0x538] sm:$0xff] }
 0x411   : > { %v2211_v35 = vcombine.low %v2187_v47, %v2203_v45  ;;  %v2212_v36 = vcombine.high %v2187_v47, %v2203_v45  ;;  %v3560_v63 = vcombine.low %v2099_v44, %v2106_v57  ;;  %v3562_v1 = vcombine.high %v2099_v44, %v2106_v57  ;;  %v2406_v47 = vld [vmem:[%s7760_s7 + $0x4f8] sm:$0xff]  ;;  %v2413_v55 = vld [vmem:[%s7760_s7 + $0x530] sm:$0xff] }
 0x412   : > { %v2175_v37 = vcombine.high %v2151_v8, %v4599_v3  ;;  %v2176_v38 = vcombine.high %v2158_v34, %v4599_v3  ;;  %v2177_v50 = vcombine.high %v6514_v30, %v4599_v3  ;;  %v4092_v19 = vpack.c.bf16 %v2385_v60, %v2383_v59  ;;  %v2418_v57 = vld [vmem:[%s7760_s7 + $0x558] sm:$0xff]  ;;  %v2415_v60 = vld [vmem:[%s7760_s7 + $0x540] sm:$0xff] }
 0x413   : > { %v6528_v41 = vrot.slane %v2211_v35, %v6463_v16  ;;  %v6531_v42 = vrot.slane %v2212_v36, %v6463_v16  ;;  %v2194_v0 = vrot.slane %v3560_v63, %v6442_v52  ;;  %v2210_v27 = vrot.slane %v3562_v1, %v6442_v52  ;;  %v2405_v35 = vld [vmem:[%s7760_s7 + $0x4f0] sm:$0xff]  ;;  %v6619_v36 = vpop.f32.mrb[7].mxu1  ;;  %v2422_v63 = vld [vmem:[%s7760_s7 + $0x578] sm:$0xff] }
 0x414   : > { %2899 = vmatprep.mubr.f32.mxu0 %v2175_v37  ;;  %2970 = vmatprep.mubr.f32.mxu1 %v2176_v38  ;;  %v4094_v26 = vpack.c.bf16 %v2390_v62, %v2388_v54  ;;  %v4096_v7 = vpack.c.bf16 %v2389_v6, %v2387_v4  ;;  %v4098_v12 = vpack.c.bf16 %v2394_v9, %v2392_v61  ;;  %v2410_v37 = vld [vmem:[%s7760_s7 + $0x518] sm:$0xff]  ;;  %v2417_v54 = vld [vmem:[%s7760_s7 + $0x550] sm:$0xff]  ;;  %v2420_v62 = vld [vmem:[%s7760_s7 + $0x568] sm:$0xff] }
 0x415   : > { %2900 = vmatmul.mubr.f32.vlgmr.msra.gmra.mrb[12].mxu0 %v2151_v8  ;;  %2971 = vmatmul.mubr.f32.vlgmr.msra.gmra.mrb[8].mxu1 %v2158_v34  ;;  %v2227_v2 = vcombine.low %v2194_v0, %v2210_v27  ;;  %v2228_v52 = vcombine.high %v2194_v0, %v2210_v27  ;;  %v4102_v18 = vpack.c.bf16 %v2398_v17, %v2396_v53  ;;  %v2403_v34 = vld [vmem:[%s7760_s7 + $0x4e0] sm:$0xff]  ;;  %v2421_v27 = vld [vmem:[%s7760_s7 + $0x570] sm:$0xff]  ;;  %v2426_v4 = vld [vmem:[%s7760_s7 + $0x598] sm:$0xff] }
 0x416   : > { %4085 = vmatpush1.bf16.msra.mxu1 %v4084_v25  ;;  %3041 = vmatprep.mubr.f32.mxu1 %v2177_v50  ;;  %v4104_v24 = vpack.c.bf16 %v2397_v23, %v2395_v20  ;;  %v4106_v28 = vpack.c.bf16 %v2402_v22, %v2400_v21  ;;  %v4108_v45 = vpack.c.bf16 %v2401_v31, %v2399_v29  ;;  %v2419_v0 = vld [vmem:[%s7760_s7 + $0x560] sm:$0xff]  ;;  %v2429_v53 = vld [vmem:[%s7760_s7 + $0x5b0] sm:$0xff]  ;;  %v2432_v17 = vld [vmem:[%s7760_s7 + $0x5c8] sm:$0xff] }
 0x417   : > { %4087 = vmatprep.subr.bf16.mxu1 %v4086_v49  ;;  %v6570_v10 = vrot.slane %v2227_v2, %v6463_v16  ;;  %v6573_v11 = vrot.slane %v2228_v52, %v6463_v16  ;;  %v4100_v16 = vpack.c.bf16 %v2393_v15, %v2391_v13  ;;  %v4110_v8 = vpack.c.bf16 %v2406_v47, %v2404_v32  ;;  %v2407_v49 = vld [vmem:[%s7760_s7 + $0x500] sm:$0xff]  ;;  %v2425_v2 = vld [vmem:[%s7760_s7 + $0x590] sm:$0xff]  ;;  %v2428_v52 = vld [vmem:[%s7760_s7 + $0x5a8] sm:$0xff] }
 0x418   : > { %v4112_v38 = vpack.c.bf16 %v2405_v35, %v2403_v34  ;;  %v4114_v25 = vpack.c.bf16 %v2410_v37, %v2408_v14  ;;  %v4116_v44 = vpack.c.bf16 %v2409_v39, %v2407_v49  ;;  %v4118_v50 = vpack.c.bf16 %v2414_v43, %v2412_v40  ;;  %v2423_v9 = vld [vmem:[%s7760_s7 + $0x580] sm:$0xff]  ;;  %v2433_v21 = vld [vmem:[%s7760_s7 + $0x5d0] sm:$0xff]  ;;  %v2436_v22 = vld [vmem:[%s7760_s7 + $0x5e8] sm:$0xff] }
 0x419   : > { %v4124_v1 = vpack.c.bf16 %v2417_v54, %v2415_v60  ;;  %v4128_v6 = vpack.c.bf16 %v2421_v27, %v2419_v0  ;;  %v2427_v15 = vld [vmem:[%s7760_s7 + $0x5a0] sm:$0xff]  ;;  %v2437_v32 = vld [vmem:[%s7760_s7 + $0x5f0] sm:$0xff]  ;;  %v2440_v47 = vld [vmem:[%s7760_s7 + $0x608] sm:$0xff]  ;;  %v2178_v43 = vcombine.high %v6517_v33, %v4599_v3 }
 0x41a   : > { %4089 = vmatpush1.bf16.msra.mxu1 %v4088_v56  ;;  %v2416_v56 = vld [vmem:[%s7760_s7 + $0x548] sm:$0xff]  ;;  %v2431_v23 = vld [vmem:[%s7760_s7 + $0x5c0] sm:$0xff]  ;;  %v2441_v14 = vld [vmem:[%s7760_s7 + $0x610] sm:$0xff] }
 0x41b   : > { %4091 = vmatprep.subr.bf16.mxu1 %v4090_v58  ;;  %v4120_v58 = vpack.c.bf16 %v2413_v55, %v2411_v51  ;;  %v4122_v59 = vpack.c.bf16 %v2418_v57, %v2416_v56  ;;  %v2435_v31 = vld [vmem:[%s7760_s7 + $0x5e0] sm:$0xff]  ;;  %v2444_v37 = vld [vmem:[%s7760_s7 + $0x628] sm:$0xff]  ;;  %v2445_v40 = vld [vmem:[%s7760_s7 + $0x630] sm:$0xff] }
 0x41c   : > { %v2439_v35 = vld [vmem:[%s7760_s7 + $0x600] sm:$0xff]  ;;  %v2449_v57 = vld [vmem:[%s7760_s7 + $0x650] sm:$0xff] }
 0x41d   : > { %v2443_v39 = vld [vmem:[%s7760_s7 + $0x620] sm:$0xff] }
 0x41e   : > { %4093 = vmatpush1.bf16.msra.mxu1 %v4092_v19  ;;  %v4126_v19 = vpack.c.bf16 %v2422_v63, %v2420_v62  ;;  %v4152_v51 = vpack.c.bf16 %v2445_v40, %v2443_v39  ;;  %v2447_v56 = vld [vmem:[%s7760_s7 + $0x640] sm:$0xff]  ;;  %v2453_v62 = vld [vmem:[%s7760_s7 + $0x670] sm:$0xff]  ;;  %v2456_v63 = vld [vmem:[%s7760_s7 + $0x688] sm:$0xff] }
 0x41f   : > { %4095 = vmatprep.subr.bf16.mxu1 %v4094_v26  ;;  %v2424_v26 = vld [vmem:[%s7760_s7 + $0x588] sm:$0xff]  ;;  %v2451_v54 = vld [vmem:[%s7760_s7 + $0x660] sm:$0xff] }
 0x420   : > { %v4130_v61 = vpack.c.bf16 %v2426_v4, %v2424_v26  ;;  %v2455_v27 = vld [vmem:[%s7760_s7 + $0x680] sm:$0xff]  ;;  %v2457_v26 = vld [vmem:[%s7760_s7 + $0x690] sm:$0xff]  ;;  %v2460_v4 = vld [vmem:[%s7760_s7 + $0x6a8] sm:$0xff] }
 0x421   : > { %v2479_v40 = vld [vmem:[%s7760_s7 + $0x740] sm:$0xff] }
 0x422   : > { %4097 = vmatpush1.bf16.msra.mxu1 %v4096_v7  ;;  %v2430_v7 = vld [vmem:[%s7760_s7 + $0x5b8] sm:$0xff] }
 0x423   : > { %4099 = vmatprep.subr.bf16.mxu1 %v4098_v12  ;;  %v4132_v12 = vpack.c.bf16 %v2425_v2, %v2423_v9  ;;  %v4134_v13 = vpack.c.bf16 %v2430_v7, %v2428_v52  ;;  %v2459_v2 = vld [vmem:[%s7760_s7 + $0x6a0] sm:$0xff]  ;;  %v2461_v52 = vld [vmem:[%s7760_s7 + $0x6b0] sm:$0xff]  ;;  %v2464_v7 = vld [vmem:[%s7760_s7 + $0x6c8] sm:$0xff] }
 0x426   : > { %4101 = vmatpush1.bf16.msra.mxu1 %v4100_v16  ;;  %v2434_v16 = vld [vmem:[%s7760_s7 + $0x5d8] sm:$0xff] }
 0x427   : > { %4103 = vmatprep.subr.bf16.mxu1 %v4102_v18  ;;  %v4136_v18 = vpack.c.bf16 %v2429_v53, %v2427_v15  ;;  %v4138_v20 = vpack.c.bf16 %v2434_v16, %v2432_v17  ;;  %v2463_v53 = vld [vmem:[%s7760_s7 + $0x6c0] sm:$0xff]  ;;  %v2465_v17 = vld [vmem:[%s7760_s7 + $0x6d0] sm:$0xff]  ;;  %v2468_v16 = vld [vmem:[%s7760_s7 + $0x6e8] sm:$0xff] }
 0x42a   : > { %4105 = vmatpush1.bf16.msra.mxu1 %v4104_v24  ;;  %v2438_v24 = vld [vmem:[%s7760_s7 + $0x5f8] sm:$0xff] }
 0x42b   : > { %4107 = vmatprep.subr.bf16.mxu1 %v4106_v28  ;;  %v4140_v28 = vpack.c.bf16 %v2433_v21, %v2431_v23  ;;  %v4142_v29 = vpack.c.bf16 %v2438_v24, %v2436_v22  ;;  %v2467_v21 = vld [vmem:[%s7760_s7 + $0x6e0] sm:$0xff]  ;;  %v2469_v22 = vld [vmem:[%s7760_s7 + $0x6f0] sm:$0xff]  ;;  %v2472_v24 = vld [vmem:[%s7760_s7 + $0x708] sm:$0xff] }
 0x42e   : > { %4109 = vmatpush1.bf16.msra.mxu1 %v4108_v45  ;;  %v2442_v45 = vld [vmem:[%s7760_s7 + $0x618] sm:$0xff] }
 0x42f   : > { %4111 = vmatprep.subr.bf16.mxu1 %v4110_v8  ;;  %v4144_v8 = vpack.c.bf16 %v2437_v32, %v2435_v31  ;;  %v4146_v34 = vpack.c.bf16 %v2442_v45, %v2440_v47  ;;  %v2471_v32 = vld [vmem:[%s7760_s7 + $0x700] sm:$0xff]  ;;  %v2473_v47 = vld [vmem:[%s7760_s7 + $0x710] sm:$0xff]  ;;  %v2476_v45 = vld [vmem:[%s7760_s7 + $0x728] sm:$0xff] }
 0x432   : > { %4113 = vmatpush1.bf16.msra.mxu1 %v4112_v38  ;;  %v2446_v38 = vld [vmem:[%s7760_s7 + $0x638] sm:$0xff] }
 0x433   : > { %4115 = vmatprep.subr.bf16.mxu1 %v4114_v25  ;;  %v4148_v25 = vpack.c.bf16 %v2441_v14, %v2439_v35  ;;  %v4150_v49 = vpack.c.bf16 %v2446_v38, %v2444_v37  ;;  %v2475_v14 = vld [vmem:[%s7760_s7 + $0x720] sm:$0xff]  ;;  %v2477_v37 = vld [vmem:[%s7760_s7 + $0x730] sm:$0xff]  ;;  %v2480_v38 = vld [vmem:[%s7760_s7 + $0x748] sm:$0xff] }
 0x436   : > { %4117 = vmatpush1.bf16.msra.mxu1 %v4116_v44  ;;  %v2448_v44 = vld [vmem:[%s7760_s7 + $0x648] sm:$0xff] }
 0x437   : > { %4119 = vmatprep.subr.bf16.mxu1 %v4118_v50  ;;  %v2450_v50 = vld [vmem:[%s7760_s7 + $0x658] sm:$0xff] }
 0x438   : > { %v4154_v55 = vpack.c.bf16 %v2450_v50, %v2448_v44  ;;  %v2484_v44 = vld [vmem:[%s7760_s7 + $0x768] sm:$0xff]  ;;  %v2486_v50 = vld [vmem:[%s7760_s7 + $0x778] sm:$0xff] }
 0x43a   : > { %4121 = vmatpush1.bf16.msra.mxu1 %v4120_v58  ;;  %v2452_v58 = vld [vmem:[%s7760_s7 + $0x668] sm:$0xff] }
 0x43b   : > { %4123 = vmatprep.subr.bf16.mxu1 %v4122_v59  ;;  %v4156_v59 = vpack.c.bf16 %v2449_v57, %v2447_v56  ;;  %v2483_v56 = vld [vmem:[%s7760_s7 + $0x760] sm:$0xff]  ;;  %v2485_v57 = vld [vmem:[%s7760_s7 + $0x770] sm:$0xff] }
 0x43e   : > { %4125 = vmatpush1.bf16.msra.mxu1 %v4124_v1  ;;  %v2458_v1 = vld [vmem:[%s7760_s7 + $0x698] sm:$0xff] }
 0x43f   : > { %4127 = vmatprep.subr.bf16.mxu1 %v4126_v19  ;;  %v4160_v19 = vpack.c.bf16 %v2453_v62, %v2451_v54  ;;  %v4162_v0 = vpack.c.bf16 %v2458_v1, %v2456_v63  ;;  %v2487_v54 = vld [vmem:[%s7760_s7 + $0x780] sm:$0xff]  ;;  %v2489_v62 = vld [vmem:[%s7760_s7 + $0x790] sm:$0xff]  ;;  %v2492_v63 = vld [vmem:[%s7760_s7 + $0x7a8] sm:$0xff] }
 0x440   : > { %v2494_v1 = vld [vmem:[%s7760_s7 + $0x7b8] sm:$0xff] }
 0x442   : > { %4129 = vmatpush1.bf16.msra.mxu1 %v4128_v6  ;;  %v2462_v6 = vld [vmem:[%s7760_s7 + $0x6b8] sm:$0xff] }
 0x443   : > { %4131 = vmatprep.subr.bf16.mxu1 %v4130_v61  ;;  %v4164_v61 = vpack.c.bf16 %v2457_v26, %v2455_v27  ;;  %v4166_v9 = vpack.c.bf16 %v2462_v6, %v2460_v4  ;;  %v2491_v27 = vld [vmem:[%s7760_s7 + $0x7a0] sm:$0xff]  ;;  %v2493_v26 = vld [vmem:[%s7760_s7 + $0x7b0] sm:$0xff]  ;;  %v2496_v4 = vld [vmem:[%s7760_s7 + $0x7c8] sm:$0xff] }
 0x444   : > { %v2498_v6 = vld [vmem:[%s7760_s7 + $0x7d8] sm:$0xff] }
 0x446   : > { %4133 = vmatpush1.bf16.msra.mxu1 %v4132_v12  ;;  %v2466_v12 = vld [vmem:[%s7760_s7 + $0x6d8] sm:$0xff] }
 0x447   : > { %4135 = vmatprep.subr.bf16.mxu1 %v4134_v13  ;;  %v4168_v13 = vpack.c.bf16 %v2461_v52, %v2459_v2  ;;  %v4170_v15 = vpack.c.bf16 %v2466_v12, %v2464_v7  ;;  %v2495_v2 = vld [vmem:[%s7760_s7 + $0x7c0] sm:$0xff]  ;;  %v2497_v52 = vld [vmem:[%s7760_s7 + $0x7d0] sm:$0xff]  ;;  %v2500_v7 = vld [vmem:[%s7760_s7 + $0x7e8] sm:$0xff] }
 0x448   : > { %v2502_v12 = vld [vmem:[%s7760_s7 + $0x7f8] sm:$0xff] }
 0x44a   : > { %4137 = vmatpush1.bf16.msra.mxu1 %v4136_v18  ;;  %v2470_v18 = vld [vmem:[%s7760_s7 + $0x6f8] sm:$0xff] }
 0x44b   : > { %4139 = vmatprep.subr.bf16.mxu1 %v4138_v20  ;;  %v4172_v20 = vpack.c.bf16 %v2465_v17, %v2463_v53  ;;  %v4174_v23 = vpack.c.bf16 %v2470_v18, %v2468_v16  ;;  %v2499_v53 = vld [vmem:[%s7760_s7 + $0x7e0] sm:$0xff]  ;;  %v2501_v17 = vld [vmem:[%s7760_s7 + $0x7f0] sm:$0xff]  ;;  %v2504_v16 = vld [vmem:[%s7760_s7 + $0x808] sm:$0xff] }
 0x44c   : > { %v2506_v18 = vld [vmem:[%s7760_s7 + $0x818] sm:$0xff] }
 0x44e   : > { %4141 = vmatpush1.bf16.msra.mxu1 %v4140_v28  ;;  %v2474_v28 = vld [vmem:[%s7760_s7 + $0x718] sm:$0xff] }
 0x44f   : > { %4143 = vmatprep.subr.bf16.mxu1 %v4142_v29  ;;  %v4176_v29 = vpack.c.bf16 %v2469_v22, %v2467_v21  ;;  %v4178_v31 = vpack.c.bf16 %v2474_v28, %v2472_v24  ;;  %v2503_v21 = vld [vmem:[%s7760_s7 + $0x800] sm:$0xff]  ;;  %v2505_v22 = vld [vmem:[%s7760_s7 + $0x810] sm:$0xff]  ;;  %v2508_v24 = vld [vmem:[%s7760_s7 + $0x828] sm:$0xff] }
 0x450   : > { %v2510_v28 = vld [vmem:[%s7760_s7 + $0x838] sm:$0xff] }
 0x452   : > { %4145 = vmatpush1.bf16.msra.mxu1 %v4144_v8  ;;  %v2478_v8 = vld [vmem:[%s7760_s7 + $0x738] sm:$0xff] }
 0x453   : > { %4147 = vmatprep.subr.bf16.mxu1 %v4146_v34  ;;  %v4180_v34 = vpack.c.bf16 %v2473_v47, %v2471_v32  ;;  %v4182_v35 = vpack.c.bf16 %v2478_v8, %v2476_v45  ;;  %v2507_v32 = vld [vmem:[%s7760_s7 + $0x820] sm:$0xff]  ;;  %v2509_v47 = vld [vmem:[%s7760_s7 + $0x830] sm:$0xff]  ;;  %v2243_v45 = vcombine.high %v6528_v41, %v4599_v3  ;;  %v2512_v8 = vld [vmem:[%s7760_s7 + $0x848] sm:$0xff] }
 0x455   : > { %3042 = vmatmul.mubr.f32.vlgmr.msra.gmra.mrb[8].mxu1 %v6514_v30  ;;  %v2454_v30 = vld [vmem:[%s7760_s7 + $0x678] sm:$0xff] }
 0x456   : > { %4149 = vmatpush1.bf16.msra.mxu1 %v4148_v25  ;;  %3112 = vmatprep.mubr.f32.mxu1 %v2178_v43  ;;  %v4158_v60 = vpack.c.bf16 %v2454_v30, %v2452_v58  ;;  %v2482_v25 = vld [vmem:[%s7760_s7 + $0x758] sm:$0xff]  ;;  %v2481_v43 = vld [vmem:[%s7760_s7 + $0x750] sm:$0xff]  ;;  %v2488_v58 = vld [vmem:[%s7760_s7 + $0x788] sm:$0xff] }
 0x457   : > { %4151 = vmatprep.subr.bf16.mxu1 %v4150_v49  ;;  %v4184_v49 = vpack.c.bf16 %v2477_v37, %v2475_v14  ;;  %v4186_v39 = vpack.c.bf16 %v2482_v25, %v2480_v38  ;;  %v2490_v30 = vld [vmem:[%s7760_s7 + $0x798] sm:$0xff]  ;;  %v2511_v37 = vld [vmem:[%s7760_s7 + $0x840] sm:$0xff]  ;;  %v2513_v38 = vld [vmem:[%s7760_s7 + $0x850] sm:$0xff] }
 0x458   : > { %v2516_v25 = vld [vmem:[%s7760_s7 + $0x868] sm:$0xff] }
 0x45a   : > { %4153 = vmatpush1.bf16.msra.mxu1 %v4152_v51  ;;  %v4188_v51 = vpack.c.bf16 %v2481_v43, %v2479_v40  ;;  %v2515_v40 = vld [vmem:[%s7760_s7 + $0x860] sm:$0xff]  ;;  %v2517_v43 = vld [vmem:[%s7760_s7 + $0x870] sm:$0xff] }
 0x45b   : > { %4155 = vmatprep.subr.bf16.mxu1 %v4154_v55  ;;  %v4190_v55 = vpack.c.bf16 %v2486_v50, %v2484_v44  ;;  %v2520_v44 = vld [vmem:[%s7760_s7 + $0x888] sm:$0xff]  ;;  %v2522_v50 = vld [vmem:[%s7760_s7 + $0x898] sm:$0xff] }
 0x45e   : > { %4157 = vmatpush1.bf16.msra.mxu1 %v4156_v59  ;;  %v4192_v59 = vpack.c.bf16 %v2485_v57, %v2483_v56  ;;  %v2519_v56 = vld [vmem:[%s7760_s7 + $0x880] sm:$0xff]  ;;  %v2521_v57 = vld [vmem:[%s7760_s7 + $0x890] sm:$0xff] }
 0x45f   : > { %4159 = vmatprep.subr.bf16.mxu1 %v4158_v60  ;;  %v4194_v60 = vpack.c.bf16 %v2490_v30, %v2488_v58  ;;  %v2524_v58 = vld [vmem:[%s7760_s7 + $0x8a8] sm:$0xff]  ;;  %v2526_v30 = vld [vmem:[%s7760_s7 + $0x8b8] sm:$0xff] }
 0x462   : > { %4161 = vmatpush1.bf16.msra.mxu1 %v4160_v19  ;;  %v4196_v19 = vpack.c.bf16 %v2489_v62, %v2487_v54  ;;  %v2523_v54 = vld [vmem:[%s7760_s7 + $0x8a0] sm:$0xff]  ;;  %v2525_v62 = vld [vmem:[%s7760_s7 + $0x8b0] sm:$0xff] }
 0x463   : > { %4163 = vmatprep.subr.bf16.mxu1 %v4162_v0  ;;  %v4198_v0 = vpack.c.bf16 %v2494_v1, %v2492_v63  ;;  %v2528_v63 = vld [vmem:[%s7760_s7 + $0x8c8] sm:$0xff]  ;;  %v2530_v1 = vld [vmem:[%s7760_s7 + $0x8d8] sm:$0xff] }
 0x466   : > { %4165 = vmatpush1.bf16.msra.mxu1 %v4164_v61  ;;  %v4200_v61 = vpack.c.bf16 %v2493_v26, %v2491_v27  ;;  %v2527_v27 = vld [vmem:[%s7760_s7 + $0x8c0] sm:$0xff]  ;;  %v2529_v26 = vld [vmem:[%s7760_s7 + $0x8d0] sm:$0xff] }
 0x467   : > { %4167 = vmatprep.subr.bf16.mxu1 %v4166_v9  ;;  %v4202_v9 = vpack.c.bf16 %v2498_v6, %v2496_v4  ;;  %v2532_v4 = vld [vmem:[%s7760_s7 + $0x8e8] sm:$0xff]  ;;  %v2534_v6 = vld [vmem:[%s7760_s7 + $0x8f8] sm:$0xff] }
 0x46a   : > { %4169 = vmatpush1.bf16.msra.mxu1 %v4168_v13  ;;  %v4204_v13 = vpack.c.bf16 %v2497_v52, %v2495_v2  ;;  %v2531_v2 = vld [vmem:[%s7760_s7 + $0x8e0] sm:$0xff]  ;;  %v2533_v52 = vld [vmem:[%s7760_s7 + $0x8f0] sm:$0xff] }
 0x46b   : > { %4171 = vmatprep.subr.bf16.mxu1 %v4170_v15  ;;  %v4206_v15 = vpack.c.bf16 %v2502_v12, %v2500_v7  ;;  %v2536_v7 = vld [vmem:[%s7760_s7 + $0x908] sm:$0xff]  ;;  %v2538_v12 = vld [vmem:[%s7760_s7 + $0x918] sm:$0xff] }
 0x46e   : > { %4173 = vmatpush1.bf16.msra.mxu1 %v4172_v20  ;;  %v4208_v20 = vpack.c.bf16 %v2501_v17, %v2499_v53  ;;  %v2535_v53 = vld [vmem:[%s7760_s7 + $0x900] sm:$0xff]  ;;  %v2537_v17 = vld [vmem:[%s7760_s7 + $0x910] sm:$0xff] }
 0x46f   : > { %4175 = vmatprep.subr.bf16.mxu1 %v4174_v23  ;;  %v4210_v23 = vpack.c.bf16 %v2506_v18, %v2504_v16  ;;  %v2540_v16 = vld [vmem:[%s7760_s7 + $0x928] sm:$0xff]  ;;  %v2542_v18 = vld [vmem:[%s7760_s7 + $0x938] sm:$0xff] }
 0x472   : > { %4177 = vmatpush1.bf16.msra.mxu1 %v4176_v29  ;;  %v4212_v29 = vpack.c.bf16 %v2505_v22, %v2503_v21  ;;  %v2539_v21 = vld [vmem:[%s7760_s7 + $0x920] sm:$0xff]  ;;  %v2541_v22 = vld [vmem:[%s7760_s7 + $0x930] sm:$0xff] }
 0x473   : > { %4179 = vmatprep.subr.bf16.mxu1 %v4178_v31  ;;  %v4214_v31 = vpack.c.bf16 %v2510_v28, %v2508_v24  ;;  %v2544_v24 = vld [vmem:[%s7760_s7 + $0x948] sm:$0xff]  ;;  %v2546_v28 = vld [vmem:[%s7760_s7 + $0x958] sm:$0xff] }
 0x476   : > { %4181 = vmatpush1.bf16.msra.mxu1 %v4180_v34  ;;  %v2514_v34 = vld [vmem:[%s7760_s7 + $0x858] sm:$0xff] }
 0x477   : > { %4183 = vmatprep.subr.bf16.mxu1 %v4182_v35  ;;  %v4216_v35 = vpack.c.bf16 %v2509_v47, %v2507_v32  ;;  %v4218_v14 = vpack.c.bf16 %v2514_v34, %v2512_v8  ;;  %v2543_v32 = vld [vmem:[%s7760_s7 + $0x940] sm:$0xff]  ;;  %v2545_v47 = vld [vmem:[%s7760_s7 + $0x950] sm:$0xff]  ;;  %v2550_v8 = vld [vmem:[%s7760_s7 + $0x978] sm:$0xff] }
 0x478   : > { %v4252_v34 = vpack.c.bf16 %v2545_v47, %v2543_v32  ;;  %v2581_v32 = vld [vmem:[%s7760_s7 + $0xa70] sm:$0xff]  ;;  %v2584_v47 = vld [vmem:[%s7760_s7 + $0xa88] sm:$0xff] }
 0x47a   : > { %4185 = vmatpush1.bf16.msra.mxu1 %v4184_v49  ;;  %v4220_v49 = vpack.c.bf16 %v2513_v38, %v2511_v37  ;;  %v2549_v37 = vld [vmem:[%s7760_s7 + $0x970] sm:$0xff]  ;;  %v2552_v38 = vld [vmem:[%s7760_s7 + $0x988] sm:$0xff] }
 0x47b   : > { %4187 = vmatprep.subr.bf16.mxu1 %v4186_v39 }
 0x47e   : > { %4189 = vmatpush1.bf16.msra.mxu1 %v4188_v51  ;;  %v4224_v51 = vpack.c.bf16 %v2517_v43, %v2515_v40  ;;  %v2553_v40 = vld [vmem:[%s7760_s7 + $0x990] sm:$0xff]  ;;  %v2556_v43 = vld [vmem:[%s7760_s7 + $0x9a8] sm:$0xff] }
 0x47f   : > { %4191 = vmatprep.subr.bf16.mxu1 %v4190_v55  ;;  %v4226_v55 = vpack.c.bf16 %v2522_v50, %v2520_v44  ;;  %v2558_v44 = vld [vmem:[%s7760_s7 + $0x9b8] sm:$0xff] }
 0x482   : > { %4193 = vmatpush1.bf16.msra.mxu1 %v4192_v59  ;;  %v4228_v59 = vpack.c.bf16 %v2521_v57, %v2519_v56  ;;  %v2557_v56 = vld [vmem:[%s7760_s7 + $0x9b0] sm:$0xff]  ;;  %v2560_v57 = vld [vmem:[%s7760_s7 + $0x9c8] sm:$0xff] }
 0x483   : > { %4195 = vmatprep.subr.bf16.mxu1 %v4194_v60  ;;  %v4230_v60 = vpack.c.bf16 %v2526_v30, %v2524_v58  ;;  %v2562_v58 = vld [vmem:[%s7760_s7 + $0x9d8] sm:$0xff] }
 0x486   : > { %4197 = vmatpush1.bf16.msra.mxu1 %v4196_v19  ;;  %v4232_v19 = vpack.c.bf16 %v2525_v62, %v2523_v54  ;;  %v2561_v54 = vld [vmem:[%s7760_s7 + $0x9d0] sm:$0xff]  ;;  %v2564_v62 = vld [vmem:[%s7760_s7 + $0x9e8] sm:$0xff] }
 0x487   : > { %4199 = vmatprep.subr.bf16.mxu1 %v4198_v0  ;;  %v4234_v0 = vpack.c.bf16 %v2530_v1, %v2528_v63  ;;  %v2566_v63 = vld [vmem:[%s7760_s7 + $0x9f8] sm:$0xff] }
 0x48a   : > { %4201 = vmatpush1.bf16.msra.mxu1 %v4200_v61  ;;  %v4236_v61 = vpack.c.bf16 %v2529_v26, %v2527_v27  ;;  %v2565_v27 = vld [vmem:[%s7760_s7 + $0x9f0] sm:$0xff]  ;;  %v2568_v26 = vld [vmem:[%s7760_s7 + $0xa08] sm:$0xff] }
 0x48b   : > { %4203 = vmatprep.subr.bf16.mxu1 %v4202_v9  ;;  %v4238_v9 = vpack.c.bf16 %v2534_v6, %v2532_v4  ;;  %v2570_v4 = vld [vmem:[%s7760_s7 + $0xa18] sm:$0xff] }
 0x48e   : > { %4205 = vmatpush1.bf16.msra.mxu1 %v4204_v13  ;;  %v4240_v13 = vpack.c.bf16 %v2533_v52, %v2531_v2  ;;  %v2569_v2 = vld [vmem:[%s7760_s7 + $0xa10] sm:$0xff]  ;;  %v2572_v52 = vld [vmem:[%s7760_s7 + $0xa28] sm:$0xff] }
 0x48f   : > { %4207 = vmatprep.subr.bf16.mxu1 %v4206_v15  ;;  %v4242_v15 = vpack.c.bf16 %v2538_v12, %v2536_v7  ;;  %v2574_v7 = vld [vmem:[%s7760_s7 + $0xa38] sm:$0xff] }
 0x492   : > { %4209 = vmatpush1.bf16.msra.mxu1 %v4208_v20  ;;  %v4244_v20 = vpack.c.bf16 %v2537_v17, %v2535_v53  ;;  %v2573_v53 = vld [vmem:[%s7760_s7 + $0xa30] sm:$0xff]  ;;  %v2244_v17 = vcombine.high %v6531_v42, %v4599_v3 }
 0x493   : > { %4211 = vmatprep.subr.bf16.mxu1 %v4210_v23  ;;  %v4246_v23 = vpack.c.bf16 %v2542_v18, %v2540_v16  ;;  %v2576_v16 = vld [vmem:[%s7760_s7 + $0xa48] sm:$0xff]  ;;  %v2578_v18 = vld [vmem:[%s7760_s7 + $0xa58] sm:$0xff] }
 0x495   : > { %3113 = vmatmul.mubr.f32.vlgmr.msra.gmra.mrb[8].mxu1 %v6517_v33  ;;  %v2518_v33 = vld [vmem:[%s7760_s7 + $0x878] sm:$0xff] }
 0x496   : > { %4213 = vmatpush1.bf16.msra.mxu1 %v4212_v29  ;;  %3183 = vmatprep.mubr.f32.mxu1 %v2243_v45  ;;  %v4222_v39 = vpack.c.bf16 %v2518_v33, %v2516_v25  ;;  %v4248_v29 = vpack.c.bf16 %v2541_v22, %v2539_v21  ;;  %v2548_v45 = vld [vmem:[%s7760_s7 + $0x968] sm:$0xff]  ;;  %v2554_v25 = vld [vmem:[%s7760_s7 + $0x998] sm:$0xff]  ;;  %v2575_v21 = vld [vmem:[%s7760_s7 + $0xa40] sm:$0xff] }
 0x497   : > { %4215 = vmatprep.subr.bf16.mxu1 %v4214_v31  ;;  %v4250_v31 = vpack.c.bf16 %v2546_v28, %v2544_v24  ;;  %v2577_v22 = vld [vmem:[%s7760_s7 + $0xa50] sm:$0xff]  ;;  %v2580_v24 = vld [vmem:[%s7760_s7 + $0xa68] sm:$0xff] }
 0x498   : > { %v4284_v28 = vpack.c.bf16 %v2577_v22, %v2575_v21  ;;  %v2611_v21 = vld [vmem:[%s7760_s7 + $0xb60] sm:$0xff]  ;;  %v2613_v22 = vld [vmem:[%s7760_s7 + $0xb70] sm:$0xff] }
 0x49a   : > { %4217 = vmatpush1.bf16.msra.mxu1 %v4216_v35  ;;  %v4254_v35 = vpack.c.bf16 %v2550_v8, %v2548_v45  ;;  %v2586_v45 = vld [vmem:[%s7760_s7 + $0xa98] sm:$0xff] }
 0x49b   : > { %4219 = vmatprep.subr.bf16.mxu1 %v4218_v14  ;;  %v2547_v14 = vld [vmem:[%s7760_s7 + $0x960] sm:$0xff] }
 0x49c   : > { %v4256_v33 = vpack.c.bf16 %v2549_v37, %v2547_v14  ;;  %v2585_v14 = vld [vmem:[%s7760_s7 + $0xa90] sm:$0xff]  ;;  %v2588_v37 = vld [vmem:[%s7760_s7 + $0xaa8] sm:$0xff] }
 0x49e   : > { %4221 = vmatpush1.bf16.msra.mxu1 %v4220_v49  ;;  %v4258_v49 = vpack.c.bf16 %v2554_v25, %v2552_v38  ;;  %v2590_v38 = vld [vmem:[%s7760_s7 + $0xab8] sm:$0xff] }
 0x49f   : > { %4223 = vmatprep.subr.bf16.mxu1 %v4222_v39  ;;  %v2551_v39 = vld [vmem:[%s7760_s7 + $0x980] sm:$0xff] }
 0x4a0   : > { %v4260_v50 = vpack.c.bf16 %v2553_v40, %v2551_v39  ;;  %v2589_v39 = vld [vmem:[%s7760_s7 + $0xab0] sm:$0xff]  ;;  %v2592_v40 = vld [vmem:[%s7760_s7 + $0xac8] sm:$0xff] }
 0x4a2   : > { %4225 = vmatpush1.bf16.msra.mxu1 %v4224_v51  ;;  %v4262_v51 = vpack.c.bf16 %v2558_v44, %v2556_v43  ;;  %v2594_v43 = vld [vmem:[%s7760_s7 + $0xad8] sm:$0xff] }
 0x4a3   : > { %4227 = vmatprep.subr.bf16.mxu1 %v4226_v55  ;;  %v2555_v55 = vld [vmem:[%s7760_s7 + $0x9a0] sm:$0xff] }
 0x4a4   : > { %v4264_v30 = vpack.c.bf16 %v2557_v56, %v2555_v55  ;;  %v2593_v55 = vld [vmem:[%s7760_s7 + $0xad0] sm:$0xff] }
 0x4a6   : > { %4229 = vmatpush1.bf16.msra.mxu1 %v4228_v59  ;;  %v4266_v59 = vpack.c.bf16 %v2562_v58, %v2560_v57  ;;  %v2596_v57 = vld [vmem:[%s7760_s7 + $0xae8] sm:$0xff]  ;;  %v2598_v58 = vld [vmem:[%s7760_s7 + $0xaf8] sm:$0xff] }
 0x4a7   : > { %4231 = vmatprep.subr.bf16.mxu1 %v4230_v60  ;;  %v2559_v60 = vld [vmem:[%s7760_s7 + $0x9c0] sm:$0xff] }
 0x4a8   : > { %v4268_v1 = vpack.c.bf16 %v2561_v54, %v2559_v60 }
 0x4aa   : > { %4233 = vmatpush1.bf16.msra.mxu1 %v4232_v19  ;;  %v4270_v19 = vpack.c.bf16 %v2566_v63, %v2564_v62  ;;  %v4302_v62 = vpack.c.bf16 %v2598_v58, %v2596_v57  ;;  %v2595_v63 = vld [vmem:[%s7760_s7 + $0xae0] sm:$0xff]  ;;  %v2634_v57 = vld [vmem:[%s7760_s7 + $0xc18] sm:$0xff] }
 0x4ab   : > { %4235 = vmatprep.subr.bf16.mxu1 %v4234_v0  ;;  %v2563_v0 = vld [vmem:[%s7760_s7 + $0x9e0] sm:$0xff] }
 0x4ac   : > { %v4272_v6 = vpack.c.bf16 %v2565_v27, %v2563_v0  ;;  %v2599_v27 = vld [vmem:[%s7760_s7 + $0xb00] sm:$0xff] }
 0x4ae   : > { %4237 = vmatpush1.bf16.msra.mxu1 %v4236_v61  ;;  %v4274_v61 = vpack.c.bf16 %v2570_v4, %v2568_v26  ;;  %v2601_v26 = vld [vmem:[%s7760_s7 + $0xb10] sm:$0xff]  ;;  %v2604_v4 = vld [vmem:[%s7760_s7 + $0xb28] sm:$0xff] }
 0x4af   : > { %4239 = vmatprep.subr.bf16.mxu1 %v4238_v9  ;;  %v2567_v9 = vld [vmem:[%s7760_s7 + $0xa00] sm:$0xff] }
 0x4b0   : > { %v4276_v12 = vpack.c.bf16 %v2569_v2, %v2567_v9  ;;  %v2603_v2 = vld [vmem:[%s7760_s7 + $0xb20] sm:$0xff] }
 0x4b2   : > { %4241 = vmatpush1.bf16.msra.mxu1 %v4240_v13  ;;  %v4278_v13 = vpack.c.bf16 %v2574_v7, %v2572_v52  ;;  %v2605_v52 = vld [vmem:[%s7760_s7 + $0xb30] sm:$0xff]  ;;  %v2608_v7 = vld [vmem:[%s7760_s7 + $0xb48] sm:$0xff] }
 0x4b3   : > { %4243 = vmatprep.subr.bf16.mxu1 %v4242_v15  ;;  %v2571_v15 = vld [vmem:[%s7760_s7 + $0xa20] sm:$0xff] }
 0x4b6   : > { %4245 = vmatpush1.bf16.msra.mxu1 %v4244_v20  ;;  %v4280_v20 = vpack.c.bf16 %v2573_v53, %v2571_v15  ;;  %v2607_v53 = vld [vmem:[%s7760_s7 + $0xb40] sm:$0xff] }
 0x4b7   : > { %4247 = vmatprep.subr.bf16.mxu1 %v4246_v23  ;;  %v4282_v23 = vpack.c.bf16 %v2578_v18, %v2576_v16  ;;  %v2612_v16 = vld [vmem:[%s7760_s7 + $0xb68] sm:$0xff]  ;;  %v2614_v18 = vld [vmem:[%s7760_s7 + $0xb78] sm:$0xff] }
 0x4ba   : > { %4249 = vmatpush1.bf16.msra.mxu1 %v4248_v29 }
 0x4bb   : > { %4251 = vmatprep.subr.bf16.mxu1 %v4250_v31  ;;  %v2579_v31 = vld [vmem:[%s7760_s7 + $0xa60] sm:$0xff] }
 0x4bc   : > { %v4288_v8 = vpack.c.bf16 %v2581_v32, %v2579_v31  ;;  %v2615_v31 = vld [vmem:[%s7760_s7 + $0xb80] sm:$0xff]  ;;  %v2617_v32 = vld [vmem:[%s7760_s7 + $0xb90] sm:$0xff] }
 0x4be   : > { %4253 = vmatpush1.bf16.msra.mxu1 %v4252_v34  ;;  %v4290_v34 = vpack.c.bf16 %v2586_v45, %v2584_v47  ;;  %v2620_v47 = vld [vmem:[%s7760_s7 + $0xba8] sm:$0xff]  ;;  %v2622_v45 = vld [vmem:[%s7760_s7 + $0xbb8] sm:$0xff] }
 0x4bf   : > { %4255 = vmatprep.subr.bf16.mxu1 %v4254_v35  ;;  %v2583_v35 = vld [vmem:[%s7760_s7 + $0xa80] sm:$0xff] }
 0x4c0   : > { %v4292_v25 = vpack.c.bf16 %v2585_v14, %v2583_v35  ;;  %v2619_v35 = vld [vmem:[%s7760_s7 + $0xba0] sm:$0xff]  ;;  %v2621_v14 = vld [vmem:[%s7760_s7 + $0xbb0] sm:$0xff] }
 0x4c2   : > { %4257 = vmatpush1.bf16.msra.mxu1 %v4256_v33  ;;  %v4294_v33 = vpack.c.bf16 %v2590_v38, %v2588_v37  ;;  %v2624_v37 = vld [vmem:[%s7760_s7 + $0xbc8] sm:$0xff]  ;;  %v2626_v38 = vld [vmem:[%s7760_s7 + $0xbd8] sm:$0xff] }
 0x4c3   : > { %4259 = vmatprep.subr.bf16.mxu1 %v4258_v49  ;;  %v2587_v49 = vld [vmem:[%s7760_s7 + $0xaa0] sm:$0xff] }
 0x4c4   : > { %v4296_v44 = vpack.c.bf16 %v2589_v39, %v2587_v49  ;;  %v2623_v49 = vld [vmem:[%s7760_s7 + $0xbc0] sm:$0xff]  ;;  %v2625_v39 = vld [vmem:[%s7760_s7 + $0xbd0] sm:$0xff] }
 0x4c6   : > { %4261 = vmatpush1.bf16.msra.mxu1 %v4260_v50  ;;  %v4298_v50 = vpack.c.bf16 %v2594_v43, %v2592_v40  ;;  %v2628_v40 = vld [vmem:[%s7760_s7 + $0xbe8] sm:$0xff]  ;;  %v2630_v43 = vld [vmem:[%s7760_s7 + $0xbf8] sm:$0xff] }
 0x4c7   : > { %4263 = vmatprep.subr.bf16.mxu1 %v4262_v51  ;;  %v2591_v51 = vld [vmem:[%s7760_s7 + $0xac0] sm:$0xff] }
 0x4c8   : > { %v4300_v54 = vpack.c.bf16 %v2593_v55, %v2591_v51  ;;  %v2627_v51 = vld [vmem:[%s7760_s7 + $0xbe0] sm:$0xff]  ;;  %v2629_v55 = vld [vmem:[%s7760_s7 + $0xbf0] sm:$0xff] }
 0x4c9   : > { %v4336_v58 = vpack.c.bf16 %v2629_v55, %v2627_v51  ;;  %v2668_v51 = vld [vmem:[%s7760_s7 + $0xd28] sm:$0xff]  ;;  %v2670_v55 = vld [vmem:[%s7760_s7 + $0xd38] sm:$0xff] }
 0x4ca   : > { %4265 = vmatpush1.bf16.msra.mxu1 %v4264_v30 }
 0x4cb   : > { %4267 = vmatprep.subr.bf16.mxu1 %v4266_v59 }
 0x4ce   : > { %4269 = vmatpush1.bf16.msra.mxu1 %v4268_v1  ;;  %v2597_v1 = vld [vmem:[%s7760_s7 + $0xaf0] sm:$0xff] }
 0x4cf   : > { %4271 = vmatprep.subr.bf16.mxu1 %v4270_v19  ;;  %v4304_v19 = vpack.c.bf16 %v2597_v1, %v2595_v63  ;;  %v2636_v63 = vld [vmem:[%s7760_s7 + $0xc28] sm:$0xff]  ;;  %v2638_v1 = vld [vmem:[%s7760_s7 + $0xc38] sm:$0xff] }
 0x4d2   : > { %4273 = vmatpush1.bf16.msra.mxu1 %v4272_v6  ;;  %v2606_v6 = vld [vmem:[%s7760_s7 + $0xb38] sm:$0xff] }
 0x4d3   : > { %4275 = vmatprep.subr.bf16.mxu1 %v4274_v61  ;;  %v4308_v61 = vpack.c.bf16 %v2601_v26, %v2599_v27  ;;  %v4310_v9 = vpack.c.bf16 %v2606_v6, %v2604_v4  ;;  %v2245_v27 = vcombine.high %v6570_v10, %v4599_v3  ;;  %v2640_v26 = vld [vmem:[%s7760_s7 + $0xc48] sm:$0xff]  ;;  %v2642_v4 = vld [vmem:[%s7760_s7 + $0xc58] sm:$0xff] }
 0x4d5   : > { %3184 = vmatmul.mubr.f32.vlgmr.msra.gmra.mrb[8].mxu1 %v6528_v41  ;;  %v2582_v41 = vld [vmem:[%s7760_s7 + $0xa78] sm:$0xff] }
 0x4d6   : > { %4277 = vmatpush1.bf16.msra.mxu1 %v4276_v12  ;;  %3254 = vmatprep.mubr.f32.mxu1 %v2244_v17  ;;  %v4286_v29 = vpack.c.bf16 %v2582_v41, %v2580_v24  ;;  %v2610_v12 = vld [vmem:[%s7760_s7 + $0xb58] sm:$0xff]  ;;  %v2609_v17 = vld [vmem:[%s7760_s7 + $0xb50] sm:$0xff]  ;;  %v2616_v24 = vld [vmem:[%s7760_s7 + $0xb88] sm:$0xff] }
 0x4d7   : > { %4279 = vmatprep.subr.bf16.mxu1 %v4278_v13  ;;  %v4312_v13 = vpack.c.bf16 %v2605_v52, %v2603_v2  ;;  %v4314_v15 = vpack.c.bf16 %v2610_v12, %v2608_v7  ;;  %v2618_v41 = vld [vmem:[%s7760_s7 + $0xb98] sm:$0xff]  ;;  %v2641_v2 = vld [vmem:[%s7760_s7 + $0xc50] sm:$0xff]  ;;  %v2644_v52 = vld [vmem:[%s7760_s7 + $0xc68] sm:$0xff] }
 0x4da   : > { %4281 = vmatpush1.bf16.msra.mxu1 %v4280_v20  ;;  %v4316_v20 = vpack.c.bf16 %v2609_v17, %v2607_v53  ;;  %v2648_v53 = vld [vmem:[%s7760_s7 + $0xc88] sm:$0xff]  ;;  %v2650_v17 = vld [vmem:[%s7760_s7 + $0xc98] sm:$0xff] }
 0x4db   : > { %4283 = vmatprep.subr.bf16.mxu1 %v4282_v23  ;;  %v4318_v23 = vpack.c.bf16 %v2614_v18, %v2612_v16  ;;  %v4354_v18 = vpack.c.bf16 %v2650_v17, %v2648_v53  ;;  %v2683_v17 = vld [vmem:[%s7760_s7 + $0xda0] sm:$0xff] }
 0x4de   : > { %4285 = vmatpush1.bf16.msra.mxu1 %v4284_v28  ;;  %v4320_v28 = vpack.c.bf16 %v2613_v22, %v2611_v21  ;;  %v2652_v21 = vld [vmem:[%s7760_s7 + $0xca8] sm:$0xff]  ;;  %v2654_v22 = vld [vmem:[%s7760_s7 + $0xcb8] sm:$0xff] }
 0x4df   : > { %4287 = vmatprep.subr.bf16.mxu1 %v4286_v29  ;;  %v4322_v29 = vpack.c.bf16 %v2618_v41, %v2616_v24  ;;  %v4358_v41 = vpack.c.bf16 %v2654_v22, %v2652_v21  ;;  %v2687_v22 = vld [vmem:[%s7760_s7 + $0xdc0] sm:$0xff] }
 0x4e2   : > { %4289 = vmatpush1.bf16.msra.mxu1 %v4288_v8  ;;  %v4324_v8 = vpack.c.bf16 %v2617_v32, %v2615_v31  ;;  %v2656_v31 = vld [vmem:[%s7760_s7 + $0xcc8] sm:$0xff]  ;;  %v2658_v32 = vld [vmem:[%s7760_s7 + $0xcd8] sm:$0xff] }
 0x4e3   : > { %4291 = vmatprep.subr.bf16.mxu1 %v4290_v34  ;;  %v4326_v34 = vpack.c.bf16 %v2622_v45, %v2620_v47  ;;  %v4362_v45 = vpack.c.bf16 %v2658_v32, %v2656_v31  ;;  %v2691_v32 = vld [vmem:[%s7760_s7 + $0xde0] sm:$0xff] }
 0x4e6   : > { %4293 = vmatpush1.bf16.msra.mxu1 %v4292_v25  ;;  %v4328_v25 = vpack.c.bf16 %v2621_v14, %v2619_v35  ;;  %v2660_v35 = vld [vmem:[%s7760_s7 + $0xce8] sm:$0xff]  ;;  %v2662_v14 = vld [vmem:[%s7760_s7 + $0xcf8] sm:$0xff] }
 0x4e7   : > { %4295 = vmatprep.subr.bf16.mxu1 %v4294_v33  ;;  %v4330_v33 = vpack.c.bf16 %v2626_v38, %v2624_v37  ;;  %v4366_v38 = vpack.c.bf16 %v2662_v14, %v2660_v35  ;;  %v2695_v14 = vld [vmem:[%s7760_s7 + $0xe00] sm:$0xff] }
 0x4e8   : > { %v2901_v56 = vpop.f32.mrb[12].mxu0 }
 0x4e9   : > { %v7201_v30 = vadd.f32 %v2901_v56, %v6611_v5  ;;  %v2903_v59 = vpop.f32.mrb[13].mxu0  ;;  %v2600_v5 = vld [vmem:[%s7760_s7 + $0xb08] sm:$0xff] }
 0x4ea   : > { %v7204_v60 = vadd.f32 %v2903_v59, %v6619_v36  ;;  %4297 = vmatpush1.bf16.msra.mxu1 %v4296_v44  ;;  %v2602_v36 = vld [vmem:[%s7760_s7 + $0xb18] sm:$0xff]  ;;  %v4332_v44 = vpack.c.bf16 %v2625_v39, %v2623_v49  ;;  %v2632_v56 = vld [vmem:[%s7760_s7 + $0xc08] sm:$0xff] }
 0x4eb   : > { %4299 = vmatprep.subr.bf16.mxu1 %v4298_v50  ;;  %v4306_v0 = vpack.c.bf16 %v2602_v36, %v2600_v5  ;;  %v4334_v50 = vpack.c.bf16 %v2630_v43, %v2628_v40  ;;  %v4338_v59 = vpack.c.bf16 %v2634_v57, %v2632_v56  ;;  %v4342_v36 = vpack.c.bf16 %v2638_v1, %v2636_v63  ;;  %v2664_v49 = vld [vmem:[%s7760_s7 + $0xd08] sm:$0xff]  ;;  %v2666_v39 = vld [vmem:[%s7760_s7 + $0xd18] sm:$0xff] }
 0x4ec   : > { %v4370_v43 = vpack.c.bf16 %v2666_v39, %v2664_v49  ;;  %v4374_v57 = vpack.c.bf16 %v2670_v55, %v2668_v51  ;;  %v2699_v39 = vld [vmem:[%s7760_s7 + $0xe20] sm:$0xff] }
 0x4ee   : > { %4301 = vmatpush1.bf16.msra.mxu1 %v4300_v54  ;;  %v2631_v54 = vld [vmem:[%s7760_s7 + $0xc00] sm:$0xff] }
 0x4ef   : > { %4303 = vmatprep.subr.bf16.mxu1 %v4302_v62  ;;  %v2633_v62 = vld [vmem:[%s7760_s7 + $0xc10] sm:$0xff] }
 0x4f0   : > { %v4340_v5 = vpack.c.bf16 %v2633_v62, %v2631_v54  ;;  %v2672_v54 = vld [vmem:[%s7760_s7 + $0xd48] sm:$0xff]  ;;  %v2674_v62 = vld [vmem:[%s7760_s7 + $0xd58] sm:$0xff] }
 0x4f1   : > { %v4378_v1 = vpack.c.bf16 %v2674_v62, %v2672_v54  ;;  %v2707_v54 = vld [vmem:[%s7760_s7 + $0xe60] sm:$0xff]  ;;  %v2709_v62 = vld [vmem:[%s7760_s7 + $0xe70] sm:$0xff] }
 0x4f2   : > { %4305 = vmatpush1.bf16.msra.mxu1 %v4304_v19  ;;  %v2635_v19 = vld [vmem:[%s7760_s7 + $0xc20] sm:$0xff] }
 0x4f3   : > { %4307 = vmatprep.subr.bf16.mxu1 %v4306_v0  ;;  %v2637_v0 = vld [vmem:[%s7760_s7 + $0xc30] sm:$0xff] }
 0x4f4   : > { %v4344_v6 = vpack.c.bf16 %v2637_v0, %v2635_v19  ;;  %v2676_v19 = vld [vmem:[%s7760_s7 + $0xd68] sm:$0xff]  ;;  %v2678_v0 = vld [vmem:[%s7760_s7 + $0xd78] sm:$0xff] }
 0x4f6   : > { %4309 = vmatpush1.bf16.msra.mxu1 %v4308_v61  ;;  %v4346_v61 = vpack.c.bf16 %v2642_v4, %v2640_v26  ;;  %v4382_v26 = vpack.c.bf16 %v2678_v0, %v2676_v19  ;;  %v2675_v4 = vld [vmem:[%s7760_s7 + $0xd60] sm:$0xff]  ;;  %v2713_v0 = vld [vmem:[%s7760_s7 + $0xe90] sm:$0xff] }
 0x4f7   : > { %4311 = vmatprep.subr.bf16.mxu1 %v4310_v9  ;;  %v2639_v9 = vld [vmem:[%s7760_s7 + $0xc40] sm:$0xff] }
 0x4f8   : > { %v4348_v7 = vpack.c.bf16 %v2641_v2, %v2639_v9  ;;  %v2682_v9 = vld [vmem:[%s7760_s7 + $0xd98] sm:$0xff]  ;;  %v2711_v19 = vld [vmem:[%s7760_s7 + $0xe80] sm:$0xff] }
 0x4fa   : > { %4313 = vmatpush1.bf16.msra.mxu1 %v4312_v13  ;;  %v2643_v13 = vld [vmem:[%s7760_s7 + $0xc60] sm:$0xff] }
 0x4fb   : > { %4315 = vmatprep.subr.bf16.mxu1 %v4314_v15  ;;  %v2645_v15 = vld [vmem:[%s7760_s7 + $0xc70] sm:$0xff] }
 0x4fc   : > { %v4352_v16 = vpack.c.bf16 %v2645_v15, %v2643_v13  ;;  %v2686_v13 = vld [vmem:[%s7760_s7 + $0xdb8] sm:$0xff] }
 0x4fe   : > { %4317 = vmatpush1.bf16.msra.mxu1 %v4316_v20  ;;  %v2647_v20 = vld [vmem:[%s7760_s7 + $0xc80] sm:$0xff] }
 0x4ff   : > { %4319 = vmatprep.subr.bf16.mxu1 %v4318_v23  ;;  %v2649_v23 = vld [vmem:[%s7760_s7 + $0xc90] sm:$0xff] }
 0x500   : > { %v4356_v24 = vpack.c.bf16 %v2649_v23, %v2647_v20  ;;  %v2690_v20 = vld [vmem:[%s7760_s7 + $0xdd8] sm:$0xff] }
 0x502   : > { %4321 = vmatpush1.bf16.msra.mxu1 %v4320_v28  ;;  %v2651_v28 = vld [vmem:[%s7760_s7 + $0xca0] sm:$0xff] }
 0x503   : > { %4323 = vmatprep.subr.bf16.mxu1 %v4322_v29  ;;  %v2653_v29 = vld [vmem:[%s7760_s7 + $0xcb0] sm:$0xff] }
 0x504   : > { %v4360_v47 = vpack.c.bf16 %v2653_v29, %v2651_v28  ;;  %v2694_v28 = vld [vmem:[%s7760_s7 + $0xdf8] sm:$0xff] }
 0x506   : > { %4325 = vmatpush1.bf16.msra.mxu1 %v4324_v8  ;;  %v2655_v8 = vld [vmem:[%s7760_s7 + $0xcc0] sm:$0xff] }
 0x507   : > { %4327 = vmatprep.subr.bf16.mxu1 %v4326_v34  ;;  %v2657_v34 = vld [vmem:[%s7760_s7 + $0xcd0] sm:$0xff] }
 0x508   : > { %v4364_v37 = vpack.c.bf16 %v2657_v34, %v2655_v8  ;;  %v2698_v8 = vld [vmem:[%s7760_s7 + $0xe18] sm:$0xff] }
 0x50a   : > { %4329 = vmatpush1.bf16.msra.mxu1 %v4328_v25  ;;  %v2659_v25 = vld [vmem:[%s7760_s7 + $0xce0] sm:$0xff] }
 0x50b   : > { %4331 = vmatprep.subr.bf16.mxu1 %v4330_v33  ;;  %v2661_v33 = vld [vmem:[%s7760_s7 + $0xcf0] sm:$0xff] }
 0x50c   : > { %v4368_v40 = vpack.c.bf16 %v2661_v33, %v2659_v25  ;;  %v2702_v25 = vld [vmem:[%s7760_s7 + $0xe38] sm:$0xff] }
 0x50e   : > { %4333 = vmatpush1.bf16.msra.mxu1 %v4332_v44  ;;  %v2663_v44 = vld [vmem:[%s7760_s7 + $0xd00] sm:$0xff] }
 0x50f   : > { %4335 = vmatprep.subr.bf16.mxu1 %v4334_v50  ;;  %v2665_v50 = vld [vmem:[%s7760_s7 + $0xd10] sm:$0xff] }
 0x510   : > { %v4372_v56 = vpack.c.bf16 %v2665_v50, %v2663_v44  ;;  %v2704_v44 = vld [vmem:[%s7760_s7 + $0xe48] sm:$0xff]  ;;  %v2706_v50 = vld [vmem:[%s7760_s7 + $0xe58] sm:$0xff] }
 0x511   : > { %v4410_v55 = vpack.c.bf16 %v2706_v50, %v2704_v44  ;;  %v2741_v44 = vld [vmem:[%s7760_s7 + $0xf70] sm:$0xff]  ;;  %v2744_v50 = vld [vmem:[%s7760_s7 + $0xf88] sm:$0xff] }
 0x512   : > { %4337 = vmatpush1.bf16.msra.mxu1 %v4336_v58  ;;  %v2667_v58 = vld [vmem:[%s7760_s7 + $0xd20] sm:$0xff] }
 0x513   : > { %4339 = vmatprep.subr.bf16.mxu1 %v4338_v59  ;;  %v2669_v59 = vld [vmem:[%s7760_s7 + $0xd30] sm:$0xff] }
 0x514   : > { %v4376_v63 = vpack.c.bf16 %v2669_v59, %v2667_v58 }
 0x515   : > { %3255 = vmatmul.mubr.f32.vlgmr.msra.gmra.mrb[8].mxu1 %v6531_v42  ;;  %v2646_v42 = vld [vmem:[%s7760_s7 + $0xc78] sm:$0xff] }
 0x516   : > { %4341 = vmatpush1.bf16.msra.mxu1 %v4340_v5  ;;  %3325 = vmatprep.mubr.f32.mxu1 %v2245_v27  ;;  %v4350_v12 = vpack.c.bf16 %v2646_v42, %v2644_v52  ;;  %v2671_v5 = vld [vmem:[%s7760_s7 + $0xd40] sm:$0xff] }
 0x517   : > { %4343 = vmatprep.subr.bf16.mxu1 %v4342_v36  ;;  %v2673_v36 = vld [vmem:[%s7760_s7 + $0xd50] sm:$0xff]  ;;  %v2679_v42 = vld [vmem:[%s7760_s7 + $0xd80] sm:$0xff] }
 0x518   : > { %v4380_v27 = vpack.c.bf16 %v2673_v36, %v2671_v5  ;;  %v4416_v5 = vpack.c.bf16 %v2709_v62, %v2707_v54  ;;  %v2747_v62 = vld [vmem:[%s7760_s7 + $0xfa0] sm:$0xff] }
 0x51a   : > { %4345 = vmatpush1.bf16.msra.mxu1 %v4344_v6  ;;  %v2677_v6 = vld [vmem:[%s7760_s7 + $0xd70] sm:$0xff] }
 0x51b   : > { %4347 = vmatprep.subr.bf16.mxu1 %v4346_v61  ;;  %v2680_v61 = vld [vmem:[%s7760_s7 + $0xd88] sm:$0xff]  ;;  %v4384_v2 = vpack.c.bf16 %v2677_v6, %v2675_v4  ;;  %v4420_v4 = vpack.c.bf16 %v2713_v0, %v2711_v19  ;;  %v2751_v0 = vld [vmem:[%s7760_s7 + $0xfc0] sm:$0xff] }
 0x51c   : > { %v4386_v52 = vpack.c.bf16 %v2682_v9, %v2680_v61  ;;  %v2715_v61 = vld [vmem:[%s7760_s7 + $0xea0] sm:$0xff]  ;;  %v2717_v9 = vld [vmem:[%s7760_s7 + $0xeb0] sm:$0xff] }
 0x51e   : > { %4349 = vmatpush1.bf16.msra.mxu1 %v4348_v7  ;;  %v2681_v7 = vld [vmem:[%s7760_s7 + $0xd90] sm:$0xff] }
 0x51f   : > { %4351 = vmatprep.subr.bf16.mxu1 %v4350_v12  ;;  %v2684_v12 = vld [vmem:[%s7760_s7 + $0xda8] sm:$0xff]  ;;  %v4388_v15 = vpack.c.bf16 %v2681_v7, %v2679_v42  ;;  %v4424_v42 = vpack.c.bf16 %v2717_v9, %v2715_v61  ;;  %v2755_v9 = vld [vmem:[%s7760_s7 + $0xfe0] sm:$0xff] }
 0x520   : > { %v4390_v53 = vpack.c.bf16 %v2686_v13, %v2684_v12  ;;  %v2719_v12 = vld [vmem:[%s7760_s7 + $0xec0] sm:$0xff]  ;;  %v2721_v13 = vld [vmem:[%s7760_s7 + $0xed0] sm:$0xff] }
 0x522   : > { %4353 = vmatpush1.bf16.msra.mxu1 %v4352_v16  ;;  %v2685_v16 = vld [vmem:[%s7760_s7 + $0xdb0] sm:$0xff] }
 0x523   : > { %4355 = vmatprep.subr.bf16.mxu1 %v4354_v18  ;;  %v2688_v18 = vld [vmem:[%s7760_s7 + $0xdc8] sm:$0xff]  ;;  %v4392_v23 = vpack.c.bf16 %v2685_v16, %v2683_v17  ;;  %v4428_v17 = vpack.c.bf16 %v2721_v13, %v2719_v12 }
 0x524   : > { %v4394_v21 = vpack.c.bf16 %v2690_v20, %v2688_v18  ;;  %v2723_v18 = vld [vmem:[%s7760_s7 + $0xee0] sm:$0xff]  ;;  %v2725_v20 = vld [vmem:[%s7760_s7 + $0xef0] sm:$0xff] }
 0x526   : > { %4357 = vmatpush1.bf16.msra.mxu1 %v4356_v24  ;;  %v2689_v24 = vld [vmem:[%s7760_s7 + $0xdd0] sm:$0xff] }
 0x527   : > { %4359 = vmatprep.subr.bf16.mxu1 %v4358_v41  ;;  %v2692_v41 = vld [vmem:[%s7760_s7 + $0xde8] sm:$0xff]  ;;  %v4396_v29 = vpack.c.bf16 %v2689_v24, %v2687_v22  ;;  %v4432_v22 = vpack.c.bf16 %v2725_v20, %v2723_v18 }
 0x528   : > { %v4398_v31 = vpack.c.bf16 %v2694_v28, %v2692_v41  ;;  %v2727_v41 = vld [vmem:[%s7760_s7 + $0xf00] sm:$0xff]  ;;  %v2729_v28 = vld [vmem:[%s7760_s7 + $0xf10] sm:$0xff] }
 0x52a   : > { %4361 = vmatpush1.bf16.msra.mxu1 %v4360_v47  ;;  %v2693_v47 = vld [vmem:[%s7760_s7 + $0xdf0] sm:$0xff] }
 0x52b   : > { %4363 = vmatprep.subr.bf16.mxu1 %v4362_v45  ;;  %v2696_v45 = vld [vmem:[%s7760_s7 + $0xe08] sm:$0xff]  ;;  %v4400_v34 = vpack.c.bf16 %v2693_v47, %v2691_v32  ;;  %v4436_v32 = vpack.c.bf16 %v2729_v28, %v2727_v41 }
 0x52c   : > { %v4402_v35 = vpack.c.bf16 %v2698_v8, %v2696_v45  ;;  %v2731_v45 = vld [vmem:[%s7760_s7 + $0xf20] sm:$0xff]  ;;  %v2733_v8 = vld [vmem:[%s7760_s7 + $0xf30] sm:$0xff] }
 0x52e   : > { %4365 = vmatpush1.bf16.msra.mxu1 %v4364_v37  ;;  %v2697_v37 = vld [vmem:[%s7760_s7 + $0xe10] sm:$0xff] }
 0x52f   : > { %4367 = vmatprep.subr.bf16.mxu1 %v4366_v38  ;;  %v2700_v38 = vld [vmem:[%s7760_s7 + $0xe28] sm:$0xff]  ;;  %v4404_v33 = vpack.c.bf16 %v2697_v37, %v2695_v14  ;;  %v4440_v14 = vpack.c.bf16 %v2733_v8, %v2731_v45 }
 0x530   : > { %v4406_v49 = vpack.c.bf16 %v2702_v25, %v2700_v38  ;;  %v2735_v38 = vld [vmem:[%s7760_s7 + $0xf40] sm:$0xff]  ;;  %v2737_v25 = vld [vmem:[%s7760_s7 + $0xf50] sm:$0xff] }
 0x532   : > { %4369 = vmatpush1.bf16.msra.mxu1 %v4368_v40  ;;  %v2701_v40 = vld [vmem:[%s7760_s7 + $0xe30] sm:$0xff] }
 0x533   : > { %4371 = vmatprep.subr.bf16.mxu1 %v4370_v43  ;;  %v2246_v43 = vcombine.high %v6573_v11, %v4599_v3  ;;  %v4408_v51 = vpack.c.bf16 %v2701_v40, %v2699_v39  ;;  %v2705_v3 = vld [vmem:[%s7760_s7 + $0xe50] sm:$0xff]  ;;  %v4444_v39 = vpack.c.bf16 %v2737_v25, %v2735_v38 }
 0x536   : > { %4373 = vmatpush1.bf16.msra.mxu1 %v4372_v56  ;;  %v2703_v56 = vld [vmem:[%s7760_s7 + $0xe40] sm:$0xff] }
 0x537   : > { %4375 = vmatprep.subr.bf16.mxu1 %v4374_v57  ;;  %v2708_v57 = vld [vmem:[%s7760_s7 + $0xe68] sm:$0xff]  ;;  %v4412_v58 = vpack.c.bf16 %v2705_v3, %v2703_v56  ;;  %v2743_v3 = vld [vmem:[%s7760_s7 + $0xf80] sm:$0xff] }
 0x53a   : > { %4377 = vmatpush1.bf16.msra.mxu1 %v4376_v63  ;;  %v2712_v63 = vld [vmem:[%s7760_s7 + $0xe88] sm:$0xff] }
 0x53b   : > { %4379 = vmatprep.subr.bf16.mxu1 %v4378_v1  ;;  %v2714_v1 = vld [vmem:[%s7760_s7 + $0xe98] sm:$0xff] }
 0x53c   : > { %v4418_v36 = vpack.c.bf16 %v2714_v1, %v2712_v63  ;;  %v2749_v63 = vld [vmem:[%s7760_s7 + $0xfb0] sm:$0xff]  ;;  %v2752_v1 = vld [vmem:[%s7760_s7 + $0xfc8] sm:$0xff] }
 0x53e   : > { %4381 = vmatpush1.bf16.msra.mxu1 %v4380_v27  ;;  %v2716_v27 = vld [vmem:[%s7760_s7 + $0xea8] sm:$0xff] }
 0x53f   : > { %4383 = vmatprep.subr.bf16.mxu1 %v4382_v26  ;;  %v2718_v26 = vld [vmem:[%s7760_s7 + $0xeb8] sm:$0xff] }
 0x540   : > { %v4422_v6 = vpack.c.bf16 %v2718_v26, %v2716_v27  ;;  %v2753_v27 = vld [vmem:[%s7760_s7 + $0xfd0] sm:$0xff]  ;;  %v2756_v26 = vld [vmem:[%s7760_s7 + $0xfe8] sm:$0xff] }
 0x542   : > { %4385 = vmatpush1.bf16.msra.mxu1 %v4384_v2  ;;  %v2720_v2 = vld [vmem:[%s7760_s7 + $0xec8] sm:$0xff] }
 0x543   : > { %4387 = vmatprep.subr.bf16.mxu1 %v4386_v52  ;;  %v2722_v52 = vld [vmem:[%s7760_s7 + $0xed8] sm:$0xff] }
 0x544   : > { %v4426_v7 = vpack.c.bf16 %v2722_v52, %v2720_v2  ;;  %v2757_v2 = vld [vmem:[%s7760_s7 + $0xff0] sm:$0xff] }
 0x545   : > { %v4464_v52 = vpack.c.bf16 %v2757_v2, %v2755_v9 }
 0x546   : > { %4389 = vmatpush1.bf16.msra.mxu1 %v4388_v15  ;;  %v2724_v15 = vld [vmem:[%s7760_s7 + $0xee8] sm:$0xff] }
 0x547   : > { %4391 = vmatprep.subr.bf16.mxu1 %v4390_v53  ;;  %v2726_v53 = vld [vmem:[%s7760_s7 + $0xef8] sm:$0xff] }
 0x548   : > { %v4430_v16 = vpack.c.bf16 %v2726_v53, %v2724_v15 }
 0x54a   : > { %4393 = vmatpush1.bf16.msra.mxu1 %v4392_v23  ;;  %v2728_v23 = vld [vmem:[%s7760_s7 + $0xf08] sm:$0xff] }
 0x54b   : > { %4395 = vmatprep.subr.bf16.mxu1 %v4394_v21  ;;  %v2730_v21 = vld [vmem:[%s7760_s7 + $0xf18] sm:$0xff] }
 0x54c   : > { %v4434_v24 = vpack.c.bf16 %v2730_v21, %v2728_v23 }
 0x54e   : > { %4397 = vmatpush1.bf16.msra.mxu1 %v4396_v29  ;;  %v2732_v29 = vld [vmem:[%s7760_s7 + $0xf28] sm:$0xff] }
 0x54f   : > { %4399 = vmatprep.subr.bf16.mxu1 %v4398_v31  ;;  %v2734_v31 = vld [vmem:[%s7760_s7 + $0xf38] sm:$0xff] }
 0x550   : > { %v4438_v47 = vpack.c.bf16 %v2734_v31, %v2732_v29 }
 0x552   : > { %4401 = vmatpush1.bf16.msra.mxu1 %v4400_v34  ;;  %v2736_v34 = vld [vmem:[%s7760_s7 + $0xf48] sm:$0xff] }
 0x553   : > { %4403 = vmatprep.subr.bf16.mxu1 %v4402_v35  ;;  %v2738_v35 = vld [vmem:[%s7760_s7 + $0xf58] sm:$0xff] }
 0x554   : > { %v4442_v37 = vpack.c.bf16 %v2738_v35, %v2736_v34 }
 0x555   : > { %3326 = vmatmul.mubr.f32.vlgmr.msra.gmra.mrb[8].mxu1 %v6570_v10  ;;  %v2710_v10 = vld [vmem:[%s7760_s7 + $0xe78] sm:$0xff] }
 0x556   : > { %4405 = vmatpush1.bf16.msra.mxu1 %v4404_v33  ;;  %3396 = vmatprep.mubr.f32.mxu1 %v2246_v43  ;;  %v4414_v59 = vpack.c.bf16 %v2710_v10, %v2708_v57  ;;  %v2740_v33 = vld [vmem:[%s7760_s7 + $0xf68] sm:$0xff]  ;;  %v2739_v43 = vld [vmem:[%s7760_s7 + $0xf60] sm:$0xff]  ;;  %v2745_v57 = vld [vmem:[%s7760_s7 + $0xf90] sm:$0xff] }
 0x557   : > { %4407 = vmatprep.subr.bf16.mxu1 %v4406_v49  ;;  %v2742_v49 = vld [vmem:[%s7760_s7 + $0xf78] sm:$0xff]  ;;  %v2748_v10 = vld [vmem:[%s7760_s7 + $0xfa8] sm:$0xff] }
 0x558   : > { %v4446_v40 = vpack.c.bf16 %v2742_v49, %v2740_v33 }
 0x55a   : > { %4409 = vmatpush1.bf16.msra.mxu1 %v4408_v51  ;;  %v2746_v51 = vld [vmem:[%s7760_s7 + $0xf98] sm:$0xff] }
 0x55b   : > { %4411 = vmatprep.subr.bf16.mxu1 %v4410_v55  ;;  %v4448_v55 = vpack.c.bf16 %v2741_v44, %v2739_v43  ;;  %v4450_v56 = vpack.c.bf16 %v2746_v51, %v2744_v50 }
 0x55e   : > { %4413 = vmatpush1.bf16.msra.mxu1 %v4412_v58  ;;  %v2750_v58 = vld [vmem:[%s7760_s7 + $0xfb8] sm:$0xff] }
 0x55f   : > { %4415 = vmatprep.subr.bf16.mxu1 %v4414_v59  ;;  %v4452_v59 = vpack.c.bf16 %v2745_v57, %v2743_v3  ;;  %v4454_v54 = vpack.c.bf16 %v2750_v58, %v2748_v10 }
 0x562   : > { %4417 = vmatpush1.bf16.msra.mxu1 %v4416_v5  ;;  %v2754_v5 = vld [vmem:[%s7760_s7 + $0xfd8] sm:$0xff] }
 0x563   : > { %4419 = vmatprep.subr.bf16.mxu1 %v4418_v36  ;;  %v4456_v36 = vpack.c.bf16 %v2749_v63, %v2747_v62  ;;  %v4458_v19 = vpack.c.bf16 %v2754_v5, %v2752_v1 }
 0x566   : > { %4421 = vmatpush1.bf16.msra.mxu1 %v4420_v4  ;;  %v2758_v4 = vld [vmem:[%s7760_s7 + $0xff8] sm:$0xff] }
 0x567   : > { %4423 = vmatprep.subr.bf16.mxu1 %v4422_v6  ;;  %v4460_v6 = vpack.c.bf16 %v2753_v27, %v2751_v0  ;;  %v4462_v61 = vpack.c.bf16 %v2758_v4, %v2756_v26 }
 0x56a   : > { %4425 = vmatpush1.bf16.msra.mxu1 %v4424_v42  ;;  %v3403_v42 = vld [vmem:[%s7762_s9] sm:$0x3] }
 0x56b   : > { %4427 = vmatprep.subr.bf16.mxu1 %v4426_v7  ;;  %v3408_v7 = vrot.slane %v3403_v42, %v4937_v46  ;;  %v3412_v13 = vrot.slane %v3403_v42, %v4945_v48 }
 0x56e   : > { %4429 = vmatpush1.bf16.msra.mxu1 %v4428_v17 }
 0x56f   : > { %4431 = vmatprep.subr.bf16.mxu1 %v4430_v16 }
 0x572   : > { %4433 = vmatpush1.bf16.msra.mxu1 %v4432_v22 }
 0x573   : > { %4435 = vmatprep.subr.bf16.mxu1 %v4434_v24 }
 0x576   : > { %4437 = vmatpush1.bf16.msra.mxu1 %v4436_v32 }
 0x577   : > { %4439 = vmatprep.subr.bf16.mxu1 %v4438_v47 }
 0x57a   : > { %4441 = vmatpush1.bf16.msra.mxu1 %v4440_v14 }
 0x57b   : > { %4443 = vmatprep.subr.bf16.mxu1 %v4442_v37 }
 0x57e   : > { %4445 = vmatpush1.bf16.msra.mxu1 %v4444_v39 }
 0x57f   : > { %4447 = vmatprep.subr.bf16.mxu1 %v4446_v40 }
 0x582   : > { %4449 = vmatpush1.bf16.msra.mxu1 %v4448_v55 }
 0x583   : > { %4451 = vmatprep.subr.bf16.mxu1 %v4450_v56 }
 0x586   : > { %4453 = vmatpush1.bf16.msra.mxu1 %v4452_v59 }
 0x587   : > { %4455 = vmatprep.subr.bf16.mxu1 %v4454_v54 }
 0x58a   : > { %4457 = vmatpush1.bf16.msra.mxu1 %v4456_v36 }
 0x58b   : > { %4459 = vmatprep.subr.bf16.mxu1 %v4458_v19 }
 0x58e   : > { %4461 = vmatpush1.bf16.msra.mxu1 %v4460_v6 }
 0x58f   : > { %4463 = vmatprep.subr.bf16.mxu1 %v4462_v61 }
 0x592   : > { %4465 = vmatpush1.bf16.msra.mxu1 %v4464_v52 }
 0x595   : > { %3397 = vmatmul.mubr.f32.vlgmr.msra.gmra.mrb[8].mxu1 %v6573_v11 }
 0x668   : > { %v3398_v12 = vpop.f32.mrb[8].mxu1 }
 0x669   : > { %v4467_v15 = vadd.f32 %v3398_v12, %v7201_v30  ;;  %v3400_v53 = vpop.f32.mrb[9].mxu1 }
 0x66a   : > { %v4469_v17 = vadd.f32 %v3400_v53, %v7204_v60 }
 0x66b   : > { %v3415_v16 = vadd.f32 %v4467_v15, %v3408_v7 }
 0x66c   : > { %v3416_v18 = vadd.f32 %v4469_v17, %v3412_v13 }
 0x66d   : > { %vm3417_vm15 = vcmp.gt.f32.partialorder %v3415_v16, 0.0  ;;  %v3419_v11 = vmul.f32 0.01, %v3415_v16 }
 0x66e   : > { %vm3418_vm0 = vcmp.gt.f32.partialorder %v3416_v18, 0.0  ;;  %v3420_v20 = vmul.f32 0.01, %v3416_v18 }
 0x66f   : > { %v3421_v46 = vsel %vm3417_vm15, %v3415_v16, %v3419_v11 }
 0x670   : > { %v3422_v23 = vsel %vm3418_vm0, %v3416_v18, %v3420_v20 }
 0x671   : > { %v3425_v21 = vcombine.low %v3421_v46, %v3422_v23 }
 0x673   : > { %3427 = vst [vmem:[%s363_s25] sm:$0xff] %v3425_v21 }
 0x674   : > { %4548 = shalt.err (!%p4545_p3)
}
 0x675   : > { %s4549_s30 = scalar_lea.hbm %s7711_s28, 128  ;;  %s4553_s21 = scalar_lea.hbm %s7763_s10, 256 }
 0x676   : > { %p4550_p4 = scmp.ne.s32.totalorder %s7711_s28, %s4549_s30  ;;  %p4554_p9 = scmp.lt.u32.totalorder %s7711_s28, %s7763_s10 }
 0x677   : > { %p4555_p10 = scmp.lt.u32.totalorder %s4553_s21, %s4549_s30  ;;  %p4557_p12 = scmp.lt.u32.totalorder %s4549_s30, %s7711_s28 }
 0x678   : > { %p4551_p7 = pnand %p4550_p4, %p4696_p5 }
 0x679   : > { %p4556_p11 = por %p4555_p10, %p4554_p9 }
 0x67a   : > { %p4552_p8 = pneg %p4551_p7 }
 0x67b   : > { %p4558_p13 = por %p4557_p12, %p4556_p11 }
 0x67d   : > { %p4559_p0 = pnand %p4558_p13, %p4552_p8 }
 0x67f   : > { %4562 = shalt.err (!%p4559_p0)
}
 0x680   : > { %4490 = dma.vmem_to_hbm [thread:$0]  (%p4696_p5), %s7713_s18, 128, %s7711_s28, %s3429_s2  }
 0x681 PF: > { %p4496_p1 = scmp.ge.s32.totalorder %s4597_s16, 2  ;;  %s3455_s27 = sand.u32 1, %s4585_s13  }
 0x682   : > { %s3456_s22 = scalar_lea.sflag [#allocation3], %s3455_s27 }
 0x683   : > { %p4493_p2 = pnand %p4496_p1, %p4700_p6 }
 0x685   : > { %4580 = dma.done.wait (!%p4493_p2), %s3456_s22, 128  }
 0x686   : > { %4582 = vsyncadd (!%p4493_p2), %s3456_s22, 4294967168  ;;  %s7769_s17 = sld [smem:[#allocation5_spill]]  ;;  %p20_p3 = scmp.ge.s32.totalorder %s4683_s19, 4  }
 0x687   : > { %s7770_s13 = smov %s4589_s14  ;;  %s7771_s14 = smov %s4593_s15 }
 0x688   : > { %s7773_s16 = smov %s4683_s19  ;;  %22 = sbr.rel (!%p20_p3) target bundleno = 5 (0x5), region = 101 }
 0x68c   : > { %s7772_s15 = smov %s7769_s17 }
 0x68f   :  { %3461 = vsyncpa [#allocation3], 1 }
 0x690   :  { %3463 = vsyncpa [#allocation3 + $0x1], 1 }

// kernel: tile.33
= control target key start
LH: loop header
LB: loop body
LE: loop exit
PB: predicated region body
PF: predicated region fallthrough
CT: control target
= control target key end

     0   :  { %2 = vsyncpa [#allocation1], 0  ;;  %s44_s6 = smov [#allocation0]   ;;  %s70_s0 = inlined_call_operand.hbm [shape: f32[128], index: 0, kind: input, shape index: {}]   ;;  %s71_s1 = inlined_call_operand.vmem [shape: f32[4,128], index: 1, kind: output, shape index: {}]  }
   0x1   :  { %s9_s7 = sshll.u32 %s44_s6, 4  ;;  %s20_s10 = scalar_lea.hbm %s70_s0, 16  ;;  %s10_s7 = int_to_ptr.vmem [resolvable:$true] %s9_s7 }
   0x2   :  { %p21_p0 = scmp.ne.s32.totalorder %s70_s0, %s20_s10  ;;  %p24_p1 = scmp.lt.u32.totalorder %s20_s10, %s70_s0 }
   0x4   :  { %p26_p2 = pnand %p24_p1, %p21_p0 }
   0x6   :  { %29 = shalt.err (!%p26_p2)
}
   0x7   :  { %s30_s15 = scalar_lea.vmem %s10_s7, 16  ;;  %s34_s16 = scalar_lea.vmem %s10_s7, 32 }
   0x8   :  { %p31_p3 = scmp.ne.s32.totalorder %s10_s7, %s30_s15  ;;  %p35_p4 = scmp.lt.s32.totalorder %s10_s7, %s10_s7 }
   0x9   :  { %p36_p5 = scmp.lt.s32.totalorder %s34_s16, %s30_s15 }
   0xb   :  { %p37_p6 = por %p36_p5, %p35_p4 }
   0xd   :  { %p38_p7 = pnand %p37_p6, %p31_p3 }
   0xf   :  { %41 = shalt.err (!%p38_p7)
}
  0x10   :  { %12 = dma.hbm_to_vmem [thread:$0]  %s70_s0, 16, %s10_s7, [#allocation1]  }
  0x11   :  { %42 = dma.done.wait [#allocation1], 16  }
  0x12   :  { %43 = vsyncadd [#allocation1], 4294967280  ;;  %v16_v0 = vld [vmem:[#allocation0] ss:$0 sm:$0xff] }
  0x13   :  { %17 = vst [vmem:[%s71_s1] sm:$0xf] %v16_v0 }
  0x14   :  { %18 = vsyncpa [#allocation1], 1 }

// kernel: forward.1
= control target key start
LH: loop header
LB: loop body
LE: loop exit
PB: predicated region body
PF: predicated region fallthrough
CT: control target
= control target key end

     0   :  { %s7662_s0 = inlined_call_operand.vmem [shape: f32[2,8,4], index: 0, kind: input, shape index: {}]   ;;  %s7663_s1 = inlined_call_operand.vmem [shape: f32[2,4,8], index: 1, kind: input, shape index: {}]   ;;  %s7664_s2 = inlined_call_operand.vmem [shape: f32[4,768], index: 2, kind: input, shape index: {}]   ;;  %s7665_s3 = inlined_call_operand.vmem [shape: f32[1,768], index: 3, kind: input, shape index: {}]   ;;  %s7666_s4 = inlined_call_operand.vmem [shape: f32[768,512], index: 4, kind: input, shape index: {}]   ;;  %s7667_s5 = inlined_call_operand.vmem [shape: f32[16,8], index: 5, kind: input, shape index: {}]   ;;  %s7668_s6 = inlined_call_operand.vmem [shape: f32[8,512], index: 6, kind: input, shape index: {}]   ;;  %s7669_s7 = inlined_call_operand.vmem [shape: f32[2048,256], index: 7, kind: input, shape index: {}]   ;;  %s7670_s8 = inlined_call_operand.vmem [shape: f32[8,256], index: 8, kind: input, shape index: {}]   ;;  %s7671_s9 = inlined_call_operand.vmem [shape: f32[1,256], index: 9, kind: input, shape index: {}]   ;;  %s7672_s10 = inlined_call_operand.hbm [shape: f32[2,4,256], index: 10, kind: output, shape index: {}]  }
   0x1   :  { %7673 = sst [smem:[#allocation6_spill]] %s7664_s2 }
   0x2   :  { %15 = vsyncpa [#allocation3], 0 }
   0x3   :  { %17 = vsyncpa [#allocation3 + $0x1], 0  ;;  %s4489_s13 = smov 0   ;;  %s4491_s14 = smov 0  }
   0x4   :  { %s4493_s15 = smov 0   ;;  %s4495_s16 = smov 0  }
   0x5 LB: > { %s4510_s17 = sadd.s32 4294967295, %s4430_s16   ;;  %s3325_s18 = sadd.s32 4294967294, %s4430_s16   ;;  %s4430_s16 = sphi %s4495_s16, %s7682_s16   ;;  %s4426_s15 = sphi %s4493_s15, %s7681_s15   ;;  %s4422_s14 = sphi %s4491_s14, %s7680_s14   ;;  %s4418_s13 = sphi %s4489_s13, %s7679_s13  }
   0x6   : > { %s4514_s19 = sadd.s32 1, %s4430_s16   ;;  %s250_s20 = sadd.s32 1, %s4426_s15 }
   0x7   : > { %s247_s21 = ssub.s32 %s4430_s16, %s4514_s19  ;;  %p260_p0 = scmp.ne.s32.totalorder %s4426_s15, %s4422_s14 }
   0x8   : > { %p248_p1 = scmp.eq.s32.totalorder %s247_s21, 0  ;;  %p261_p2 = scmp.eq.s32.totalorder %s4510_s17, 1 }
   0x9   : > { %p266_p3 = scmp.ne.s32.totalorder %s4422_s14, %s4418_s13  ;;  %p267_p4 = scmp.eq.s32.totalorder %s3325_s18, 1 }
   0xa   : > { %s4525_s22 = scalar_select %p248_p1, %s4426_s15, %s250_s20  }
   0xb   : > { %p4527_p5 = por %p261_p2, %p260_p0  ;;  %p4531_p6 = por %p267_p4, %p266_p3 }
   0xc   : > { %7674 = sst [smem:[#allocation5_spill]] %s4525_s22  ;;  %p3328_p7 = scmp.ge.s32.totalorder %s4430_s16, 1 }
   0xd   : > { %p323_p8 = scmp.lt.s32.totalorder %s4430_s16, 3 }
   0xf   : > { %p324_p9 = pnand %p3328_p7, %p323_p8 }
  0x10   : > { %s7677_s2 = sld [smem:[#allocation6_spill]] (!%p324_p9)  ;;  %vm419_vm0 = vcmask (!%p324_p9), 1043456   ;;  %p364_p10 = scmp.lt.s32.totalorder (!%p324_p9), %s4510_s17, 1  ;;  %v4432_v3 = vmov (!%p324_p9), 0.0   ;;  %v688_v7 = vld [vmem:[%s7666_s4 + $0x8] sm:$0xff] (!%p324_p9)  ;;  %vm415_vm1 = vcmask (!%p324_p9), 31744  }
  0x11   : > { %327 = sbr.rel (%p324_p9) target bundleno = 1642 (0x66a), region = 60  ;;  %496 = vmatprep.mubr.f32.mxu0 (!%p324_p9), %v4432_v3  ;;  %567 = vmatprep.mubr.f32.mxu1 (!%p324_p9), %v4432_v3  ;;  %v692_v8 = vld [vmem:[%s7666_s4 + $0x28] sm:$0xff] (!%p324_p9)  ;;  %v687_v10 = vld [vmem:[%s7666_s4] sm:$0xff] (!%p324_p9)  ;;  %vm1506_vm14 = vcmask (!%p324_p9), 64512   ;;  %s361_s12 = sand.u32 (!%p324_p9), 1, %s4422_s14  }
  0x12   : > { %v3405_v9 = vpack.c.bf16 (!%p324_p9), %v692_v8, %v688_v7  ;;  %v691_v11 = vld [vmem:[%s7666_s4 + $0x20] sm:$0xff] (!%p324_p9)  ;;  %v696_v13 = vld [vmem:[%s7666_s4 + $0x48] sm:$0xff] (!%p324_p9)  ;;  %s3329_s20 = sshll.u32 (!%p324_p9), %s361_s12, 3  ;;  %s3404_s21 = sshll.u32 (!%p324_p9), %s4510_s17, 7 }
  0x13   : > { %v700_v14 = vld [vmem:[%s7666_s4 + $0x68] sm:$0xff] (!%p324_p9)  ;;  %v3407_v15 = vpack.c.bf16 (!%p324_p9), %v691_v11, %v687_v10  ;;  %v695_v17 = vld [vmem:[%s7666_s4 + $0x40] sm:$0xff] (!%p324_p9) }
  0x14   : > { %v3409_v16 = vpack.c.bf16 (!%p324_p9), %v700_v14, %v696_v13  ;;  %v699_v18 = vld [vmem:[%s7666_s4 + $0x60] sm:$0xff] (!%p324_p9)  ;;  %v704_v19 = vld [vmem:[%s7666_s4 + $0x88] sm:$0xff] (!%p324_p9) }
  0x15   : > { %v708_v20 = vld [vmem:[%s7666_s4 + $0xa8] sm:$0xff] (!%p324_p9)  ;;  %v3411_v21 = vpack.c.bf16 (!%p324_p9), %v699_v18, %v695_v17  ;;  %v703_v23 = vld [vmem:[%s7666_s4 + $0x80] sm:$0xff] (!%p324_p9) }
  0x16   : > { %v374_v0 = vld [vmem:[%s7677_s2] sm:$0xff] (!%p324_p9)  ;;  %v375_v1 = vld [vmem:[%s7677_s2 + $0x8] sm:$0xff] (!%p324_p9)  ;;  %v376_v5 = vld [vmem:[%s7677_s2 + $0x10] sm:$0xff] (!%p324_p9)  ;;  %v3413_v22 = vpack.c.bf16 (!%p324_p9), %v708_v20, %v704_v19  ;;  %s3240_s2 = scalar_lea.sflag (!%p324_p9), [#allocation3], %s361_s12 }
  0x17   : > { %v412_v2 = vcombine.high (!%p324_p9), %v374_v0, %v374_v0  ;;  %v413_v4 = vcombine.high (!%p324_p9), %v375_v1, %v375_v1  ;;  %v414_v6 = vcombine.high (!%p324_p9), %v376_v5, %v376_v5  ;;  %v707_v24 = vld [vmem:[%s7666_s4 + $0xa0] sm:$0xff] (!%p324_p9)  ;;  %v712_v25 = vld [vmem:[%s7666_s4 + $0xc8] sm:$0xff] (!%p324_p9) }
  0x18   : > { %s4550_s11 = scalar_select %p364_p10, %s4510_s17, 1  ;;  %v716_v26 = vld [vmem:[%s7666_s4 + $0xe8] sm:$0xff]  ;;  %v3415_v27 = vpack.c.bf16 %v707_v24, %v703_v23  ;;  %v711_v29 = vld [vmem:[%s7666_s4 + $0xc0] sm:$0xff] }
  0x19   : > { %3332 = vmatprep.subr.msk.mxu0 %vm419_vm0, %v412_v2  ;;  %3335 = vmatprep.subr.msk.mxu1 %vm419_vm0, %v413_v4  ;;  %v3417_v28 = vpack.c.bf16 %v716_v26, %v712_v25  ;;  %v715_v30 = vld [vmem:[%s7666_s4 + $0xe0] sm:$0xff]  ;;  %v720_v31 = vld [vmem:[%s7666_s4 + $0x108] sm:$0xff]  ;;  %s4433_s17 = smov [#allocation2]  }
  0x1a   : > { %3333 = vmatpush1.msk.msra.mxu0 %vm419_vm0, %v374_v0  ;;  %s3330_s25 = sshll.u32 %s4550_s11, 3  ;;  %3336 = vmatpush1.msk.msra.mxu1 %vm419_vm0, %v375_v1  ;;  %v724_v32 = vld [vmem:[%s7666_s4 + $0x128] sm:$0xff]  ;;  %v3419_v33 = vpack.c.bf16 %v715_v30, %v711_v29  ;;  %v719_v35 = vld [vmem:[%s7666_s4 + $0x100] sm:$0xff]  ;;  %s3331_s29 = sshll.u32 %s4550_s11, 2 }
  0x1b   : > { %s367_s28 = scalar_lea.vmem %s7662_s0, %s3330_s25  ;;  %3338 = vmatprep.subr.msk.mxu0 %vm419_vm0, %v414_v6  ;;  %v3421_v34 = vpack.c.bf16 %v724_v32, %v720_v31  ;;  %v723_v36 = vld [vmem:[%s7666_s4 + $0x120] sm:$0xff]  ;;  %v728_v37 = vld [vmem:[%s7666_s4 + $0x148] sm:$0xff]  ;;  %s371_s18 = scalar_lea.vmem %s7663_s1, %s3331_s29 }
  0x1c   : > { %v372_v12 = vld [vmem:[%s367_s28] sm:$0xff]  ;;  %v732_v38 = vld [vmem:[%s7666_s4 + $0x168] sm:$0xff]  ;;  %v3423_v39 = vpack.c.bf16 %v723_v36, %v719_v35  ;;  %s363_s25 = scalar_lea.vmem [#allocation2], %s3329_s20  ;;  %s7620_s28 = scalar_lea.hbm %s7672_s10, %s3404_s21 }
  0x1d   : > { %3334 = vmatmul.mubr.msk.f32.vlgmr.msra.gmra.mrb[0].mxu0 %vm415_vm1, %v372_v12  ;;  %3337 = vmatmul.mubr.msk.f32.vlgmr.msra.gmra.mrb[0].mxu1 %vm415_vm1, %v372_v12  ;;  %v3425_v40 = vpack.c.bf16 %v732_v38, %v728_v37  ;;  %v727_v41 = vld [vmem:[%s7666_s4 + $0x140] sm:$0xff]  ;;  %v736_v43 = vld [vmem:[%s7666_s4 + $0x188] sm:$0xff]  ;;  %s4372_s11 = sshll.u32 %s4433_s17, 4  ;;  %s4373_s11 = int_to_ptr.vmem [resolvable:$false] %s4372_s11 }
  0x1e   : > { %3339 = vmatpush1.msk.msra.mxu0 %vm419_vm0, %v376_v5  ;;  %638 = vmatprep.mubr.f32.mxu0 %v4432_v3  ;;  %v731_v42 = vld [vmem:[%s7666_s4 + $0x160] sm:$0xff]  ;;  %v740_v44 = vld [vmem:[%s7666_s4 + $0x1a8] sm:$0xff]  ;;  %s4374_s29 = scalar_lea.vmem %s4373_s11, 256 }
  0x1f   : > { %3406 = vmatprep.subr.bf16.mxu0 %v3405_v9  ;;  %1577 = vmatprep.mubr.f32.mxu1 %v4432_v3  ;;  %v3427_v45 = vpack.c.bf16 %v731_v42, %v727_v41  ;;  %v3429_v46 = vpack.c.bf16 %v740_v44, %v736_v43  ;;  %v735_v47 = vld [vmem:[%s7666_s4 + $0x180] sm:$0xff]  ;;  %v744_v49 = vld [vmem:[%s7666_s4 + $0x1c8] sm:$0xff]  ;;  %v379_v44 = vlaneseq }
  0x20   : > { %v739_v48 = vld [vmem:[%s7666_s4 + $0x1a0] sm:$0xff]  ;;  %v748_v50 = vld [vmem:[%s7666_s4 + $0x1e8] sm:$0xff] }
  0x21   : > { %3340 = vmatmul.mubr.msk.f32.vlgmr.msra.gmra.mrb[2].mxu0 %vm415_vm1, %v372_v12  ;;  %v3431_v51 = vpack.c.bf16 %v739_v48, %v735_v47  ;;  %v3433_v52 = vpack.c.bf16 %v748_v50, %v744_v49  ;;  %v743_v53 = vld [vmem:[%s7666_s4 + $0x1c0] sm:$0xff]  ;;  %v752_v55 = vld [vmem:[%s7666_s4 + $0x208] sm:$0xff] }
  0x22   : > { %3408 = vmatpush1.bf16.msra.mxu0 %v3407_v15  ;;  %v747_v54 = vld [vmem:[%s7666_s4 + $0x1e0] sm:$0xff]  ;;  %v756_v56 = vld [vmem:[%s7666_s4 + $0x228] sm:$0xff] }
  0x23   : > { %3410 = vmatprep.subr.bf16.mxu0 %v3409_v16  ;;  %v3435_v57 = vpack.c.bf16 %v747_v54, %v743_v53  ;;  %v3437_v58 = vpack.c.bf16 %v756_v56, %v752_v55  ;;  %v751_v59 = vld [vmem:[%s7666_s4 + $0x200] sm:$0xff]  ;;  %v760_v61 = vld [vmem:[%s7666_s4 + $0x248] sm:$0xff] }
  0x24   : > { %v755_v60 = vld [vmem:[%s7666_s4 + $0x220] sm:$0xff]  ;;  %v764_v62 = vld [vmem:[%s7666_s4 + $0x268] sm:$0xff] }
  0x25   : > { %v3439_v63 = vpack.c.bf16 %v755_v60, %v751_v59  ;;  %v3441_v0 = vpack.c.bf16 %v764_v62, %v760_v61  ;;  %v759_v1 = vld [vmem:[%s7666_s4 + $0x240] sm:$0xff]  ;;  %v768_v4 = vld [vmem:[%s7666_s4 + $0x288] sm:$0xff] }
  0x26   : > { %3412 = vmatpush1.bf16.msra.mxu0 %v3411_v21  ;;  %v763_v2 = vld [vmem:[%s7666_s4 + $0x260] sm:$0xff]  ;;  %v772_v5 = vld [vmem:[%s7666_s4 + $0x2a8] sm:$0xff] }
  0x27   : > { %3414 = vmatprep.subr.bf16.mxu0 %v3413_v22  ;;  %v3443_v6 = vpack.c.bf16 %v763_v2, %v759_v1  ;;  %v3445_v7 = vpack.c.bf16 %v772_v5, %v768_v4  ;;  %v767_v8 = vld [vmem:[%s7666_s4 + $0x280] sm:$0xff]  ;;  %v776_v10 = vld [vmem:[%s7666_s4 + $0x2c8] sm:$0xff] }
  0x28   : > { %v771_v9 = vld [vmem:[%s7666_s4 + $0x2a0] sm:$0xff]  ;;  %v780_v11 = vld [vmem:[%s7666_s4 + $0x2e8] sm:$0xff] }
  0x29   : > { %v3447_v12 = vpack.c.bf16 %v771_v9, %v767_v8  ;;  %v3449_v13 = vpack.c.bf16 %v780_v11, %v776_v10  ;;  %v775_v14 = vld [vmem:[%s7666_s4 + $0x2c0] sm:$0xff]  ;;  %v784_v16 = vld [vmem:[%s7666_s4 + $0x308] sm:$0xff] }
  0x2a   : > { %3416 = vmatpush1.bf16.msra.mxu0 %v3415_v27  ;;  %v779_v15 = vld [vmem:[%s7666_s4 + $0x2e0] sm:$0xff]  ;;  %v788_v17 = vld [vmem:[%s7666_s4 + $0x328] sm:$0xff] }
  0x2b   : > { %3418 = vmatprep.subr.bf16.mxu0 %v3417_v28  ;;  %v3451_v18 = vpack.c.bf16 %v779_v15, %v775_v14  ;;  %v3453_v19 = vpack.c.bf16 %v788_v17, %v784_v16  ;;  %v783_v20 = vld [vmem:[%s7666_s4 + $0x300] sm:$0xff]  ;;  %v792_v22 = vld [vmem:[%s7666_s4 + $0x348] sm:$0xff] }
  0x2c   : > { %v787_v21 = vld [vmem:[%s7666_s4 + $0x320] sm:$0xff]  ;;  %v796_v23 = vld [vmem:[%s7666_s4 + $0x368] sm:$0xff] }
  0x2d   : > { %v3455_v24 = vpack.c.bf16 %v787_v21, %v783_v20  ;;  %v3457_v25 = vpack.c.bf16 %v796_v23, %v792_v22  ;;  %v791_v26 = vld [vmem:[%s7666_s4 + $0x340] sm:$0xff]  ;;  %v800_v29 = vld [vmem:[%s7666_s4 + $0x388] sm:$0xff] }
  0x2e   : > { %3420 = vmatpush1.bf16.msra.mxu0 %v3419_v33  ;;  %v795_v27 = vld [vmem:[%s7666_s4 + $0x360] sm:$0xff]  ;;  %v804_v30 = vld [vmem:[%s7666_s4 + $0x3a8] sm:$0xff] }
  0x2f   : > { %3422 = vmatprep.subr.bf16.mxu0 %v3421_v34  ;;  %v3459_v28 = vpack.c.bf16 %v795_v27, %v791_v26  ;;  %v3461_v31 = vpack.c.bf16 %v804_v30, %v800_v29  ;;  %v799_v32 = vld [vmem:[%s7666_s4 + $0x380] sm:$0xff]  ;;  %v808_v35 = vld [vmem:[%s7666_s4 + $0x3c8] sm:$0xff] }
  0x30   : > { %v803_v33 = vld [vmem:[%s7666_s4 + $0x3a0] sm:$0xff]  ;;  %v812_v36 = vld [vmem:[%s7666_s4 + $0x3e8] sm:$0xff] }
  0x31   : > { %v3463_v34 = vpack.c.bf16 %v803_v33, %v799_v32  ;;  %v3465_v37 = vpack.c.bf16 %v812_v36, %v808_v35  ;;  %v807_v38 = vld [vmem:[%s7666_s4 + $0x3c0] sm:$0xff]  ;;  %v816_v41 = vld [vmem:[%s7666_s4 + $0x408] sm:$0xff] }
  0x32   : > { %3424 = vmatpush1.bf16.msra.mxu0 %v3423_v39  ;;  %v811_v39 = vld [vmem:[%s7666_s4 + $0x3e0] sm:$0xff]  ;;  %v820_v42 = vld [vmem:[%s7666_s4 + $0x428] sm:$0xff] }
  0x33   : > { %3426 = vmatprep.subr.bf16.mxu0 %v3425_v40  ;;  %v3467_v40 = vpack.c.bf16 %v811_v39, %v807_v38  ;;  %v3469_v43 = vpack.c.bf16 %v820_v42, %v816_v41  ;;  %v4773_v47 = vld [vmem:[%s7665_s3] sm:$0x3f]  ;;  %v824_v4 = vld [vmem:[%s7666_s4 + $0x448] sm:$0xff] }
  0x34   : > { %v815_v62 = vld [vmem:[%s7666_s4 + $0x400] sm:$0xff]  ;;  %v828_v5 = vld [vmem:[%s7666_s4 + $0x468] sm:$0xff] }
  0x35   : > { %v819_v2 = vld [vmem:[%s7666_s4 + $0x420] sm:$0xff]  ;;  %v3473_v15 = vpack.c.bf16 %v828_v5, %v824_v4  ;;  %v832_v21 = vld [vmem:[%s7666_s4 + $0x488] sm:$0xff] }
  0x36   : > { %3428 = vmatpush1.bf16.msra.mxu0 %v3427_v45  ;;  %v4765_v45 = vshrl.u32 %v379_v44, 7  ;;  %v823_v16 = vld [vmem:[%s7666_s4 + $0x440] sm:$0xff]  ;;  %v836_v22 = vld [vmem:[%s7666_s4 + $0x4a8] sm:$0xff] }
  0x37   : > { %3430 = vmatprep.subr.bf16.mxu0 %v3429_v46  ;;  %v827_v17 = vld [vmem:[%s7666_s4 + $0x460] sm:$0xff]  ;;  %v844_v29 = vld [vmem:[%s7666_s4 + $0x4e8] sm:$0xff] }
  0x38   : > { %v4768_v46 = vsub.s32 0, %v4765_v45  ;;  %v4776_v48 = vsub.s32 1, %v4765_v45  ;;  %v4779_v49 = vsub.s32 3, %v4765_v45  ;;  %v831_v26 = vld [vmem:[%s7666_s4 + $0x480] sm:$0xff]  ;;  %v852_v35 = vld [vmem:[%s7666_s4 + $0x528] sm:$0xff] }
  0x39   : > { %v835_v27 = vld [vmem:[%s7666_s4 + $0x4a0] sm:$0xff]  ;;  %v860_v41 = vld [vmem:[%s7666_s4 + $0x568] sm:$0xff] }
  0x3a   : > { %3432 = vmatpush1.bf16.msra.mxu0 %v3431_v51  ;;  %v382_v50 = vrot.slane %v4773_v47, %v4768_v46  ;;  %v386_v51 = vrot.slane %v4773_v47, %v4776_v48  ;;  %v3479_v30 = vpack.c.bf16 %v835_v27, %v831_v26  ;;  %v839_v32 = vld [vmem:[%s7666_s4 + $0x4c0] sm:$0xff] }
  0x3b   : > { %3434 = vmatprep.subr.bf16.mxu0 %v3433_v52  ;;  %v394_v52 = vrot.slane %v4773_v47, %v4779_v49  ;;  %v843_v33 = vld [vmem:[%s7666_s4 + $0x4e0] sm:$0xff] }
  0x3c   : > { %v3483_v36 = vpack.c.bf16 %v843_v33, %v839_v32  ;;  %v847_v38 = vld [vmem:[%s7666_s4 + $0x500] sm:$0xff]  ;;  %v401_v32 = vsub.s32 5, %v4765_v45  ;;  %v4949_v33 = vsub.s32 2, %v4765_v45 }
  0x3d   : > { %v851_v39 = vld [vmem:[%s7666_s4 + $0x520] sm:$0xff] }
  0x3e   : > { %3436 = vmatpush1.bf16.msra.mxu0 %v3435_v57  ;;  %v3487_v42 = vpack.c.bf16 %v851_v39, %v847_v38  ;;  %v855_v44 = vld [vmem:[%s7666_s4 + $0x540] sm:$0xff]  ;;  %v920_v38 = vld [vmem:[%s7666_s4 + $0x748] sm:$0xff] }
  0x3f   : > { %3438 = vmatprep.subr.bf16.mxu0 %v3437_v58  ;;  %v924_v39 = vld [vmem:[%s7666_s4 + $0x768] sm:$0xff] }
  0x42   : > { %3440 = vmatpush1.bf16.msra.mxu0 %v3439_v63 }
  0x43   : > { %3442 = vmatprep.subr.bf16.mxu0 %v3441_v0 }
  0x46   : > { %3444 = vmatpush1.bf16.msra.mxu0 %v3443_v6 }
  0x47   : > { %3446 = vmatprep.subr.bf16.mxu0 %v3445_v7 }
  0x4a   : > { %3448 = vmatpush1.bf16.msra.mxu0 %v3447_v12 }
  0x4b   : > { %3450 = vmatprep.subr.bf16.mxu0 %v3449_v13  ;;  %v3471_v13 = vpack.c.bf16 %v819_v2, %v815_v62  ;;  %v871_v62 = vld [vmem:[%s7666_s4 + $0x5c0] sm:$0xff]  ;;  %v884_v2 = vld [vmem:[%s7666_s4 + $0x628] sm:$0xff] }
  0x4e   : > { %3452 = vmatpush1.bf16.msra.mxu0 %v3451_v18 }
  0x4f   : > { %3454 = vmatprep.subr.bf16.mxu0 %v3453_v19 }
  0x52   : > { %3456 = vmatpush1.bf16.msra.mxu0 %v3455_v24  ;;  %v3475_v24 = vpack.c.bf16 %v827_v17, %v823_v16  ;;  %v900_v16 = vld [vmem:[%s7666_s4 + $0x6a8] sm:$0xff] }
  0x53   : > { %3458 = vmatprep.subr.bf16.mxu0 %v3457_v25  ;;  %v3477_v25 = vpack.c.bf16 %v836_v22, %v832_v21  ;;  %v895_v21 = vld [vmem:[%s7666_s4 + $0x680] sm:$0xff] }
  0x54   : > { %v899_v22 = vld [vmem:[%s7666_s4 + $0x6a0] sm:$0xff] }
  0x55   : > { %v3511_v26 = vpack.c.bf16 %v899_v22, %v895_v21 }
  0x56   : > { %3460 = vmatpush1.bf16.msra.mxu0 %v3459_v28  ;;  %v840_v28 = vld [vmem:[%s7666_s4 + $0x4c8] sm:$0xff] }
  0x57   : > { %3462 = vmatprep.subr.bf16.mxu0 %v3461_v31  ;;  %v3481_v31 = vpack.c.bf16 %v844_v29, %v840_v28  ;;  %v903_v28 = vld [vmem:[%s7666_s4 + $0x6c0] sm:$0xff] }
  0x58   : > { %v907_v29 = vld [vmem:[%s7666_s4 + $0x6e0] sm:$0xff] }
  0x5a   : > { %3464 = vmatpush1.bf16.msra.mxu0 %v3463_v34  ;;  %v848_v34 = vld [vmem:[%s7666_s4 + $0x508] sm:$0xff] }
  0x5b   : > { %3466 = vmatprep.subr.bf16.mxu0 %v3465_v37  ;;  %v3485_v37 = vpack.c.bf16 %v852_v35, %v848_v34  ;;  %v3515_v34 = vpack.c.bf16 %v907_v29, %v903_v28  ;;  %v960_v28 = vld [vmem:[%s7666_s4 + $0x888] sm:$0xff] }
  0x5c   : > { %v964_v29 = vld [vmem:[%s7666_s4 + $0x8a8] sm:$0xff] }
  0x5e   : > { %3468 = vmatpush1.bf16.msra.mxu0 %v3467_v40  ;;  %v856_v40 = vld [vmem:[%s7666_s4 + $0x548] sm:$0xff] }
  0x5f   : > { %3470 = vmatprep.subr.bf16.mxu0 %v3469_v43  ;;  %v3489_v43 = vpack.c.bf16 %v860_v41, %v856_v40  ;;  %v402_v40 = vrot.slane %v4773_v47, %v401_v32  ;;  %v390_v41 = vrot.slane %v4773_v47, %v4949_v33  ;;  %v959_v32 = vld [vmem:[%s7666_s4 + $0x880] sm:$0xff] }
  0xf0   : > { %v498_v53 = vpop.f32.mrb[0].mxu0  ;;  %v4787_v54 = vpop.f32.mrb[0].mxu1 }
  0xf1   : > { %v499_v55 = vadd.f32 %v498_v53, %v382_v50  ;;  %v500_v56 = vpop.f32.mrb[1].mxu0  ;;  %v571_v57 = vpop.f32.mrb[1].mxu1  ;;  %v859_v50 = vld [vmem:[%s7666_s4 + $0x560] sm:$0xff] }
  0xf2   : > { %v501_v58 = vadd.f32 %v500_v56, %v386_v51  ;;  %v572_v59 = vadd.f32 %v571_v57, %v394_v52  ;;  %v864_v51 = vld [vmem:[%s7666_s4 + $0x588] sm:$0xff]  ;;  %v3491_v53 = vpack.c.bf16 %v859_v50, %v855_v44  ;;  %v863_v56 = vld [vmem:[%s7666_s4 + $0x580] sm:$0xff] }
  0xf3   : > { %v645_v60 = vmax.f32 %v499_v55, 0.0  ;;  %v868_v52 = vld [vmem:[%s7666_s4 + $0x5a8] sm:$0xff]  ;;  %v867_v57 = vld [vmem:[%s7666_s4 + $0x5a0] sm:$0xff] }
  0xf4   : > { %v646_v61 = vmax.f32 %v501_v58, 0.0  ;;  %v648_v63 = vmax.f32 %v572_v59, 0.0  ;;  %v4792_v0 = vpop.f32.mrb[2].mxu0  ;;  %v3493_v55 = vpack.c.bf16 %v868_v52, %v864_v51  ;;  %v872_v58 = vld [vmem:[%s7666_s4 + $0x5c8] sm:$0xff]  ;;  %v919_v44 = vld [vmem:[%s7666_s4 + $0x740] sm:$0xff] }
  0xf5   : > { %v3341_v1 = vadd.f32 -0.01, %v645_v60  ;;  %vm663_vm3 = vcmp.lt.f32.partialorder %v645_v60, -0.01  ;;  %v669_v8 = vadd.f32 0.01, %v645_v60 }
  0xf6   : > { %v3342_v6 = vadd.f32 -0.01, %v646_v61  ;;  %vm664_vm2 = vcmp.lt.f32.partialorder %v646_v61, -0.01  ;;  %v670_v7 = vadd.f32 0.01, %v646_v61 }
  0xf7   : > { %vm654_vm4 = vcmp.gt.f32.partialorder %v648_v63, 0.01  ;;  %v3344_v9 = vadd.f32 -0.01, %v648_v63  ;;  %vm666_vm5 = vcmp.lt.f32.partialorder %v648_v63, -0.01 }
  0xf8   : > { %v672_v10 = vadd.f32 0.01, %v648_v63  ;;  %vm652_vm6 = vcmp.gt.f32.partialorder %v646_v61, 0.01  ;;  %v676_v11 = vsel %vm664_vm2, %v670_v7, 0.0  ;;  %v675_v12 = vsel %vm663_vm3, %v669_v8, 0.0 }
  0xf9   : > { %v4803_v14 = vsel %vm652_vm6, %v3342_v6, %v676_v11  ;;  %vm651_vm7 = vcmp.gt.f32.partialorder %v645_v60, 0.01  ;;  %v4811_v19 = vpop.f32.mrb[3].mxu0  ;;  %v876_v59 = vld [vmem:[%s7666_s4 + $0x5e8] sm:$0xff]  ;;  %v3495_v60 = vpack.c.bf16 %v867_v57, %v863_v56  ;;  %v875_v63 = vld [vmem:[%s7666_s4 + $0x5e0] sm:$0xff] }
  0xfa   : > { %v678_v18 = vsel %vm666_vm5, %v672_v10, 0.0  ;;  %1135 = vmatprep.mubr.f32.mxu0 %v4803_v14  ;;  %v4814_v20 = vsel %vm651_vm7, %v3341_v1, %v675_v12  ;;  %v3497_v61 = vpack.c.bf16 %v876_v59, %v872_v58  ;;  %v880_v1 = vld [vmem:[%s7666_s4 + $0x608] sm:$0xff]  ;;  %v3499_v4 = vpack.c.bf16 %v875_v63, %v871_v62  ;;  %v879_v6 = vld [vmem:[%s7666_s4 + $0x600] sm:$0xff] }
  0xfb   : > { %v4823_v23 = vsel %vm654_vm4, %v3344_v9, %v678_v18  ;;  %1136 = vmatmul.mubr.f32.vlgmr.msra.gmra.mrb[4].mxu0 %v4814_v20  ;;  %v3501_v5 = vpack.c.bf16 %v884_v2, %v880_v1  ;;  %v883_v7 = vld [vmem:[%s7666_s4 + $0x620] sm:$0xff]  ;;  %v888_v8 = vld [vmem:[%s7666_s4 + $0x648] sm:$0xff]  ;;  %vm2007_vm7 = vcmask 1040384  }
  0xfc   : > { %3472 = vmatpush1.bf16.msra.mxu0 %v3471_v13  ;;  %1206 = vmatprep.mubr.f32.mxu0 %v4823_v23  ;;  %v892_v9 = vld [vmem:[%s7666_s4 + $0x668] sm:$0xff]  ;;  %v3503_v10 = vpack.c.bf16 %v883_v7, %v879_v6  ;;  %v887_v12 = vld [vmem:[%s7666_s4 + $0x640] sm:$0xff] }
  0xfd   : > { %3474 = vmatprep.subr.bf16.mxu0 %v3473_v15  ;;  %v3505_v11 = vpack.c.bf16 %v892_v9, %v888_v8  ;;  %v891_v13 = vld [vmem:[%s7666_s4 + $0x660] sm:$0xff]  ;;  %v896_v15 = vld [vmem:[%s7666_s4 + $0x688] sm:$0xff] }
  0xfe   : > { %v3507_v17 = vpack.c.bf16 %v891_v13, %v887_v12  ;;  %v3509_v18 = vpack.c.bf16 %v900_v16, %v896_v15  ;;  %v923_v50 = vld [vmem:[%s7666_s4 + $0x760] sm:$0xff]  ;;  %v928_v51 = vld [vmem:[%s7666_s4 + $0x788] sm:$0xff] }
  0xff   : > { %v932_v52 = vld [vmem:[%s7666_s4 + $0x7a8] sm:$0xff]  ;;  %v3523_v56 = vpack.c.bf16 %v923_v50, %v919_v44  ;;  %v927_v58 = vld [vmem:[%s7666_s4 + $0x780] sm:$0xff] }
 0x100   : > { %3476 = vmatpush1.bf16.msra.mxu0 %v3475_v24  ;;  %v904_v24 = vld [vmem:[%s7666_s4 + $0x6c8] sm:$0xff]  ;;  %v3525_v57 = vpack.c.bf16 %v932_v52, %v928_v51  ;;  %v931_v59 = vld [vmem:[%s7666_s4 + $0x7a0] sm:$0xff] }
 0x101   : > { %3478 = vmatprep.subr.bf16.mxu0 %v3477_v25  ;;  %v908_v25 = vld [vmem:[%s7666_s4 + $0x6e8] sm:$0xff]  ;;  %v3527_v62 = vpack.c.bf16 %v931_v59, %v927_v58  ;;  %v935_v1 = vld [vmem:[%s7666_s4 + $0x7c0] sm:$0xff] }
 0x102   : > { %v3513_v27 = vpack.c.bf16 %v908_v25, %v904_v24  ;;  %v939_v2 = vld [vmem:[%s7666_s4 + $0x7e0] sm:$0xff]  ;;  %v952_v12 = vld [vmem:[%s7666_s4 + $0x848] sm:$0xff] }
 0x103   : > { %v3531_v8 = vpack.c.bf16 %v939_v2, %v935_v1  ;;  %v956_v16 = vld [vmem:[%s7666_s4 + $0x868] sm:$0xff]  ;;  %v951_v24 = vld [vmem:[%s7666_s4 + $0x840] sm:$0xff] }
 0x104   : > { %3480 = vmatpush1.bf16.msra.mxu0 %v3479_v30  ;;  %v912_v30 = vld [vmem:[%s7666_s4 + $0x708] sm:$0xff]  ;;  %v3537_v22 = vpack.c.bf16 %v956_v16, %v952_v12  ;;  %v955_v25 = vld [vmem:[%s7666_s4 + $0x860] sm:$0xff] }
 0x105   : > { %3482 = vmatprep.subr.bf16.mxu0 %v3481_v31  ;;  %v916_v31 = vld [vmem:[%s7666_s4 + $0x728] sm:$0xff]  ;;  %v975_v50 = vld [vmem:[%s7666_s4 + $0x900] sm:$0xff] }
 0x106   : > { %v3517_v35 = vpack.c.bf16 %v916_v31, %v912_v30  ;;  %v3539_v30 = vpack.c.bf16 %v955_v25, %v951_v24  ;;  %v3541_v31 = vpack.c.bf16 %v964_v29, %v960_v28  ;;  %v979_v51 = vld [vmem:[%s7666_s4 + $0x920] sm:$0xff]  ;;  %v984_v52 = vld [vmem:[%s7666_s4 + $0x948] sm:$0xff] }
 0x107   : > { %v987_v58 = vld [vmem:[%s7666_s4 + $0x960] sm:$0xff]  ;;  %v992_v59 = vld [vmem:[%s7666_s4 + $0x988] sm:$0xff] }
 0x108   : > { %3484 = vmatpush1.bf16.msra.mxu0 %v3483_v36  ;;  %v911_v36 = vld [vmem:[%s7666_s4 + $0x700] sm:$0xff]  ;;  %v1004_v1 = vld [vmem:[%s7666_s4 + $0x9e8] sm:$0xff] }
 0x109   : > { %3486 = vmatprep.subr.bf16.mxu0 %v3485_v37  ;;  %v915_v37 = vld [vmem:[%s7666_s4 + $0x720] sm:$0xff]  ;;  %v1028_v24 = vld [vmem:[%s7666_s4 + $0xaa8] sm:$0xff] }
 0x10a   : > { %v1011_v12 = vld [vmem:[%s7666_s4 + $0xa20] sm:$0xff] }
 0x10b   : > { %v1023_v29 = vld [vmem:[%s7666_s4 + $0xa80] sm:$0xff] }
 0x10c   : > { %3488 = vmatpush1.bf16.msra.mxu0 %v3487_v42  ;;  %v3519_v42 = vpack.c.bf16 %v915_v37, %v911_v36  ;;  %v972_v36 = vld [vmem:[%s7666_s4 + $0x8e8] sm:$0xff] }
 0x10d   : > { %3490 = vmatprep.subr.bf16.mxu0 %v3489_v43  ;;  %v3521_v43 = vpack.c.bf16 %v924_v39, %v920_v38  ;;  %v967_v39 = vld [vmem:[%s7666_s4 + $0x8c0] sm:$0xff] }
 0x110   : > { %3492 = vmatpush1.bf16.msra.mxu0 %v3491_v53  ;;  %v643_v53 = vadd.f32 %v4811_v19, %v402_v40  ;;  %v971_v40 = vld [vmem:[%s7666_s4 + $0x8e0] sm:$0xff] }
 0x111   : > { %3494 = vmatprep.subr.bf16.mxu0 %v3493_v55  ;;  %v570_v55 = vadd.f32 %v4787_v54, %v390_v41  ;;  %v940_v54 = vld [vmem:[%s7666_s4 + $0x7e8] sm:$0xff] }
 0x112   : > { %v650_v19 = vmax.f32 %v643_v53, 0.0  ;;  %v976_v41 = vld [vmem:[%s7666_s4 + $0x908] sm:$0xff] }
 0x113   : > { %v988_v53 = vld [vmem:[%s7666_s4 + $0x968] sm:$0xff] }
 0x114   : > { %3496 = vmatpush1.bf16.msra.mxu0 %v3495_v60  ;;  %v936_v60 = vld [vmem:[%s7666_s4 + $0x7c8] sm:$0xff]  ;;  %v674_v6 = vadd.f32 0.01, %v650_v19  ;;  %vm668_vm8 = vcmp.lt.f32.partialorder %v650_v19, -0.01 }
 0x115   : > { %3498 = vmatprep.subr.bf16.mxu0 %v3497_v61  ;;  %v647_v61 = vmax.f32 %v570_v55, 0.0  ;;  %v3529_v63 = vpack.c.bf16 %v940_v54, %v936_v60  ;;  %v3346_v13 = vadd.f32 -0.01, %v650_v19  ;;  %vm656_vm10 = vcmp.gt.f32.partialorder %v650_v19, 0.01  ;;  %v996_v60 = vld [vmem:[%s7666_s4 + $0x9a8] sm:$0xff] }
 0x116   : > { %v3551_v55 = vpack.c.bf16 %v979_v51, %v975_v50  ;;  %v3557_v19 = vpack.c.bf16 %v996_v60, %v992_v59  ;;  %v1048_v50 = vld [vmem:[%s7666_s4 + $0xb48] sm:$0xff] }
 0x117   : > { %v671_v7 = vadd.f32 0.01, %v647_v61  ;;  %vm665_vm9 = vcmp.lt.f32.partialorder %v647_v61, -0.01  ;;  %v3343_v15 = vadd.f32 -0.01, %v647_v61 }
 0x118   : > { %3500 = vmatpush1.bf16.msra.mxu0 %v3499_v4  ;;  %v944_v4 = vld [vmem:[%s7666_s4 + $0x808] sm:$0xff]  ;;  %vm653_vm11 = vcmp.gt.f32.partialorder %v647_v61, 0.01  ;;  %v991_v61 = vld [vmem:[%s7666_s4 + $0x980] sm:$0xff] }
 0x119   : > { %3502 = vmatprep.subr.bf16.mxu0 %v3501_v5  ;;  %v948_v5 = vld [vmem:[%s7666_s4 + $0x828] sm:$0xff] }
 0x11a   : > { %v3533_v9 = vpack.c.bf16 %v948_v5, %v944_v4  ;;  %v999_v5 = vld [vmem:[%s7666_s4 + $0x9c0] sm:$0xff] }
 0x11c   : > { %3504 = vmatpush1.bf16.msra.mxu0 %v3503_v10  ;;  %v943_v10 = vld [vmem:[%s7666_s4 + $0x800] sm:$0xff] }
 0x11d   : > { %3506 = vmatprep.subr.bf16.mxu0 %v3505_v11  ;;  %v947_v11 = vld [vmem:[%s7666_s4 + $0x820] sm:$0xff] }
 0x11e   : > { %v3535_v21 = vpack.c.bf16 %v947_v11, %v943_v10  ;;  %v1007_v11 = vld [vmem:[%s7666_s4 + $0xa00] sm:$0xff] }
 0x11f   : > { %v3567_v16 = vpack.c.bf16 %v1011_v12, %v1007_v11  ;;  %v693_v11 = vld [vmem:[%s7666_s4 + $0x30] sm:$0xff] }
 0x120   : > { %3508 = vmatpush1.bf16.msra.mxu0 %v3507_v17  ;;  %v680_v17 = vsel %vm668_vm8, %v674_v6, 0.0  ;;  %v1003_v6 = vld [vmem:[%s7666_s4 + $0x9e0] sm:$0xff]  ;;  %vm2024_vm8 = vcmask 1041408  }
 0x121   : > { %3510 = vmatprep.subr.bf16.mxu0 %v3509_v18  ;;  %v677_v18 = vsel %vm665_vm9, %v671_v7, 0.0  ;;  %v1008_v7 = vld [vmem:[%s7666_s4 + $0xa08] sm:$0xff]  ;;  %vm2041_vm9 = vcmask 1042432  }
 0x124   : > { %3512 = vmatpush1.bf16.msra.mxu0 %v3511_v26  ;;  %v5022_v26 = vsel %vm656_vm10, %v3346_v13, %v680_v17  ;;  %v1016_v13 = vld [vmem:[%s7666_s4 + $0xa48] sm:$0xff] }
 0x125   : > { %3514 = vmatprep.subr.bf16.mxu0 %v3513_v27  ;;  %v5024_v27 = vsel %vm653_vm11, %v3343_v15, %v677_v18  ;;  %v1020_v15 = vld [vmem:[%s7666_s4 + $0xa68] sm:$0xff]  ;;  %v1015_v18 = vld [vmem:[%s7666_s4 + $0xa40] sm:$0xff] }
 0x126   : > { %v3569_v17 = vpack.c.bf16 %v1020_v15, %v1016_v13  ;;  %v698_v13 = vld [vmem:[%s7666_s4 + $0x58] sm:$0xff] }
 0x127   : > { %v702_v15 = vld [vmem:[%s7666_s4 + $0x78] sm:$0xff] }
 0x128   : > { %3516 = vmatpush1.bf16.msra.mxu0 %v3515_v34  ;;  %v963_v34 = vld [vmem:[%s7666_s4 + $0x8a0] sm:$0xff] }
 0x129   : > { %3518 = vmatprep.subr.bf16.mxu0 %v3517_v35  ;;  %v968_v35 = vld [vmem:[%s7666_s4 + $0x8c8] sm:$0xff]  ;;  %v3543_v37 = vpack.c.bf16 %v963_v34, %v959_v32 }
 0x12a   : > { %v3545_v38 = vpack.c.bf16 %v972_v36, %v968_v35  ;;  %v1036_v32 = vld [vmem:[%s7666_s4 + $0xae8] sm:$0xff]  ;;  %v1031_v36 = vld [vmem:[%s7666_s4 + $0xac0] sm:$0xff] }
 0x12c   : > { %3520 = vmatpush1.bf16.msra.mxu0 %v3519_v42  ;;  %v980_v42 = vld [vmem:[%s7666_s4 + $0x928] sm:$0xff] }
 0x12d   : > { %3522 = vmatprep.subr.bf16.mxu0 %v3521_v43  ;;  %v3547_v43 = vpack.c.bf16 %v971_v40, %v967_v39  ;;  %v3549_v44 = vpack.c.bf16 %v980_v42, %v976_v41  ;;  %v1044_v39 = vld [vmem:[%s7666_s4 + $0xb28] sm:$0xff]  ;;  %v397_v40 = vsub.s32 4, %v4765_v45 }
 0x12e   : > { %v1052_v45 = vld [vmem:[%s7666_s4 + $0xb68] sm:$0xff] }
 0x12f   : > { %v398_v51 = vrot.slane %v4773_v47, %v397_v40  ;;  %v1060_v47 = vld [vmem:[%s7666_s4 + $0xba8] sm:$0xff]  ;;  %v726_v40 = vld [vmem:[%s7666_s4 + $0x138] sm:$0xff] }
 0x130   : > { %3524 = vmatpush1.bf16.msra.mxu0 %v3523_v56  ;;  %v3553_v56 = vpack.c.bf16 %v988_v53, %v984_v52  ;;  %v3585_v53 = vpack.c.bf16 %v1052_v45, %v1048_v50  ;;  %v730_v50 = vld [vmem:[%s7666_s4 + $0x158] sm:$0xff] }
 0x131   : > { %3526 = vmatprep.subr.bf16.mxu0 %v3525_v57  ;;  %v983_v57 = vld [vmem:[%s7666_s4 + $0x940] sm:$0xff]  ;;  %v734_v45 = vld [vmem:[%s7666_s4 + $0x178] sm:$0xff] }
 0x132   : > { %v3555_v54 = vpack.c.bf16 %v987_v58, %v983_v57  ;;  %v1056_v57 = vld [vmem:[%s7666_s4 + $0xb88] sm:$0xff]  ;;  %v641_v58 = vadd.f32 %v4792_v0, %v398_v51 }
 0x133   : > { %v3589_v60 = vpack.c.bf16 %v1060_v47, %v1056_v57  ;;  %v1068_v0 = vld [vmem:[%s7666_s4 + $0xbe8] sm:$0xff]  ;;  %v742_v57 = vld [vmem:[%s7666_s4 + $0x1b8] sm:$0xff] }
 0x134   : > { %3528 = vmatpush1.bf16.msra.mxu0 %v3527_v62  ;;  %v995_v62 = vld [vmem:[%s7666_s4 + $0x9a0] sm:$0xff] }
 0x135   : > { %3530 = vmatprep.subr.bf16.mxu0 %v3529_v63  ;;  %v1000_v63 = vld [vmem:[%s7666_s4 + $0x9c8] sm:$0xff]  ;;  %v3559_v2 = vpack.c.bf16 %v995_v62, %v991_v61  ;;  %v649_v62 = vmax.f32 %v641_v58, 0.0 }
 0x136   : > { %v3561_v4 = vpack.c.bf16 %v1004_v1, %v1000_v63  ;;  %v1064_v61 = vld [vmem:[%s7666_s4 + $0xbc8] sm:$0xff] }
 0x137   : > { %v3593_v1 = vpack.c.bf16 %v1068_v0, %v1064_v61  ;;  %vm667_vm12 = vcmp.lt.f32.partialorder %v649_v62, -0.01  ;;  %v3345_v12 = vadd.f32 -0.01, %v649_v62  ;;  %vm655_vm13 = vcmp.gt.f32.partialorder %v649_v62, 0.01 }
 0x138   : > { %3532 = vmatpush1.bf16.msra.mxu0 %v3531_v8  ;;  %v1012_v8 = vld [vmem:[%s7666_s4 + $0xa28] sm:$0xff] }
 0x139   : > { %3534 = vmatprep.subr.bf16.mxu0 %v3533_v9  ;;  %v3563_v9 = vpack.c.bf16 %v1003_v6, %v999_v5  ;;  %v3565_v10 = vpack.c.bf16 %v1012_v8, %v1008_v7  ;;  %v690_v5 = vld [vmem:[%s7666_s4 + $0x18] sm:$0xff]  ;;  %v673_v7 = vadd.f32 0.01, %v649_v62  ;;  %v745_v62 = vld [vmem:[%s7666_s4 + $0x1d0] sm:$0xff] }
 0x13a   : > { %v694_v6 = vld [vmem:[%s7666_s4 + $0x38] sm:$0xff] }
 0x13b   : > { %1207 = vmatmul.mubr.f32.vlgmr.msra.gmra.mrb[4].mxu0 %v5024_v27 }
 0x13c   : > { %3536 = vmatpush1.bf16.msra.mxu0 %v3535_v21  ;;  %1277 = vmatprep.mubr.f32.mxu0 %v5022_v26  ;;  %v1019_v21 = vld [vmem:[%s7666_s4 + $0xa60] sm:$0xff] }
 0x13d   : > { %3538 = vmatprep.subr.bf16.mxu0 %v3537_v22  ;;  %v1024_v22 = vld [vmem:[%s7666_s4 + $0xa88] sm:$0xff]  ;;  %v3571_v25 = vpack.c.bf16 %v1019_v21, %v1015_v18  ;;  %v3601_v18 = vpack.c.bf16 %v702_v15, %v698_v13  ;;  %v697_v21 = vld [vmem:[%s7666_s4 + $0x50] sm:$0xff]  ;;  %v770_v15 = vld [vmem:[%s7666_s4 + $0x298] sm:$0xff] }
 0x13e   : > { %v3573_v28 = vpack.c.bf16 %v1028_v24, %v1024_v22  ;;  %v701_v22 = vld [vmem:[%s7666_s4 + $0x70] sm:$0xff] }
 0x13f   : > { %v765_v13 = vld [vmem:[%s7666_s4 + $0x270] sm:$0xff] }
 0x140   : > { %3540 = vmatpush1.bf16.msra.mxu0 %v3539_v30  ;;  %v1027_v30 = vld [vmem:[%s7666_s4 + $0xaa0] sm:$0xff] }
 0x141   : > { %3542 = vmatprep.subr.bf16.mxu0 %v3541_v31  ;;  %v1032_v31 = vld [vmem:[%s7666_s4 + $0xac8] sm:$0xff]  ;;  %v3575_v34 = vpack.c.bf16 %v1027_v30, %v1023_v29  ;;  %v3603_v29 = vpack.c.bf16 %v701_v22, %v697_v21  ;;  %v769_v21 = vld [vmem:[%s7666_s4 + $0x290] sm:$0xff] }
 0x142   : > { %v3577_v35 = vpack.c.bf16 %v1036_v32, %v1032_v31  ;;  %v705_v31 = vld [vmem:[%s7666_s4 + $0x90] sm:$0xff] }
 0x143   : > { %v709_v32 = vld [vmem:[%s7666_s4 + $0xb0] sm:$0xff] }
 0x144   : > { %3544 = vmatpush1.bf16.msra.mxu0 %v3543_v37  ;;  %v1035_v37 = vld [vmem:[%s7666_s4 + $0xae0] sm:$0xff]  ;;  %v773_v22 = vld [vmem:[%s7666_s4 + $0x2b0] sm:$0xff] }
 0x145   : > { %3546 = vmatprep.subr.bf16.mxu0 %v3545_v38  ;;  %v1040_v38 = vld [vmem:[%s7666_s4 + $0xb08] sm:$0xff]  ;;  %v3579_v41 = vpack.c.bf16 %v1035_v37, %v1031_v36  ;;  %v713_v37 = vld [vmem:[%s7666_s4 + $0xd0] sm:$0xff] }
 0x146   : > { %v3581_v42 = vpack.c.bf16 %v1044_v39, %v1040_v38  ;;  %v717_v38 = vld [vmem:[%s7666_s4 + $0xf0] sm:$0xff]  ;;  %v722_v39 = vld [vmem:[%s7666_s4 + $0x118] sm:$0xff] }
 0x148   : > { %3548 = vmatpush1.bf16.msra.mxu0 %v3547_v43  ;;  %v1039_v43 = vld [vmem:[%s7666_s4 + $0xb00] sm:$0xff] }
 0x149   : > { %3550 = vmatprep.subr.bf16.mxu0 %v3549_v44  ;;  %v1043_v44 = vld [vmem:[%s7666_s4 + $0xb20] sm:$0xff] }
 0x14a   : > { %v3583_v52 = vpack.c.bf16 %v1043_v44, %v1039_v43  ;;  %v721_v43 = vld [vmem:[%s7666_s4 + $0x110] sm:$0xff] }
 0x14b   : > { %v725_v44 = vld [vmem:[%s7666_s4 + $0x130] sm:$0xff] }
 0x14c   : > { %3552 = vmatpush1.bf16.msra.mxu0 %v3551_v55  ;;  %v1047_v55 = vld [vmem:[%s7666_s4 + $0xb40] sm:$0xff]  ;;  %v3615_v51 = vpack.c.bf16 %v725_v44, %v721_v43  ;;  %v793_v43 = vld [vmem:[%s7666_s4 + $0x350] sm:$0xff] }
 0x14d   : > { %3554 = vmatprep.subr.bf16.mxu0 %v3553_v56  ;;  %v1051_v56 = vld [vmem:[%s7666_s4 + $0xb60] sm:$0xff]  ;;  %v797_v44 = vld [vmem:[%s7666_s4 + $0x370] sm:$0xff] }
 0x14e   : > { %v3587_v59 = vpack.c.bf16 %v1051_v56, %v1047_v55  ;;  %v733_v55 = vld [vmem:[%s7666_s4 + $0x170] sm:$0xff]  ;;  %v738_v56 = vld [vmem:[%s7666_s4 + $0x198] sm:$0xff] }
 0x14f   : > { %v3621_v58 = vpack.c.bf16 %v742_v57, %v738_v56  ;;  %v810_v56 = vld [vmem:[%s7666_s4 + $0x3d8] sm:$0xff] }
 0x150   : > { %3556 = vmatpush1.bf16.msra.mxu0 %v3555_v54  ;;  %v1055_v54 = vld [vmem:[%s7666_s4 + $0xb80] sm:$0xff]  ;;  %v814_v57 = vld [vmem:[%s7666_s4 + $0x3f8] sm:$0xff] }
 0x151   : > { %3558 = vmatprep.subr.bf16.mxu0 %v3557_v19  ;;  %v1059_v19 = vld [vmem:[%s7666_s4 + $0xba0] sm:$0xff] }
 0x152   : > { %v3591_v63 = vpack.c.bf16 %v1059_v19, %v1055_v54  ;;  %v746_v54 = vld [vmem:[%s7666_s4 + $0x1d8] sm:$0xff] }
 0x153   : > { %v750_v19 = vld [vmem:[%s7666_s4 + $0x1f8] sm:$0xff] }
 0x154   : > { %3560 = vmatpush1.bf16.msra.mxu0 %v3559_v2  ;;  %v1063_v2 = vld [vmem:[%s7666_s4 + $0xbc0] sm:$0xff]  ;;  %v3625_v0 = vpack.c.bf16 %v750_v19, %v746_v54  ;;  %v818_v54 = vld [vmem:[%s7666_s4 + $0x418] sm:$0xff] }
 0x155   : > { %3562 = vmatprep.subr.bf16.mxu0 %v3561_v4  ;;  %v1067_v4 = vld [vmem:[%s7666_s4 + $0xbe0] sm:$0xff]  ;;  %v822_v19 = vld [vmem:[%s7666_s4 + $0x438] sm:$0xff] }
 0x156   : > { %v3595_v8 = vpack.c.bf16 %v1067_v4, %v1063_v2  ;;  %v758_v2 = vld [vmem:[%s7666_s4 + $0x238] sm:$0xff] }
 0x158   : > { %3564 = vmatpush1.bf16.msra.mxu0 %v3563_v9  ;;  %v3597_v9 = vpack.c.bf16 %v694_v6, %v690_v5  ;;  %v753_v6 = vld [vmem:[%s7666_s4 + $0x210] sm:$0xff] }
 0x159   : > { %3566 = vmatprep.subr.bf16.mxu0 %v3565_v10  ;;  %v689_v10 = vld [vmem:[%s7666_s4 + $0x10] sm:$0xff] }
 0x15c   : > { %3568 = vmatpush1.bf16.msra.mxu0 %v3567_v16  ;;  %v679_v16 = vsel %vm667_vm12, %v673_v7, 0.0  ;;  %v757_v7 = vld [vmem:[%s7666_s4 + $0x230] sm:$0xff] }
 0x15d   : > { %3570 = vmatprep.subr.bf16.mxu0 %v3569_v17  ;;  %v3599_v17 = vpack.c.bf16 %v693_v11, %v689_v10  ;;  %v5223_v24 = vsel %vm655_vm13, %v3345_v12, %v679_v16  ;;  %v3631_v10 = vpack.c.bf16 %v757_v7, %v753_v6  ;;  %v761_v12 = vld [vmem:[%s7666_s4 + $0x250] sm:$0xff]  ;;  %v774_v16 = vld [vmem:[%s7666_s4 + $0x2b8] sm:$0xff] }
 0x15e   : > { %v825_v6 = vld [vmem:[%s7666_s4 + $0x450] sm:$0xff] }
 0x15f   : > { %v829_v7 = vld [vmem:[%s7666_s4 + $0x470] sm:$0xff] }
 0x160   : > { %3572 = vmatpush1.bf16.msra.mxu0 %v3571_v25  ;;  %v706_v25 = vld [vmem:[%s7666_s4 + $0x98] sm:$0xff] }
 0x161   : > { %3574 = vmatprep.subr.bf16.mxu0 %v3573_v28  ;;  %v710_v28 = vld [vmem:[%s7666_s4 + $0xb8] sm:$0xff] }
 0x162   : > { %v3605_v30 = vpack.c.bf16 %v710_v28, %v706_v25  ;;  %v778_v25 = vld [vmem:[%s7666_s4 + $0x2d8] sm:$0xff] }
 0x163   : > { %v782_v28 = vld [vmem:[%s7666_s4 + $0x2f8] sm:$0xff] }
 0x164   : > { %3576 = vmatpush1.bf16.msra.mxu0 %v3575_v34  ;;  %v714_v34 = vld [vmem:[%s7666_s4 + $0xd8] sm:$0xff] }
 0x165   : > { %3578 = vmatprep.subr.bf16.mxu0 %v3577_v35  ;;  %v718_v35 = vld [vmem:[%s7666_s4 + $0xf8] sm:$0xff] }
 0x166   : > { %v3609_v36 = vpack.c.bf16 %v718_v35, %v714_v34  ;;  %v786_v34 = vld [vmem:[%s7666_s4 + $0x318] sm:$0xff] }
 0x167   : > { %v790_v35 = vld [vmem:[%s7666_s4 + $0x338] sm:$0xff] }
 0x168   : > { %3580 = vmatpush1.bf16.msra.mxu0 %v3579_v41  ;;  %v3611_v41 = vpack.c.bf16 %v717_v38, %v713_v37  ;;  %v785_v37 = vld [vmem:[%s7666_s4 + $0x310] sm:$0xff] }
 0x169   : > { %3582 = vmatprep.subr.bf16.mxu0 %v3581_v42  ;;  %v3613_v42 = vpack.c.bf16 %v726_v40, %v722_v39  ;;  %v789_v38 = vld [vmem:[%s7666_s4 + $0x330] sm:$0xff]  ;;  %v794_v39 = vld [vmem:[%s7666_s4 + $0x358] sm:$0xff] }
 0x16a   : > { %v798_v40 = vld [vmem:[%s7666_s4 + $0x378] sm:$0xff] }
 0x16c   : > { %3584 = vmatpush1.bf16.msra.mxu0 %v3583_v52  ;;  %v3617_v52 = vpack.c.bf16 %v734_v45, %v730_v50  ;;  %v802_v50 = vld [vmem:[%s7666_s4 + $0x398] sm:$0xff] }
 0x16d   : > { %3586 = vmatprep.subr.bf16.mxu0 %v3585_v53  ;;  %v729_v53 = vld [vmem:[%s7666_s4 + $0x150] sm:$0xff]  ;;  %v806_v45 = vld [vmem:[%s7666_s4 + $0x3b8] sm:$0xff] }
 0x16e   : > { %v3619_v47 = vpack.c.bf16 %v733_v55, %v729_v53  ;;  %v801_v53 = vld [vmem:[%s7666_s4 + $0x390] sm:$0xff] }
 0x16f   : > { %v805_v55 = vld [vmem:[%s7666_s4 + $0x3b0] sm:$0xff] }
 0x170   : > { %3588 = vmatpush1.bf16.msra.mxu0 %v3587_v59  ;;  %v737_v59 = vld [vmem:[%s7666_s4 + $0x190] sm:$0xff] }
 0x171   : > { %3590 = vmatprep.subr.bf16.mxu0 %v3589_v60  ;;  %v741_v60 = vld [vmem:[%s7666_s4 + $0x1b0] sm:$0xff] }
 0x172   : > { %v3623_v61 = vpack.c.bf16 %v741_v60, %v737_v59  ;;  %v809_v59 = vld [vmem:[%s7666_s4 + $0x3d0] sm:$0xff] }
 0x173   : > { %v813_v60 = vld [vmem:[%s7666_s4 + $0x3f0] sm:$0xff] }
 0x174   : > { %3592 = vmatpush1.bf16.msra.mxu0 %v3591_v63  ;;  %v749_v63 = vld [vmem:[%s7666_s4 + $0x1f0] sm:$0xff] }
 0x175   : > { %3594 = vmatprep.subr.bf16.mxu0 %v3593_v1  ;;  %v754_v1 = vld [vmem:[%s7666_s4 + $0x218] sm:$0xff]  ;;  %v3627_v4 = vpack.c.bf16 %v749_v63, %v745_v62  ;;  %v817_v62 = vld [vmem:[%s7666_s4 + $0x410] sm:$0xff] }
 0x176   : > { %v3629_v5 = vpack.c.bf16 %v758_v2, %v754_v1  ;;  %v821_v63 = vld [vmem:[%s7666_s4 + $0x430] sm:$0xff]  ;;  %v826_v1 = vld [vmem:[%s7666_s4 + $0x458] sm:$0xff] }
 0x177   : > { %v830_v2 = vld [vmem:[%s7666_s4 + $0x478] sm:$0xff] }
 0x178   : > { %3596 = vmatpush1.bf16.msra.mxu0 %v3595_v8  ;;  %v762_v8 = vld [vmem:[%s7666_s4 + $0x258] sm:$0xff] }
 0x179   : > { %3598 = vmatprep.subr.bf16.mxu0 %v3597_v9  ;;  %v766_v9 = vld [vmem:[%s7666_s4 + $0x278] sm:$0xff] }
 0x17a   : > { %v3633_v11 = vpack.c.bf16 %v766_v9, %v762_v8  ;;  %v834_v8 = vld [vmem:[%s7666_s4 + $0x498] sm:$0xff] }
 0x17b   : > { %1278 = vmatmul.mubr.f32.vlgmr.msra.gmra.mrb[4].mxu0 %v5223_v24  ;;  %v838_v9 = vld [vmem:[%s7666_s4 + $0x4b8] sm:$0xff] }
 0x17c   : > { %3600 = vmatpush1.bf16.msra.mxu0 %v3599_v17  ;;  %1348 = vmatprep.mubr.f32.mxu0 %v4803_v14  ;;  %v3607_v14 = vpack.c.bf16 %v709_v32, %v705_v31  ;;  %v3635_v17 = vpack.c.bf16 %v765_v13, %v761_v12  ;;  %v777_v31 = vld [vmem:[%s7666_s4 + $0x2d0] sm:$0xff] }
 0x17d   : > { %3602 = vmatprep.subr.bf16.mxu0 %v3601_v18  ;;  %v3637_v18 = vpack.c.bf16 %v774_v16, %v770_v15  ;;  %v781_v32 = vld [vmem:[%s7666_s4 + $0x2f0] sm:$0xff]  ;;  %v842_v15 = vld [vmem:[%s7666_s4 + $0x4d8] sm:$0xff] }
 0x17e   : > { %v833_v12 = vld [vmem:[%s7666_s4 + $0x490] sm:$0xff] }
 0x17f   : > { %v837_v13 = vld [vmem:[%s7666_s4 + $0x4b0] sm:$0xff] }
 0x180   : > { %3604 = vmatpush1.bf16.msra.mxu0 %v3603_v29  ;;  %v3639_v29 = vpack.c.bf16 %v773_v22, %v769_v21  ;;  %v850_v21 = vld [vmem:[%s7666_s4 + $0x518] sm:$0xff] }
 0x181   : > { %3606 = vmatprep.subr.bf16.mxu0 %v3605_v30  ;;  %v3641_v30 = vpack.c.bf16 %v782_v28, %v778_v25  ;;  %v854_v22 = vld [vmem:[%s7666_s4 + $0x538] sm:$0xff] }
 0x182   : > { %v3677_v28 = vpack.c.bf16 %v854_v22, %v850_v21 }
 0x184   : > { %3608 = vmatpush1.bf16.msra.mxu0 %v3607_v14  ;;  %v3643_v14 = vpack.c.bf16 %v781_v32, %v777_v31  ;;  %v858_v31 = vld [vmem:[%s7666_s4 + $0x558] sm:$0xff] }
 0x185   : > { %3610 = vmatprep.subr.bf16.mxu0 %v3609_v36  ;;  %v3645_v36 = vpack.c.bf16 %v790_v35, %v786_v34  ;;  %v862_v32 = vld [vmem:[%s7666_s4 + $0x578] sm:$0xff] }
 0x186   : > { %v3681_v35 = vpack.c.bf16 %v862_v32, %v858_v31 }
 0x188   : > { %3612 = vmatpush1.bf16.msra.mxu0 %v3611_v41  ;;  %v3647_v41 = vpack.c.bf16 %v789_v38, %v785_v37  ;;  %v866_v37 = vld [vmem:[%s7666_s4 + $0x598] sm:$0xff] }
 0x189   : > { %3614 = vmatprep.subr.bf16.mxu0 %v3613_v42  ;;  %v3649_v42 = vpack.c.bf16 %v798_v40, %v794_v39  ;;  %v870_v38 = vld [vmem:[%s7666_s4 + $0x5b8] sm:$0xff] }
 0x18a   : > { %v3685_v40 = vpack.c.bf16 %v870_v38, %v866_v37 }
 0x18c   : > { %3616 = vmatpush1.bf16.msra.mxu0 %v3615_v51  ;;  %v3651_v51 = vpack.c.bf16 %v797_v44, %v793_v43  ;;  %v874_v43 = vld [vmem:[%s7666_s4 + $0x5d8] sm:$0xff] }
 0x18d   : > { %3618 = vmatprep.subr.bf16.mxu0 %v3617_v52  ;;  %v3653_v52 = vpack.c.bf16 %v806_v45, %v802_v50  ;;  %v878_v44 = vld [vmem:[%s7666_s4 + $0x5f8] sm:$0xff] }
 0x18e   : > { %v3689_v45 = vpack.c.bf16 %v878_v44, %v874_v43 }
 0x190   : > { %3620 = vmatpush1.bf16.msra.mxu0 %v3619_v47  ;;  %v3655_v47 = vpack.c.bf16 %v805_v55, %v801_v53  ;;  %v882_v53 = vld [vmem:[%s7666_s4 + $0x618] sm:$0xff] }
 0x191   : > { %3622 = vmatprep.subr.bf16.mxu0 %v3621_v58  ;;  %v3657_v58 = vpack.c.bf16 %v814_v57, %v810_v56  ;;  %v886_v55 = vld [vmem:[%s7666_s4 + $0x638] sm:$0xff] }
 0x192   : > { %v3693_v57 = vpack.c.bf16 %v886_v55, %v882_v53 }
 0x194   : > { %3624 = vmatpush1.bf16.msra.mxu0 %v3623_v61  ;;  %v3659_v61 = vpack.c.bf16 %v813_v60, %v809_v59  ;;  %v890_v59 = vld [vmem:[%s7666_s4 + $0x658] sm:$0xff] }
 0x195   : > { %3626 = vmatprep.subr.bf16.mxu0 %v3625_v0  ;;  %v3661_v0 = vpack.c.bf16 %v822_v19, %v818_v54  ;;  %v894_v60 = vld [vmem:[%s7666_s4 + $0x678] sm:$0xff] }
 0x196   : > { %v3697_v19 = vpack.c.bf16 %v894_v60, %v890_v59 }
 0x198   : > { %3628 = vmatpush1.bf16.msra.mxu0 %v3627_v4  ;;  %v3663_v4 = vpack.c.bf16 %v821_v63, %v817_v62  ;;  %v898_v62 = vld [vmem:[%s7666_s4 + $0x698] sm:$0xff] }
 0x199   : > { %3630 = vmatprep.subr.bf16.mxu0 %v3629_v5  ;;  %v3665_v5 = vpack.c.bf16 %v830_v2, %v826_v1  ;;  %v902_v63 = vld [vmem:[%s7666_s4 + $0x6b8] sm:$0xff] }
 0x19a   : > { %v3701_v2 = vpack.c.bf16 %v902_v63, %v898_v62  ;;  %v969_v62 = vld [vmem:[%s7666_s4 + $0x8d0] sm:$0xff] }
 0x19b   : > { %v973_v63 = vld [vmem:[%s7666_s4 + $0x8f0] sm:$0xff] }
 0x19c   : > { %3632 = vmatpush1.bf16.msra.mxu0 %v3631_v10  ;;  %v3667_v10 = vpack.c.bf16 %v829_v7, %v825_v6  ;;  %v906_v6 = vld [vmem:[%s7666_s4 + $0x6d8] sm:$0xff] }
 0x19d   : > { %3634 = vmatprep.subr.bf16.mxu0 %v3633_v11  ;;  %v3669_v11 = vpack.c.bf16 %v838_v9, %v834_v8  ;;  %v910_v7 = vld [vmem:[%s7666_s4 + $0x6f8] sm:$0xff] }
 0x19e   : > { %v3705_v9 = vpack.c.bf16 %v910_v7, %v906_v6  ;;  %v977_v6 = vld [vmem:[%s7666_s4 + $0x910] sm:$0xff] }
 0x19f   : > { %v981_v7 = vld [vmem:[%s7666_s4 + $0x930] sm:$0xff] }
 0x1a0   : > { %3636 = vmatpush1.bf16.msra.mxu0 %v3635_v17  ;;  %v841_v17 = vld [vmem:[%s7666_s4 + $0x4d0] sm:$0xff] }
 0x1a1   : > { %3638 = vmatprep.subr.bf16.mxu0 %v3637_v18  ;;  %v845_v18 = vld [vmem:[%s7666_s4 + $0x4f0] sm:$0xff] }
 0x1a2   : > { %v3675_v25 = vpack.c.bf16 %v845_v18, %v841_v17  ;;  %v922_v17 = vld [vmem:[%s7666_s4 + $0x758] sm:$0xff] }
 0x1a3   : > { %v926_v18 = vld [vmem:[%s7666_s4 + $0x778] sm:$0xff] }
 0x1a4   : > { %3640 = vmatpush1.bf16.msra.mxu0 %v3639_v29  ;;  %v849_v29 = vld [vmem:[%s7666_s4 + $0x510] sm:$0xff]  ;;  %v3713_v22 = vpack.c.bf16 %v926_v18, %v922_v17 }
 0x1a5   : > { %3642 = vmatprep.subr.bf16.mxu0 %v3641_v30  ;;  %v853_v30 = vld [vmem:[%s7666_s4 + $0x530] sm:$0xff] }
 0x1a6   : > { %v3679_v34 = vpack.c.bf16 %v853_v30, %v849_v29  ;;  %v930_v29 = vld [vmem:[%s7666_s4 + $0x798] sm:$0xff]  ;;  %v993_v17 = vld [vmem:[%s7666_s4 + $0x990] sm:$0xff] }
 0x1a7   : > { %v934_v30 = vld [vmem:[%s7666_s4 + $0x7b8] sm:$0xff]  ;;  %v997_v18 = vld [vmem:[%s7666_s4 + $0x9b0] sm:$0xff] }
 0x1a8   : > { %3644 = vmatpush1.bf16.msra.mxu0 %v3643_v14  ;;  %v857_v14 = vld [vmem:[%s7666_s4 + $0x550] sm:$0xff]  ;;  %v3717_v32 = vpack.c.bf16 %v934_v30, %v930_v29 }
 0x1a9   : > { %3646 = vmatprep.subr.bf16.mxu0 %v3645_v36  ;;  %v861_v36 = vld [vmem:[%s7666_s4 + $0x570] sm:$0xff] }
 0x1aa   : > { %v3683_v39 = vpack.c.bf16 %v861_v36, %v857_v14  ;;  %v938_v14 = vld [vmem:[%s7666_s4 + $0x7d8] sm:$0xff]  ;;  %v1001_v29 = vld [vmem:[%s7666_s4 + $0x9d0] sm:$0xff] }
 0x1ab   : > { %v942_v36 = vld [vmem:[%s7666_s4 + $0x7f8] sm:$0xff]  ;;  %v1005_v30 = vld [vmem:[%s7666_s4 + $0x9f0] sm:$0xff] }
 0x1ac   : > { %3648 = vmatpush1.bf16.msra.mxu0 %v3647_v41  ;;  %v865_v41 = vld [vmem:[%s7666_s4 + $0x590] sm:$0xff]  ;;  %v3721_v38 = vpack.c.bf16 %v942_v36, %v938_v14 }
 0x1ad   : > { %3650 = vmatprep.subr.bf16.mxu0 %v3649_v42  ;;  %v869_v42 = vld [vmem:[%s7666_s4 + $0x5b0] sm:$0xff] }
 0x1ae   : > { %v3687_v50 = vpack.c.bf16 %v869_v42, %v865_v41  ;;  %v946_v41 = vld [vmem:[%s7666_s4 + $0x818] sm:$0xff]  ;;  %v1009_v14 = vld [vmem:[%s7666_s4 + $0xa10] sm:$0xff] }
 0x1af   : > { %v950_v42 = vld [vmem:[%s7666_s4 + $0x838] sm:$0xff]  ;;  %v1013_v36 = vld [vmem:[%s7666_s4 + $0xa30] sm:$0xff] }
 0x1b0   : > { %3652 = vmatpush1.bf16.msra.mxu0 %v3651_v51  ;;  %v873_v51 = vld [vmem:[%s7666_s4 + $0x5d0] sm:$0xff]  ;;  %v3725_v44 = vpack.c.bf16 %v950_v42, %v946_v41 }
 0x1b1   : > { %3654 = vmatprep.subr.bf16.mxu0 %v3653_v52  ;;  %v877_v52 = vld [vmem:[%s7666_s4 + $0x5f0] sm:$0xff] }
 0x1b2   : > { %v3691_v56 = vpack.c.bf16 %v877_v52, %v873_v51  ;;  %v954_v51 = vld [vmem:[%s7666_s4 + $0x858] sm:$0xff]  ;;  %v1017_v41 = vld [vmem:[%s7666_s4 + $0xa50] sm:$0xff] }
 0x1b3   : > { %v958_v52 = vld [vmem:[%s7666_s4 + $0x878] sm:$0xff]  ;;  %v1021_v42 = vld [vmem:[%s7666_s4 + $0xa70] sm:$0xff] }
 0x1b4   : > { %3656 = vmatpush1.bf16.msra.mxu0 %v3655_v47  ;;  %v881_v47 = vld [vmem:[%s7666_s4 + $0x610] sm:$0xff]  ;;  %v3729_v55 = vpack.c.bf16 %v958_v52, %v954_v51 }
 0x1b5   : > { %3658 = vmatprep.subr.bf16.mxu0 %v3657_v58  ;;  %v885_v58 = vld [vmem:[%s7666_s4 + $0x630] sm:$0xff] }
 0x1b6   : > { %v3695_v54 = vpack.c.bf16 %v885_v58, %v881_v47  ;;  %v962_v47 = vld [vmem:[%s7666_s4 + $0x898] sm:$0xff]  ;;  %v1025_v51 = vld [vmem:[%s7666_s4 + $0xa90] sm:$0xff] }
 0x1b7   : > { %v966_v58 = vld [vmem:[%s7666_s4 + $0x8b8] sm:$0xff]  ;;  %v1029_v52 = vld [vmem:[%s7666_s4 + $0xab0] sm:$0xff] }
 0x1b8   : > { %3660 = vmatpush1.bf16.msra.mxu0 %v3659_v61  ;;  %v889_v61 = vld [vmem:[%s7666_s4 + $0x650] sm:$0xff]  ;;  %v3733_v60 = vpack.c.bf16 %v966_v58, %v962_v47 }
 0x1b9   : > { %3662 = vmatprep.subr.bf16.mxu0 %v3661_v0  ;;  %v893_v0 = vld [vmem:[%s7666_s4 + $0x670] sm:$0xff] }
 0x1ba   : > { %v3699_v1 = vpack.c.bf16 %v893_v0, %v889_v61  ;;  %v970_v61 = vld [vmem:[%s7666_s4 + $0x8d8] sm:$0xff]  ;;  %v1033_v47 = vld [vmem:[%s7666_s4 + $0xad0] sm:$0xff] }
 0x1bb   : > { %1349 = vmatmul.mubr.f32.vlgmr.msra.gmra.mrb[6].mxu0 %v4814_v20  ;;  %v846_v20 = vld [vmem:[%s7666_s4 + $0x4f8] sm:$0xff]  ;;  %v1037_v58 = vld [vmem:[%s7666_s4 + $0xaf0] sm:$0xff] }
 0x1bc   : > { %3664 = vmatpush1.bf16.msra.mxu0 %v3663_v4  ;;  %1419 = vmatprep.mubr.f32.mxu0 %v4823_v23  ;;  %v3671_v23 = vpack.c.bf16 %v837_v13, %v833_v12  ;;  %v3673_v16 = vpack.c.bf16 %v846_v20, %v842_v15  ;;  %v897_v4 = vld [vmem:[%s7666_s4 + $0x690] sm:$0xff]  ;;  %v914_v12 = vld [vmem:[%s7666_s4 + $0x718] sm:$0xff] }
 0x1bd   : > { %3666 = vmatprep.subr.bf16.mxu0 %v3665_v5  ;;  %v901_v5 = vld [vmem:[%s7666_s4 + $0x6b0] sm:$0xff]  ;;  %v918_v13 = vld [vmem:[%s7666_s4 + $0x738] sm:$0xff] }
 0x1be   : > { %v3703_v8 = vpack.c.bf16 %v901_v5, %v897_v4  ;;  %v3709_v20 = vpack.c.bf16 %v918_v13, %v914_v12  ;;  %v3739_v4 = vpack.c.bf16 %v973_v63, %v969_v62  ;;  %v985_v12 = vld [vmem:[%s7666_s4 + $0x950] sm:$0xff] }
 0x1bf   : > { %v989_v13 = vld [vmem:[%s7666_s4 + $0x970] sm:$0xff] }
 0x1c0   : > { %3668 = vmatpush1.bf16.msra.mxu0 %v3667_v10  ;;  %v905_v10 = vld [vmem:[%s7666_s4 + $0x6d0] sm:$0xff] }
 0x1c1   : > { %3670 = vmatprep.subr.bf16.mxu0 %v3669_v11  ;;  %v909_v11 = vld [vmem:[%s7666_s4 + $0x6f0] sm:$0xff] }
 0x1c2   : > { %v3707_v15 = vpack.c.bf16 %v909_v11, %v905_v10  ;;  %v3743_v10 = vpack.c.bf16 %v981_v7, %v977_v6 }
 0x1c4   : > { %3672 = vmatpush1.bf16.msra.mxu0 %v3671_v23  ;;  %v913_v23 = vld [vmem:[%s7666_s4 + $0x710] sm:$0xff] }
 0x1c5   : > { %3674 = vmatprep.subr.bf16.mxu0 %v3673_v16  ;;  %v917_v16 = vld [vmem:[%s7666_s4 + $0x730] sm:$0xff] }
 0x1c6   : > { %v3711_v21 = vpack.c.bf16 %v917_v16, %v913_v23  ;;  %v3747_v23 = vpack.c.bf16 %v989_v13, %v985_v12 }
 0x1c8   : > { %3676 = vmatpush1.bf16.msra.mxu0 %v3675_v25  ;;  %v921_v25 = vld [vmem:[%s7666_s4 + $0x750] sm:$0xff] }
 0x1c9   : > { %3678 = vmatprep.subr.bf16.mxu0 %v3677_v28  ;;  %v925_v28 = vld [vmem:[%s7666_s4 + $0x770] sm:$0xff] }
 0x1ca   : > { %v3715_v31 = vpack.c.bf16 %v925_v28, %v921_v25  ;;  %v3751_v25 = vpack.c.bf16 %v997_v18, %v993_v17  ;;  %v5788_v18 = vld [vmem:[%s7667_s5] sm:$0xff] }
 0x1cc   : > { %3680 = vmatpush1.bf16.msra.mxu0 %v3679_v34  ;;  %v929_v34 = vld [vmem:[%s7666_s4 + $0x790] sm:$0xff] }
 0x1cd   : > { %3682 = vmatprep.subr.bf16.mxu0 %v3681_v35  ;;  %v933_v35 = vld [vmem:[%s7666_s4 + $0x7b0] sm:$0xff] }
 0x1ce   : > { %v3719_v37 = vpack.c.bf16 %v933_v35, %v929_v34  ;;  %v3755_v34 = vpack.c.bf16 %v1005_v30, %v1001_v29  ;;  %v373_v29 = vld [vmem:[%s371_s18] sm:$0xf]  ;;  %s3254_s18 = sshll.u32 %s363_s25, 4  ;;  %s7622_s18 = int_to_ptr.vmem [resolvable:$true] %s3254_s18 }
 0x1cf   : > { %s4368_s22 = scalar_lea.vmem %s7622_s18, 128  ;;  %p4375_p0 = scmp.lt.s32.totalorder %s7622_s18, %s4373_s11 }
 0x1d0   : > { %3684 = vmatpush1.bf16.msra.mxu0 %v3683_v39  ;;  %v937_v39 = vld [vmem:[%s7666_s4 + $0x7d0] sm:$0xff]  ;;  %p4369_p11 = scmp.ne.s32.totalorder %s7622_s18, %s4368_s22  ;;  %p4376_p1 = scmp.lt.s32.totalorder %s4374_s29, %s4368_s22 }
 0x1d1   : > { %3686 = vmatprep.subr.bf16.mxu0 %v3685_v40  ;;  %v941_v40 = vld [vmem:[%s7666_s4 + $0x7f0] sm:$0xff] }
 0x1d2   : > { %v3723_v43 = vpack.c.bf16 %v941_v40, %v937_v39  ;;  %v3759_v39 = vpack.c.bf16 %v1013_v36, %v1009_v14  ;;  %v2129_v14 = vld [vmem:[%s7669_s7 + $0x238] sm:$0xff]  ;;  %p4370_p12 = pnand %p4369_p11, %p4527_p5  ;;  %p4377_p2 = por %p4376_p1, %p4375_p0 }
 0x1d4   : > { %3688 = vmatpush1.bf16.msra.mxu0 %v3687_v50  ;;  %v945_v50 = vld [vmem:[%s7666_s4 + $0x810] sm:$0xff]  ;;  %p4371_p13 = pneg %p4370_p12 }
 0x1d5   : > { %3690 = vmatprep.subr.bf16.mxu0 %v3689_v45  ;;  %v949_v45 = vld [vmem:[%s7666_s4 + $0x830] sm:$0xff] }
 0x1d6   : > { %v3727_v53 = vpack.c.bf16 %v949_v45, %v945_v50  ;;  %v3763_v50 = vpack.c.bf16 %v1021_v42, %v1017_v41  ;;  %v2133_v41 = vld [vmem:[%s7669_s7 + $0x258] sm:$0xff]  ;;  %p4378_p3 = pnand %p4377_p2, %p4371_p13 }
 0x1d8   : > { %3692 = vmatpush1.bf16.msra.mxu0 %v3691_v56  ;;  %v953_v56 = vld [vmem:[%s7666_s4 + $0x850] sm:$0xff] }
 0x1d9   : > { %3694 = vmatprep.subr.bf16.mxu0 %v3693_v57  ;;  %v957_v57 = vld [vmem:[%s7666_s4 + $0x870] sm:$0xff] }
 0x1da   : > { %v3731_v59 = vpack.c.bf16 %v957_v57, %v953_v56  ;;  %v3767_v56 = vpack.c.bf16 %v1029_v52, %v1025_v51  ;;  %v2137_v51 = vld [vmem:[%s7669_s7 + $0x278] sm:$0xff] }
 0x1dc   : > { %3696 = vmatpush1.bf16.msra.mxu0 %v3695_v54  ;;  %v961_v54 = vld [vmem:[%s7666_s4 + $0x890] sm:$0xff] }
 0x1dd   : > { %3698 = vmatprep.subr.bf16.mxu0 %v3697_v19  ;;  %v965_v19 = vld [vmem:[%s7666_s4 + $0x8b0] sm:$0xff] }
 0x1e0   : > { %3700 = vmatpush1.bf16.msra.mxu0 %v3699_v1  ;;  %v978_v1 = vld [vmem:[%s7666_s4 + $0x918] sm:$0xff] }
 0x1e1   : > { %3702 = vmatprep.subr.bf16.mxu0 %v3701_v2  ;;  %v982_v2 = vld [vmem:[%s7666_s4 + $0x938] sm:$0xff] }
 0x1e2   : > { %v3741_v5 = vpack.c.bf16 %v982_v2, %v978_v1  ;;  %v1049_v1 = vld [vmem:[%s7666_s4 + $0xb50] sm:$0xff] }
 0x1e3   : > { %v1053_v2 = vld [vmem:[%s7666_s4 + $0xb70] sm:$0xff] }
 0x1e4   : > { %3704 = vmatpush1.bf16.msra.mxu0 %v3703_v8  ;;  %v986_v8 = vld [vmem:[%s7666_s4 + $0x958] sm:$0xff]  ;;  %v3779_v6 = vpack.c.bf16 %v1053_v2, %v1049_v1 }
 0x1e5   : > { %3706 = vmatprep.subr.bf16.mxu0 %v3705_v9  ;;  %v990_v9 = vld [vmem:[%s7666_s4 + $0x978] sm:$0xff] }
 0x1e6   : > { %v3745_v11 = vpack.c.bf16 %v990_v9, %v986_v8  ;;  %v1057_v8 = vld [vmem:[%s7666_s4 + $0xb90] sm:$0xff] }
 0x1e7   : > { %v1061_v9 = vld [vmem:[%s7666_s4 + $0xbb0] sm:$0xff] }
 0x1e8   : > { %3708 = vmatpush1.bf16.msra.mxu0 %v3707_v15  ;;  %v994_v15 = vld [vmem:[%s7666_s4 + $0x998] sm:$0xff]  ;;  %v3783_v12 = vpack.c.bf16 %v1061_v9, %v1057_v8 }
 0x1e9   : > { %3710 = vmatprep.subr.bf16.mxu0 %v3709_v20  ;;  %v998_v20 = vld [vmem:[%s7666_s4 + $0x9b8] sm:$0xff] }
 0x1ea   : > { %v3749_v16 = vpack.c.bf16 %v998_v20, %v994_v15  ;;  %v1065_v15 = vld [vmem:[%s7666_s4 + $0xbd0] sm:$0xff] }
 0x1eb   : > { %v1069_v20 = vld [vmem:[%s7666_s4 + $0xbf0] sm:$0xff] }
 0x1ec   : > { %3712 = vmatpush1.bf16.msra.mxu0 %v3711_v21  ;;  %v1002_v21 = vld [vmem:[%s7666_s4 + $0x9d8] sm:$0xff] }
 0x1ed   : > { %3714 = vmatprep.subr.bf16.mxu0 %v3713_v22  ;;  %v1006_v22 = vld [vmem:[%s7666_s4 + $0x9f8] sm:$0xff] }
 0x1ee   : > { %v3753_v28 = vpack.c.bf16 %v1006_v22, %v1002_v21  ;;  %v2571_v21 = vld [vmem:[%s7670_s8 + $0x8] sm:$0xff]  ;;  %v2570_v22 = vld [vmem:[%s7670_s8] sm:$0xff] }
 0x1f0   : > { %3716 = vmatpush1.bf16.msra.mxu0 %v3715_v31  ;;  %v1010_v31 = vld [vmem:[%s7666_s4 + $0xa18] sm:$0xff] }
 0x1f1   : > { %3718 = vmatprep.subr.bf16.mxu0 %v3717_v32  ;;  %v1014_v32 = vld [vmem:[%s7666_s4 + $0xa38] sm:$0xff] }
 0x1f2   : > { %v3757_v35 = vpack.c.bf16 %v1014_v32, %v1010_v31  ;;  %v2122_v31 = vld [vmem:[%s7669_s7 + $0x200] sm:$0xff]  ;;  %v2124_v32 = vld [vmem:[%s7669_s7 + $0x210] sm:$0xff] }
 0x1f4   : > { %3720 = vmatpush1.bf16.msra.mxu0 %v3719_v37  ;;  %v1018_v37 = vld [vmem:[%s7666_s4 + $0xa58] sm:$0xff] }
 0x1f5   : > { %3722 = vmatprep.subr.bf16.mxu0 %v3721_v38  ;;  %v1022_v38 = vld [vmem:[%s7666_s4 + $0xa78] sm:$0xff] }
 0x1f6   : > { %v3761_v40 = vpack.c.bf16 %v1022_v38, %v1018_v37  ;;  %v2126_v37 = vld [vmem:[%s7669_s7 + $0x220] sm:$0xff]  ;;  %v2128_v38 = vld [vmem:[%s7669_s7 + $0x230] sm:$0xff] }
 0x1f8   : > { %3724 = vmatpush1.bf16.msra.mxu0 %v3723_v43  ;;  %v1026_v43 = vld [vmem:[%s7666_s4 + $0xa98] sm:$0xff] }
 0x1f9   : > { %3726 = vmatprep.subr.bf16.mxu0 %v3725_v44  ;;  %v1030_v44 = vld [vmem:[%s7666_s4 + $0xab8] sm:$0xff] }
 0x1fa   : > { %v3765_v45 = vpack.c.bf16 %v1030_v44, %v1026_v43  ;;  %v2130_v43 = vld [vmem:[%s7669_s7 + $0x240] sm:$0xff]  ;;  %v2132_v44 = vld [vmem:[%s7669_s7 + $0x250] sm:$0xff] }
 0x1fb   : > { %1420 = vmatmul.mubr.f32.vlgmr.msra.gmra.mrb[6].mxu0 %v5024_v27  ;;  %v974_v27 = vld [vmem:[%s7666_s4 + $0x8f8] sm:$0xff] }
 0x1fc   : > { %3728 = vmatpush1.bf16.msra.mxu0 %v3727_v53  ;;  %1490 = vmatprep.mubr.f32.mxu0 %v5022_v26  ;;  %v3735_v26 = vpack.c.bf16 %v965_v19, %v961_v54  ;;  %v3737_v0 = vpack.c.bf16 %v974_v27, %v970_v61  ;;  %v1034_v53 = vld [vmem:[%s7666_s4 + $0xad8] sm:$0xff]  ;;  %v3771_v54 = vpack.c.bf16 %v1037_v58, %v1033_v47  ;;  %v1041_v61 = vld [vmem:[%s7666_s4 + $0xb10] sm:$0xff] }
 0x1fd   : > { %3730 = vmatprep.subr.bf16.mxu0 %v3729_v55  ;;  %v1038_v55 = vld [vmem:[%s7666_s4 + $0xaf8] sm:$0xff]  ;;  %v1045_v27 = vld [vmem:[%s7666_s4 + $0xb30] sm:$0xff] }
 0x1fe   : > { %v3769_v57 = vpack.c.bf16 %v1038_v55, %v1034_v53  ;;  %v3775_v62 = vpack.c.bf16 %v1045_v27, %v1041_v61  ;;  %v2134_v53 = vld [vmem:[%s7669_s7 + $0x260] sm:$0xff]  ;;  %v2136_v55 = vld [vmem:[%s7669_s7 + $0x270] sm:$0xff] }
 0x1ff   : > { %v3867_v47 = vpack.c.bf16 %v2136_v55, %v2134_v53 }
 0x200   : > { %3732 = vmatpush1.bf16.msra.mxu0 %v3731_v59  ;;  %v1042_v59 = vld [vmem:[%s7666_s4 + $0xb18] sm:$0xff] }
 0x201   : > { %3734 = vmatprep.subr.bf16.mxu0 %v3733_v60  ;;  %v1046_v60 = vld [vmem:[%s7666_s4 + $0xb38] sm:$0xff] }
 0x202   : > { %v3773_v19 = vpack.c.bf16 %v1046_v60, %v1042_v59  ;;  %v2138_v59 = vld [vmem:[%s7669_s7 + $0x280] sm:$0xff]  ;;  %v2140_v60 = vld [vmem:[%s7669_s7 + $0x290] sm:$0xff] }
 0x203   : > { %v3871_v61 = vpack.c.bf16 %v2140_v60, %v2138_v59 }
 0x204   : > { %3736 = vmatpush1.bf16.msra.mxu0 %v3735_v26  ;;  %v1050_v26 = vld [vmem:[%s7666_s4 + $0xb58] sm:$0xff] }
 0x205   : > { %3738 = vmatprep.subr.bf16.mxu0 %v3737_v0  ;;  %v1054_v0 = vld [vmem:[%s7666_s4 + $0xb78] sm:$0xff] }
 0x206   : > { %v3777_v63 = vpack.c.bf16 %v1054_v0, %v1050_v26  ;;  %v2142_v26 = vld [vmem:[%s7669_s7 + $0x2a0] sm:$0xff]  ;;  %v2144_v0 = vld [vmem:[%s7669_s7 + $0x2b0] sm:$0xff] }
 0x207   : > { %v3875_v1 = vpack.c.bf16 %v2144_v0, %v2142_v26  ;;  %v2070_v26 = vld [vmem:[%s7669_s7 + $0x60] sm:$0xff]  ;;  %v2072_v0 = vld [vmem:[%s7669_s7 + $0x70] sm:$0xff] }
 0x208   : > { %3740 = vmatpush1.bf16.msra.mxu0 %v3739_v4  ;;  %v1058_v4 = vld [vmem:[%s7666_s4 + $0xb98] sm:$0xff] }
 0x209   : > { %3742 = vmatprep.subr.bf16.mxu0 %v3741_v5  ;;  %v1062_v5 = vld [vmem:[%s7666_s4 + $0xbb8] sm:$0xff] }
 0x20a   : > { %v3781_v7 = vpack.c.bf16 %v1062_v5, %v1058_v4  ;;  %v2146_v4 = vld [vmem:[%s7669_s7 + $0x2c0] sm:$0xff]  ;;  %v2148_v5 = vld [vmem:[%s7669_s7 + $0x2d0] sm:$0xff] }
 0x20b   : > { %v3879_v8 = vpack.c.bf16 %v2148_v5, %v2146_v4  ;;  %v2076_v4 = vld [vmem:[%s7669_s7 + $0x90] sm:$0xff]  ;;  %v2079_v5 = vld [vmem:[%s7669_s7 + $0xa8] sm:$0xff] }
 0x20c   : > { %3744 = vmatpush1.bf16.msra.mxu0 %v3743_v10  ;;  %v1066_v10 = vld [vmem:[%s7666_s4 + $0xbd8] sm:$0xff] }
 0x20d   : > { %3746 = vmatprep.subr.bf16.mxu0 %v3745_v11  ;;  %v1070_v11 = vld [vmem:[%s7666_s4 + $0xbf8] sm:$0xff] }
 0x20e   : > { %v3785_v13 = vpack.c.bf16 %v1070_v11, %v1066_v10  ;;  %v2150_v10 = vld [vmem:[%s7669_s7 + $0x2e0] sm:$0xff]  ;;  %v2152_v11 = vld [vmem:[%s7669_s7 + $0x2f0] sm:$0xff] }
 0x210   : > { %3748 = vmatpush1.bf16.msra.mxu0 %v3747_v23  ;;  %v3787_v23 = vpack.c.bf16 %v1069_v20, %v1065_v15  ;;  %v3883_v15 = vpack.c.bf16 %v2152_v11, %v2150_v10  ;;  %v2078_v10 = vld [vmem:[%s7669_s7 + $0xa0] sm:$0xff]  ;;  %v2080_v11 = vld [vmem:[%s7669_s7 + $0xb0] sm:$0xff] }
 0x211   : > { %3750 = vmatprep.subr.bf16.mxu0 %v3749_v16 }
 0x214   : > { %3752 = vmatpush1.bf16.msra.mxu0 %v3751_v25  ;;  %v2123_v25 = vld [vmem:[%s7669_s7 + $0x208] sm:$0xff] }
 0x215   : > { %3754 = vmatprep.subr.bf16.mxu0 %v3753_v28  ;;  %v2125_v28 = vld [vmem:[%s7669_s7 + $0x218] sm:$0xff] }
 0x216   : > { %v3853_v30 = vpack.c.bf16 %v2125_v28, %v2123_v25  ;;  %v2158_v28 = vld [vmem:[%s7669_s7 + $0x320] sm:$0xff] }
 0x218   : > { %3756 = vmatpush1.bf16.msra.mxu0 %v3755_v34  ;;  %v3855_v34 = vpack.c.bf16 %v2124_v32, %v2122_v31  ;;  %v2163_v31 = vld [vmem:[%s7669_s7 + $0x348] sm:$0xff]  ;;  %v2165_v32 = vld [vmem:[%s7669_s7 + $0x358] sm:$0xff] }
 0x219   : > { %3758 = vmatprep.subr.bf16.mxu0 %v3757_v35  ;;  %v2127_v35 = vld [vmem:[%s7669_s7 + $0x228] sm:$0xff] }
 0x21a   : > { %v3857_v36 = vpack.c.bf16 %v2129_v14, %v2127_v35  ;;  %v2162_v35 = vld [vmem:[%s7669_s7 + $0x340] sm:$0xff]  ;;  %v2164_v14 = vld [vmem:[%s7669_s7 + $0x350] sm:$0xff] }
 0x21c   : > { %3760 = vmatpush1.bf16.msra.mxu0 %v3759_v39  ;;  %v3859_v39 = vpack.c.bf16 %v2128_v38, %v2126_v37  ;;  %v2167_v37 = vld [vmem:[%s7669_s7 + $0x368] sm:$0xff]  ;;  %v2169_v38 = vld [vmem:[%s7669_s7 + $0x378] sm:$0xff] }
 0x21d   : > { %3762 = vmatprep.subr.bf16.mxu0 %v3761_v40  ;;  %v2131_v40 = vld [vmem:[%s7669_s7 + $0x248] sm:$0xff] }
 0x21e   : > { %v3861_v42 = vpack.c.bf16 %v2133_v41, %v2131_v40  ;;  %v2059_v40 = vld [vmem:[%s7669_s7 + $0x8] sm:$0xff]  ;;  %v2061_v41 = vld [vmem:[%s7669_s7 + $0x18] sm:$0xff] }
 0x220   : > { %3764 = vmatpush1.bf16.msra.mxu0 %v3763_v50  ;;  %v3863_v50 = vpack.c.bf16 %v2132_v44, %v2130_v43  ;;  %v2060_v43 = vld [vmem:[%s7669_s7 + $0x10] sm:$0xff]  ;;  %v2063_v44 = vld [vmem:[%s7669_s7 + $0x28] sm:$0xff] }
 0x221   : > { %3766 = vmatprep.subr.bf16.mxu0 %v3765_v45  ;;  %v2135_v45 = vld [vmem:[%s7669_s7 + $0x268] sm:$0xff] }
 0x222   : > { %v3865_v52 = vpack.c.bf16 %v2137_v51, %v2135_v45  ;;  %v3789_v51 = vpack.c.bf16 %v2061_v41, %v2059_v40  ;;  %v2090_v40 = vld [vmem:[%s7669_s7 + $0x100] sm:$0xff]  ;;  %v2092_v41 = vld [vmem:[%s7669_s7 + $0x110] sm:$0xff] }
 0x224   : > { %3768 = vmatpush1.bf16.msra.mxu0 %v3767_v56  ;;  %v2139_v56 = vld [vmem:[%s7669_s7 + $0x288] sm:$0xff] }
 0x225   : > { %3770 = vmatprep.subr.bf16.mxu0 %v3769_v57  ;;  %v2141_v57 = vld [vmem:[%s7669_s7 + $0x298] sm:$0xff] }
 0x226   : > { %v3869_v58 = vpack.c.bf16 %v2141_v57, %v2139_v56  ;;  %v2062_v56 = vld [vmem:[%s7669_s7 + $0x20] sm:$0xff]  ;;  %v2064_v57 = vld [vmem:[%s7669_s7 + $0x30] sm:$0xff] }
 0x227   : > { %v3795_v59 = vpack.c.bf16 %v2064_v57, %v2062_v56  ;;  %v2098_v57 = vld [vmem:[%s7669_s7 + $0x140] sm:$0xff] }
 0x228   : > { %3772 = vmatpush1.bf16.msra.mxu0 %v3771_v54  ;;  %v2143_v54 = vld [vmem:[%s7669_s7 + $0x2a8] sm:$0xff] }
 0x229   : > { %3774 = vmatprep.subr.bf16.mxu0 %v3773_v19  ;;  %v2145_v19 = vld [vmem:[%s7669_s7 + $0x2b8] sm:$0xff] }
 0x22a   : > { %v3873_v27 = vpack.c.bf16 %v2145_v19, %v2143_v54  ;;  %v2066_v54 = vld [vmem:[%s7669_s7 + $0x40] sm:$0xff]  ;;  %v2068_v19 = vld [vmem:[%s7669_s7 + $0x50] sm:$0xff] }
 0x22c   : > { %3776 = vmatpush1.bf16.msra.mxu0 %v3775_v62  ;;  %v2147_v62 = vld [vmem:[%s7669_s7 + $0x2c8] sm:$0xff] }
 0x22d   : > { %3778 = vmatprep.subr.bf16.mxu0 %v3777_v63  ;;  %v2149_v63 = vld [vmem:[%s7669_s7 + $0x2d8] sm:$0xff] }
 0x22e   : > { %v3877_v2 = vpack.c.bf16 %v2149_v63, %v2147_v62  ;;  %v2075_v62 = vld [vmem:[%s7669_s7 + $0x88] sm:$0xff]  ;;  %v3803_v63 = vpack.c.bf16 %v2072_v0, %v2070_v26 }
 0x230   : > { %3780 = vmatpush1.bf16.msra.mxu0 %v3779_v6  ;;  %v2151_v6 = vld [vmem:[%s7669_s7 + $0x2e8] sm:$0xff] }
 0x231   : > { %3782 = vmatprep.subr.bf16.mxu0 %v3781_v7  ;;  %v2153_v7 = vld [vmem:[%s7669_s7 + $0x2f8] sm:$0xff] }
 0x232   : > { %v3881_v9 = vpack.c.bf16 %v2153_v7, %v2151_v6  ;;  %v2081_v6 = vld [vmem:[%s7669_s7 + $0xb8] sm:$0xff] }
 0x234   : > { %3784 = vmatpush1.bf16.msra.mxu0 %v3783_v12  ;;  %v2155_v12 = vld [vmem:[%s7669_s7 + $0x308] sm:$0xff] }
 0x235   : > { %3786 = vmatprep.subr.bf16.mxu0 %v3785_v13  ;;  %v2157_v13 = vld [vmem:[%s7669_s7 + $0x318] sm:$0xff] }
 0x236   : > { %v3885_v20 = vpack.c.bf16 %v2157_v13, %v2155_v12  ;;  %v2083_v12 = vld [vmem:[%s7669_s7 + $0xc8] sm:$0xff]  ;;  %v2085_v13 = vld [vmem:[%s7669_s7 + $0xd8] sm:$0xff] }
 0x238   : > { %3788 = vmatpush1.bf16.msra.mxu0 %v3787_v23  ;;  %v2154_v23 = vld [vmem:[%s7669_s7 + $0x300] sm:$0xff] }
 0x23b   : > { %1491 = vmatmul.mubr.f32.vlgmr.msra.gmra.mrb[6].mxu0 %v5223_v24  ;;  %v5796_v24 = vld [vmem:[%s7667_s5 + $0x8] sm:$0xff] }
 0x23c   : > { %1654 = vmatprep.mubr.f32.mxu0 %v4432_v3 }
 0x24e   : > { %v1279_v16 = vpop.f32.mrb[4].mxu0 }
 0x24f   : > { %v1281_v17 = vpop.f32.mrb[5].mxu0 }
 0x250   : > { %1513 = vmatprep.subr.mxu1 %v1281_v17  ;;  %v2159_v17 = vld [vmem:[%s7669_s7 + $0x328] sm:$0xff] }
 0x251   : > { %1514 = vmatpush1.msra.mxu1 %v1279_v16  ;;  %v2156_v16 = vld [vmem:[%s7669_s7 + $0x310] sm:$0xff] }
 0x252   : > { %3350 = vmatmul.mubr.msk.f32.vlgmr.msra.gmra.mrb[2].mxu1 %vm1506_vm14, %v5788_v18  ;;  %2575 = vmatprep.subr.mxu1 %v2571_v21  ;;  %v2161_v21 = vld [vmem:[%s7669_s7 + $0x338] sm:$0xff] }
 0x253   : > { %1583 = vmatprep.mubr.f32.mxu1 %v4432_v3  ;;  %2576 = vmatpush1.msra.mxu1 %v2570_v22  ;;  %v3887_v22 = vpack.c.bf16 %v2156_v16, %v2154_v23  ;;  %v3889_v25 = vpack.c.bf16 %v2161_v21, %v2159_v17  ;;  %v3813_v16 = vpack.c.bf16 %v2085_v13, %v2083_v12  ;;  %v2082_v17 = vld [vmem:[%s7669_s7 + $0xc0] sm:$0xff]  ;;  %v2084_v21 = vld [vmem:[%s7669_s7 + $0xd0] sm:$0xff] }
 0x254   : > { %3854 = vmatprep.subr.bf16.mxu1 %v3853_v30 }
 0x256   : > { %3351 = vmatmul.mubr.msk.f32.gmra.mrb[4].mxu1 %vm1506_vm14, %v5796_v24 }
 0x257   : > { %2639 = vmatprep.mubr.f32.mxu1 %v4432_v3 }
 0x25a   : > { %3398 = vmatmul.mubr.msk.f32.vlgmr.msra.gmra.mrb[6].mxu1 %vm1506_vm14, %v373_v29  ;;  %v2160_v29 = vld [vmem:[%s7669_s7 + $0x330] sm:$0xff] }
 0x25b   : > { %3856 = vmatpush1.bf16.msra.mxu1 %v3855_v34  ;;  %v3891_v30 = vpack.c.bf16 %v2160_v29, %v2158_v28  ;;  %v3893_v34 = vpack.c.bf16 %v2165_v32, %v2163_v31  ;;  %v3815_v31 = vpack.c.bf16 %v2084_v21, %v2082_v17 }
 0x25c   : > { %3858 = vmatprep.subr.bf16.mxu1 %v3857_v36  ;;  %v3895_v36 = vpack.c.bf16 %v2164_v14, %v2162_v35  ;;  %v2086_v35 = vld [vmem:[%s7669_s7 + $0xe0] sm:$0xff]  ;;  %v2088_v14 = vld [vmem:[%s7669_s7 + $0xf0] sm:$0xff] }
 0x25f   : > { %3860 = vmatpush1.bf16.msra.mxu1 %v3859_v39  ;;  %v3897_v39 = vpack.c.bf16 %v2169_v38, %v2167_v37  ;;  %v2093_v37 = vld [vmem:[%s7669_s7 + $0x118] sm:$0xff]  ;;  %v3819_v38 = vpack.c.bf16 %v2088_v14, %v2086_v35 }
 0x260   : > { %3862 = vmatprep.subr.bf16.mxu1 %v3861_v42  ;;  %v2058_v42 = vld [vmem:[%s7669_s7] sm:$0xff] }
 0x261   : > { %v3791_v53 = vpack.c.bf16 %v2060_v43, %v2058_v42  ;;  %v2095_v42 = vld [vmem:[%s7669_s7 + $0x128] sm:$0xff]  ;;  %v2097_v43 = vld [vmem:[%s7669_s7 + $0x138] sm:$0xff] }
 0x263   : > { %3864 = vmatpush1.bf16.msra.mxu1 %v3863_v50  ;;  %v2065_v50 = vld [vmem:[%s7669_s7 + $0x38] sm:$0xff] }
 0x264   : > { %3866 = vmatprep.subr.bf16.mxu1 %v3865_v52  ;;  %v3793_v55 = vpack.c.bf16 %v2065_v50, %v2063_v44  ;;  %v3823_v44 = vpack.c.bf16 %v2092_v41, %v2090_v40  ;;  %v3825_v50 = vpack.c.bf16 %v2097_v43, %v2095_v42  ;;  %v2171_v42 = vld [vmem:[%s7669_s7 + $0x388] sm:$0xff] }
 0x267   : > { %3868 = vmatpush1.bf16.msra.mxu1 %v3867_v47  ;;  %v2067_v47 = vld [vmem:[%s7669_s7 + $0x48] sm:$0xff] }
 0x268   : > { %3870 = vmatprep.subr.bf16.mxu1 %v3869_v58  ;;  %v2069_v58 = vld [vmem:[%s7669_s7 + $0x58] sm:$0xff] }
 0x269   : > { %v3797_v60 = vpack.c.bf16 %v2069_v58, %v2067_v47  ;;  %v2100_v47 = vld [vmem:[%s7669_s7 + $0x150] sm:$0xff] }
 0x26a   : > { %v3831_v58 = vpack.c.bf16 %v2100_v47, %v2098_v57 }
 0x26b   : > { %3872 = vmatpush1.bf16.msra.mxu1 %v3871_v61  ;;  %v2071_v61 = vld [vmem:[%s7669_s7 + $0x68] sm:$0xff] }
 0x26c   : > { %3874 = vmatprep.subr.bf16.mxu1 %v3873_v27 }
 0x26f   : > { %3876 = vmatpush1.bf16.msra.mxu1 %v3875_v1 }
 0x270   : > { %3878 = vmatprep.subr.bf16.mxu1 %v3877_v2  ;;  %v2074_v2 = vld [vmem:[%s7669_s7 + $0x80] sm:$0xff] }
 0x271   : > { %v3807_v7 = vpack.c.bf16 %v2076_v4, %v2074_v2 }
 0x273   : > { %3880 = vmatpush1.bf16.msra.mxu1 %v3879_v8  ;;  %v6024_v8 = vld [vmem:[%s7668_s6 + $0x1] ss:$8 sm:$0xf] }
 0x274   : > { %3882 = vmatprep.subr.bf16.mxu1 %v3881_v9  ;;  %v3809_v9 = vpack.c.bf16 %v2081_v6, %v2079_v5  ;;  %v1700_v23 = vrot.slane %v6024_v8, %v4776_v48 }
 0x277   : > { %3884 = vmatpush1.bf16.msra.mxu1 %v3883_v15  ;;  %v1696_v15 = vrot.slane %v6024_v8, %v4768_v46 }
 0x278   : > { %3886 = vmatprep.subr.bf16.mxu1 %v3885_v20  ;;  %v3811_v20 = vpack.c.bf16 %v2080_v11, %v2078_v10 }
 0x27b   : > { %3888 = vmatpush1.bf16.msra.mxu1 %v3887_v22  ;;  %v2087_v22 = vld [vmem:[%s7669_s7 + $0xe8] sm:$0xff] }
 0x27c   : > { %3890 = vmatprep.subr.bf16.mxu1 %v3889_v25  ;;  %v2089_v25 = vld [vmem:[%s7669_s7 + $0xf8] sm:$0xff] }
 0x27f   : > { %3892 = vmatpush1.bf16.msra.mxu1 %v3891_v30 }
 0x280   : > { %3894 = vmatprep.subr.bf16.mxu1 %v3893_v34  ;;  %v3817_v34 = vpack.c.bf16 %v2089_v25, %v2087_v22  ;;  %v2168_v25 = vld [vmem:[%s7669_s7 + $0x370] sm:$0xff] }
 0x283   : > { %3896 = vmatpush1.bf16.msra.mxu1 %v3895_v36  ;;  %v2091_v36 = vld [vmem:[%s7669_s7 + $0x108] sm:$0xff] }
 0x284   : > { %3898 = vmatprep.subr.bf16.mxu1 %v3897_v39  ;;  %v3821_v39 = vpack.c.bf16 %v2093_v37, %v2091_v36 }
 0x30e   : > { %v1492_v45 = vpop.f32.mrb[6].mxu0 }
 0x30f   : > { %v1494_v52 = vpop.f32.mrb[7].mxu0 }
 0x310   : > { %1590 = vmatprep.subr.mxu0 %v1494_v52  ;;  %v2099_v52 = vld [vmem:[%s7669_s7 + $0x148] sm:$0xff] }
 0x311   : > { %1591 = vmatpush1.msra.mxu0 %v1492_v45  ;;  %v2094_v45 = vld [vmem:[%s7669_s7 + $0x120] sm:$0xff] }
 0x312   : > { %3352 = vmatmul.mubr.msk.f32.vlgmr.msra.gmra.mrb[8].mxu0 %vm1506_vm14, %v5788_v18  ;;  %3790 = vmatprep.subr.bf16.mxu0 %v3789_v51  ;;  %v3799_v18 = vpack.c.bf16 %v2068_v19, %v2066_v54  ;;  %v2096_v51 = vld [vmem:[%s7669_s7 + $0x130] sm:$0xff] }
 0x313   : > { %1660 = vmatprep.mubr.f32.mxu0 %v4432_v3  ;;  %3792 = vmatpush1.bf16.msra.mxu0 %v3791_v53  ;;  %v2073_v3 = vld [vmem:[%s7669_s7 + $0x78] sm:$0xff] }
 0x314   : > { %3794 = vmatprep.subr.bf16.mxu0 %v3793_v55  ;;  %v3801_v27 = vpack.c.bf16 %v2073_v3, %v2071_v61  ;;  %v2101_v53 = vld [vmem:[%s7669_s7 + $0x158] sm:$0xff]  ;;  %v3827_v55 = vpack.c.bf16 %v2096_v51, %v2094_v45 }
 0x315   : > { %v3829_v56 = vpack.c.bf16 %v2101_v53, %v2099_v52  ;;  %v6108_v19 = vld [vmem:[%s7668_s6 + $0x2] ss:$8 sm:$0xf]  ;;  %v6113_v61 = vld [vmem:[%s7668_s6 + $0x3] ss:$8 sm:$0xf] }
 0x316   : > { %3353 = vmatmul.mubr.msk.f32.gmra.mrb[10].mxu0 %vm1506_vm14, %v5796_v24  ;;  %v2077_v24 = vld [vmem:[%s7669_s7 + $0x98] sm:$0xff]  ;;  %v1725_v0 = vrot.slane %v6108_v19, %v4768_v46  ;;  %v1729_v2 = vrot.slane %v6108_v19, %v4776_v48  ;;  %v1794_v5 = vrot.slane %v6113_v61, %v4776_v48  ;;  %v2107_v52 = vld [vmem:[%s7669_s7 + $0x188] sm:$0xff] }
 0x317   : > { %3796 = vmatpush1.bf16.msra.mxu0 %v3795_v59  ;;  %v3805_v1 = vpack.c.bf16 %v2077_v24, %v2075_v62  ;;  %v6099_v59 = vld [vmem:[%s7668_s6] ss:$8 sm:$0xf]  ;;  %v1790_v24 = vrot.slane %v6113_v61, %v4768_v46 }
 0x318   : > { %3798 = vmatprep.subr.bf16.mxu0 %v3797_v60  ;;  %v1671_v60 = vrot.slane %v6099_v59, %v4768_v46  ;;  %v1675_v54 = vrot.slane %v6099_v59, %v4776_v48  ;;  %v2173_v51 = vld [vmem:[%s7669_s7 + $0x398] sm:$0xff] }
 0x319   : > { %v2109_v53 = vld [vmem:[%s7669_s7 + $0x198] sm:$0xff]  ;;  %v3901_v57 = vpack.c.bf16 %v2173_v51, %v2171_v42  ;;  %v2183_v51 = vld [vmem:[%s7669_s7 + $0x3e8] sm:$0xff] }
 0x31a   : > { %v3837_v47 = vpack.c.bf16 %v2109_v53, %v2107_v52  ;;  %v2185_v52 = vld [vmem:[%s7669_s7 + $0x3f8] sm:$0xff] }
 0x31b   : > { %3800 = vmatpush1.bf16.msra.mxu0 %v3799_v18 }
 0x31c   : > { %3802 = vmatprep.subr.bf16.mxu0 %v3801_v27 }
 0x31f   : > { %3804 = vmatpush1.bf16.msra.mxu0 %v3803_v63 }
 0x320   : > { %3806 = vmatprep.subr.bf16.mxu0 %v3805_v1 }
 0x323   : > { %3808 = vmatpush1.bf16.msra.mxu0 %v3807_v7 }
 0x324   : > { %3810 = vmatprep.subr.bf16.mxu0 %v3809_v9 }
 0x325   : > { %v1579_v28 = vpop.f32.mrb[2].mxu1 }
 0x326   : > { %v1778_v29 = vmul.f32 %v1696_v15, %v1579_v28  ;;  %v1581_v30 = vpop.f32.mrb[3].mxu1  ;;  %v1688_v3 = vmul.f32 %v1671_v60, %v1579_v28  ;;  %v2102_v28 = vld [vmem:[%s7669_s7 + $0x160] sm:$0xff] }
 0x327   : > { %3812 = vmatpush1.bf16.msra.mxu0 %v3811_v20  ;;  %v1779_v32 = vmul.f32 %v1700_v23, %v1581_v30  ;;  %v1689_v18 = vmul.f32 %v1675_v54, %v1581_v30  ;;  %v2103_v20 = vld [vmem:[%s7669_s7 + $0x168] sm:$0xff] }
 0x328   : > { %3814 = vmatprep.subr.bf16.mxu0 %v3813_v16  ;;  %v2166_v16 = vld [vmem:[%s7669_s7 + $0x360] sm:$0xff] }
 0x329   : > { %v1585_v27 = vpop.f32.mrb[4].mxu1 }
 0x32a   : > { %v1713_v26 = vmul.f32 %v1696_v15, %v1585_v27  ;;  %v1774_v62 = vmul.f32 %v1671_v60, %v1585_v27  ;;  %v1587_v63 = vpop.f32.mrb[5].mxu1  ;;  %v2172_v60 = vld [vmem:[%s7669_s7 + $0x390] sm:$0xff]  ;;  %v2175_v27 = vld [vmem:[%s7669_s7 + $0x3a8] sm:$0xff] }
 0x32b   : > { %3816 = vmatpush1.bf16.msra.mxu0 %v3815_v31  ;;  %v1714_v1 = vmul.f32 %v1700_v23, %v1587_v63  ;;  %v1775_v4 = vmul.f32 %v1675_v54, %v1587_v63  ;;  %v2105_v23 = vld [vmem:[%s7669_s7 + $0x178] sm:$0xff]  ;;  %v3899_v31 = vpack.c.bf16 %v2168_v25, %v2166_v16  ;;  %v2106_v54 = vld [vmem:[%s7669_s7 + $0x180] sm:$0xff]  ;;  %v2111_v63 = vld [vmem:[%s7669_s7 + $0x1a8] sm:$0xff] }
 0x32c   : > { %3818 = vmatprep.subr.bf16.mxu0 %v3817_v34  ;;  %v1717_v6 = vsub.f32 %v1688_v3, %v1713_v26  ;;  %v1782_v7 = vadd.f32 %v1778_v29, %v1774_v62  ;;  %v3833_v22 = vpack.c.bf16 %v2105_v23, %v2103_v20  ;;  %v2104_v29 = vld [vmem:[%s7669_s7 + $0x170] sm:$0xff]  ;;  %v2177_v26 = vld [vmem:[%s7669_s7 + $0x3b8] sm:$0xff]  ;;  %v2179_v23 = vld [vmem:[%s7669_s7 + $0x3c8] sm:$0xff] }
 0x32d   : > { %v1718_v9 = vsub.f32 %v1689_v18, %v1714_v1  ;;  %v1783_v10 = vadd.f32 %v1779_v32, %v1775_v4  ;;  %v3835_v34 = vpack.c.bf16 %v2104_v29, %v2102_v28  ;;  %3900 = vmatpush1.bf16.msra.mxu1 %v3899_v31  ;;  %v2108_v18 = vld [vmem:[%s7669_s7 + $0x190] sm:$0xff]  ;;  %v2113_v1 = vld [vmem:[%s7669_s7 + $0x1b8] sm:$0xff]  ;;  %v2115_v29 = vld [vmem:[%s7669_s7 + $0x1c8] sm:$0xff] }
 0x32e   : > { %v1742_v11 = vadd.f32 %v1725_v0, %v1717_v6  ;;  %v1807_v12 = vadd.f32 %v1790_v24, %v1782_v7  ;;  %3902 = vmatprep.subr.bf16.mxu1 %v3901_v57  ;;  %v3839_v62 = vpack.c.bf16 %v2108_v18, %v2106_v54  ;;  %v3905_v24 = vpack.c.bf16 %v2177_v26, %v2175_v27  ;;  %v2176_v7 = vld [vmem:[%s7669_s7 + $0x3b0] sm:$0xff]  ;;  %v2181_v16 = vld [vmem:[%s7669_s7 + $0x3d8] sm:$0xff]  ;;  %v2178_v31 = vld [vmem:[%s7669_s7 + $0x3c0] sm:$0xff] }
 0x32f   : > { %3820 = vmatpush1.bf16.msra.mxu0 %v3819_v38  ;;  %v1743_v13 = vadd.f32 %v1729_v2, %v1718_v9  ;;  %v1808_v15 = vadd.f32 %v1794_v5, %v1783_v10  ;;  %v2174_v2 = vld [vmem:[%s7669_s7 + $0x3a0] sm:$0xff]  ;;  %v3841_v6 = vpack.c.bf16 %v2113_v1, %v2111_v63  ;;  %v2112_v10 = vld [vmem:[%s7669_s7 + $0x1b0] sm:$0xff]  ;;  %v3909_v28 = vpack.c.bf16 %v2181_v16, %v2179_v23  ;;  %v2121_v54 = vld [vmem:[%s7669_s7 + $0x1f8] sm:$0xff] }
 0x330   : > { %3822 = vmatprep.subr.bf16.mxu0 %v3821_v39  ;;  %v1746_v17 = vmax.f32 %v1742_v11, 0.0  ;;  %v1811_v21 = vmax.f32 %v1807_v12, 0.0  ;;  %v2110_v9 = vld [vmem:[%s7669_s7 + $0x1a0] sm:$0xff]  ;;  %v3907_v12 = vpack.c.bf16 %v2176_v7, %v2174_v2  ;;  %v2189_v7 = vld [vmem:[%s7669_s7 + $0x418] sm:$0xff] }
 0x331   : > { %v1747_v30 = vmax.f32 %v1743_v13, 0.0  ;;  %v1812_v32 = vmax.f32 %v1808_v15, 0.0  ;;  %v3843_v13 = vpack.c.bf16 %v2112_v10, %v2110_v9  ;;  %v2118_v26 = vld [vmem:[%s7669_s7 + $0x1e0] sm:$0xff] }
 0x332   : > { %vm1750_vm15 = vcmp.gt.f32.partialorder %v1746_v17, 0.01  ;;  %vm1758_vm0 = vcmp.lt.f32.partialorder %v1746_v17, -0.01  ;;  %v3354_v35 = vadd.f32 -0.01, %v1746_v17 }
 0x333   : > { %3824 = vmatpush1.bf16.msra.mxu0 %v3823_v44  ;;  %v1762_v14 = vadd.f32 0.01, %v1746_v17  ;;  %vm1815_vm1 = vcmp.gt.f32.partialorder %v1811_v21, 0.01  ;;  %v3358_v36 = vadd.f32 -0.01, %v1811_v21 }
 0x334   : > { %3826 = vmatprep.subr.bf16.mxu0 %v3825_v50  ;;  %vm1823_vm2 = vcmp.lt.f32.partialorder %v1811_v21, -0.01  ;;  %v1827_v37 = vadd.f32 0.01, %v1811_v21  ;;  %v3355_v39 = vadd.f32 -0.01, %v1747_v30 }
 0x335   : > { %v1766_v38 = vsel %vm1758_vm0, %v1762_v14, 0.0  ;;  %vm1759_vm3 = vcmp.lt.f32.partialorder %v1747_v30, -0.01  ;;  %vm1751_vm4 = vcmp.gt.f32.partialorder %v1747_v30, 0.01 }
 0x336   : > { %v1831_v40 = vsel %vm1823_vm2, %v1827_v37, 0.0  ;;  %v1763_v41 = vadd.f32 0.01, %v1747_v30  ;;  %vm1816_vm5 = vcmp.gt.f32.partialorder %v1812_v32, 0.01  ;;  %v6145_v44 = vsel %vm1750_vm15, %v3354_v35, %v1766_v38  ;;  %v2117_v30 = vld [vmem:[%s7669_s7 + $0x1d8] sm:$0xff] }
 0x337   : > { %3828 = vmatpush1.bf16.msra.mxu0 %v3827_v55  ;;  %vm1824_vm6 = vcmp.lt.f32.partialorder %v1812_v32, -0.01  ;;  %v1828_v43 = vadd.f32 0.01, %v1812_v32  ;;  %v3359_v45 = vadd.f32 -0.01, %v1812_v32  ;;  %v6177_v0 = vsel %vm1815_vm1, %v3358_v36, %v1831_v40 }
 0x338   : > { %3830 = vmatprep.subr.bf16.mxu0 %v3829_v56  ;;  %v1767_v50 = vsel %vm1759_vm3, %v1763_v41, 0.0  ;;  %v1840_v4 = vrot.slane %v6145_v44, 1  ;;  %v1844_v20 = vrot.slane %v6145_v44, 3  ;;  %v1848_v32 = vrot.slane %v6145_v44, 5  ;;  %v2180_v36 = vld [vmem:[%s7669_s7 + $0x3d0] sm:$0xff]  ;;  %v2114_v37 = vld [vmem:[%s7669_s7 + $0x1c0] sm:$0xff] }
 0x339   : > { %v6156_v55 = vsel %vm1751_vm4, %v3355_v39, %v1767_v50  ;;  %v1832_v56 = vsel %vm1824_vm6, %v1828_v43, 0.0  ;;  %v1846_v35 = vrot.slane %v6145_v44, 4  ;;  %v3845_v14 = vpack.c.bf16 %v2117_v30, %v2115_v29  ;;  %v2116_v38 = vld [vmem:[%s7669_s7 + $0x1d0] sm:$0xff] }
 0x33a   : > { %v6190_v5 = vsel %vm1816_vm5, %v3359_v45, %v1832_v56  ;;  %v1876_v11 = vrot.slane %v6156_v55, 7  ;;  %v6204_v15 = vsel %vm2007_vm7, %v1840_v4, %v6156_v55  ;;  %v3364_v17 = vrot.slane %v6156_v55, 10 }
 0x33b   : > { %3832 = vmatpush1.bf16.msra.mxu0 %v3831_v58  ;;  %v2170_v58 = vld [vmem:[%s7669_s7 + $0x380] sm:$0xff]  ;;  %v3363_v25 = vrot.slane %v6156_v55, 9  ;;  %v3365_v41 = vrot.slane %v6156_v55, 11  ;;  %v3911_v42 = vpack.c.bf16 %v2180_v36, %v2178_v31  ;;  %v3847_v43 = vpack.c.bf16 %v2116_v38, %v2114_v37 }
 0x33c   : > { %3834 = vmatprep.subr.bf16.mxu0 %v3833_v22  ;;  %v3903_v3 = vpack.c.bf16 %v2172_v60, %v2170_v58  ;;  %v6216_v21 = vsel %vm2007_vm7, %v6145_v44, %v1876_v11  ;;  %v1842_v22 = vrot.slane %v6145_v44, 2  ;;  %v6242_v39 = vsel %vm2007_vm7, %v1844_v20, %v3364_v17  ;;  %v2119_v60 = vld [vmem:[%s7669_s7 + $0x1e8] sm:$0xff] }
 0x33d   : > { %v1852_v45 = vrot.slane %v6145_v44, 7  ;;  %v6259_v53 = vsel %vm2007_vm7, %v1846_v35, %v3365_v41  ;;  %v1923_v56 = vrot.slane %v1876_v11, 7  ;;  %v1850_v57 = vrot.slane %v6145_v44, 6 }
 0x33e   : > { %3904 = vmatpush1.bf16.msra.mxu1 %v3903_v3  ;;  %v6245_v40 = vsel %vm2007_vm7, %v1842_v22, %v3363_v25  ;;  %v3913_v58 = vpack.c.bf16 %v2185_v52, %v2183_v51  ;;  %v2182_v3 = vld [vmem:[%s7669_s7 + $0x3e0] sm:$0xff]  ;;  %v1855_v18 = vrot.slane %v6177_v0, 1  ;;  %v1884_v27 = vrot.slane %v6190_v5, 7 }
 0x33f   : > { %3836 = vmatpush1.bf16.msra.mxu0 %v3835_v34  ;;  %3906 = vmatprep.subr.bf16.mxu1 %v3905_v24  ;;  %v3366_v34 = vrot.slane %v6156_v55, 12  ;;  %v3849_v44 = vpack.c.bf16 %v2121_v54, %v2119_v60  ;;  %v6284_v24 = vsel %vm2007_vm7, %v1852_v45, %v1923_v56  ;;  %v1859_v10 = vrot.slane %v6177_v0, 3 }
 0x340   : > { %3838 = vmatprep.subr.bf16.mxu0 %v3837_v47  ;;  %v3367_v47 = vrot.slane %v6156_v55, 13  ;;  %v2184_v55 = vld [vmem:[%s7669_s7 + $0x3f0] sm:$0xff]  ;;  %v6291_v4 = vsel %vm2007_vm7, %v1855_v18, %v6190_v5  ;;  %v6301_v9 = vsel %vm2007_vm7, %v6177_v0, %v1884_v27  ;;  %v3370_v11 = vrot.slane %v6190_v5, 10 }
 0x341   : > { %v6249_v50 = vsel %vm2007_vm7, %v1848_v32, %v3366_v34  ;;  %v3915_v1 = vpack.c.bf16 %v2184_v55, %v2182_v3  ;;  %v3369_v20 = vrot.slane %v6190_v5, 9  ;;  %v1863_v16 = vrot.slane %v6177_v0, 5 }
 0x342   : > { %3908 = vmatpush1.bf16.msra.mxu1 %v3907_v12  ;;  %v6287_v63 = vsel %vm2007_vm7, %v1850_v57, %v3367_v47  ;;  %v1857_v12 = vrot.slane %v6177_v0, 2  ;;  %v6308_v23 = vsel %vm2007_vm7, %v1859_v10, %v3370_v11  ;;  %v3372_v17 = vrot.slane %v6190_v5, 12 }
 0x343   : > { %3840 = vmatpush1.bf16.msra.mxu0 %v3839_v62  ;;  %3910 = vmatprep.subr.bf16.mxu1 %v3909_v28  ;;  %v2120_v62 = vld [vmem:[%s7669_s7 + $0x1f0] sm:$0xff]  ;;  %v1861_v25 = vrot.slane %v6177_v0, 4  ;;  %v3371_v28 = vrot.slane %v6190_v5, 11  ;;  %v1867_v29 = vrot.slane %v6177_v0, 7  ;;  %v1930_v30 = vrot.slane %v1884_v27, 7 }
 0x344   : > { %3842 = vmatprep.subr.bf16.mxu0 %v3841_v6  ;;  %v3851_v2 = vpack.c.bf16 %v2120_v62, %v2118_v26  ;;  %v2187_v6 = vld [vmem:[%s7669_s7 + $0x408] sm:$0xff]  ;;  %v6313_v22 = vsel %vm2007_vm7, %v1857_v12, %v3369_v20  ;;  %v1865_v31 = vrot.slane %v6177_v0, 6  ;;  %v3373_v32 = vrot.slane %v6190_v5, 13  ;;  %v2193_v20 = vld [vmem:[%s7669_s7 + $0x438] sm:$0xff] }
 0x345   : > { %v6321_v34 = vsel %vm2007_vm7, %v1863_v16, %v3372_v17  ;;  %v6324_v35 = vsel %vm2007_vm7, %v1861_v25, %v3371_v28  ;;  %v1704_v37 = vrot.slane %v6024_v8, %v4949_v33  ;;  %v1708_v0 = vrot.slane %v6024_v8, %v4779_v49 }
 0x346   : > { %3912 = vmatpush1.bf16.msra.mxu1 %v3911_v42  ;;  %v6330_v36 = vsel %vm2007_vm7, %v1865_v31, %v3373_v32  ;;  %v1679_v5 = vrot.slane %v6099_v59, %v4949_v33  ;;  %v1733_v52 = vrot.slane %v6108_v19, %v4949_v33  ;;  %v1798_v56 = vrot.slane %v6113_v61, %v4949_v33 }
 0x347   : > { %3844 = vmatpush1.bf16.msra.mxu0 %v3843_v13  ;;  %3914 = vmatprep.subr.bf16.mxu1 %v3913_v58  ;;  %v3917_v13 = vpack.c.bf16 %v2189_v7, %v2187_v6  ;;  %v1737_v60 = vrot.slane %v6108_v19, %v4779_v49  ;;  %v2186_v19 = vld [vmem:[%s7669_s7 + $0x400] sm:$0xff] }
 0x348   : > { %3846 = vmatprep.subr.bf16.mxu0 %v3845_v14  ;;  %v6327_v14 = vsel %vm2007_vm7, %v1867_v29, %v1930_v30 }
 0x34a   : > { %3916 = vmatpush1.bf16.msra.mxu1 %v3915_v1 }
 0x34b   : > { %3848 = vmatpush1.bf16.msra.mxu0 %v3847_v43  ;;  %3918 = vmatprep.subr.bf16.mxu1 %v3917_v13  ;;  %v1683_v43 = vrot.slane %v6099_v59, %v4779_v49  ;;  %v1802_v59 = vrot.slane %v6113_v61, %v4779_v49  ;;  %v2188_v49 = vld [vmem:[%s7669_s7 + $0x410] sm:$0xff]  ;;  %v6357_v61 = vld [vmem:[%s7669_s7 + $0x428] sm:$0xff] }
 0x34c   : > { %3850 = vmatprep.subr.bf16.mxu0 %v3849_v44  ;;  %v3919_v29 = vpack.c.bf16 %v2188_v49, %v2186_v19 }
 0x34f   : > { %3852 = vmatpush1.bf16.msra.mxu0 %v3851_v2 }
 0x3e5   : > { %v1656_v38 = vpop.f32.mrb[8].mxu0 }
 0x3e6   : > { %v1780_v41 = vmul.f32 %v1704_v37, %v1656_v38  ;;  %v1658_v42 = vpop.f32.mrb[9].mxu0  ;;  %v1690_v57 = vmul.f32 %v1679_v5, %v1656_v38 }
 0x3e7   : > { %v1781_v45 = vmul.f32 %v1708_v0, %v1658_v42  ;;  %v1691_v54 = vmul.f32 %v1683_v43, %v1658_v42 }
 0x3e9   : > { %v1662_v51 = vpop.f32.mrb[10].mxu0 }
 0x3ea   : > { %v1715_v47 = vmul.f32 %v1704_v37, %v1662_v51  ;;  %v1776_v8 = vmul.f32 %v1679_v5, %v1662_v51  ;;  %v1664_v58 = vpop.f32.mrb[11].mxu0 }
 0x3eb   : > { %v1716_v3 = vmul.f32 %v1708_v0, %v1664_v58  ;;  %v1777_v18 = vmul.f32 %v1683_v43, %v1664_v58  ;;  %v3921_v0 = vpack.c.bf16 %v2193_v20, %v6357_v61  ;;  %v2199_v20 = vld [vmem:[%s7669_s7 + $0x468] sm:$0xff] }
 0x3ec   : > { %v1719_v27 = vsub.f32 %v1690_v57, %v1715_v47  ;;  %v1784_v44 = vadd.f32 %v1780_v41, %v1776_v8 }
 0x3ed   : > { %v1720_v55 = vsub.f32 %v1691_v54, %v1716_v3  ;;  %v1785_v26 = vadd.f32 %v1781_v45, %v1777_v18 }
 0x3ee   : > { %v1744_v62 = vadd.f32 %v1733_v52, %v1719_v27  ;;  %v1809_v1 = vadd.f32 %v1798_v56, %v1784_v44 }
 0x3ef   : > { %v1745_v33 = vadd.f32 %v1737_v60, %v1720_v55  ;;  %v1810_v2 = vadd.f32 %v1802_v59, %v1785_v26  ;;  %v2197_v26 = vld [vmem:[%s7669_s7 + $0x458] sm:$0xff] }
 0x3f0   : > { %v1748_v6 = vmax.f32 %v1744_v62, 0.0  ;;  %v1813_v7 = vmax.f32 %v1809_v1, 0.0 }
 0x3f1   : > { %v1749_v10 = vmax.f32 %v1745_v33, 0.0  ;;  %v1814_v13 = vmax.f32 %v1810_v2, 0.0 }
 0x3f2   : > { %v3356_v11 = vadd.f32 -0.01, %v1748_v6  ;;  %vm1760_vm10 = vcmp.lt.f32.partialorder %v1748_v6, -0.01  ;;  %vm1752_vm11 = vcmp.gt.f32.partialorder %v1748_v6, 0.01 }
 0x3f3   : > { %v1764_v12 = vadd.f32 0.01, %v1748_v6  ;;  %v3360_v16 = vadd.f32 -0.01, %v1813_v7  ;;  %vm1825_vm12 = vcmp.lt.f32.partialorder %v1813_v7, -0.01 }
 0x3f4   : > { %v1829_v17 = vadd.f32 0.01, %v1813_v7  ;;  %vm1817_vm13 = vcmp.gt.f32.partialorder %v1813_v7, 0.01  ;;  %v3357_v28 = vadd.f32 -0.01, %v1749_v10 }
 0x3f5   : > { %v1768_v25 = vsel %vm1760_vm10, %v1764_v12, 0.0  ;;  %vm1761_vm14 = vcmp.lt.f32.partialorder %v1749_v10, -0.01  ;;  %vm1753_vm15 = vcmp.gt.f32.partialorder %v1749_v10, 0.01  ;;  %v2196_v7 = vld [vmem:[%s7669_s7 + $0x450] sm:$0xff] }
 0x3f6   : > { %v1772_v30 = vsel %vm1752_vm11, %v3356_v11, %v1768_v25  ;;  %v1833_v31 = vsel %vm1825_vm12, %v1829_v17, 0.0  ;;  %v1765_v32 = vadd.f32 0.01, %v1749_v10  ;;  %vm1818_vm0 = vcmp.gt.f32.partialorder %v1814_v13, 0.01  ;;  %v2194_v11 = vld [vmem:[%s7669_s7 + $0x440] sm:$0xff] }
 0x3f7   : > { %vm1826_vm1 = vcmp.lt.f32.partialorder %v1814_v13, -0.01  ;;  %v1830_v37 = vadd.f32 0.01, %v1814_v13  ;;  %v3374_v5 = vrot.slane %v1772_v30, 7  ;;  %v3376_v41 = vrot.slane %v1772_v30, 9 }
 0x3f8   : > { %v1769_v38 = vsel %vm1761_vm14, %v1765_v32, 0.0  ;;  %v1891_v42 = vrot.slane %v1772_v30, 6  ;;  %v3361_v45 = vadd.f32 -0.01, %v1814_v13  ;;  %v2027_v51 = vsel %vm2024_vm8, %v6245_v40, %v1772_v30 }
 0x3f9   : > { %v1773_v43 = vsel %vm1753_vm15, %v3357_v28, %v1769_v38  ;;  %v3378_v52 = vrot.slane %v1772_v30, 11  ;;  %v1834_v56 = vsel %vm1826_vm1, %v1830_v37, 0.0  ;;  %v2026_v47 = vsel %vm2024_vm8, %v6204_v15, %v3374_v5  ;;  %v2190_v15 = vld [vmem:[%s7669_s7 + $0x420] sm:$0xff] }
 0x3fa   : > { %v3386_v57 = vrot.slane %v1773_v43, 6  ;;  %v2028_v8 = vsel %vm2024_vm8, %v6242_v39, %v3376_v41  ;;  %v1906_v60 = vrot.slane %v1773_v43, 5  ;;  %v2025_v54 = vsel %vm2024_vm8, %v6216_v21, %v1891_v42  ;;  %v2192_v39 = vld [vmem:[%s7669_s7 + $0x430] sm:$0xff] }
 0x3fb   : > { %v2045_v58 = vsel %vm2041_vm9, %v2028_v8, %v1773_v43  ;;  %v3387_v3 = vrot.slane %v1773_v43, 7  ;;  %v2030_v40 = vsel %vm2024_vm8, %v6249_v50, %v3378_v52  ;;  %v3377_v59 = vrot.slane %v1772_v30, 10  ;;  %v2195_v50 = vld [vmem:[%s7669_s7 + $0x448] sm:$0xff] }
 0x3fc   : > { %v2043_v18 = vsel %vm2041_vm9, %v2026_v47, %v3386_v57  ;;  %2781 = vmatprep.mubr.f32.mxu1 %v2045_v58  ;;  %v3389_v27 = vrot.slane %v1773_v43, 9  ;;  %v2042_v21 = vsel %vm2041_vm9, %v2025_v54, %v1906_v60  ;;  %v1981_v55 = vrot.slane %v1906_v60, 5 }
 0x3fd   : > { %2710 = vmatprep.mubr.f32.mxu0 %v2043_v18  ;;  %v2044_v44 = vsel %vm2041_vm9, %v2027_v51, %v3387_v3  ;;  %v3379_v62 = vrot.slane %v1772_v30, 13  ;;  %v6390_v1 = vsel %vm1817_vm13, %v3360_v16, %v1833_v31  ;;  %v6393_v33 = vsel %vm1818_vm0, %v3361_v45, %v1834_v56  ;;  %v2201_v16 = vld [vmem:[%s7669_s7 + $0x478] sm:$0xff]  ;;  %v2200_v30 = vld [vmem:[%s7669_s7 + $0x470] sm:$0xff]  ;;  %v2203_v51 = vld [vmem:[%s7669_s7 + $0x488] sm:$0xff] }
 0x3fe   : > { %2711 = vmatmul.mubr.f32.vlgmr.msra.gmra.mrb[12].mxu0 %v2042_v21  ;;  %2782 = vmatmul.mubr.f32.vlgmr.msra.gmra.mrb[8].mxu1 %v2044_v44  ;;  %v2029_v2 = vsel %vm2024_vm8, %v6259_v53, %v3377_v59  ;;  %v3391_v6 = vrot.slane %v1773_v43, 12  ;;  %v2047_v10 = vsel %vm2041_vm9, %v2030_v40, %v1981_v55  ;;  %v3923_v19 = vpack.c.bf16 %v2192_v39, %v2190_v15  ;;  %v2202_v18 = vld [vmem:[%s7669_s7 + $0x480] sm:$0xff]  ;;  %v2204_v40 = vld [vmem:[%s7669_s7 + $0x490] sm:$0xff]  ;;  %v2207_v59 = vld [vmem:[%s7669_s7 + $0x4a8] sm:$0xff] }
 0x3ff   : > { %3920 = vmatpush1.bf16.msra.mxu1 %v3919_v29  ;;  %v6405_v49 = vsel %vm2041_vm9, %v2029_v2, %v3389_v27  ;;  %v2032_v61 = vsel %vm2024_vm8, %v6284_v24, %v3379_v62  ;;  %2852 = vmatprep.mubr.f32.mxu1 %v2047_v10  ;;  %v3925_v53 = vpack.c.bf16 %v2197_v26, %v2195_v50  ;;  %v1952_v13 = vrot.slane %v1891_v42, 6  ;;  %v2198_v29 = vld [vmem:[%s7669_s7 + $0x460] sm:$0xff]  ;;  %v2209_v27 = vld [vmem:[%s7669_s7 + $0x4b8] sm:$0xff] }
 0x400   : > { %3922 = vmatprep.subr.bf16.mxu1 %v3921_v0  ;;  %v6410_v12 = vsel %vm2041_vm9, %v2032_v61, %v3391_v6  ;;  %v3390_v17 = vrot.slane %v1773_v43, 11  ;;  %v3380_v25 = vrot.slane %v6390_v1, 7  ;;  %v3392_v24 = vrot.slane %v6393_v33, 6  ;;  %v2211_v6 = vld [vmem:[%s7669_s7 + $0x4c8] sm:$0xff] }
 0x401   : > { %v3927_v28 = vpack.c.bf16 %v2196_v7, %v2194_v11  ;;  %v2031_v31 = vsel %vm2024_vm8, %v6287_v63, %v1952_v13  ;;  %v1899_v32 = vrot.slane %v6390_v1, 6  ;;  %v1914_v38 = vrot.slane %v6393_v33, 5  ;;  %v2210_v11 = vld [vmem:[%s7669_s7 + $0x4c0] sm:$0xff]  ;;  %v2212_v7 = vld [vmem:[%s7669_s7 + $0x4d0] sm:$0xff]  ;;  %v2215_v61 = vld [vmem:[%s7669_s7 + $0x4e8] sm:$0xff] }
 0x402   : > { %v6430_v37 = vsel %vm2041_vm9, %v2031_v31, %v3390_v17  ;;  %v2034_v0 = vsel %vm2024_vm8, %v6291_v4, %v3380_v25  ;;  %v3382_v5 = vrot.slane %v6390_v1, 9  ;;  %v3929_v41 = vpack.c.bf16 %v2201_v16, %v2199_v20  ;;  %v2205_v4 = vld [vmem:[%s7669_s7 + $0x498] sm:$0xff]  ;;  %v6525_v20 = vpop.f32.mrb[6].mxu1  ;;  %v2214_v17 = vld [vmem:[%s7669_s7 + $0x4e0] sm:$0xff]  ;;  %v2216_v25 = vld [vmem:[%s7669_s7 + $0x4f0] sm:$0xff] }
 0x403   : > { %3924 = vmatpush1.bf16.msra.mxu1 %v3923_v19  ;;  %v6437_v42 = vsel %vm2041_vm9, %v2034_v0, %v3392_v24  ;;  %v2033_v63 = vsel %vm2024_vm8, %v6301_v9, %v1899_v32  ;;  %v3393_v43 = vrot.slane %v6393_v33, 7  ;;  %v3931_v45 = vpack.c.bf16 %v2200_v30, %v2198_v29  ;;  %v6533_v24 = vpop.f32.mrb[7].mxu1  ;;  %v2221_v29 = vld [vmem:[%s7669_s7 + $0x518] sm:$0xff]  ;;  %v2220_v0 = vld [vmem:[%s7669_s7 + $0x510] sm:$0xff] }
 0x404   : > { %3926 = vmatprep.subr.bf16.mxu1 %v3925_v53  ;;  %v6449_v52 = vsel %vm2041_vm9, %v2033_v63, %v1914_v38  ;;  %v2036_v56 = vsel %vm2024_vm8, %v6308_v23, %v3382_v5  ;;  %v2035_v9 = vsel %vm2024_vm8, %v6313_v22, %v6390_v1  ;;  %v3384_v8 = vrot.slane %v6390_v1, 11  ;;  %v2217_v53 = vld [vmem:[%s7669_s7 + $0x4f8] sm:$0xff] }
 0x405   : > { %v6458_v57 = vsel %vm2041_vm9, %v2036_v56, %v6393_v33  ;;  %v6461_v47 = vsel %vm2041_vm9, %v2035_v9, %v3393_v43  ;;  %v1988_v58 = vrot.slane %v1914_v38, 5  ;;  %v3383_v60 = vrot.slane %v6390_v1, 10  ;;  %v2223_v38 = vld [vmem:[%s7669_s7 + $0x528] sm:$0xff]  ;;  %v2225_v5 = vld [vmem:[%s7669_s7 + $0x538] sm:$0xff]  ;;  %v2222_v43 = vld [vmem:[%s7669_s7 + $0x520] sm:$0xff] }
 0x406   : > { %v3395_v54 = vrot.slane %v6393_v33, 9  ;;  %v3385_v23 = vrot.slane %v6390_v1, 13  ;;  %v3397_v3 = vrot.slane %v6393_v33, 12  ;;  %v3933_v22 = vpack.c.bf16 %v2205_v4, %v2203_v51  ;;  %v2227_v51 = vld [vmem:[%s7669_s7 + $0x548] sm:$0xff]  ;;  %v2229_v4 = vld [vmem:[%s7669_s7 + $0x558] sm:$0xff] }
 0x407   : > { %3928 = vmatpush1.bf16.msra.mxu1 %v3927_v28  ;;  %v2038_v15 = vsel %vm2024_vm8, %v6321_v34, %v3384_v8  ;;  %v1959_v39 = vrot.slane %v1899_v32, 6  ;;  %v2037_v44 = vsel %vm2024_vm8, %v6324_v35, %v3383_v60  ;;  %v3396_v34 = vrot.slane %v6393_v33, 11  ;;  %v2208_v33 = vld [vmem:[%s7669_s7 + $0x4b0] sm:$0xff]  ;;  %v2219_v28 = vld [vmem:[%s7669_s7 + $0x508] sm:$0xff]  ;;  %v2218_v32 = vld [vmem:[%s7669_s7 + $0x500] sm:$0xff] }
 0x408   : > { %3930 = vmatprep.subr.bf16.mxu1 %v3929_v41  ;;  %v6483_v21 = vsel %vm2041_vm9, %v2038_v15, %v1988_v58  ;;  %v2040_v55 = vsel %vm2024_vm8, %v6327_v14, %v3385_v23  ;;  %v6491_v50 = vsel %vm2041_vm9, %v2037_v44, %v3395_v54  ;;  %v3935_v1 = vpack.c.bf16 %v2204_v40, %v2202_v18  ;;  %v2206_v14 = vld [vmem:[%s7669_s7 + $0x4a0] sm:$0xff]  ;;  %v2228_v58 = vld [vmem:[%s7669_s7 + $0x550] sm:$0xff]  ;;  %v2231_v60 = vld [vmem:[%s7669_s7 + $0x568] sm:$0xff] }
 0x409   : > { %v6494_v26 = vsel %vm2041_vm9, %v2040_v55, %v3397_v3  ;;  %v2039_v62 = vsel %vm2024_vm8, %v6330_v36, %v1959_v39  ;;  %v3937_v35 = vpack.c.bf16 %v2209_v27, %v2207_v59  ;;  %v2213_v36 = vld [vmem:[%s7669_s7 + $0x4d8] sm:$0xff]  ;;  %v3939_v10 = vpack.c.bf16 %v2208_v33, %v2206_v14  ;;  %v2226_v8 = vld [vmem:[%s7669_s7 + $0x540] sm:$0xff]  ;;  %v2232_v18 = vld [vmem:[%s7669_s7 + $0x570] sm:$0xff] }
 0x40a   : > { %v6499_v2 = vsel %vm2041_vm9, %v2039_v62, %v3396_v34  ;;  %v3941_v19 = vpack.c.bf16 %v2213_v36, %v2211_v6  ;;  %v3943_v13 = vpack.c.bf16 %v2212_v7, %v2210_v11  ;;  %v3945_v16 = vpack.c.bf16 %v2217_v53, %v2215_v61  ;;  %v2233_v54 = vld [vmem:[%s7669_s7 + $0x578] sm:$0xff]  ;;  %v2235_v40 = vld [vmem:[%s7669_s7 + $0x588] sm:$0xff]  ;;  %v2234_v27 = vld [vmem:[%s7669_s7 + $0x580] sm:$0xff] }
 0x40b   : > { %3932 = vmatpush1.bf16.msra.mxu1 %v3931_v45  ;;  %v3947_v30 = vpack.c.bf16 %v2216_v25, %v2214_v17  ;;  %v3949_v31 = vpack.c.bf16 %v2221_v29, %v2219_v28  ;;  %v3951_v41 = vpack.c.bf16 %v2220_v0, %v2218_v32  ;;  %v3953_v63 = vpack.c.bf16 %v2225_v5, %v2223_v38  ;;  %v2224_v45 = vld [vmem:[%s7669_s7 + $0x530] sm:$0xff]  ;;  %v2237_v15 = vld [vmem:[%s7669_s7 + $0x598] sm:$0xff]  ;;  %v2239_v55 = vld [vmem:[%s7669_s7 + $0x5a8] sm:$0xff] }
 0x40c   : > { %3934 = vmatprep.subr.bf16.mxu1 %v3933_v22  ;;  %v3955_v56 = vpack.c.bf16 %v2224_v45, %v2222_v43  ;;  %v3957_v9 = vpack.c.bf16 %v2229_v4, %v2227_v51  ;;  %v3959_v23 = vpack.c.bf16 %v2228_v58, %v2226_v8  ;;  %v3961_v3 = vpack.c.bf16 %v2233_v54, %v2231_v60  ;;  %v2230_v22 = vld [vmem:[%s7669_s7 + $0x560] sm:$0xff]  ;;  %v2236_v44 = vld [vmem:[%s7669_s7 + $0x590] sm:$0xff]  ;;  %v2241_v34 = vld [vmem:[%s7669_s7 + $0x5b8] sm:$0xff] }
 0x40d   : > { %v3963_v39 = vpack.c.bf16 %v2232_v18, %v2230_v22  ;;  %v3965_v59 = vpack.c.bf16 %v2237_v15, %v2235_v40  ;;  %v3967_v62 = vpack.c.bf16 %v2236_v44, %v2234_v27  ;;  %v2240_v14 = vld [vmem:[%s7669_s7 + $0x5b0] sm:$0xff]  ;;  %v2243_v33 = vld [vmem:[%s7669_s7 + $0x5c8] sm:$0xff]  ;;  %v2245_v6 = vld [vmem:[%s7669_s7 + $0x5d8] sm:$0xff] }
 0x40e   : > { %v2244_v11 = vld [vmem:[%s7669_s7 + $0x5d0] sm:$0xff]  ;;  %v2247_v7 = vld [vmem:[%s7669_s7 + $0x5e8] sm:$0xff]  ;;  %v2249_v61 = vld [vmem:[%s7669_s7 + $0x5f8] sm:$0xff] }
 0x40f   : > { %3936 = vmatpush1.bf16.msra.mxu1 %v3935_v1  ;;  %v3969_v1 = vpack.c.bf16 %v2241_v34, %v2239_v55  ;;  %v2248_v17 = vld [vmem:[%s7669_s7 + $0x5f0] sm:$0xff]  ;;  %v2251_v25 = vld [vmem:[%s7669_s7 + $0x608] sm:$0xff]  ;;  %v2253_v28 = vld [vmem:[%s7669_s7 + $0x618] sm:$0xff] }
 0x410   : > { %3938 = vmatprep.subr.bf16.mxu1 %v3937_v35  ;;  %v2238_v35 = vld [vmem:[%s7669_s7 + $0x5a0] sm:$0xff]  ;;  %v2252_v32 = vld [vmem:[%s7669_s7 + $0x610] sm:$0xff]  ;;  %v2255_v0 = vld [vmem:[%s7669_s7 + $0x628] sm:$0xff] }
 0x411   : > { %v3971_v36 = vpack.c.bf16 %v2240_v14, %v2238_v35  ;;  %v2257_v38 = vld [vmem:[%s7669_s7 + $0x638] sm:$0xff]  ;;  %v2256_v43 = vld [vmem:[%s7669_s7 + $0x630] sm:$0xff]  ;;  %v2259_v45 = vld [vmem:[%s7669_s7 + $0x648] sm:$0xff] }
 0x412   : > { %v2261_v51 = vld [vmem:[%s7669_s7 + $0x658] sm:$0xff]  ;;  %v2260_v8 = vld [vmem:[%s7669_s7 + $0x650] sm:$0xff]  ;;  %v2263_v58 = vld [vmem:[%s7669_s7 + $0x668] sm:$0xff] }
 0x413   : > { %3940 = vmatpush1.bf16.msra.mxu1 %v3939_v10  ;;  %v3973_v10 = vpack.c.bf16 %v2245_v6, %v2243_v33  ;;  %v2262_v54 = vld [vmem:[%s7669_s7 + $0x660] sm:$0xff]  ;;  %v2269_v22 = vld [vmem:[%s7669_s7 + $0x698] sm:$0xff] }
 0x414   : > { %3942 = vmatprep.subr.bf16.mxu1 %v3941_v19  ;;  %v2242_v19 = vld [vmem:[%s7669_s7 + $0x5c0] sm:$0xff]  ;;  %v2273_v27 = vld [vmem:[%s7669_s7 + $0x6b8] sm:$0xff] }
 0x415   : > { %v3975_v53 = vpack.c.bf16 %v2244_v11, %v2242_v19  ;;  %v2266_v15 = vld [vmem:[%s7669_s7 + $0x680] sm:$0xff]  ;;  %v2277_v35 = vld [vmem:[%s7669_s7 + $0x6d8] sm:$0xff] }
 0x416   : > { %v2270_v34 = vld [vmem:[%s7669_s7 + $0x6a0] sm:$0xff]  ;;  %v2281_v19 = vld [vmem:[%s7669_s7 + $0x6f8] sm:$0xff] }
 0x417   : > { %3944 = vmatpush1.bf16.msra.mxu1 %v3943_v13  ;;  %v3977_v13 = vpack.c.bf16 %v2249_v61, %v2247_v7  ;;  %v2274_v6 = vld [vmem:[%s7669_s7 + $0x6c0] sm:$0xff] }
 0x418   : > { %3946 = vmatprep.subr.bf16.mxu1 %v3945_v16  ;;  %v2246_v16 = vld [vmem:[%s7669_s7 + $0x5e0] sm:$0xff] }
 0x419   : > { %v3979_v29 = vpack.c.bf16 %v2248_v17, %v2246_v16  ;;  %v2278_v61 = vld [vmem:[%s7669_s7 + $0x6e0] sm:$0xff]  ;;  %v2285_v16 = vld [vmem:[%s7669_s7 + $0x718] sm:$0xff] }
 0x41b   : > { %3948 = vmatpush1.bf16.msra.mxu1 %v3947_v30  ;;  %v3981_v30 = vpack.c.bf16 %v2253_v28, %v2251_v25  ;;  %v2282_v28 = vld [vmem:[%s7669_s7 + $0x700] sm:$0xff] }
 0x41c   : > { %3950 = vmatprep.subr.bf16.mxu1 %v3949_v31  ;;  %v2250_v31 = vld [vmem:[%s7669_s7 + $0x600] sm:$0xff] }
 0x41d   : > { %v3983_v5 = vpack.c.bf16 %v2252_v32, %v2250_v31  ;;  %v2289_v31 = vld [vmem:[%s7669_s7 + $0x738] sm:$0xff] }
 0x41f   : > { %3952 = vmatpush1.bf16.msra.mxu1 %v3951_v41  ;;  %v3985_v41 = vpack.c.bf16 %v2257_v38, %v2255_v0  ;;  %v2286_v38 = vld [vmem:[%s7669_s7 + $0x720] sm:$0xff] }
 0x420   : > { %3954 = vmatprep.subr.bf16.mxu1 %v3953_v63  ;;  %v2254_v63 = vld [vmem:[%s7669_s7 + $0x620] sm:$0xff] }
 0x421   : > { %v3987_v4 = vpack.c.bf16 %v2256_v43, %v2254_v63  ;;  %v2293_v63 = vld [vmem:[%s7669_s7 + $0x758] sm:$0xff] }
 0x423   : > { %3956 = vmatpush1.bf16.msra.mxu1 %v3955_v56  ;;  %v3989_v56 = vpack.c.bf16 %v2261_v51, %v2259_v45  ;;  %v2290_v51 = vld [vmem:[%s7669_s7 + $0x740] sm:$0xff] }
 0x424   : > { %3958 = vmatprep.subr.bf16.mxu1 %v3957_v9  ;;  %v2258_v9 = vld [vmem:[%s7669_s7 + $0x640] sm:$0xff] }
 0x427   : > { %3960 = vmatpush1.bf16.msra.mxu1 %v3959_v23  ;;  %v2264_v23 = vld [vmem:[%s7669_s7 + $0x670] sm:$0xff] }
 0x428   : > { %3962 = vmatprep.subr.bf16.mxu1 %v3961_v3  ;;  %v2267_v3 = vld [vmem:[%s7669_s7 + $0x688] sm:$0xff]  ;;  %v3995_v18 = vpack.c.bf16 %v2264_v23, %v2262_v54  ;;  %v2301_v54 = vld [vmem:[%s7669_s7 + $0x798] sm:$0xff] }
 0x429   : > { %v3997_v40 = vpack.c.bf16 %v2269_v22, %v2267_v3  ;;  %v2298_v22 = vld [vmem:[%s7669_s7 + $0x780] sm:$0xff] }
 0x42b   : > { %3964 = vmatpush1.bf16.msra.mxu1 %v3963_v39  ;;  %v2268_v39 = vld [vmem:[%s7669_s7 + $0x690] sm:$0xff] }
 0x42c   : > { %3966 = vmatprep.subr.bf16.mxu1 %v3965_v59  ;;  %v2271_v59 = vld [vmem:[%s7669_s7 + $0x6a8] sm:$0xff]  ;;  %v3999_v44 = vpack.c.bf16 %v2268_v39, %v2266_v15  ;;  %v2305_v15 = vld [vmem:[%s7669_s7 + $0x7b8] sm:$0xff] }
 0x42d   : > { %v4001_v55 = vpack.c.bf16 %v2273_v27, %v2271_v59  ;;  %v2302_v27 = vld [vmem:[%s7669_s7 + $0x7a0] sm:$0xff] }
 0x42f   : > { %3968 = vmatpush1.bf16.msra.mxu1 %v3967_v62  ;;  %v2272_v62 = vld [vmem:[%s7669_s7 + $0x6b0] sm:$0xff] }
 0x430   : > { %3970 = vmatprep.subr.bf16.mxu1 %v3969_v1  ;;  %v2275_v1 = vld [vmem:[%s7669_s7 + $0x6c8] sm:$0xff]  ;;  %v4003_v14 = vpack.c.bf16 %v2272_v62, %v2270_v34  ;;  %v2309_v34 = vld [vmem:[%s7669_s7 + $0x7d8] sm:$0xff] }
 0x431   : > { %v4005_v33 = vpack.c.bf16 %v2277_v35, %v2275_v1  ;;  %v2306_v35 = vld [vmem:[%s7669_s7 + $0x7c0] sm:$0xff] }
 0x433   : > { %3972 = vmatpush1.bf16.msra.mxu1 %v3971_v36  ;;  %v2276_v36 = vld [vmem:[%s7669_s7 + $0x6d0] sm:$0xff] }
 0x434   : > { %3974 = vmatprep.subr.bf16.mxu1 %v3973_v10  ;;  %v2279_v10 = vld [vmem:[%s7669_s7 + $0x6e8] sm:$0xff]  ;;  %v4007_v11 = vpack.c.bf16 %v2276_v36, %v2274_v6  ;;  %v2313_v6 = vld [vmem:[%s7669_s7 + $0x7f8] sm:$0xff] }
 0x435   : > { %v4009_v7 = vpack.c.bf16 %v2281_v19, %v2279_v10  ;;  %v2310_v19 = vld [vmem:[%s7669_s7 + $0x7e0] sm:$0xff] }
 0x437   : > { %3976 = vmatpush1.bf16.msra.mxu1 %v3975_v53  ;;  %v2280_v53 = vld [vmem:[%s7669_s7 + $0x6f0] sm:$0xff] }
 0x438   : > { %3978 = vmatprep.subr.bf16.mxu1 %v3977_v13  ;;  %v2283_v13 = vld [vmem:[%s7669_s7 + $0x708] sm:$0xff]  ;;  %v4011_v17 = vpack.c.bf16 %v2280_v53, %v2278_v61  ;;  %v2317_v61 = vld [vmem:[%s7669_s7 + $0x818] sm:$0xff] }
 0x439   : > { %v4013_v25 = vpack.c.bf16 %v2285_v16, %v2283_v13  ;;  %v2314_v16 = vld [vmem:[%s7669_s7 + $0x800] sm:$0xff] }
 0x43b   : > { %3980 = vmatpush1.bf16.msra.mxu1 %v3979_v29  ;;  %v2284_v29 = vld [vmem:[%s7669_s7 + $0x710] sm:$0xff] }
 0x43c   : > { %3982 = vmatprep.subr.bf16.mxu1 %v3981_v30  ;;  %v2287_v30 = vld [vmem:[%s7669_s7 + $0x728] sm:$0xff]  ;;  %v4015_v32 = vpack.c.bf16 %v2284_v29, %v2282_v28  ;;  %v2321_v28 = vld [vmem:[%s7669_s7 + $0x838] sm:$0xff] }
 0x43d   : > { %v4017_v0 = vpack.c.bf16 %v2289_v31, %v2287_v30  ;;  %v2318_v31 = vld [vmem:[%s7669_s7 + $0x820] sm:$0xff] }
 0x43e   : > { %2853 = vmatmul.mubr.f32.vlgmr.msra.gmra.mrb[8].mxu1 %v6405_v49  ;;  %v2265_v49 = vld [vmem:[%s7669_s7 + $0x678] sm:$0xff] }
 0x43f   : > { %3984 = vmatpush1.bf16.msra.mxu1 %v3983_v5  ;;  %2923 = vmatprep.mubr.f32.mxu1 %v6410_v12  ;;  %v3991_v12 = vpack.c.bf16 %v2260_v8, %v2258_v9  ;;  %v3993_v60 = vpack.c.bf16 %v2265_v49, %v2263_v58  ;;  %v2288_v5 = vld [vmem:[%s7669_s7 + $0x730] sm:$0xff]  ;;  %v2297_v9 = vld [vmem:[%s7669_s7 + $0x778] sm:$0xff]  ;;  %v2294_v49 = vld [vmem:[%s7669_s7 + $0x760] sm:$0xff] }
 0x440   : > { %3986 = vmatprep.subr.bf16.mxu1 %v3985_v41  ;;  %v2291_v41 = vld [vmem:[%s7669_s7 + $0x748] sm:$0xff]  ;;  %v4019_v43 = vpack.c.bf16 %v2288_v5, %v2286_v38  ;;  %v2325_v38 = vld [vmem:[%s7669_s7 + $0x858] sm:$0xff] }
 0x441   : > { %v4021_v45 = vpack.c.bf16 %v2293_v63, %v2291_v41  ;;  %v2322_v63 = vld [vmem:[%s7669_s7 + $0x840] sm:$0xff] }
 0x443   : > { %3988 = vmatpush1.bf16.msra.mxu1 %v3987_v4  ;;  %v2292_v4 = vld [vmem:[%s7669_s7 + $0x750] sm:$0xff] }
 0x444   : > { %3990 = vmatprep.subr.bf16.mxu1 %v3989_v56  ;;  %v2295_v56 = vld [vmem:[%s7669_s7 + $0x768] sm:$0xff]  ;;  %v4023_v8 = vpack.c.bf16 %v2292_v4, %v2290_v51  ;;  %v2326_v4 = vld [vmem:[%s7669_s7 + $0x860] sm:$0xff] }
 0x445   : > { %v4025_v58 = vpack.c.bf16 %v2297_v9, %v2295_v56  ;;  %v2328_v56 = vld [vmem:[%s7669_s7 + $0x870] sm:$0xff]  ;;  %v2331_v9 = vld [vmem:[%s7669_s7 + $0x888] sm:$0xff] }
 0x447   : > { %3992 = vmatpush1.bf16.msra.mxu1 %v3991_v12  ;;  %v2296_v12 = vld [vmem:[%s7669_s7 + $0x770] sm:$0xff] }
 0x448   : > { %3994 = vmatprep.subr.bf16.mxu1 %v3993_v60  ;;  %v2299_v60 = vld [vmem:[%s7669_s7 + $0x788] sm:$0xff]  ;;  %v4027_v23 = vpack.c.bf16 %v2296_v12, %v2294_v49  ;;  %v2330_v12 = vld [vmem:[%s7669_s7 + $0x880] sm:$0xff] }
 0x449   : > { %v4029_v3 = vpack.c.bf16 %v2301_v54, %v2299_v60  ;;  %v2332_v60 = vld [vmem:[%s7669_s7 + $0x890] sm:$0xff]  ;;  %v2335_v54 = vld [vmem:[%s7669_s7 + $0x8a8] sm:$0xff] }
 0x44b   : > { %3996 = vmatpush1.bf16.msra.mxu1 %v3995_v18  ;;  %v2300_v18 = vld [vmem:[%s7669_s7 + $0x790] sm:$0xff] }
 0x44c   : > { %3998 = vmatprep.subr.bf16.mxu1 %v3997_v40  ;;  %v2303_v40 = vld [vmem:[%s7669_s7 + $0x7a8] sm:$0xff]  ;;  %v4031_v39 = vpack.c.bf16 %v2300_v18, %v2298_v22  ;;  %v2334_v18 = vld [vmem:[%s7669_s7 + $0x8a0] sm:$0xff] }
 0x44d   : > { %v4033_v59 = vpack.c.bf16 %v2305_v15, %v2303_v40  ;;  %v2336_v40 = vld [vmem:[%s7669_s7 + $0x8b0] sm:$0xff]  ;;  %v2339_v15 = vld [vmem:[%s7669_s7 + $0x8c8] sm:$0xff] }
 0x44f   : > { %4000 = vmatpush1.bf16.msra.mxu1 %v3999_v44  ;;  %v2304_v44 = vld [vmem:[%s7669_s7 + $0x7b0] sm:$0xff] }
 0x450   : > { %4002 = vmatprep.subr.bf16.mxu1 %v4001_v55  ;;  %v2307_v55 = vld [vmem:[%s7669_s7 + $0x7c8] sm:$0xff]  ;;  %v4035_v62 = vpack.c.bf16 %v2304_v44, %v2302_v27  ;;  %v2338_v44 = vld [vmem:[%s7669_s7 + $0x8c0] sm:$0xff] }
 0x451   : > { %v4037_v1 = vpack.c.bf16 %v2309_v34, %v2307_v55  ;;  %v2340_v55 = vld [vmem:[%s7669_s7 + $0x8d0] sm:$0xff]  ;;  %v2343_v34 = vld [vmem:[%s7669_s7 + $0x8e8] sm:$0xff] }
 0x453   : > { %4004 = vmatpush1.bf16.msra.mxu1 %v4003_v14  ;;  %v2308_v14 = vld [vmem:[%s7669_s7 + $0x7d0] sm:$0xff] }
 0x454   : > { %4006 = vmatprep.subr.bf16.mxu1 %v4005_v33  ;;  %v2311_v33 = vld [vmem:[%s7669_s7 + $0x7e8] sm:$0xff]  ;;  %v4039_v36 = vpack.c.bf16 %v2308_v14, %v2306_v35  ;;  %v2342_v14 = vld [vmem:[%s7669_s7 + $0x8e0] sm:$0xff] }
 0x455   : > { %v4041_v10 = vpack.c.bf16 %v2313_v6, %v2311_v33  ;;  %v2344_v33 = vld [vmem:[%s7669_s7 + $0x8f0] sm:$0xff]  ;;  %v2347_v6 = vld [vmem:[%s7669_s7 + $0x908] sm:$0xff] }
 0x457   : > { %4008 = vmatpush1.bf16.msra.mxu1 %v4007_v11  ;;  %v2312_v11 = vld [vmem:[%s7669_s7 + $0x7f0] sm:$0xff] }
 0x458   : > { %4010 = vmatprep.subr.bf16.mxu1 %v4009_v7  ;;  %v2315_v7 = vld [vmem:[%s7669_s7 + $0x808] sm:$0xff]  ;;  %v4043_v53 = vpack.c.bf16 %v2312_v11, %v2310_v19  ;;  %v2346_v11 = vld [vmem:[%s7669_s7 + $0x900] sm:$0xff] }
 0x459   : > { %v4045_v13 = vpack.c.bf16 %v2317_v61, %v2315_v7  ;;  %v2348_v7 = vld [vmem:[%s7669_s7 + $0x910] sm:$0xff]  ;;  %v2351_v61 = vld [vmem:[%s7669_s7 + $0x928] sm:$0xff] }
 0x45b   : > { %4012 = vmatpush1.bf16.msra.mxu1 %v4011_v17  ;;  %v2316_v17 = vld [vmem:[%s7669_s7 + $0x810] sm:$0xff] }
 0x45c   : > { %4014 = vmatprep.subr.bf16.mxu1 %v4013_v25  ;;  %v2319_v25 = vld [vmem:[%s7669_s7 + $0x828] sm:$0xff]  ;;  %v4047_v29 = vpack.c.bf16 %v2316_v17, %v2314_v16  ;;  %v2350_v17 = vld [vmem:[%s7669_s7 + $0x920] sm:$0xff] }
 0x45d   : > { %v4049_v30 = vpack.c.bf16 %v2321_v28, %v2319_v25  ;;  %v2352_v25 = vld [vmem:[%s7669_s7 + $0x930] sm:$0xff]  ;;  %v2355_v28 = vld [vmem:[%s7669_s7 + $0x948] sm:$0xff] }
 0x45f   : > { %4016 = vmatpush1.bf16.msra.mxu1 %v4015_v32  ;;  %v2320_v32 = vld [vmem:[%s7669_s7 + $0x830] sm:$0xff] }
 0x460   : > { %4018 = vmatprep.subr.bf16.mxu1 %v4017_v0  ;;  %v2323_v0 = vld [vmem:[%s7669_s7 + $0x848] sm:$0xff]  ;;  %v4051_v5 = vpack.c.bf16 %v2320_v32, %v2318_v31  ;;  %v2354_v32 = vld [vmem:[%s7669_s7 + $0x940] sm:$0xff] }
 0x461   : > { %v4053_v41 = vpack.c.bf16 %v2325_v38, %v2323_v0  ;;  %v2356_v0 = vld [vmem:[%s7669_s7 + $0x950] sm:$0xff]  ;;  %v2359_v38 = vld [vmem:[%s7669_s7 + $0x968] sm:$0xff] }
 0x463   : > { %4020 = vmatpush1.bf16.msra.mxu1 %v4019_v43  ;;  %v2324_v43 = vld [vmem:[%s7669_s7 + $0x850] sm:$0xff] }
 0x464   : > { %4022 = vmatprep.subr.bf16.mxu1 %v4021_v45  ;;  %v2327_v45 = vld [vmem:[%s7669_s7 + $0x868] sm:$0xff] }
 0x467   : > { %4024 = vmatpush1.bf16.msra.mxu1 %v4023_v8  ;;  %v2333_v8 = vld [vmem:[%s7669_s7 + $0x898] sm:$0xff] }
 0x468   : > { %4026 = vmatprep.subr.bf16.mxu1 %v4025_v58  ;;  %v4059_v58 = vpack.c.bf16 %v2328_v56, %v2326_v4  ;;  %v4061_v49 = vpack.c.bf16 %v2333_v8, %v2331_v9  ;;  %v2362_v56 = vld [vmem:[%s7669_s7 + $0x980] sm:$0xff]  ;;  %v2364_v9 = vld [vmem:[%s7669_s7 + $0x990] sm:$0xff]  ;;  %v2367_v8 = vld [vmem:[%s7669_s7 + $0x9a8] sm:$0xff] }
 0x46b   : > { %4028 = vmatpush1.bf16.msra.mxu1 %v4027_v23  ;;  %v2337_v23 = vld [vmem:[%s7669_s7 + $0x8b8] sm:$0xff] }
 0x46c   : > { %4030 = vmatprep.subr.bf16.mxu1 %v4029_v3  ;;  %v4063_v3 = vpack.c.bf16 %v2332_v60, %v2330_v12  ;;  %v4065_v22 = vpack.c.bf16 %v2337_v23, %v2335_v54  ;;  %v2366_v60 = vld [vmem:[%s7669_s7 + $0x9a0] sm:$0xff]  ;;  %v2368_v54 = vld [vmem:[%s7669_s7 + $0x9b0] sm:$0xff]  ;;  %v2371_v23 = vld [vmem:[%s7669_s7 + $0x9c8] sm:$0xff] }
 0x46f   : > { %4032 = vmatpush1.bf16.msra.mxu1 %v4031_v39  ;;  %v2341_v39 = vld [vmem:[%s7669_s7 + $0x8d8] sm:$0xff] }
 0x470   : > { %4034 = vmatprep.subr.bf16.mxu1 %v4033_v59  ;;  %v4067_v59 = vpack.c.bf16 %v2336_v40, %v2334_v18  ;;  %v4069_v27 = vpack.c.bf16 %v2341_v39, %v2339_v15  ;;  %v2370_v40 = vld [vmem:[%s7669_s7 + $0x9c0] sm:$0xff]  ;;  %v2372_v15 = vld [vmem:[%s7669_s7 + $0x9d0] sm:$0xff]  ;;  %v2375_v39 = vld [vmem:[%s7669_s7 + $0x9e8] sm:$0xff] }
 0x473   : > { %4036 = vmatpush1.bf16.msra.mxu1 %v4035_v62  ;;  %v2345_v62 = vld [vmem:[%s7669_s7 + $0x8f8] sm:$0xff] }
 0x474   : > { %4038 = vmatprep.subr.bf16.mxu1 %v4037_v1  ;;  %v4071_v1 = vpack.c.bf16 %v2340_v55, %v2338_v44  ;;  %v4073_v35 = vpack.c.bf16 %v2345_v62, %v2343_v34  ;;  %v2374_v55 = vld [vmem:[%s7669_s7 + $0x9e0] sm:$0xff]  ;;  %v2376_v34 = vld [vmem:[%s7669_s7 + $0x9f0] sm:$0xff]  ;;  %v2379_v62 = vld [vmem:[%s7669_s7 + $0xa08] sm:$0xff] }
 0x477   : > { %4040 = vmatpush1.bf16.msra.mxu1 %v4039_v36  ;;  %v2349_v36 = vld [vmem:[%s7669_s7 + $0x918] sm:$0xff] }
 0x478   : > { %4042 = vmatprep.subr.bf16.mxu1 %v4041_v10  ;;  %v4075_v10 = vpack.c.bf16 %v2344_v33, %v2342_v14  ;;  %v4077_v19 = vpack.c.bf16 %v2349_v36, %v2347_v6  ;;  %v2378_v33 = vld [vmem:[%s7669_s7 + $0xa00] sm:$0xff]  ;;  %v2380_v6 = vld [vmem:[%s7669_s7 + $0xa10] sm:$0xff]  ;;  %v2383_v36 = vld [vmem:[%s7669_s7 + $0xa28] sm:$0xff] }
 0x47b   : > { %4044 = vmatpush1.bf16.msra.mxu1 %v4043_v53  ;;  %v2353_v53 = vld [vmem:[%s7669_s7 + $0x938] sm:$0xff] }
 0x47c   : > { %4046 = vmatprep.subr.bf16.mxu1 %v4045_v13  ;;  %v4079_v13 = vpack.c.bf16 %v2348_v7, %v2346_v11  ;;  %v4081_v16 = vpack.c.bf16 %v2353_v53, %v2351_v61  ;;  %v2382_v7 = vld [vmem:[%s7669_s7 + $0xa20] sm:$0xff]  ;;  %v2384_v61 = vld [vmem:[%s7669_s7 + $0xa30] sm:$0xff]  ;;  %v2387_v53 = vld [vmem:[%s7669_s7 + $0xa48] sm:$0xff] }
 0x47e   : > { %2924 = vmatmul.mubr.f32.vlgmr.msra.gmra.mrb[8].mxu1 %v6430_v37  ;;  %v2329_v37 = vld [vmem:[%s7669_s7 + $0x878] sm:$0xff] }
 0x47f   : > { %4048 = vmatpush1.bf16.msra.mxu1 %v4047_v29  ;;  %2994 = vmatprep.mubr.f32.mxu1 %v6437_v42  ;;  %v4055_v42 = vpack.c.bf16 %v2324_v43, %v2322_v63  ;;  %v4057_v51 = vpack.c.bf16 %v2329_v37, %v2327_v45  ;;  %v2357_v29 = vld [vmem:[%s7669_s7 + $0x958] sm:$0xff]  ;;  %v2358_v43 = vld [vmem:[%s7669_s7 + $0x960] sm:$0xff]  ;;  %v2360_v45 = vld [vmem:[%s7669_s7 + $0x970] sm:$0xff] }
 0x480   : > { %4050 = vmatprep.subr.bf16.mxu1 %v4049_v30  ;;  %v4083_v30 = vpack.c.bf16 %v2352_v25, %v2350_v17  ;;  %v4085_v31 = vpack.c.bf16 %v2357_v29, %v2355_v28  ;;  %v2363_v37 = vld [vmem:[%s7669_s7 + $0x988] sm:$0xff]  ;;  %v2386_v25 = vld [vmem:[%s7669_s7 + $0xa40] sm:$0xff]  ;;  %v2388_v28 = vld [vmem:[%s7669_s7 + $0xa50] sm:$0xff] }
 0x481   : > { %v2391_v29 = vld [vmem:[%s7669_s7 + $0xa68] sm:$0xff] }
 0x483   : > { %4052 = vmatpush1.bf16.msra.mxu1 %v4051_v5  ;;  %v2361_v5 = vld [vmem:[%s7669_s7 + $0x978] sm:$0xff] }
 0x484   : > { %4054 = vmatprep.subr.bf16.mxu1 %v4053_v41  ;;  %v4087_v41 = vpack.c.bf16 %v2356_v0, %v2354_v32  ;;  %v4089_v63 = vpack.c.bf16 %v2361_v5, %v2359_v38  ;;  %v2392_v32 = vld [vmem:[%s7669_s7 + $0xa70] sm:$0xff]  ;;  %v2395_v0 = vld [vmem:[%s7669_s7 + $0xa88] sm:$0xff]  ;;  %v2397_v38 = vld [vmem:[%s7669_s7 + $0xa98] sm:$0xff] }
 0x487   : > { %4056 = vmatpush1.bf16.msra.mxu1 %v4055_v42  ;;  %v2365_v42 = vld [vmem:[%s7669_s7 + $0x998] sm:$0xff] }
 0x488   : > { %4058 = vmatprep.subr.bf16.mxu1 %v4057_v51  ;;  %v4091_v51 = vpack.c.bf16 %v2360_v45, %v2358_v43  ;;  %v4093_v4 = vpack.c.bf16 %v2365_v42, %v2363_v37  ;;  %v2396_v43 = vld [vmem:[%s7669_s7 + $0xa90] sm:$0xff]  ;;  %v2399_v45 = vld [vmem:[%s7669_s7 + $0xaa8] sm:$0xff]  ;;  %v2401_v37 = vld [vmem:[%s7669_s7 + $0xab8] sm:$0xff] }
 0x48b   : > { %4060 = vmatpush1.bf16.msra.mxu1 %v4059_v58  ;;  %v2369_v58 = vld [vmem:[%s7669_s7 + $0x9b8] sm:$0xff] }
 0x48c   : > { %4062 = vmatprep.subr.bf16.mxu1 %v4061_v49  ;;  %v4095_v49 = vpack.c.bf16 %v2364_v9, %v2362_v56  ;;  %v4097_v12 = vpack.c.bf16 %v2369_v58, %v2367_v8  ;;  %v2400_v56 = vld [vmem:[%s7669_s7 + $0xab0] sm:$0xff]  ;;  %v2403_v9 = vld [vmem:[%s7669_s7 + $0xac8] sm:$0xff]  ;;  %v2405_v8 = vld [vmem:[%s7669_s7 + $0xad8] sm:$0xff] }
 0x48f   : > { %4064 = vmatpush1.bf16.msra.mxu1 %v4063_v3  ;;  %v2373_v3 = vld [vmem:[%s7669_s7 + $0x9d8] sm:$0xff] }
 0x490   : > { %4066 = vmatprep.subr.bf16.mxu1 %v4065_v22  ;;  %v4099_v22 = vpack.c.bf16 %v2368_v54, %v2366_v60  ;;  %v4101_v18 = vpack.c.bf16 %v2373_v3, %v2371_v23  ;;  %v2404_v60 = vld [vmem:[%s7669_s7 + $0xad0] sm:$0xff]  ;;  %v2407_v23 = vld [vmem:[%s7669_s7 + $0xae8] sm:$0xff]  ;;  %v2409_v3 = vld [vmem:[%s7669_s7 + $0xaf8] sm:$0xff] }
 0x493   : > { %4068 = vmatpush1.bf16.msra.mxu1 %v4067_v59  ;;  %v2377_v59 = vld [vmem:[%s7669_s7 + $0x9f8] sm:$0xff] }
 0x494   : > { %4070 = vmatprep.subr.bf16.mxu1 %v4069_v27  ;;  %v4103_v27 = vpack.c.bf16 %v2372_v15, %v2370_v40  ;;  %v4105_v44 = vpack.c.bf16 %v2377_v59, %v2375_v39  ;;  %v4137_v39 = vpack.c.bf16 %v2409_v3, %v2407_v23  ;;  %v2406_v59 = vld [vmem:[%s7669_s7 + $0xae0] sm:$0xff]  ;;  %v2443_v23 = vld [vmem:[%s7669_s7 + $0xc08] sm:$0xff]  ;;  %v2445_v3 = vld [vmem:[%s7669_s7 + $0xc18] sm:$0xff] }
 0x497   : > { %4072 = vmatpush1.bf16.msra.mxu1 %v4071_v1  ;;  %v2381_v1 = vld [vmem:[%s7669_s7 + $0xa18] sm:$0xff] }
 0x498   : > { %4074 = vmatprep.subr.bf16.mxu1 %v4073_v35  ;;  %v4107_v35 = vpack.c.bf16 %v2376_v34, %v2374_v55  ;;  %v4109_v14 = vpack.c.bf16 %v2381_v1, %v2379_v62  ;;  %v2410_v34 = vld [vmem:[%s7669_s7 + $0xb00] sm:$0xff]  ;;  %v2412_v62 = vld [vmem:[%s7669_s7 + $0xb10] sm:$0xff]  ;;  %v2415_v1 = vld [vmem:[%s7669_s7 + $0xb28] sm:$0xff] }
 0x49b   : > { %4076 = vmatpush1.bf16.msra.mxu1 %v4075_v10  ;;  %v2385_v10 = vld [vmem:[%s7669_s7 + $0xa38] sm:$0xff] }
 0x49c   : > { %4078 = vmatprep.subr.bf16.mxu1 %v4077_v19  ;;  %v4111_v19 = vpack.c.bf16 %v2380_v6, %v2378_v33  ;;  %v4113_v11 = vpack.c.bf16 %v2385_v10, %v2383_v36  ;;  %v2414_v6 = vld [vmem:[%s7669_s7 + $0xb20] sm:$0xff]  ;;  %v2416_v36 = vld [vmem:[%s7669_s7 + $0xb30] sm:$0xff]  ;;  %v2419_v10 = vld [vmem:[%s7669_s7 + $0xb48] sm:$0xff] }
 0x49f   : > { %4080 = vmatpush1.bf16.msra.mxu1 %v4079_v13  ;;  %v2389_v13 = vld [vmem:[%s7669_s7 + $0xa58] sm:$0xff] }
 0x4a0   : > { %4082 = vmatprep.subr.bf16.mxu1 %v4081_v16  ;;  %v4115_v16 = vpack.c.bf16 %v2384_v61, %v2382_v7  ;;  %v4117_v17 = vpack.c.bf16 %v2389_v13, %v2387_v53  ;;  %v2418_v61 = vld [vmem:[%s7669_s7 + $0xb40] sm:$0xff]  ;;  %v2420_v53 = vld [vmem:[%s7669_s7 + $0xb50] sm:$0xff]  ;;  %v2423_v13 = vld [vmem:[%s7669_s7 + $0xb68] sm:$0xff] }
 0x4a3   : > { %4084 = vmatpush1.bf16.msra.mxu1 %v4083_v30 }
 0x4a4   : > { %4086 = vmatprep.subr.bf16.mxu1 %v4085_v31  ;;  %v2390_v31 = vld [vmem:[%s7669_s7 + $0xa60] sm:$0xff] }
 0x4a5   : > { %v4123_v5 = vpack.c.bf16 %v2392_v32, %v2390_v31  ;;  %v2426_v32 = vld [vmem:[%s7669_s7 + $0xb80] sm:$0xff] }
 0x4a7   : > { %4088 = vmatpush1.bf16.msra.mxu1 %v4087_v41  ;;  %v4125_v41 = vpack.c.bf16 %v2397_v38, %v2395_v0  ;;  %v2428_v0 = vld [vmem:[%s7669_s7 + $0xb90] sm:$0xff]  ;;  %v2431_v38 = vld [vmem:[%s7669_s7 + $0xba8] sm:$0xff] }
 0x4a8   : > { %4090 = vmatprep.subr.bf16.mxu1 %v4089_v63  ;;  %v2394_v63 = vld [vmem:[%s7669_s7 + $0xa80] sm:$0xff] }
 0x4a9   : > { %v4127_v42 = vpack.c.bf16 %v2396_v43, %v2394_v63  ;;  %v2430_v43 = vld [vmem:[%s7669_s7 + $0xba0] sm:$0xff] }
 0x4ab   : > { %4092 = vmatpush1.bf16.msra.mxu1 %v4091_v51  ;;  %v4129_v51 = vpack.c.bf16 %v2401_v37, %v2399_v45  ;;  %v2432_v45 = vld [vmem:[%s7669_s7 + $0xbb0] sm:$0xff]  ;;  %v2435_v37 = vld [vmem:[%s7669_s7 + $0xbc8] sm:$0xff] }
 0x4ac   : > { %4094 = vmatprep.subr.bf16.mxu1 %v4093_v4  ;;  %v2398_v4 = vld [vmem:[%s7669_s7 + $0xaa0] sm:$0xff] }
 0x4ad   : > { %v4131_v58 = vpack.c.bf16 %v2400_v56, %v2398_v4  ;;  %v2434_v56 = vld [vmem:[%s7669_s7 + $0xbc0] sm:$0xff] }
 0x4af   : > { %4096 = vmatpush1.bf16.msra.mxu1 %v4095_v49  ;;  %v4133_v49 = vpack.c.bf16 %v2405_v8, %v2403_v9  ;;  %v2436_v9 = vld [vmem:[%s7669_s7 + $0xbd0] sm:$0xff]  ;;  %v2439_v8 = vld [vmem:[%s7669_s7 + $0xbe8] sm:$0xff] }
 0x4b0   : > { %4098 = vmatprep.subr.bf16.mxu1 %v4097_v12  ;;  %v2402_v12 = vld [vmem:[%s7669_s7 + $0xac0] sm:$0xff] }
 0x4b1   : > { %v4135_v15 = vpack.c.bf16 %v2404_v60, %v2402_v12  ;;  %v2438_v60 = vld [vmem:[%s7669_s7 + $0xbe0] sm:$0xff] }
 0x4b3   : > { %4100 = vmatpush1.bf16.msra.mxu1 %v4099_v22 }
 0x4b4   : > { %4102 = vmatprep.subr.bf16.mxu1 %v4101_v18 }
 0x4b7   : > { %4104 = vmatpush1.bf16.msra.mxu1 %v4103_v27  ;;  %v2408_v27 = vld [vmem:[%s7669_s7 + $0xaf0] sm:$0xff] }
 0x4b8   : > { %4106 = vmatprep.subr.bf16.mxu1 %v4105_v44  ;;  %v4139_v44 = vpack.c.bf16 %v2408_v27, %v2406_v59  ;;  %v2444_v59 = vld [vmem:[%s7669_s7 + $0xc10] sm:$0xff]  ;;  %v2447_v27 = vld [vmem:[%s7669_s7 + $0xc28] sm:$0xff] }
 0x4bb   : > { %4108 = vmatpush1.bf16.msra.mxu1 %v4107_v35  ;;  %v2417_v35 = vld [vmem:[%s7669_s7 + $0xb38] sm:$0xff] }
 0x4bc   : > { %4110 = vmatprep.subr.bf16.mxu1 %v4109_v14  ;;  %v4143_v14 = vpack.c.bf16 %v2412_v62, %v2410_v34  ;;  %v4145_v33 = vpack.c.bf16 %v2417_v35, %v2415_v1  ;;  %v2448_v34 = vld [vmem:[%s7669_s7 + $0xc30] sm:$0xff]  ;;  %v2451_v62 = vld [vmem:[%s7669_s7 + $0xc48] sm:$0xff]  ;;  %v2453_v1 = vld [vmem:[%s7669_s7 + $0xc58] sm:$0xff] }
 0x4be   : > { %2995 = vmatmul.mubr.f32.vlgmr.msra.gmra.mrb[8].mxu1 %v6449_v52  ;;  %v2393_v52 = vld [vmem:[%s7669_s7 + $0xa78] sm:$0xff] }
 0x4bf   : > { %4112 = vmatpush1.bf16.msra.mxu1 %v4111_v19  ;;  %3065 = vmatprep.mubr.f32.mxu1 %v6458_v57  ;;  %v4119_v57 = vpack.c.bf16 %v2388_v28, %v2386_v25  ;;  %v4121_v30 = vpack.c.bf16 %v2393_v52, %v2391_v29  ;;  %v2421_v19 = vld [vmem:[%s7669_s7 + $0xb58] sm:$0xff]  ;;  %v2422_v28 = vld [vmem:[%s7669_s7 + $0xb60] sm:$0xff]  ;;  %v2424_v29 = vld [vmem:[%s7669_s7 + $0xb70] sm:$0xff] }
 0x4c0   : > { %4114 = vmatprep.subr.bf16.mxu1 %v4113_v11  ;;  %v4147_v11 = vpack.c.bf16 %v2416_v36, %v2414_v6  ;;  %v4149_v7 = vpack.c.bf16 %v2421_v19, %v2419_v10  ;;  %v2427_v52 = vld [vmem:[%s7669_s7 + $0xb88] sm:$0xff]  ;;  %v2452_v6 = vld [vmem:[%s7669_s7 + $0xc50] sm:$0xff]  ;;  %v2454_v19 = vld [vmem:[%s7669_s7 + $0xc60] sm:$0xff] }
 0x4c1   : > { %v2455_v36 = vld [vmem:[%s7669_s7 + $0xc68] sm:$0xff] }
 0x4c3   : > { %4116 = vmatpush1.bf16.msra.mxu1 %v4115_v16  ;;  %v2425_v16 = vld [vmem:[%s7669_s7 + $0xb78] sm:$0xff] }
 0x4c4   : > { %4118 = vmatprep.subr.bf16.mxu1 %v4117_v17  ;;  %v4151_v17 = vpack.c.bf16 %v2420_v53, %v2418_v61  ;;  %v4153_v25 = vpack.c.bf16 %v2425_v16, %v2423_v13  ;;  %v2461_v61 = vld [vmem:[%s7669_s7 + $0xc98] sm:$0xff]  ;;  %v2458_v16 = vld [vmem:[%s7669_s7 + $0xc80] sm:$0xff] }
 0x4c7   : > { %4120 = vmatpush1.bf16.msra.mxu1 %v4119_v57  ;;  %v2429_v57 = vld [vmem:[%s7669_s7 + $0xb98] sm:$0xff] }
 0x4c8   : > { %4122 = vmatprep.subr.bf16.mxu1 %v4121_v30  ;;  %v4155_v30 = vpack.c.bf16 %v2424_v29, %v2422_v28  ;;  %v4157_v31 = vpack.c.bf16 %v2429_v57, %v2427_v52  ;;  %v2465_v28 = vld [vmem:[%s7669_s7 + $0xcb8] sm:$0xff]  ;;  %v2462_v57 = vld [vmem:[%s7669_s7 + $0xca0] sm:$0xff] }
 0x4cb   : > { %4124 = vmatpush1.bf16.msra.mxu1 %v4123_v5  ;;  %v2433_v5 = vld [vmem:[%s7669_s7 + $0xbb8] sm:$0xff] }
 0x4cc   : > { %4126 = vmatprep.subr.bf16.mxu1 %v4125_v41  ;;  %v4159_v41 = vpack.c.bf16 %v2428_v0, %v2426_v32  ;;  %v4161_v63 = vpack.c.bf16 %v2433_v5, %v2431_v38  ;;  %v2469_v32 = vld [vmem:[%s7669_s7 + $0xcd8] sm:$0xff]  ;;  %v2466_v5 = vld [vmem:[%s7669_s7 + $0xcc0] sm:$0xff] }
 0x4cf   : > { %4128 = vmatpush1.bf16.msra.mxu1 %v4127_v42  ;;  %v2437_v42 = vld [vmem:[%s7669_s7 + $0xbd8] sm:$0xff] }
 0x4d0   : > { %4130 = vmatprep.subr.bf16.mxu1 %v4129_v51  ;;  %v4163_v51 = vpack.c.bf16 %v2432_v45, %v2430_v43  ;;  %v4165_v4 = vpack.c.bf16 %v2437_v42, %v2435_v37  ;;  %v2473_v43 = vld [vmem:[%s7669_s7 + $0xcf8] sm:$0xff]  ;;  %v2470_v42 = vld [vmem:[%s7669_s7 + $0xce0] sm:$0xff] }
 0x4d1   : > { %v2712_v54 = vpop.f32.mrb[12].mxu0 }
 0x4d2   : > { %v7112_v22 = vadd.f32 %v2712_v54, %v6525_v20  ;;  %v2714_v18 = vpop.f32.mrb[13].mxu0  ;;  %v2411_v20 = vld [vmem:[%s7669_s7 + $0xb08] sm:$0xff]  ;;  %v2440_v54 = vld [vmem:[%s7669_s7 + $0xbf0] sm:$0xff] }
 0x4d3   : > { %v7115_v40 = vadd.f32 %v2714_v18, %v6533_v24  ;;  %4132 = vmatpush1.bf16.msra.mxu1 %v4131_v58  ;;  %v2413_v24 = vld [vmem:[%s7669_s7 + $0xb18] sm:$0xff]  ;;  %v4171_v18 = vpack.c.bf16 %v2440_v54, %v2438_v60 }
 0x4d4   : > { %4134 = vmatprep.subr.bf16.mxu1 %v4133_v49  ;;  %v4141_v55 = vpack.c.bf16 %v2413_v24, %v2411_v20  ;;  %v2441_v58 = vld [vmem:[%s7669_s7 + $0xbf8] sm:$0xff]  ;;  %v4167_v49 = vpack.c.bf16 %v2436_v9, %v2434_v56 }
 0x4d5   : > { %v4169_v12 = vpack.c.bf16 %v2441_v58, %v2439_v8  ;;  %v2449_v20 = vld [vmem:[%s7669_s7 + $0xc38] sm:$0xff]  ;;  %v2474_v58 = vld [vmem:[%s7669_s7 + $0xd00] sm:$0xff] }
 0x4d6   : > { %v2477_v56 = vld [vmem:[%s7669_s7 + $0xd18] sm:$0xff] }
 0x4d7   : > { %4136 = vmatpush1.bf16.msra.mxu1 %v4135_v15  ;;  %v4173_v15 = vpack.c.bf16 %v2445_v3, %v2443_v23  ;;  %v2481_v60 = vld [vmem:[%s7669_s7 + $0xd38] sm:$0xff]  ;;  %v2478_v3 = vld [vmem:[%s7669_s7 + $0xd20] sm:$0xff] }
 0x4d8   : > { %4138 = vmatprep.subr.bf16.mxu1 %v4137_v39  ;;  %v2442_v39 = vld [vmem:[%s7669_s7 + $0xc00] sm:$0xff] }
 0x4d9   : > { %v4175_v24 = vpack.c.bf16 %v2444_v59, %v2442_v39  ;;  %v2485_v39 = vld [vmem:[%s7669_s7 + $0xd58] sm:$0xff] }
 0x4db   : > { %4140 = vmatpush1.bf16.msra.mxu1 %v4139_v44  ;;  %v4177_v44 = vpack.c.bf16 %v2449_v20, %v2447_v27  ;;  %v2482_v20 = vld [vmem:[%s7669_s7 + $0xd40] sm:$0xff] }
 0x4dc   : > { %4142 = vmatprep.subr.bf16.mxu1 %v4141_v55  ;;  %v2446_v55 = vld [vmem:[%s7669_s7 + $0xc20] sm:$0xff] }
 0x4dd   : > { %v4179_v35 = vpack.c.bf16 %v2448_v34, %v2446_v55  ;;  %v2489_v55 = vld [vmem:[%s7669_s7 + $0xd78] sm:$0xff] }
 0x4df   : > { %4144 = vmatpush1.bf16.msra.mxu1 %v4143_v14  ;;  %v4181_v14 = vpack.c.bf16 %v2453_v1, %v2451_v62  ;;  %v2486_v1 = vld [vmem:[%s7669_s7 + $0xd60] sm:$0xff] }
 0x4e0   : > { %4146 = vmatprep.subr.bf16.mxu1 %v4145_v33  ;;  %v2450_v33 = vld [vmem:[%s7669_s7 + $0xc40] sm:$0xff] }
 0x4e3   : > { %4148 = vmatpush1.bf16.msra.mxu1 %v4147_v11  ;;  %v2456_v11 = vld [vmem:[%s7669_s7 + $0xc70] sm:$0xff] }
 0x4e4   : > { %4150 = vmatprep.subr.bf16.mxu1 %v4149_v7  ;;  %v2459_v7 = vld [vmem:[%s7669_s7 + $0xc88] sm:$0xff]  ;;  %v4187_v53 = vpack.c.bf16 %v2456_v11, %v2454_v19  ;;  %v2497_v19 = vld [vmem:[%s7669_s7 + $0xdb8] sm:$0xff] }
 0x4e5   : > { %v4189_v13 = vpack.c.bf16 %v2461_v61, %v2459_v7  ;;  %v2494_v61 = vld [vmem:[%s7669_s7 + $0xda0] sm:$0xff] }
 0x4e7   : > { %4152 = vmatpush1.bf16.msra.mxu1 %v4151_v17  ;;  %v2460_v17 = vld [vmem:[%s7669_s7 + $0xc90] sm:$0xff] }
 0x4e8   : > { %4154 = vmatprep.subr.bf16.mxu1 %v4153_v25  ;;  %v2463_v25 = vld [vmem:[%s7669_s7 + $0xca8] sm:$0xff]  ;;  %v4191_v29 = vpack.c.bf16 %v2460_v17, %v2458_v16  ;;  %v2501_v16 = vld [vmem:[%s7669_s7 + $0xdd8] sm:$0xff] }
 0x4e9   : > { %v4193_v52 = vpack.c.bf16 %v2465_v28, %v2463_v25  ;;  %v2498_v28 = vld [vmem:[%s7669_s7 + $0xdc0] sm:$0xff] }
 0x4eb   : > { %4156 = vmatpush1.bf16.msra.mxu1 %v4155_v30  ;;  %v2464_v30 = vld [vmem:[%s7669_s7 + $0xcb0] sm:$0xff] }
 0x4ec   : > { %4158 = vmatprep.subr.bf16.mxu1 %v4157_v31  ;;  %v2467_v31 = vld [vmem:[%s7669_s7 + $0xcc8] sm:$0xff]  ;;  %v4195_v0 = vpack.c.bf16 %v2464_v30, %v2462_v57  ;;  %v2505_v57 = vld [vmem:[%s7669_s7 + $0xdf8] sm:$0xff] }
 0x4ed   : > { %v4197_v38 = vpack.c.bf16 %v2469_v32, %v2467_v31  ;;  %v2502_v32 = vld [vmem:[%s7669_s7 + $0xde0] sm:$0xff] }
 0x4ef   : > { %4160 = vmatpush1.bf16.msra.mxu1 %v4159_v41  ;;  %v2468_v41 = vld [vmem:[%s7669_s7 + $0xcd0] sm:$0xff] }
 0x4f0   : > { %4162 = vmatprep.subr.bf16.mxu1 %v4161_v63  ;;  %v2471_v63 = vld [vmem:[%s7669_s7 + $0xce8] sm:$0xff]  ;;  %v4199_v45 = vpack.c.bf16 %v2468_v41, %v2466_v5  ;;  %v2509_v5 = vld [vmem:[%s7669_s7 + $0xe18] sm:$0xff] }
 0x4f1   : > { %v4201_v37 = vpack.c.bf16 %v2473_v43, %v2471_v63  ;;  %v2506_v43 = vld [vmem:[%s7669_s7 + $0xe00] sm:$0xff] }
 0x4f3   : > { %4164 = vmatpush1.bf16.msra.mxu1 %v4163_v51  ;;  %v2472_v51 = vld [vmem:[%s7669_s7 + $0xcf0] sm:$0xff] }
 0x4f4   : > { %4166 = vmatprep.subr.bf16.mxu1 %v4165_v4  ;;  %v2475_v4 = vld [vmem:[%s7669_s7 + $0xd08] sm:$0xff]  ;;  %v4203_v9 = vpack.c.bf16 %v2472_v51, %v2470_v42  ;;  %v2513_v42 = vld [vmem:[%s7669_s7 + $0xe38] sm:$0xff] }
 0x4f5   : > { %v4205_v8 = vpack.c.bf16 %v2477_v56, %v2475_v4  ;;  %v2510_v56 = vld [vmem:[%s7669_s7 + $0xe20] sm:$0xff] }
 0x4f7   : > { %4168 = vmatpush1.bf16.msra.mxu1 %v4167_v49  ;;  %v2476_v49 = vld [vmem:[%s7669_s7 + $0xd10] sm:$0xff] }
 0x4f8   : > { %4170 = vmatprep.subr.bf16.mxu1 %v4169_v12  ;;  %v2479_v12 = vld [vmem:[%s7669_s7 + $0xd28] sm:$0xff]  ;;  %v4207_v54 = vpack.c.bf16 %v2476_v49, %v2474_v58  ;;  %v2517_v58 = vld [vmem:[%s7669_s7 + $0xe58] sm:$0xff] }
 0x4f9   : > { %v4209_v23 = vpack.c.bf16 %v2481_v60, %v2479_v12  ;;  %v2514_v60 = vld [vmem:[%s7669_s7 + $0xe40] sm:$0xff] }
 0x4fb   : > { %4172 = vmatpush1.bf16.msra.mxu1 %v4171_v18  ;;  %v2480_v18 = vld [vmem:[%s7669_s7 + $0xd30] sm:$0xff] }
 0x4fc   : > { %4174 = vmatprep.subr.bf16.mxu1 %v4173_v15  ;;  %v2483_v15 = vld [vmem:[%s7669_s7 + $0xd48] sm:$0xff]  ;;  %v4211_v59 = vpack.c.bf16 %v2480_v18, %v2478_v3  ;;  %v2518_v18 = vld [vmem:[%s7669_s7 + $0xe60] sm:$0xff] }
 0x4fd   : > { %v4213_v27 = vpack.c.bf16 %v2485_v39, %v2483_v15  ;;  %v2520_v15 = vld [vmem:[%s7669_s7 + $0xe70] sm:$0xff]  ;;  %v2523_v39 = vld [vmem:[%s7669_s7 + $0xe88] sm:$0xff] }
 0x4fe   : > { %3066 = vmatmul.mubr.f32.vlgmr.msra.gmra.mrb[8].mxu1 %v6461_v47  ;;  %v2457_v47 = vld [vmem:[%s7669_s7 + $0xc78] sm:$0xff] }
 0x4ff   : > { %4176 = vmatpush1.bf16.msra.mxu1 %v4175_v24  ;;  %3136 = vmatprep.mubr.f32.mxu1 %v6483_v21  ;;  %v4183_v21 = vpack.c.bf16 %v2452_v6, %v2450_v33  ;;  %v4185_v10 = vpack.c.bf16 %v2457_v47, %v2455_v36  ;;  %v2484_v24 = vld [vmem:[%s7669_s7 + $0xd50] sm:$0xff]  ;;  %v2493_v33 = vld [vmem:[%s7669_s7 + $0xd98] sm:$0xff]  ;;  %v2490_v47 = vld [vmem:[%s7669_s7 + $0xd80] sm:$0xff] }
 0x500   : > { %4178 = vmatprep.subr.bf16.mxu1 %v4177_v44  ;;  %v2487_v44 = vld [vmem:[%s7669_s7 + $0xd68] sm:$0xff]  ;;  %v4215_v34 = vpack.c.bf16 %v2484_v24, %v2482_v20  ;;  %v2522_v24 = vld [vmem:[%s7669_s7 + $0xe80] sm:$0xff] }
 0x501   : > { %v4217_v62 = vpack.c.bf16 %v2489_v55, %v2487_v44  ;;  %v2524_v44 = vld [vmem:[%s7669_s7 + $0xe90] sm:$0xff]  ;;  %v2527_v55 = vld [vmem:[%s7669_s7 + $0xea8] sm:$0xff] }
 0x503   : > { %4180 = vmatpush1.bf16.msra.mxu1 %v4179_v35  ;;  %v2488_v35 = vld [vmem:[%s7669_s7 + $0xd70] sm:$0xff] }
 0x504   : > { %4182 = vmatprep.subr.bf16.mxu1 %v4181_v14  ;;  %v2491_v14 = vld [vmem:[%s7669_s7 + $0xd88] sm:$0xff]  ;;  %v4219_v6 = vpack.c.bf16 %v2488_v35, %v2486_v1  ;;  %v2526_v35 = vld [vmem:[%s7669_s7 + $0xea0] sm:$0xff] }
 0x505   : > { %v4221_v36 = vpack.c.bf16 %v2493_v33, %v2491_v14  ;;  %v2528_v14 = vld [vmem:[%s7669_s7 + $0xeb0] sm:$0xff]  ;;  %v2531_v33 = vld [vmem:[%s7669_s7 + $0xec8] sm:$0xff] }
 0x507   : > { %4184 = vmatpush1.bf16.msra.mxu1 %v4183_v21  ;;  %v2492_v21 = vld [vmem:[%s7669_s7 + $0xd90] sm:$0xff] }
 0x508   : > { %4186 = vmatprep.subr.bf16.mxu1 %v4185_v10  ;;  %v2495_v10 = vld [vmem:[%s7669_s7 + $0xda8] sm:$0xff]  ;;  %v4223_v11 = vpack.c.bf16 %v2492_v21, %v2490_v47  ;;  %v2530_v21 = vld [vmem:[%s7669_s7 + $0xec0] sm:$0xff] }
 0x509   : > { %v4225_v7 = vpack.c.bf16 %v2497_v19, %v2495_v10  ;;  %v2532_v10 = vld [vmem:[%s7669_s7 + $0xed0] sm:$0xff]  ;;  %v2535_v19 = vld [vmem:[%s7669_s7 + $0xee8] sm:$0xff] }
 0x50b   : > { %4188 = vmatpush1.bf16.msra.mxu1 %v4187_v53  ;;  %v2496_v53 = vld [vmem:[%s7669_s7 + $0xdb0] sm:$0xff] }
 0x50c   : > { %4190 = vmatprep.subr.bf16.mxu1 %v4189_v13  ;;  %v2499_v13 = vld [vmem:[%s7669_s7 + $0xdc8] sm:$0xff]  ;;  %v4227_v17 = vpack.c.bf16 %v2496_v53, %v2494_v61  ;;  %v2534_v53 = vld [vmem:[%s7669_s7 + $0xee0] sm:$0xff] }
 0x50d   : > { %v4229_v25 = vpack.c.bf16 %v2501_v16, %v2499_v13  ;;  %v2536_v13 = vld [vmem:[%s7669_s7 + $0xef0] sm:$0xff]  ;;  %v2539_v16 = vld [vmem:[%s7669_s7 + $0xf08] sm:$0xff] }
 0x50f   : > { %4192 = vmatpush1.bf16.msra.mxu1 %v4191_v29  ;;  %v2500_v29 = vld [vmem:[%s7669_s7 + $0xdd0] sm:$0xff] }
 0x510   : > { %4194 = vmatprep.subr.bf16.mxu1 %v4193_v52  ;;  %v2503_v52 = vld [vmem:[%s7669_s7 + $0xde8] sm:$0xff]  ;;  %v4231_v30 = vpack.c.bf16 %v2500_v29, %v2498_v28  ;;  %v2538_v29 = vld [vmem:[%s7669_s7 + $0xf00] sm:$0xff] }
 0x511   : > { %v4233_v31 = vpack.c.bf16 %v2505_v57, %v2503_v52  ;;  %v2540_v52 = vld [vmem:[%s7669_s7 + $0xf10] sm:$0xff]  ;;  %v2543_v57 = vld [vmem:[%s7669_s7 + $0xf28] sm:$0xff] }
 0x513   : > { %4196 = vmatpush1.bf16.msra.mxu1 %v4195_v0  ;;  %v2504_v0 = vld [vmem:[%s7669_s7 + $0xdf0] sm:$0xff] }
 0x514   : > { %4198 = vmatprep.subr.bf16.mxu1 %v4197_v38  ;;  %v2507_v38 = vld [vmem:[%s7669_s7 + $0xe08] sm:$0xff]  ;;  %v4235_v41 = vpack.c.bf16 %v2504_v0, %v2502_v32  ;;  %v2542_v0 = vld [vmem:[%s7669_s7 + $0xf20] sm:$0xff] }
 0x515   : > { %v4237_v63 = vpack.c.bf16 %v2509_v5, %v2507_v38  ;;  %v2544_v38 = vld [vmem:[%s7669_s7 + $0xf30] sm:$0xff]  ;;  %v2547_v5 = vld [vmem:[%s7669_s7 + $0xf48] sm:$0xff] }
 0x517   : > { %4200 = vmatpush1.bf16.msra.mxu1 %v4199_v45  ;;  %v2508_v45 = vld [vmem:[%s7669_s7 + $0xe10] sm:$0xff] }
 0x518   : > { %4202 = vmatprep.subr.bf16.mxu1 %v4201_v37  ;;  %v2511_v37 = vld [vmem:[%s7669_s7 + $0xe28] sm:$0xff]  ;;  %v4239_v51 = vpack.c.bf16 %v2508_v45, %v2506_v43  ;;  %v2546_v45 = vld [vmem:[%s7669_s7 + $0xf40] sm:$0xff] }
 0x519   : > { %v4241_v4 = vpack.c.bf16 %v2513_v42, %v2511_v37  ;;  %v2548_v37 = vld [vmem:[%s7669_s7 + $0xf50] sm:$0xff]  ;;  %v2551_v42 = vld [vmem:[%s7669_s7 + $0xf68] sm:$0xff] }
 0x51b   : > { %4204 = vmatpush1.bf16.msra.mxu1 %v4203_v9  ;;  %v2512_v9 = vld [vmem:[%s7669_s7 + $0xe30] sm:$0xff] }
 0x51c   : > { %4206 = vmatprep.subr.bf16.mxu1 %v4205_v8  ;;  %v2515_v8 = vld [vmem:[%s7669_s7 + $0xe48] sm:$0xff]  ;;  %v4243_v49 = vpack.c.bf16 %v2512_v9, %v2510_v56  ;;  %v2550_v9 = vld [vmem:[%s7669_s7 + $0xf60] sm:$0xff] }
 0x51d   : > { %v4245_v12 = vpack.c.bf16 %v2517_v58, %v2515_v8  ;;  %v2552_v8 = vld [vmem:[%s7669_s7 + $0xf70] sm:$0xff]  ;;  %v2555_v58 = vld [vmem:[%s7669_s7 + $0xf88] sm:$0xff] }
 0x51f   : > { %4208 = vmatpush1.bf16.msra.mxu1 %v4207_v54  ;;  %v2516_v54 = vld [vmem:[%s7669_s7 + $0xe50] sm:$0xff] }
 0x520   : > { %4210 = vmatprep.subr.bf16.mxu1 %v4209_v23  ;;  %v2519_v23 = vld [vmem:[%s7669_s7 + $0xe68] sm:$0xff] }
 0x523   : > { %4212 = vmatpush1.bf16.msra.mxu1 %v4211_v59  ;;  %v2525_v59 = vld [vmem:[%s7669_s7 + $0xe98] sm:$0xff] }
 0x524   : > { %4214 = vmatprep.subr.bf16.mxu1 %v4213_v27  ;;  %v4251_v27 = vpack.c.bf16 %v2520_v15, %v2518_v18  ;;  %v4253_v20 = vpack.c.bf16 %v2525_v59, %v2523_v39  ;;  %v2558_v15 = vld [vmem:[%s7669_s7 + $0xfa0] sm:$0xff]  ;;  %v2560_v39 = vld [vmem:[%s7669_s7 + $0xfb0] sm:$0xff]  ;;  %v2563_v59 = vld [vmem:[%s7669_s7 + $0xfc8] sm:$0xff] }
 0x527   : > { %4216 = vmatpush1.bf16.msra.mxu1 %v4215_v34  ;;  %v2529_v34 = vld [vmem:[%s7669_s7 + $0xeb8] sm:$0xff] }
 0x528   : > { %4218 = vmatprep.subr.bf16.mxu1 %v4217_v62  ;;  %v4255_v62 = vpack.c.bf16 %v2524_v44, %v2522_v24  ;;  %v4257_v1 = vpack.c.bf16 %v2529_v34, %v2527_v55  ;;  %v2562_v44 = vld [vmem:[%s7669_s7 + $0xfc0] sm:$0xff]  ;;  %v2564_v55 = vld [vmem:[%s7669_s7 + $0xfd0] sm:$0xff]  ;;  %v2567_v34 = vld [vmem:[%s7669_s7 + $0xfe8] sm:$0xff] }
 0x52b   : > { %4220 = vmatpush1.bf16.msra.mxu1 %v4219_v6  ;;  %v2533_v6 = vld [vmem:[%s7669_s7 + $0xed8] sm:$0xff] }
 0x52c   : > { %4222 = vmatprep.subr.bf16.mxu1 %v4221_v36  ;;  %v4259_v36 = vpack.c.bf16 %v2528_v14, %v2526_v35  ;;  %v4261_v47 = vpack.c.bf16 %v2533_v6, %v2531_v33  ;;  %v2566_v14 = vld [vmem:[%s7669_s7 + $0xfe0] sm:$0xff]  ;;  %v2568_v33 = vld [vmem:[%s7669_s7 + $0xff0] sm:$0xff] }
 0x52d   : > { %v4299_v6 = vpack.c.bf16 %v2568_v33, %v2566_v14 }
 0x52f   : > { %4224 = vmatpush1.bf16.msra.mxu1 %v4223_v11  ;;  %v2537_v11 = vld [vmem:[%s7669_s7 + $0xef8] sm:$0xff] }
 0x530   : > { %4226 = vmatprep.subr.bf16.mxu1 %v4225_v7  ;;  %v4263_v7 = vpack.c.bf16 %v2532_v10, %v2530_v21  ;;  %v4265_v61 = vpack.c.bf16 %v2537_v11, %v2535_v19 }
 0x533   : > { %4228 = vmatpush1.bf16.msra.mxu1 %v4227_v17  ;;  %v2541_v17 = vld [vmem:[%s7669_s7 + $0xf18] sm:$0xff] }
 0x534   : > { %4230 = vmatprep.subr.bf16.mxu1 %v4229_v25  ;;  %v4267_v25 = vpack.c.bf16 %v2536_v13, %v2534_v53  ;;  %v4269_v28 = vpack.c.bf16 %v2541_v17, %v2539_v16 }
 0x537   : > { %4232 = vmatpush1.bf16.msra.mxu1 %v4231_v30  ;;  %v2545_v30 = vld [vmem:[%s7669_s7 + $0xf38] sm:$0xff] }
 0x538   : > { %4234 = vmatprep.subr.bf16.mxu1 %v4233_v31  ;;  %v4271_v31 = vpack.c.bf16 %v2540_v52, %v2538_v29  ;;  %v4273_v32 = vpack.c.bf16 %v2545_v30, %v2543_v57 }
 0x53b   : > { %4236 = vmatpush1.bf16.msra.mxu1 %v4235_v41  ;;  %v2549_v41 = vld [vmem:[%s7669_s7 + $0xf58] sm:$0xff] }
 0x53c   : > { %4238 = vmatprep.subr.bf16.mxu1 %v4237_v63  ;;  %v4275_v63 = vpack.c.bf16 %v2544_v38, %v2542_v0  ;;  %v4277_v43 = vpack.c.bf16 %v2549_v41, %v2547_v5 }
 0x53e   : > { %3137 = vmatmul.mubr.f32.vlgmr.msra.gmra.mrb[8].mxu1 %v6491_v50  ;;  %v2521_v50 = vld [vmem:[%s7669_s7 + $0xe78] sm:$0xff] }
 0x53f   : > { %4240 = vmatpush1.bf16.msra.mxu1 %v4239_v51  ;;  %3207 = vmatprep.mubr.f32.mxu1 %v6494_v26  ;;  %v4247_v26 = vpack.c.bf16 %v2516_v54, %v2514_v60  ;;  %v4249_v3 = vpack.c.bf16 %v2521_v50, %v2519_v23  ;;  %v2553_v51 = vld [vmem:[%s7669_s7 + $0xf78] sm:$0xff]  ;;  %v2554_v54 = vld [vmem:[%s7669_s7 + $0xf80] sm:$0xff]  ;;  %v2556_v23 = vld [vmem:[%s7669_s7 + $0xf90] sm:$0xff] }
 0x540   : > { %4242 = vmatprep.subr.bf16.mxu1 %v4241_v4  ;;  %v4279_v4 = vpack.c.bf16 %v2548_v37, %v2546_v45  ;;  %v4281_v56 = vpack.c.bf16 %v2553_v51, %v2551_v42  ;;  %v2559_v50 = vld [vmem:[%s7669_s7 + $0xfa8] sm:$0xff] }
 0x543   : > { %4244 = vmatpush1.bf16.msra.mxu1 %v4243_v49  ;;  %v2557_v49 = vld [vmem:[%s7669_s7 + $0xf98] sm:$0xff] }
 0x544   : > { %4246 = vmatprep.subr.bf16.mxu1 %v4245_v12  ;;  %v4283_v12 = vpack.c.bf16 %v2552_v8, %v2550_v9  ;;  %v4285_v60 = vpack.c.bf16 %v2557_v49, %v2555_v58 }
 0x547   : > { %4248 = vmatpush1.bf16.msra.mxu1 %v4247_v26  ;;  %v2561_v26 = vld [vmem:[%s7669_s7 + $0xfb8] sm:$0xff] }
 0x548   : > { %4250 = vmatprep.subr.bf16.mxu1 %v4249_v3  ;;  %v4287_v3 = vpack.c.bf16 %v2556_v23, %v2554_v54  ;;  %v4289_v18 = vpack.c.bf16 %v2561_v26, %v2559_v50 }
 0x54b   : > { %4252 = vmatpush1.bf16.msra.mxu1 %v4251_v27  ;;  %v2565_v27 = vld [vmem:[%s7669_s7 + $0xfd8] sm:$0xff] }
 0x54c   : > { %4254 = vmatprep.subr.bf16.mxu1 %v4253_v20  ;;  %v4291_v20 = vpack.c.bf16 %v2560_v39, %v2558_v15  ;;  %v4293_v24 = vpack.c.bf16 %v2565_v27, %v2563_v59 }
 0x54f   : > { %4256 = vmatpush1.bf16.msra.mxu1 %v4255_v62  ;;  %v2569_v62 = vld [vmem:[%s7669_s7 + $0xff8] sm:$0xff] }
 0x550   : > { %4258 = vmatprep.subr.bf16.mxu1 %v4257_v1  ;;  %v4295_v1 = vpack.c.bf16 %v2564_v55, %v2562_v44  ;;  %v4297_v35 = vpack.c.bf16 %v2569_v62, %v2567_v34 }
 0x553   : > { %4260 = vmatpush1.bf16.msra.mxu1 %v4259_v36  ;;  %v3214_v36 = vld [vmem:[%s7671_s9] sm:$0x3] }
 0x554   : > { %4262 = vmatprep.subr.bf16.mxu1 %v4261_v47  ;;  %v3219_v47 = vrot.slane %v3214_v36, %v4768_v46  ;;  %v3223_v10 = vrot.slane %v3214_v36, %v4776_v48 }
 0x557   : > { %4264 = vmatpush1.bf16.msra.mxu1 %v4263_v7 }
 0x558   : > { %4266 = vmatprep.subr.bf16.mxu1 %v4265_v61 }
 0x55b   : > { %4268 = vmatpush1.bf16.msra.mxu1 %v4267_v25 }
 0x55c   : > { %4270 = vmatprep.subr.bf16.mxu1 %v4269_v28 }
 0x55f   : > { %4272 = vmatpush1.bf16.msra.mxu1 %v4271_v31 }
 0x560   : > { %4274 = vmatprep.subr.bf16.mxu1 %v4273_v32 }
 0x563   : > { %4276 = vmatpush1.bf16.msra.mxu1 %v4275_v63 }
 0x564   : > { %4278 = vmatprep.subr.bf16.mxu1 %v4277_v43 }
 0x567   : > { %4280 = vmatpush1.bf16.msra.mxu1 %v4279_v4 }
 0x568   : > { %4282 = vmatprep.subr.bf16.mxu1 %v4281_v56 }
 0x56b   : > { %4284 = vmatpush1.bf16.msra.mxu1 %v4283_v12 }
 0x56c   : > { %4286 = vmatprep.subr.bf16.mxu1 %v4285_v60 }
 0x56f   : > { %4288 = vmatpush1.bf16.msra.mxu1 %v4287_v3 }
 0x570   : > { %4290 = vmatprep.subr.bf16.mxu1 %v4289_v18 }
 0x573   : > { %4292 = vmatpush1.bf16.msra.mxu1 %v4291_v20 }
 0x574   : > { %4294 = vmatprep.subr.bf16.mxu1 %v4293_v24 }
 0x577   : > { %4296 = vmatpush1.bf16.msra.mxu1 %v4295_v1 }
 0x578   : > { %4298 = vmatprep.subr.bf16.mxu1 %v4297_v35 }
 0x57b   : > { %4300 = vmatpush1.bf16.msra.mxu1 %v4299_v6 }
 0x57e   : > { %3208 = vmatmul.mubr.f32.vlgmr.msra.gmra.mrb[8].mxu1 %v6499_v2 }
 0x651   : > { %v3209_v21 = vpop.f32.mrb[8].mxu1 }
 0x652   : > { %v4302_v19 = vadd.f32 %v3209_v21, %v7112_v22  ;;  %v3211_v11 = vpop.f32.mrb[9].mxu1 }
 0x653   : > { %v4304_v7 = vadd.f32 %v3211_v11, %v7115_v40 }
 0x654   : > { %v3226_v61 = vadd.f32 %v4302_v19, %v3219_v47 }
 0x655   : > { %v3227_v53 = vadd.f32 %v4304_v7, %v3223_v10 }
 0x656   : > { %vm3228_vm2 = vcmp.gt.f32.partialorder %v3226_v61, 0.0  ;;  %v3230_v2 = vmul.f32 0.01, %v3226_v61 }
 0x657   : > { %vm3229_vm3 = vcmp.gt.f32.partialorder %v3227_v53, 0.0  ;;  %v3231_v13 = vmul.f32 0.01, %v3227_v53 }
 0x658   : > { %v3232_v46 = vsel %vm3228_vm2, %v3226_v61, %v3230_v2 }
 0x659   : > { %v3233_v16 = vsel %vm3229_vm3, %v3227_v53, %v3231_v13 }
 0x65a   : > { %v3236_v17 = vcombine.low %v3232_v46, %v3233_v16 }
 0x65c   : > { %3238 = vst [vmem:[%s363_s25] sm:$0xff] %v3236_v17 }
 0x65d   : > { %4381 = shalt.err (!%p4378_p3)
}
 0x65e   : > { %s4382_s30 = scalar_lea.hbm %s7620_s28, 128  ;;  %s4386_s21 = scalar_lea.hbm %s7672_s10, 256 }
 0x65f   : > { %p4383_p4 = scmp.ne.s32.totalorder %s7620_s28, %s4382_s30  ;;  %p4387_p9 = scmp.lt.u32.totalorder %s7620_s28, %s7672_s10 }
 0x660   : > { %p4388_p10 = scmp.lt.u32.totalorder %s4386_s21, %s4382_s30  ;;  %p4390_p12 = scmp.lt.u32.totalorder %s4382_s30, %s7620_s28 }
 0x661   : > { %p4384_p7 = pnand %p4383_p4, %p4527_p5 }
 0x662   : > { %p4389_p11 = por %p4388_p10, %p4387_p9 }
 0x663   : > { %p4385_p8 = pneg %p4384_p7 }
 0x664   : > { %p4391_p13 = por %p4390_p12, %p4389_p11 }
 0x666   : > { %p4392_p0 = pnand %p4391_p13, %p4385_p8 }
 0x668   : > { %4395 = shalt.err (!%p4392_p0)
}
 0x669   : > { %4325 = dma.vmem_to_hbm [thread:$0]  (%p4527_p5), %s7622_s18, 128, %s7620_s28, %s3240_s2  }
 0x66a PF: > { %p4331_p1 = scmp.ge.s32.totalorder %s4430_s16, 2  ;;  %s3266_s27 = sand.u32 1, %s4418_s13  }
 0x66b   : > { %s3267_s22 = scalar_lea.sflag [#allocation3], %s3266_s27 }
 0x66c   : > { %p4328_p2 = pnand %p4331_p1, %p4531_p6 }
 0x66e   : > { %4413 = dma.done.wait (!%p4328_p2), %s3267_s22, 128  }
 0x66f   : > { %4415 = vsyncadd (!%p4328_p2), %s3267_s22, 4294967168  ;;  %s7678_s17 = sld [smem:[#allocation5_spill]]  ;;  %p20_p3 = scmp.ge.s32.totalorder %s4514_s19, 4  }
 0x670   : > { %s7679_s13 = smov %s4422_s14  ;;  %s7680_s14 = smov %s4426_s15 }
 0x671   : > { %s7682_s16 = smov %s4514_s19  ;;  %22 = sbr.rel (!%p20_p3) target bundleno = 5 (0x5), region = 101 }
 0x675   : > { %s7681_s15 = smov %s7678_s17 }
 0x678   :  { %3272 = vsyncpa [#allocation3], 1 }
 0x679   :  { %3274 = vsyncpa [#allocation3 + $0x1], 1 }

</bundles_post_ra>
